<compile_context>
chip_gen: v7x
topology: tpu7x:2x2x1
jax: 0.10.0
libtpu: 0.0.40
codegen_flags: <defaults>
</compile_context>

<pallas_src>
import functools

import jax
import jax.numpy as jnp
from jax.experimental import pallas as pl
from jax.experimental.pallas import tpu as pltpu

EPS = 1e-5
ACT_DTYPE = jnp.bfloat16      # activations & weights in HBM (halves traffic, MXU-native)
ACC_DTYPE = jnp.float32       # accumulation / BN / epilogues
LANE = 128                    # channel padding target (lane-dense stores)
VMEM_LIMIT = 40 * 1024 * 1024         # leaves headroom on v7x (64 MiB) and v5e/v6e (128 MiB)
WEIGHT_RESIDENT_BYTES = 6 * 1024 * 1024  # largest 1x1 weight in the default net ~3.3 MB bf16


# --------------------------------------------------------------------------- helpers

def _round_up(x, m):
    return (x + m - 1) // m * m


def _cpad(c):
    return _round_up(c, LANE)


def _row_tiling(m, target=256):
    """(padded_rows, row_tile) for the sublane (row) dim of the matmul."""
    if m <= target:
        return m, m                      # single full block (no 8-divisibility constraint)
    mp = _round_up(m, 8)
    t = (target // 8) * 8
    while mp % t != 0:
        t -= 8
    return mp, t


def _cparams(*sems):
    return pltpu.CompilerParams(dimension_semantics=tuple(sems),
                                vmem_limit_bytes=VMEM_LIMIT)


# --------------------------------------------------- weight-resident 1x1-conv matmul kernel

def _conv1x1_kernel(x_ref, w_ref, s_ref, b_ref, *rest,
                    relu6, has_gate, has_res, emit_energy, inv_hw):
    idx = 0
    g_ref = rest[idx] if has_gate else None
    idx += int(has_gate)
    r_ref = rest[idx] if has_res else None
    idx += int(has_res)
    o_ref = rest[idx]
    e_ref = rest[idx + 1] if emit_energy else None

    x = x_ref[0]
    if has_gate:
        # per-(sample, input-channel) energy gate fused on the K dim
        x = (x.astype(ACC_DTYPE) * g_ref[0]).astype(x_ref.dtype)
    acc = jnp.dot(x, w_ref[...], preferred_element_type=ACC_DTYPE)
    acc = acc * s_ref[...] + b_ref[...]
    if relu6:
        acc = jnp.clip(acc, 0.0, 6.0)
    if has_res:
        acc = acc + r_ref[0].astype(ACC_DTYPE)
    o_ref[0] = acc.astype(o_ref.dtype)
    if emit_energy:
        # partial mean(y^2) for this row tile; padded to 8 sublanes to keep the block legal
        part = jnp.sum(acc * acc, axis=0, keepdims=True) * inv_hw          # (1, tn)
        e_ref[0, 0] = jnp.broadcast_to(part, (8, part.shape[1]))


def conv1x1_bn(x, w, scale, bias, *, relu6=False, residual=None, gate=None,
               emit_energy=False, out_dtype=ACT_DTYPE, row_tile=256):
    """Pointwise conv + folded-BN affine (+ReLU6) (+K-dim gate) (+residual) (+energy epilogue).

    The whole (K, N) weight stays VMEM-resident (single block, no K grid axis) whenever it
    fits the budget; otherwise only N is tiled and the weight block is invariant across the
    row sweep, so activations are read from HBM exactly once either way.

    x: (B, H, W, K) bf16     w: (K, N) bf16 (N multiple of 128)
    scale, bias: (N,) f32    gate: (B, 1, K) f32      residual: (B, H, W, N) bf16
    """
    B, H, W, K = x.shape
    K2, N = w.shape
    assert K == K2 and N % LANE == 0
    M = H * W
    Mp, tm = _row_tiling(M, row_tile)
    tn = N if (K * N * 2 <= WEIGHT_RESIDENT_BYTES) else (256 if N % 256 == 0 else LANE)
    nj, ni = N // tn, Mp // tm

    x3 = x.reshape(B, M, K)
    if Mp != M:
        x3 = jnp.pad(x3, ((0, 0), (0, Mp - M), (0, 0)))

    args = [x3, w,
            scale.reshape(1, N).astype(ACC_DTYPE),
            bias.reshape(1, N).astype(ACC_DTYPE)]
    in_specs = [
        pl.BlockSpec((1, tm, K), lambda b, j, i: (b, i, 0)),
        pl.BlockSpec((K, tn), lambda b, j, i: (0, j)),     # invariant across the row sweep
        pl.BlockSpec((1, tn), lambda b, j, i: (0, j)),
        pl.BlockSpec((1, tn), lambda b, j, i: (0, j)),
    ]
    if gate is not None:
        args.append(gate.astype(ACC_DTYPE))
        in_specs.append(pl.BlockSpec((1, 1, K), lambda b, j, i: (b, 0, 0)))
    if residual is not None:
        r3 = residual.reshape(B, M, N)
        if Mp != M:
            r3 = jnp.pad(r3, ((0, 0), (0, Mp - M), (0, 0)))
        args.append(r3)
        in_specs.append(pl.BlockSpec((1, tm, tn), lambda b, j, i: (b, i, j)))

    out_shape = jax.ShapeDtypeStruct((B, Mp, N), out_dtype)
    out_specs = pl.BlockSpec((1, tm, tn), lambda b, j, i: (b, i, j))
    if emit_energy:
        out_shape = (out_shape, jax.ShapeDtypeStruct((B, ni, 8, N), ACC_DTYPE))
        out_specs = (out_specs, pl.BlockSpec((1, 1, 8, tn), lambda b, j, i: (b, i, 0, j)))

    kern = functools.partial(_conv1x1_kernel, relu6=relu6, has_gate=gate is not None,
                             has_res=residual is not None, emit_energy=emit_energy,
                             inv_hw=1.0 / M)
    outs = pl.pallas_call(
        kern,
        out_shape=out_shape,
        grid=(B, nj, ni),
        in_specs=in_specs,
        out_specs=out_specs,
        compiler_params=_cparams("parallel", "parallel", "parallel"),
    )(*args)

    if emit_energy:
        out, epart = outs
    else:
        out = outs
    if Mp != M:
        out = out[:, :M, :]
    out = out.reshape(B, H, W, N)
    if not emit_energy:
        return out
    # tiny (B, ni, N) reduction + sigmoid stays in XLA
    gate_out = jax.nn.sigmoid(jnp.sum(epart[:, :, 0, :], axis=1, keepdims=True))   # (B, 1, N)
    return out, gate_out


# ------------------------------------------------------------------- depthwise 3x3 kernel

def _dw3x3_kernel(x_ref, w_ref, s_ref, b_ref, *rest, H, W, has_gate):
    if has_gate:
        g_ref, o_ref, scr_ref = rest
    else:
        o_ref, scr_ref = rest
    w = w_ref[...].astype(ACC_DTYPE)                         # (9, C), hoisted out of tap loop
    if has_gate:
        w = w * g_ref[0]                                     # fold per-(sample,channel) gate
    s = s_ref[...]
    b = b_ref[...]
    # Zero halo built in VMEM (replaces the former HBM-side jnp.pad pass).  Interior sits at
    # (row 1, col 8) so the column offset of the store stays sublane-aligned.
    scr_ref[...] = jnp.zeros_like(scr_ref)
    scr_ref[1:H + 1, 8:8 + W, :] = x_ref[0]
    acc = jnp.zeros((H, W, w.shape[1]), ACC_DTYPE)
    for dy in range(3):
        for dx in range(3):
            # TODO(synk): dx=0/2 slices are sublane-misaligned (VMEM retile per tap); could be
            #             replaced with pltpu.roll + edge masks to ride the idle XLU slot.
            patch = scr_ref[dy:dy + H, 7 + dx:7 + dx + W, :].astype(ACC_DTYPE)
            acc = acc + patch * w[dy * 3 + dx]
    acc = jnp.clip(acc * s + b, 0.0, 6.0)
    o_ref[0] = acc.astype(o_ref.dtype)


def depthwise3x3_bn_relu6(x, w9c, scale, bias, gate=None):
    """Depthwise 3x3 (stride 1, pad 1) + BN affine + ReLU6 (+fused per-channel input gate)."""
    B, H, W, C = x.shape
    assert C % LANE == 0
    has_gate = gate is not None
    args = [x, w9c,
            scale.reshape(1, C).astype(ACC_DTYPE),
            bias.reshape(1, C).astype(ACC_DTYPE)]
    in_specs = [
        pl.BlockSpec((1, H, W, LANE), lambda b, c: (b, 0, 0, c)),
        pl.BlockSpec((9, LANE), lambda b, c: (0, c)),
        pl.BlockSpec((1, LANE), lambda b, c: (0, c)),
        pl.BlockSpec((1, LANE), lambda b, c: (0, c)),
    ]
    if has_gate:
        args.append(gate.astype(ACC_DTYPE))
        in_specs.append(pl.BlockSpec((1, 1, LANE), lambda b, c: (b, 0, c)))
    kern = functools.partial(_dw3x3_kernel, H=H, W=W, has_gate=has_gate)
    # TODO(synk): at large resolutions (e.g. 112x112) the whole-plane block should be row-tiled
    #             (halo via manual DMA) to stay inside v7x's 64 MiB VMEM.
    return pl.pallas_call(
        kern,
        out_shape=jax.ShapeDtypeStruct((B, H, W, C), ACT_DTYPE),
        grid=(B, C // LANE),
        in_specs=in_specs,
        out_specs=pl.BlockSpec((1, H, W, LANE), lambda b, c: (b, 0, 0, c)),
        scratch_shapes=[pltpu.VMEM((H + 2, W + 16, LANE), ACT_DTYPE)],
        compiler_params=_cparams("parallel", "parallel"),
    )(*args)


# ------------------------------------------------------------------------- pooling / glue

def _gap_kernel(x_ref, o_ref, *, inv_hw):
    o_ref[0] = jnp.sum(x_ref[0].astype(ACC_DTYPE), axis=0, keepdims=True) * inv_hw


def global_avg_pool(x):
    """adaptive_avg_pool2d(x, 1).reshape(B, C), tiled over (batch, 128-channel) blocks."""
    B, H, W, C = x.shape
    assert C % LANE == 0
    x3 = x.reshape(B, H * W, C)
    kern = functools.partial(_gap_kernel, inv_hw=1.0 / (H * W))
    y = pl.pallas_call(
        kern,
        out_shape=jax.ShapeDtypeStruct((B, 1, C), ACC_DTYPE),
        grid=(B, C // LANE),
        in_specs=[pl.BlockSpec((1, H * W, LANE), lambda b, c: (b, 0, c))],
        out_specs=pl.BlockSpec((1, 1, LANE), lambda b, c: (b, 0, c)),
        compiler_params=_cparams("parallel", "parallel"),
    )(x3)
    return y.reshape(B, C)


def lifting_down(x):
    # TODO(synk): pure layout glue (lazy-wavelet / pixel-unshuffle split) left to XLA; fusing
    #             it into the producing depthwise kernel's output would save one HBM pass.
    B, H, W, C = x.shape
    xr = x.reshape(B, H // 2, 2, W // 2, 2, C)
    parts = [xr[:, :, i, :, j, :] for i in range(2) for j in range(2)]
    return jnp.concatenate(parts, axis=-1)


def apply_gate(x, gate):
    # TODO(synk): rare fallback (only when the first block carries a residual and therefore
    #             needs the gated tensor materialized); plain XLA elementwise.
    B = x.shape[0]
    C = x.shape[-1]
    return (x.astype(ACC_DTYPE) * gate.reshape(B, 1, 1, C)).astype(x.dtype)


# --------------------------------------------------------------------------- parameters

def _make_divisible(v, divisor, min_value=None):
    if min_value is None:
        min_value = divisor
    new_v = max(min_value, int(v + divisor / 2) // divisor * divisor)
    if new_v < 0.9 * v:
        new_v += divisor
    return new_v


class KeyGen:
    def __init__(self, key):
        self.key = key

    def __call__(self):
        self.key, sub = jax.random.split(self.key)
        return sub


def bn_affine(c_real, c_pad):
    gamma = jnp.ones((c_real,), ACC_DTYPE)
    beta = jnp.zeros((c_real,), ACC_DTYPE)
    mean = jnp.zeros((c_real,), ACC_DTYPE)
    var = jnp.ones((c_real,), ACC_DTYPE)
    scale = gamma / jnp.sqrt(var + EPS)
    bias = beta - mean * scale
    scale = jnp.pad(scale, (0, c_pad - c_real), constant_values=1.0)
    bias = jnp.pad(bias, (0, c_pad - c_real))
    return scale, bias


class StemConvBNReLU:
    """Conv2d(3, C, 3, stride=1, pad=1, bias=False) + BN + ReLU6 (im2col + matmul)."""

    def __init__(self, kg, cin, cout_real):
        self.cout = _cpad(cout_real)
        self.k_in = _round_up(9 * cin, 32)        # pad K (27 -> 32) for clean sublane packing
        fan_out = cout_real * 9
        std = (2.0 / fan_out) ** 0.5
        w = std * jax.random.normal(kg(), (9 * cin, cout_real), ACC_DTYPE)
        w = jnp.pad(w, ((0, self.k_in - 9 * cin), (0, self.cout - cout_real)))
        self.w = w.astype(ACT_DTYPE)
        self.scale, self.bias = bn_affine(cout_real, self.cout)

    def __call__(self, x):
        B, H, W, C = x.shape
        xp = jnp.pad(x, ((0, 0), (1, 1), (1, 1), (0, 0)))
        # TODO(synk): the 9-tap im2col stays in XLA because Cin=3 makes it a tiny tensor;
        #             the dominant 1x1 convs never take such a round trip.
        cols = jnp.concatenate(
            [xp[:, dy:dy + H, dx:dx + W, :] for dy in range(3) for dx in range(3)], axis=-1)
        if cols.shape[-1] != self.k_in:
            cols = jnp.pad(cols, ((0, 0), (0, 0), (0, 0), (0, self.k_in - cols.shape[-1])))
        return conv1x1_bn(cols, self.w, self.scale, self.bias, relu6=True)


class DepthwiseBNReLU:
    """Depthwise Conv2d(C, C, 3, stride=1, pad=1, groups=C, bias=False) + BN + ReLU6."""

    def __init__(self, kg, c_real):
        self.c = _cpad(c_real)
        std = (2.0 / 9.0) ** 0.5                      # fan_out = C*9/C
        w = std * jax.random.normal(kg(), (9, c_real), ACC_DTYPE)
        self.w = jnp.pad(w, ((0, 0), (0, self.c - c_real))).astype(ACT_DTYPE)
        self.scale, self.bias = bn_affine(c_real, self.c)

    def __call__(self, x, gate=None):
        return depthwise3x3_bn_relu6(x, self.w, self.scale, self.bias, gate=gate)


class Conv1x1:
    """nn.Conv2d(cin, cout, 1, bias=False), optionally + BatchNorm2d (padded channels)."""

    def __init__(self, kg, cin_pad, cout_real, bn=False):
        self.cout = _cpad(cout_real)
        std = (2.0 / cout_real) ** 0.5                # kaiming fan_out, k=1
        w = std * jax.random.normal(kg(), (cin_pad, cout_real), ACC_DTYPE)
        self.w = jnp.pad(w, ((0, 0), (0, self.cout - cout_real))).astype(ACT_DTYPE)
        if bn:
            self.scale, self.bias = bn_affine(cout_real, self.cout)
        else:
            self.scale = jnp.ones((self.cout,), ACC_DTYPE)
            self.bias = jnp.zeros((self.cout,), ACC_DTYPE)

    def __call__(self, x, relu6=False, residual=None, gate=None, emit_energy=False,
                 out_dtype=ACT_DTYPE):
        return conv1x1_bn(x, self.w, self.scale, self.bias, relu6=relu6, residual=residual,
                          gate=gate, emit_energy=emit_energy, out_dtype=out_dtype)


class InvertedResidualP:
    def __init__(self, kg, inp, oup, stride, expand_ratio):
        assert stride == 1
        hidden = int(round(inp * expand_ratio))
        self.use_res = stride == 1 and inp == oup
        self.expand = Conv1x1(kg, _cpad(inp), hidden, bn=True) if expand_ratio != 1 else None
        self.dw = DepthwiseBNReLU(kg, hidden)
        self.project = Conv1x1(kg, _cpad(hidden), oup, bn=True)

    def __call__(self, x, in_gate=None):
        if in_gate is not None and self.use_res:
            x = apply_gate(x, in_gate)        # residual needs the gated tensor materialized
            in_gate = None
        y = x
        if self.expand is not None:
            y = self.expand(y, relu6=True, gate=in_gate)
            in_gate = None
        y = self.dw(y, gate=in_gate)
        res = x if self.use_res else None
        return self.project(y, relu6=False, residual=res)


class InvertedResidualLDWP:
    def __init__(self, kg, inp, oup, stride, expand_ratio):
        assert stride == 1
        hidden = int(round(inp * expand_ratio))
        # NOTE: mirrors the source; with inp==oup the residual would spatially mismatch (the
        # same latent issue exists in the PyTorch module since Lifting_down halves H,W).
        self.use_res = stride == 1 and inp == oup
        self.expand = Conv1x1(kg, _cpad(inp), hidden, bn=True) if expand_ratio != 1 else None
        self.dw = DepthwiseBNReLU(kg, hidden)
        self.reduce4 = Conv1x1(kg, 4 * _cpad(hidden), hidden, bn=False)
        self.project = Conv1x1(kg, _cpad(hidden), oup, bn=True)

    def __call__(self, x, in_gate=None):
        if in_gate is not None and self.use_res:
            x = apply_gate(x, in_gate)
            in_gate = None
        y = x
        if self.expand is not None:
            y = self.expand(y, relu6=True, gate=in_gate)
            in_gate = None
        y = self.dw(y, gate=in_gate)
        y = lifting_down(y)                     # (B, H/2, W/2, 4*Cpad)
        # Energy_attention: the gate comes from reduce4's epilogue (no extra read of y) and is
        # applied on the projection's K dim in-kernel (the gated tensor never hits HBM).
        y, gate = self.reduce4(y, emit_energy=True)
        res = x if self.use_res else None
        return self.project(y, relu6=False, residual=res, gate=gate)


class MobileNetV2Pallas:
    def __init__(self, key, num_classes=1000, width_mult=1.0,
                 inverted_residual_setting=None, round_nearest=8):
        kg = KeyGen(key)
        input_channel = 32
        last_channel = 1280
        if inverted_residual_setting is None:
            inverted_residual_setting = [[1, 16, 1, 1], [6, 24, 2, 2], [6, 32, 3, 2],
                                         [6, 64, 4, 2], [6, 96, 3, 1], [6, 160, 3, 2],
                                         [6, 320, 1, 1]]
        if len(inverted_residual_setting) == 0 or len(inverted_residual_setting[0]) != 4:
            raise ValueError("inverted_residual_setting should be non-empty 4-element lists")
        input_channel = _make_divisible(input_channel * width_mult, round_nearest)
        self.last_channel = _make_divisible(last_channel * max(1.0, width_mult), round_nearest)

        self.stem = StemConvBNReLU(kg, 3, input_channel)
        self.stem_reduce = Conv1x1(kg, 4 * _cpad(input_channel), input_channel, bn=False)
        blocks = []
        for t, c, n, s in inverted_residual_setting:
            output_channel = _make_divisible(c * width_mult, round_nearest)
            for i in range(n):
                stride = s if i == 0 else 1
                if stride == 1:
                    blocks.append(InvertedResidualP(kg, input_channel, output_channel, 1, t))
                else:
                    blocks.append(InvertedResidualLDWP(kg, input_channel, output_channel, 1, t))
                input_channel = output_channel
        self.blocks = blocks
        self.head = Conv1x1(kg, _cpad(input_channel), self.last_channel, bn=True)

        self.num_classes = num_classes
        ncp = _cpad(num_classes)
        lcp = _cpad(self.last_channel)
        fc_w = 0.01 * jax.random.normal(kg(), (self.last_channel, num_classes), ACC_DTYPE)
        self.fc_w = jnp.pad(fc_w, ((0, lcp - self.last_channel),
                                   (0, ncp - num_classes))).astype(ACT_DTYPE)
        self.fc_scale = jnp.ones((ncp,), ACC_DTYPE)
        self.fc_bias = jnp.zeros((ncp,), ACC_DTYPE)

    def __call__(self, x_nchw):
        x = jnp.transpose(x_nchw, (0, 2, 3, 1)).astype(ACT_DTYPE)      # NCHW -> NHWC
        x = self.stem(x)
        x = lifting_down(x)
        # stem_reduce emits the Energy_attention gate from its epilogue; the gate is applied
        # fused inside the first consumer (expand conv or depthwise taps of blocks[0]).
        x, gate = self.stem_reduce(x, emit_energy=True)
        for idx, blk in enumerate(self.blocks):
            x = blk(x, in_gate=gate if idx == 0 else None)
        x = self.head(x, relu6=True)
        pooled = global_avg_pool(x)                                    # (B, last_channel_pad) f32
        B = pooled.shape[0]
        # Dropout(0.2) is identity in eval mode; classifier as ONE (B, C) x (C, ncls) matmul.
        logits = conv1x1_bn(pooled.reshape(1, 1, B, -1).astype(ACT_DTYPE),
                            self.fc_w, self.fc_scale, self.fc_bias,
                            relu6=False, out_dtype=ACC_DTYPE)
        return logits.reshape(B, -1)[:, :self.num_classes]


if __name__ == "__main__":
    key = jax.random.PRNGKey(0)
    pkey, xkey = jax.random.split(key)
    # Small but structurally faithful configuration (module supports custom settings).
    model = MobileNetV2Pallas(
        pkey,
        num_classes=10,
        width_mult=1.0,
        inverted_residual_setting=[[1, 16, 1, 1], [6, 24, 2, 2], [6, 32, 2, 2]],
    )
    x = jax.random.normal(xkey, (2, 3, 16, 16), jnp.float32)  # NCHW, like the PyTorch input
    fwd = jax.jit(model.__call__)
    out = jax.block_until_ready(fwd(x))
    assert out.shape == (2, 10), out.shape
    assert bool(jnp.all(jnp.isfinite(out)))
    print("KERNEL_OK")
</pallas_src>

<mosaic_0001>
module attributes {stable_mosaic.version = 11 : i64} {
  func.func @_conv1x1_kernel(%arg0: i32, %arg1: i32, %arg2: i32, %arg3: memref<1x256x32xbf16, #tpu.memory_space<vmem>>, %arg4: memref<32x128xbf16, #tpu.memory_space<vmem>>, %arg5: memref<1x128xf32, #tpu.memory_space<vmem>>, %arg6: memref<1x128xf32, #tpu.memory_space<vmem>>, %arg7: memref<1x256x128xbf16, #tpu.memory_space<vmem>>) attributes {dimension_semantics = [#tpu.dimension_semantics<parallel>, #tpu.dimension_semantics<parallel>, #tpu.dimension_semantics<parallel>], iteration_bounds = array<i64: 2, 1, 1>, scalar_prefetch = 0 : i64, scratch_operands = 0 : i64, tpu.core_type = #tpu.core_type<tc>, window_params = [{transform_indices = @transform_0, window_bounds = array<i64: 1, 256, 32>}, {transform_indices = @transform_1, window_bounds = array<i64: 32, 128>}, {transform_indices = @transform_2, window_bounds = array<i64: 1, 128>}, {transform_indices = @transform_3, window_bounds = array<i64: 1, 128>}, {transform_indices = @transform_4, window_bounds = array<i64: 1, 256, 128>}]} {
    %c0 = arith.constant 0 : index
    %c0_0 = arith.constant 0 : index
    %c0_1 = arith.constant 0 : index
    %0 = vector.load %arg3[%c0, %c0_0, %c0_1] : memref<1x256x32xbf16, #tpu.memory_space<vmem>>, vector<1x256x32xbf16>
    %1 = vector.shape_cast %0 : vector<1x256x32xbf16> to vector<256x32xbf16>
    %c0_2 = arith.constant 0 : index
    %c0_3 = arith.constant 0 : index
    %2 = vector.load %arg4[%c0_2, %c0_3] : memref<32x128xbf16, #tpu.memory_space<vmem>>, vector<32x128xbf16>
    %cst = arith.constant dense<0.000000e+00> : vector<256x128xf32>
    %3 = tpu.matmul %1, %2, %cst {dimension_numbers = #tpu.dot_dimension_numbers<[1], [0], [0], [1], [0, 0, 1, 1], [], []>} : vector<256x32xbf16>, vector<32x128xbf16>, vector<256x128xf32> -> vector<256x128xf32>
    %c0_4 = arith.constant 0 : index
    %c0_5 = arith.constant 0 : index
    %4 = vector.load %arg5[%c0_4, %c0_5] : memref<1x128xf32, #tpu.memory_space<vmem>>, vector<1x128xf32>
    %5 = vector.broadcast %4 : vector<1x128xf32> to vector<256x128xf32>
    %6 = arith.mulf %3, %5 : vector<256x128xf32>
    %c0_6 = arith.constant 0 : index
    %c0_7 = arith.constant 0 : index
    %7 = vector.load %arg6[%c0_6, %c0_7] : memref<1x128xf32, #tpu.memory_space<vmem>>, vector<1x128xf32>
    %8 = vector.broadcast %7 : vector<1x128xf32> to vector<256x128xf32>
    %9 = arith.addf %6, %8 : vector<256x128xf32>
    %cst_8 = arith.constant 0.000000e+00 : f32
    %cst_9 = arith.constant 6.000000e+00 : f32
    %10 = vector.broadcast %cst_8 : f32 to vector<256x128xf32>
    %11 = arith.maximumf %10, %9 : vector<256x128xf32>
    %12 = vector.broadcast %cst_9 : f32 to vector<256x128xf32>
    %13 = arith.minimumf %12, %11 : vector<256x128xf32>
    %14 = arith.truncf %13 : vector<256x128xf32> to vector<256x128xbf16>
    %c0_10 = arith.constant 0 : index
    %c0_11 = arith.constant 0 : index
    %c0_12 = arith.constant 0 : index
    %15 = vector.load %arg7[%c0_10, %c0_11, %c0_12] : memref<1x256x128xbf16, #tpu.memory_space<vmem>>, vector<1x256x128xbf16>
    %16 = vector.shape_cast %15 : vector<1x256x128xbf16> to vector<256x128xbf16>
    %17 = vector.shape_cast %14 : vector<256x128xbf16> to vector<1x256x128xbf16>
    tpu.vector_store %arg7[%c0_10, %c0_11, %c0_12], %17 {strides = array<i32>} : memref<1x256x128xbf16, #tpu.memory_space<vmem>>, vector<1x256x128xbf16>,
    return
  }
  func.func @transform_0(%arg0: i32, %arg1: i32, %arg2: i32) -> (i32, i32, i32) {
    %c0_i32 = arith.constant 0 : i32
    %c0_i32_0 = arith.constant 0 : i32
    return %arg0, %arg2, %c0_i32 : i32, i32, i32
  }
  func.func @transform_1(%arg0: i32, %arg1: i32, %arg2: i32) -> (i32, i32) {
    %c0_i32 = arith.constant 0 : i32
    %c0_i32_0 = arith.constant 0 : i32
    return %c0_i32, %arg1 : i32, i32
  }
  func.func @transform_2(%arg0: i32, %arg1: i32, %arg2: i32) -> (i32, i32) {
    %c0_i32 = arith.constant 0 : i32
    %c0_i32_0 = arith.constant 0 : i32
    return %c0_i32, %arg1 : i32, i32
  }
  func.func @transform_3(%arg0: i32, %arg1: i32, %arg2: i32) -> (i32, i32) {
    %c0_i32 = arith.constant 0 : i32
    %c0_i32_0 = arith.constant 0 : i32
    return %c0_i32, %arg1 : i32, i32
  }
  func.func @transform_4(%arg0: i32, %arg1: i32, %arg2: i32) -> (i32, i32, i32) {
    %c0_i32 = arith.constant 0 : i32
    return %arg0, %arg2, %arg1 : i32, i32, i32
  }
}

module attributes {stable_mosaic.version = 11 : i64} {
  func.func @_conv1x1_kernel(%arg0: i32, %arg1: i32, %arg2: i32, %arg3: memref<1x64x512xbf16, #tpu.memory_space<vmem>>, %arg4: memref<512x128xbf16, #tpu.memory_space<vmem>>, %arg5: memref<1x128xf32, #tpu.memory_space<vmem>>, %arg6: memref<1x128xf32, #tpu.memory_space<vmem>>, %arg7: memref<1x64x128xbf16, #tpu.memory_space<vmem>>, %arg8: memref<1x1x8x128xf32, #tpu.memory_space<vmem>>) attributes {dimension_semantics = [#tpu.dimension_semantics<parallel>, #tpu.dimension_semantics<parallel>, #tpu.dimension_semantics<parallel>], iteration_bounds = array<i64: 2, 1, 1>, scalar_prefetch = 0 : i64, scratch_operands = 0 : i64, tpu.core_type = #tpu.core_type<tc>, window_params = [{transform_indices = @transform_0, window_bounds = array<i64: 1, 64, 512>}, {transform_indices = @transform_1, window_bounds = array<i64: 512, 128>}, {transform_indices = @transform_2, window_bounds = array<i64: 1, 128>}, {transform_indices = @transform_3, window_bounds = array<i64: 1, 128>}, {transform_indices = @transform_4, window_bounds = array<i64: 1, 64, 128>}, {transform_indices = @transform_5, window_bounds = array<i64: 1, 1, 8, 128>}]} {
    %c0 = arith.constant 0 : index
    %c0_0 = arith.constant 0 : index
    %c0_1 = arith.constant 0 : index
    %0 = vector.load %arg3[%c0, %c0_0, %c0_1] : memref<1x64x512xbf16, #tpu.memory_space<vmem>>, vector<1x64x512xbf16>
    %1 = vector.shape_cast %0 : vector<1x64x512xbf16> to vector<64x512xbf16>
    %c0_2 = arith.constant 0 : index
    %c0_3 = arith.constant 0 : index
    %2 = vector.load %arg4[%c0_2, %c0_3] : memref<512x128xbf16, #tpu.memory_space<vmem>>, vector<512x128xbf16>
    %cst = arith.constant dense<0.000000e+00> : vector<64x128xf32>
    %3 = tpu.matmul %1, %2, %cst {dimension_numbers = #tpu.dot_dimension_numbers<[1], [0], [0], [1], [0, 0, 1, 1], [], []>} : vector<64x512xbf16>, vector<512x128xbf16>, vector<64x128xf32> -> vector<64x128xf32>
    %c0_4 = arith.constant 0 : index
    %c0_5 = arith.constant 0 : index
    %4 = vector.load %arg5[%c0_4, %c0_5] : memref<1x128xf32, #tpu.memory_space<vmem>>, vector<1x128xf32>
    %5 = vector.broadcast %4 : vector<1x128xf32> to vector<64x128xf32>
    %6 = arith.mulf %3, %5 : vector<64x128xf32>
    %c0_6 = arith.constant 0 : index
    %c0_7 = arith.constant 0 : index
    %7 = vector.load %arg6[%c0_6, %c0_7] : memref<1x128xf32, #tpu.memory_space<vmem>>, vector<1x128xf32>
    %8 = vector.broadcast %7 : vector<1x128xf32> to vector<64x128xf32>
    %9 = arith.addf %6, %8 : vector<64x128xf32>
    %10 = arith.truncf %9 : vector<64x128xf32> to vector<64x128xbf16>
    %c0_8 = arith.constant 0 : index
    %c0_9 = arith.constant 0 : index
    %c0_10 = arith.constant 0 : index
    %11 = vector.load %arg7[%c0_8, %c0_9, %c0_10] : memref<1x64x128xbf16, #tpu.memory_space<vmem>>, vector<1x64x128xbf16>
    %12 = vector.shape_cast %11 : vector<1x64x128xbf16> to vector<64x128xbf16>
    %13 = vector.shape_cast %10 : vector<64x128xbf16> to vector<1x64x128xbf16>
    tpu.vector_store %arg7[%c0_8, %c0_9, %c0_10], %13 {strides = array<i32>} : memref<1x64x128xbf16, #tpu.memory_space<vmem>>, vector<1x64x128xbf16>,
    %14 = arith.mulf %9, %9 : vector<64x128xf32>
    %cst_11 = arith.constant dense<0.000000e+00> : vector<128xf32>
    %15 = vector.multi_reduction <add>, %14, %cst_11 [0] : vector<64x128xf32> to vector<128xf32>
    %16 = vector.shape_cast %15 : vector<128xf32> to vector<1x128xf32>
    %cst_12 = arith.constant 1.562500e-02 : f32
    %17 = vector.broadcast %cst_12 : f32 to vector<1x128xf32>
    %18 = arith.mulf %16, %17 : vector<1x128xf32>
    %19 = vector.shape_cast %18 : vector<1x128xf32> to vector<1x128xf32>
    %20 = vector.broadcast %19 : vector<1x128xf32> to vector<8x128xf32>
    %c0_13 = arith.constant 0 : index
    %c0_14 = arith.constant 0 : index
    %c0_15 = arith.constant 0 : index
    %c0_16 = arith.constant 0 : index
    %21 = vector.load %arg8[%c0_13, %c0_14, %c0_15, %c0_16] : memref<1x1x8x128xf32, #tpu.memory_space<vmem>>, vector<1x1x8x128xf32>
    %22 = vector.shape_cast %21 : vector<1x1x8x128xf32> to vector<8x128xf32>
    %23 = vector.shape_cast %20 : vector<8x128xf32> to vector<1x1x8x128xf32>
    tpu.vector_store %arg8[%c0_13, %c0_14, %c0_15, %c0_16], %23 {strides = array<i32>} : memref<1x1x8x128xf32, #tpu.memory_space<vmem>>, vector<1x1x8x128xf32>,
    return
  }
  func.func @transform_0(%arg0: i32, %arg1: i32, %arg2: i32) -> (i32, i32, i32) {
    %c0_i32 = arith.constant 0 : i32
    %c0_i32_0 = arith.constant 0 : i32
    return %arg0, %arg2, %c0_i32 : i32, i32, i32
  }
  func.func @transform_1(%arg0: i32, %arg1: i32, %arg2: i32) -> (i32, i32) {
    %c0_i32 = arith.constant 0 : i32
    %c0_i32_0 = arith.constant 0 : i32
    return %c0_i32, %arg1 : i32, i32
  }
  func.func @transform_2(%arg0: i32, %arg1: i32, %arg2: i32) -> (i32, i32) {
    %c0_i32 = arith.constant 0 : i32
    %c0_i32_0 = arith.constant 0 : i32
    return %c0_i32, %arg1 : i32, i32
  }
  func.func @transform_3(%arg0: i32, %arg1: i32, %arg2: i32) -> (i32, i32) {
    %c0_i32 = arith.constant 0 : i32
    %c0_i32_0 = arith.constant 0 : i32
    return %c0_i32, %arg1 : i32, i32
  }
  func.func @transform_4(%arg0: i32, %arg1: i32, %arg2: i32) -> (i32, i32, i32) {
    %c0_i32 = arith.constant 0 : i32
    return %arg0, %arg2, %arg1 : i32, i32, i32
  }
  func.func @transform_5(%arg0: i32, %arg1: i32, %arg2: i32) -> (i32, i32, i32, i32) {
    %c0_i32 = arith.constant 0 : i32
    %c0_i32_0 = arith.constant 0 : i32
    return %arg0, %arg2, %c0_i32, %arg1 : i32, i32, i32, i32
  }
}

module attributes {stable_mosaic.version = 11 : i64} {
  func.func @_conv1x1_kernel(%arg0: i32, %arg1: i32, %arg2: i32, %arg3: memref<1x64x128xbf16, #tpu.memory_space<vmem>>, %arg4: memref<128x128xbf16, #tpu.memory_space<vmem>>, %arg5: memref<1x128xf32, #tpu.memory_space<vmem>>, %arg6: memref<1x128xf32, #tpu.memory_space<vmem>>, %arg7: memref<1x64x128xbf16, #tpu.memory_space<vmem>>) attributes {dimension_semantics = [#tpu.dimension_semantics<parallel>, #tpu.dimension_semantics<parallel>, #tpu.dimension_semantics<parallel>], iteration_bounds = array<i64: 2, 1, 1>, scalar_prefetch = 0 : i64, scratch_operands = 0 : i64, tpu.core_type = #tpu.core_type<tc>, window_params = [{transform_indices = @transform_0, window_bounds = array<i64: 1, 64, 128>}, {transform_indices = @transform_1, window_bounds = array<i64: 128, 128>}, {transform_indices = @transform_2, window_bounds = array<i64: 1, 128>}, {transform_indices = @transform_3, window_bounds = array<i64: 1, 128>}, {transform_indices = @transform_4, window_bounds = array<i64: 1, 64, 128>}]} {
    %c0 = arith.constant 0 : index
    %c0_0 = arith.constant 0 : index
    %c0_1 = arith.constant 0 : index
    %0 = vector.load %arg3[%c0, %c0_0, %c0_1] : memref<1x64x128xbf16, #tpu.memory_space<vmem>>, vector<1x64x128xbf16>
    %1 = vector.shape_cast %0 : vector<1x64x128xbf16> to vector<64x128xbf16>
    %c0_2 = arith.constant 0 : index
    %c0_3 = arith.constant 0 : index
    %2 = vector.load %arg4[%c0_2, %c0_3] : memref<128x128xbf16, #tpu.memory_space<vmem>>, vector<128x128xbf16>
    %cst = arith.constant dense<0.000000e+00> : vector<64x128xf32>
    %3 = tpu.matmul %1, %2, %cst {dimension_numbers = #tpu.dot_dimension_numbers<[1], [0], [0], [1], [0, 0, 1, 1], [], []>} : vector<64x128xbf16>, vector<128x128xbf16>, vector<64x128xf32> -> vector<64x128xf32>
    %c0_4 = arith.constant 0 : index
    %c0_5 = arith.constant 0 : index
    %4 = vector.load %arg5[%c0_4, %c0_5] : memref<1x128xf32, #tpu.memory_space<vmem>>, vector<1x128xf32>
    %5 = vector.broadcast %4 : vector<1x128xf32> to vector<64x128xf32>
    %6 = arith.mulf %3, %5 : vector<64x128xf32>
    %c0_6 = arith.constant 0 : index
    %c0_7 = arith.constant 0 : index
    %7 = vector.load %arg6[%c0_6, %c0_7] : memref<1x128xf32, #tpu.memory_space<vmem>>, vector<1x128xf32>
    %8 = vector.broadcast %7 : vector<1x128xf32> to vector<64x128xf32>
    %9 = arith.addf %6, %8 : vector<64x128xf32>
    %cst_8 = arith.constant 0.000000e+00 : f32
    %cst_9 = arith.constant 6.000000e+00 : f32
    %10 = vector.broadcast %cst_8 : f32 to vector<64x128xf32>
    %11 = arith.maximumf %10, %9 : vector<64x128xf32>
    %12 = vector.broadcast %cst_9 : f32 to vector<64x128xf32>
    %13 = arith.minimumf %12, %11 : vector<64x128xf32>
    %14 = arith.truncf %13 : vector<64x128xf32> to vector<64x128xbf16>
    %c0_10 = arith.constant 0 : index
    %c0_11 = arith.constant 0 : index
    %c0_12 = arith.constant 0 : index
    %15 = vector.load %arg7[%c0_10, %c0_11, %c0_12] : memref<1x64x128xbf16, #tpu.memory_space<vmem>>, vector<1x64x128xbf16>
    %16 = vector.shape_cast %15 : vector<1x64x128xbf16> to vector<64x128xbf16>
    %17 = vector.shape_cast %14 : vector<64x128xbf16> to vector<1x64x128xbf16>
    tpu.vector_store %arg7[%c0_10, %c0_11, %c0_12], %17 {strides = array<i32>} : memref<1x64x128xbf16, #tpu.memory_space<vmem>>, vector<1x64x128xbf16>,
    return
  }
  func.func @transform_0(%arg0: i32, %arg1: i32, %arg2: i32) -> (i32, i32, i32) {
    %c0_i32 = arith.constant 0 : i32
    %c0_i32_0 = arith.constant 0 : i32
    return %arg0, %arg2, %c0_i32 : i32, i32, i32
  }
  func.func @transform_1(%arg0: i32, %arg1: i32, %arg2: i32) -> (i32, i32) {
    %c0_i32 = arith.constant 0 : i32
    %c0_i32_0 = arith.constant 0 : i32
    return %c0_i32, %arg1 : i32, i32
  }
  func.func @transform_2(%arg0: i32, %arg1: i32, %arg2: i32) -> (i32, i32) {
    %c0_i32 = arith.constant 0 : i32
    %c0_i32_0 = arith.constant 0 : i32
    return %c0_i32, %arg1 : i32, i32
  }
  func.func @transform_3(%arg0: i32, %arg1: i32, %arg2: i32) -> (i32, i32) {
    %c0_i32 = arith.constant 0 : i32
    %c0_i32_0 = arith.constant 0 : i32
    return %c0_i32, %arg1 : i32, i32
  }
  func.func @transform_4(%arg0: i32, %arg1: i32, %arg2: i32) -> (i32, i32, i32) {
    %c0_i32 = arith.constant 0 : i32
    return %arg0, %arg2, %arg1 : i32, i32, i32
  }
}

module attributes {stable_mosaic.version = 11 : i64} {
  func.func @_dw3x3_kernel(%arg0: i32, %arg1: i32, %arg2: memref<1x8x8x128xbf16, #tpu.memory_space<vmem>>, %arg3: memref<9x128xbf16, #tpu.memory_space<vmem>>, %arg4: memref<1x128xf32, #tpu.memory_space<vmem>>, %arg5: memref<1x128xf32, #tpu.memory_space<vmem>>, %arg6: memref<1x8x8x128xbf16, #tpu.memory_space<vmem>>, %arg7: memref<10x24x128xbf16, #tpu.memory_space<vmem>>) attributes {dimension_semantics = [#tpu.dimension_semantics<parallel>, #tpu.dimension_semantics<parallel>], iteration_bounds = array<i64: 2, 1>, scalar_prefetch = 0 : i64, scratch_operands = 1 : i64, tpu.core_type = #tpu.core_type<tc>, window_params = [{transform_indices = @transform_0, window_bounds = array<i64: 1, 8, 8, 128>}, {transform_indices = @transform_1, window_bounds = array<i64: 9, 128>}, {transform_indices = @transform_2, window_bounds = array<i64: 1, 128>}, {transform_indices = @transform_3, window_bounds = array<i64: 1, 128>}, {transform_indices = @transform_4, window_bounds = array<i64: 1, 8, 8, 128>}]} {
    %c0 = arith.constant 0 : index
    %c0_0 = arith.constant 0 : index
    %0 = vector.load %arg3[%c0, %c0_0] : memref<9x128xbf16, #tpu.memory_space<vmem>>, vector<9x128xbf16>
    %1 = arith.extf %0 : vector<9x128xbf16> to vector<9x128xf32>
    %c0_1 = arith.constant 0 : index
    %c0_2 = arith.constant 0 : index
    %2 = vector.load %arg4[%c0_1, %c0_2] : memref<1x128xf32, #tpu.memory_space<vmem>>, vector<1x128xf32>
    %c0_3 = arith.constant 0 : index
    %c0_4 = arith.constant 0 : index
    %3 = vector.load %arg5[%c0_3, %c0_4] : memref<1x128xf32, #tpu.memory_space<vmem>>, vector<1x128xf32>
    %cst = arith.constant 0.000000e+00 : bf16
    %4 = vector.broadcast %cst : bf16 to vector<10x24x128xbf16>
    %c0_5 = arith.constant 0 : index
    %c0_6 = arith.constant 0 : index
    %c0_7 = arith.constant 0 : index
    %5 = vector.load %arg7[%c0_5, %c0_6, %c0_7] : memref<10x24x128xbf16, #tpu.memory_space<vmem>>, vector<10x24x128xbf16>
    tpu.vector_store %arg7[%c0_5, %c0_6, %c0_7], %4 {strides = array<i32>} : memref<10x24x128xbf16, #tpu.memory_space<vmem>>, vector<10x24x128xbf16>,
    %c0_8 = arith.constant 0 : index
    %c0_9 = arith.constant 0 : index
    %c0_10 = arith.constant 0 : index
    %c0_11 = arith.constant 0 : index
    %6 = vector.load %arg2[%c0_8, %c0_9, %c0_10, %c0_11] : memref<1x8x8x128xbf16, #tpu.memory_space<vmem>>, vector<1x8x8x128xbf16>
    %7 = vector.shape_cast %6 : vector<1x8x8x128xbf16> to vector<8x8x128xbf16>
    %c1 = arith.constant 1 : index
    %c8 = arith.constant 8 : index
    %c0_12 = arith.constant 0 : index
    %8 = vector.load %arg7[%c1, %c8, %c0_12] : memref<10x24x128xbf16, #tpu.memory_space<vmem>>, vector<8x8x128xbf16>
    tpu.vector_store %arg7[%c1, %c8, %c0_12], %7 {strides = array<i32>} : memref<10x24x128xbf16, #tpu.memory_space<vmem>>, vector<8x8x128xbf16>,
    %cst_13 = arith.constant 0.000000e+00 : f32
    %9 = vector.broadcast %cst_13 : f32 to vector<8x8x128xf32>
    %c0_14 = arith.constant 0 : index
    %c7 = arith.constant 7 : index
    %c0_15 = arith.constant 0 : index
    %10 = vector.load %arg7[%c0_14, %c7, %c0_15] : memref<10x24x128xbf16, #tpu.memory_space<vmem>>, vector<8x8x128xbf16>
    %11 = arith.extf %10 : vector<8x8x128xbf16> to vector<8x8x128xf32>
    %12 = vector.extract_strided_slice %1 {offsets = [0, 0], sizes = [1, 128], strides = [1, 1]} : vector<9x128xf32> to vector<1x128xf32>
    %13 = vector.shape_cast %12 : vector<1x128xf32> to vector<128xf32>
    %14 = vector.shape_cast %13 : vector<128xf32> to vector<1x1x128xf32>
    %15 = vector.broadcast %14 : vector<1x1x128xf32> to vector<8x8x128xf32>
    %16 = arith.mulf %11, %15 : vector<8x8x128xf32>
    %17 = arith.addf %9, %16 : vector<8x8x128xf32>
    %c0_16 = arith.constant 0 : index
    %c8_17 = arith.constant 8 : index
    %c0_18 = arith.constant 0 : index
    %18 = vector.load %arg7[%c0_16, %c8_17, %c0_18] : memref<10x24x128xbf16, #tpu.memory_space<vmem>>, vector<8x8x128xbf16>
    %19 = arith.extf %18 : vector<8x8x128xbf16> to vector<8x8x128xf32>
    %20 = vector.extract_strided_slice %1 {offsets = [1, 0], sizes = [1, 128], strides = [1, 1]} : vector<9x128xf32> to vector<1x128xf32>
    %21 = vector.shape_cast %20 : vector<1x128xf32> to vector<128xf32>
    %22 = vector.shape_cast %21 : vector<128xf32> to vector<1x1x128xf32>
    %23 = vector.broadcast %22 : vector<1x1x128xf32> to vector<8x8x128xf32>
    %24 = arith.mulf %19, %23 : vector<8x8x128xf32>
    %25 = arith.addf %17, %24 : vector<8x8x128xf32>
    %c0_19 = arith.constant 0 : index
    %c9 = arith.constant 9 : index
    %c0_20 = arith.constant 0 : index
    %26 = vector.load %arg7[%c0_19, %c9, %c0_20] : memref<10x24x128xbf16, #tpu.memory_space<vmem>>, vector<8x8x128xbf16>
    %27 = arith.extf %26 : vector<8x8x128xbf16> to vector<8x8x128xf32>
    %28 = vector.extract_strided_slice %1 {offsets = [2, 0], sizes = [1, 128], strides = [1, 1]} : vector<9x128xf32> to vector<1x128xf32>
    %29 = vector.shape_cast %28 : vector<1x128xf32> to vector<128xf32>
    %30 = vector.shape_cast %29 : vector<128xf32> to vector<1x1x128xf32>
    %31 = vector.broadcast %30 : vector<1x1x128xf32> to vector<8x8x128xf32>
    %32 = arith.mulf %27, %31 : vector<8x8x128xf32>
    %33 = arith.addf %25, %32 : vector<8x8x128xf32>
    %c1_21 = arith.constant 1 : index
    %c7_22 = arith.constant 7 : index
    %c0_23 = arith.constant 0 : index
    %34 = vector.load %arg7[%c1_21, %c7_22, %c0_23] : memref<10x24x128xbf16, #tpu.memory_space<vmem>>, vector<8x8x128xbf16>
    %35 = arith.extf %34 : vector<8x8x128xbf16> to vector<8x8x128xf32>
    %36 = vector.extract_strided_slice %1 {offsets = [3, 0], sizes = [1, 128], strides = [1, 1]} : vector<9x128xf32> to vector<1x128xf32>
    %37 = vector.shape_cast %36 : vector<1x128xf32> to vector<128xf32>
    %38 = vector.shape_cast %37 : vector<128xf32> to vector<1x1x128xf32>
    %39 = vector.broadcast %38 : vector<1x1x128xf32> to vector<8x8x128xf32>
    %40 = arith.mulf %35, %39 : vector<8x8x128xf32>
    %41 = arith.addf %33, %40 : vector<8x8x128xf32>
    %c1_24 = arith.constant 1 : index
    %c8_25 = arith.constant 8 : index
    %c0_26 = arith.constant 0 : index
    %42 = vector.load %arg7[%c1_24, %c8_25, %c0_26] : memref<10x24x128xbf16, #tpu.memory_space<vmem>>, vector<8x8x128xbf16>
    %43 = arith.extf %42 : vector<8x8x128xbf16> to vector<8x8x128xf32>
    %44 = vector.extract_strided_slice %1 {offsets = [4, 0], sizes = [1, 128], strides = [1, 1]} : vector<9x128xf32> to vector<1x128xf32>
    %45 = vector.shape_cast %44 : vector<1x128xf32> to vector<128xf32>
    %46 = vector.shape_cast %45 : vector<128xf32> to vector<1x1x128xf32>
    %47 = vector.broadcast %46 : vector<1x1x128xf32> to vector<8x8x128xf32>
    %48 = arith.mulf %43, %47 : vector<8x8x128xf32>
    %49 = arith.addf %41, %48 : vector<8x8x128xf32>
    %c1_27 = arith.constant 1 : index
    %c9_28 = arith.constant 9 : index
    %c0_29 = arith.constant 0 : index
    %50 = vector.load %arg7[%c1_27, %c9_28, %c0_29] : memref<10x24x128xbf16, #tpu.memory_space<vmem>>, vector<8x8x128xbf16>
    %51 = arith.extf %50 : vector<8x8x128xbf16> to vector<8x8x128xf32>
    %52 = vector.extract_strided_slice %1 {offsets = [5, 0], sizes = [1, 128], strides = [1, 1]} : vector<9x128xf32> to vector<1x128xf32>
    %53 = vector.shape_cast %52 : vector<1x128xf32> to vector<128xf32>
    %54 = vector.shape_cast %53 : vector<128xf32> to vector<1x1x128xf32>
    %55 = vector.broadcast %54 : vector<1x1x128xf32> to vector<8x8x128xf32>
    %56 = arith.mulf %51, %55 : vector<8x8x128xf32>
    %57 = arith.addf %49, %56 : vector<8x8x128xf32>
    %c2 = arith.constant 2 : index
    %c7_30 = arith.constant 7 : index
    %c0_31 = arith.constant 0 : index
    %58 = vector.load %arg7[%c2, %c7_30, %c0_31] : memref<10x24x128xbf16, #tpu.memory_space<vmem>>, vector<8x8x128xbf16>
    %59 = arith.extf %58 : vector<8x8x128xbf16> to vector<8x8x128xf32>
    %60 = vector.extract_strided_slice %1 {offsets = [6, 0], sizes = [1, 128], strides = [1, 1]} : vector<9x128xf32> to vector<1x128xf32>
    %61 = vector.shape_cast %60 : vector<1x128xf32> to vector<128xf32>
    %62 = vector.shape_cast %61 : vector<128xf32> to vector<1x1x128xf32>
    %63 = vector.broadcast %62 : vector<1x1x128xf32> to vector<8x8x128xf32>
    %64 = arith.mulf %59, %63 : vector<8x8x128xf32>
    %65 = arith.addf %57, %64 : vector<8x8x128xf32>
    %c2_32 = arith.constant 2 : index
    %c8_33 = arith.constant 8 : index
    %c0_34 = arith.constant 0 : index
    %66 = vector.load %arg7[%c2_32, %c8_33, %c0_34] : memref<10x24x128xbf16, #tpu.memory_space<vmem>>, vector<8x8x128xbf16>
    %67 = arith.extf %66 : vector<8x8x128xbf16> to vector<8x8x128xf32>
    %68 = vector.extract_strided_slice %1 {offsets = [7, 0], sizes = [1, 128], strides = [1, 1]} : vector<9x128xf32> to vector<1x128xf32>
    %69 = vector.shape_cast %68 : vector<1x128xf32> to vector<128xf32>
    %70 = vector.shape_cast %69 : vector<128xf32> to vector<1x1x128xf32>
    %71 = vector.broadcast %70 : vector<1x1x128xf32> to vector<8x8x128xf32>
    %72 = arith.mulf %67, %71 : vector<8x8x128xf32>
    %73 = arith.addf %65, %72 : vector<8x8x128xf32>
    %c2_35 = arith.constant 2 : index
    %c9_36 = arith.constant 9 : index
    %c0_37 = arith.constant 0 : index
    %74 = vector.load %arg7[%c2_35, %c9_36, %c0_37] : memref<10x24x128xbf16, #tpu.memory_space<vmem>>, vector<8x8x128xbf16>
    %75 = arith.extf %74 : vector<8x8x128xbf16> to vector<8x8x128xf32>
    %76 = vector.extract_strided_slice %1 {offsets = [8, 0], sizes = [1, 128], strides = [1, 1]} : vector<9x128xf32> to vector<1x128xf32>
    %77 = vector.shape_cast %76 : vector<1x128xf32> to vector<128xf32>
    %78 = vector.shape_cast %77 : vector<128xf32> to vector<1x1x128xf32>
    %79 = vector.broadcast %78 : vector<1x1x128xf32> to vector<8x8x128xf32>
    %80 = arith.mulf %75, %79 : vector<8x8x128xf32>
    %81 = arith.addf %73, %80 : vector<8x8x128xf32>
    %82 = vector.shape_cast %2 : vector<1x128xf32> to vector<1x1x128xf32>
    %83 = vector.broadcast %82 : vector<1x1x128xf32> to vector<8x8x128xf32>
    %84 = arith.mulf %81, %83 : vector<8x8x128xf32>
    %85 = vector.shape_cast %3 : vector<1x128xf32> to vector<1x1x128xf32>
    %86 = vector.broadcast %85 : vector<1x1x128xf32> to vector<8x8x128xf32>
    %87 = arith.addf %84, %86 : vector<8x8x128xf32>
    %cst_38 = arith.constant 0.000000e+00 : f32
    %cst_39 = arith.constant 6.000000e+00 : f32
    %88 = vector.broadcast %cst_38 : f32 to vector<8x8x128xf32>
    %89 = arith.maximumf %88, %87 : vector<8x8x128xf32>
    %90 = vector.broadcast %cst_39 : f32 to vector<8x8x128xf32>
    %91 = arith.minimumf %90, %89 : vector<8x8x128xf32>
    %92 = arith.truncf %91 : vector<8x8x128xf32> to vector<8x8x128xbf16>
    %c0_40 = arith.constant 0 : index
    %c0_41 = arith.constant 0 : index
    %c0_42 = arith.constant 0 : index
    %c0_43 = arith.constant 0 : index
    %93 = vector.load %arg6[%c0_40, %c0_41, %c0_42, %c0_43] : memref<1x8x8x128xbf16, #tpu.memory_space<vmem>>, vector<1x8x8x128xbf16>
    %94 = vector.shape_cast %93 : vector<1x8x8x128xbf16> to vector<8x8x128xbf16>
    %95 = vector.shape_cast %92 : vector<8x8x128xbf16> to vector<1x8x8x128xbf16>
    tpu.vector_store %arg6[%c0_40, %c0_41, %c0_42, %c0_43], %95 {strides = array<i32>} : memref<1x8x8x128xbf16, #tpu.memory_space<vmem>>, vector<1x8x8x128xbf16>,
    return
  }
  func.func @transform_0(%arg0: i32, %arg1: i32) -> (i32, i32, i32, i32) {
    %c0_i32 = arith.constant 0 : i32
    %c0_i32_0 = arith.constant 0 : i32
    %c0_i32_1 = arith.constant 0 : i32
    return %arg0, %c0_i32, %c0_i32_0, %arg1 : i32, i32, i32, i32
  }
  func.func @transform_1(%arg0: i32, %arg1: i32) -> (i32, i32) {
    %c0_i32 = arith.constant 0 : i32
    %c0_i32_0 = arith.constant 0 : i32
    return %c0_i32, %arg1 : i32, i32
  }
  func.func @transform_2(%arg0: i32, %arg1: i32) -> (i32, i32) {
    %c0_i32 = arith.constant 0 : i32
    %c0_i32_0 = arith.constant 0 : i32
    return %c0_i32, %arg1 : i32, i32
  }
  func.func @transform_3(%arg0: i32, %arg1: i32) -> (i32, i32) {
    %c0_i32 = arith.constant 0 : i32
    %c0_i32_0 = arith.constant 0 : i32
    return %c0_i32, %arg1 : i32, i32
  }
  func.func @transform_4(%arg0: i32, %arg1: i32) -> (i32, i32, i32, i32) {
    %c0_i32 = arith.constant 0 : i32
    %c0_i32_0 = arith.constant 0 : i32
    %c0_i32_1 = arith.constant 0 : i32
    return %arg0, %c0_i32, %c0_i32_0, %arg1 : i32, i32, i32, i32
  }
}

module attributes {stable_mosaic.version = 11 : i64} {
  func.func @_conv1x1_kernel(%arg0: i32, %arg1: i32, %arg2: i32, %arg3: memref<1x64x128xbf16, #tpu.memory_space<vmem>>, %arg4: memref<128x128xbf16, #tpu.memory_space<vmem>>, %arg5: memref<1x128xf32, #tpu.memory_space<vmem>>, %arg6: memref<1x128xf32, #tpu.memory_space<vmem>>, %arg7: memref<1x64x128xbf16, #tpu.memory_space<vmem>>) attributes {dimension_semantics = [#tpu.dimension_semantics<parallel>, #tpu.dimension_semantics<parallel>, #tpu.dimension_semantics<parallel>], iteration_bounds = array<i64: 2, 1, 1>, scalar_prefetch = 0 : i64, scratch_operands = 0 : i64, tpu.core_type = #tpu.core_type<tc>, window_params = [{transform_indices = @transform_0, window_bounds = array<i64: 1, 64, 128>}, {transform_indices = @transform_1, window_bounds = array<i64: 128, 128>}, {transform_indices = @transform_2, window_bounds = array<i64: 1, 128>}, {transform_indices = @transform_3, window_bounds = array<i64: 1, 128>}, {transform_indices = @transform_4, window_bounds = array<i64: 1, 64, 128>}]} {
    %c0 = arith.constant 0 : index
    %c0_0 = arith.constant 0 : index
    %c0_1 = arith.constant 0 : index
    %0 = vector.load %arg3[%c0, %c0_0, %c0_1] : memref<1x64x128xbf16, #tpu.memory_space<vmem>>, vector<1x64x128xbf16>
    %1 = vector.shape_cast %0 : vector<1x64x128xbf16> to vector<64x128xbf16>
    %c0_2 = arith.constant 0 : index
    %c0_3 = arith.constant 0 : index
    %2 = vector.load %arg4[%c0_2, %c0_3] : memref<128x128xbf16, #tpu.memory_space<vmem>>, vector<128x128xbf16>
    %cst = arith.constant dense<0.000000e+00> : vector<64x128xf32>
    %3 = tpu.matmul %1, %2, %cst {dimension_numbers = #tpu.dot_dimension_numbers<[1], [0], [0], [1], [0, 0, 1, 1], [], []>} : vector<64x128xbf16>, vector<128x128xbf16>, vector<64x128xf32> -> vector<64x128xf32>
    %c0_4 = arith.constant 0 : index
    %c0_5 = arith.constant 0 : index
    %4 = vector.load %arg5[%c0_4, %c0_5] : memref<1x128xf32, #tpu.memory_space<vmem>>, vector<1x128xf32>
    %5 = vector.broadcast %4 : vector<1x128xf32> to vector<64x128xf32>
    %6 = arith.mulf %3, %5 : vector<64x128xf32>
    %c0_6 = arith.constant 0 : index
    %c0_7 = arith.constant 0 : index
    %7 = vector.load %arg6[%c0_6, %c0_7] : memref<1x128xf32, #tpu.memory_space<vmem>>, vector<1x128xf32>
    %8 = vector.broadcast %7 : vector<1x128xf32> to vector<64x128xf32>
    %9 = arith.addf %6, %8 : vector<64x128xf32>
    %10 = arith.truncf %9 : vector<64x128xf32> to vector<64x128xbf16>
    %c0_8 = arith.constant 0 : index
    %c0_9 = arith.constant 0 : index
    %c0_10 = arith.constant 0 : index
    %11 = vector.load %arg7[%c0_8, %c0_9, %c0_10] : memref<1x64x128xbf16, #tpu.memory_space<vmem>>, vector<1x64x128xbf16>
    %12 = vector.shape_cast %11 : vector<1x64x128xbf16> to vector<64x128xbf16>
    %13 = vector.shape_cast %10 : vector<64x128xbf16> to vector<1x64x128xbf16>
    tpu.vector_store %arg7[%c0_8, %c0_9, %c0_10], %13 {strides = array<i32>} : memref<1x64x128xbf16, #tpu.memory_space<vmem>>, vector<1x64x128xbf16>,
    return
  }
  func.func @transform_0(%arg0: i32, %arg1: i32, %arg2: i32) -> (i32, i32, i32) {
    %c0_i32 = arith.constant 0 : i32
    %c0_i32_0 = arith.constant 0 : i32
    return %arg0, %arg2, %c0_i32 : i32, i32, i32
  }
  func.func @transform_1(%arg0: i32, %arg1: i32, %arg2: i32) -> (i32, i32) {
    %c0_i32 = arith.constant 0 : i32
    %c0_i32_0 = arith.constant 0 : i32
    return %c0_i32, %arg1 : i32, i32
  }
  func.func @transform_2(%arg0: i32, %arg1: i32, %arg2: i32) -> (i32, i32) {
    %c0_i32 = arith.constant 0 : i32
    %c0_i32_0 = arith.constant 0 : i32
    return %c0_i32, %arg1 : i32, i32
  }
  func.func @transform_3(%arg0: i32, %arg1: i32, %arg2: i32) -> (i32, i32) {
    %c0_i32 = arith.constant 0 : i32
    %c0_i32_0 = arith.constant 0 : i32
    return %c0_i32, %arg1 : i32, i32
  }
  func.func @transform_4(%arg0: i32, %arg1: i32, %arg2: i32) -> (i32, i32, i32) {
    %c0_i32 = arith.constant 0 : i32
    return %arg0, %arg2, %arg1 : i32, i32, i32
  }
}

module attributes {stable_mosaic.version = 11 : i64} {
  func.func @_dw3x3_kernel(%arg0: i32, %arg1: i32, %arg2: memref<1x8x8x128xbf16, #tpu.memory_space<vmem>>, %arg3: memref<9x128xbf16, #tpu.memory_space<vmem>>, %arg4: memref<1x128xf32, #tpu.memory_space<vmem>>, %arg5: memref<1x128xf32, #tpu.memory_space<vmem>>, %arg6: memref<1x1x128xf32, #tpu.memory_space<vmem>>, %arg7: memref<1x8x8x128xbf16, #tpu.memory_space<vmem>>, %arg8: memref<10x24x128xbf16, #tpu.memory_space<vmem>>) attributes {dimension_semantics = [#tpu.dimension_semantics<parallel>, #tpu.dimension_semantics<parallel>], iteration_bounds = array<i64: 2, 1>, scalar_prefetch = 0 : i64, scratch_operands = 1 : i64, tpu.core_type = #tpu.core_type<tc>, window_params = [{transform_indices = @transform_0, window_bounds = array<i64: 1, 8, 8, 128>}, {transform_indices = @transform_1, window_bounds = array<i64: 9, 128>}, {transform_indices = @transform_2, window_bounds = array<i64: 1, 128>}, {transform_indices = @transform_3, window_bounds = array<i64: 1, 128>}, {transform_indices = @transform_4, window_bounds = array<i64: 1, 1, 128>}, {transform_indices = @transform_5, window_bounds = array<i64: 1, 8, 8, 128>}]} {
    %c0 = arith.constant 0 : index
    %c0_0 = arith.constant 0 : index
    %0 = vector.load %arg3[%c0, %c0_0] : memref<9x128xbf16, #tpu.memory_space<vmem>>, vector<9x128xbf16>
    %1 = arith.extf %0 : vector<9x128xbf16> to vector<9x128xf32>
    %c0_1 = arith.constant 0 : index
    %c0_2 = arith.constant 0 : index
    %c0_3 = arith.constant 0 : index
    %2 = vector.load %arg6[%c0_1, %c0_2, %c0_3] : memref<1x1x128xf32, #tpu.memory_space<vmem>>, vector<1x1x128xf32>
    %3 = vector.shape_cast %2 : vector<1x1x128xf32> to vector<1x128xf32>
    %4 = vector.broadcast %3 : vector<1x128xf32> to vector<9x128xf32>
    %5 = arith.mulf %1, %4 : vector<9x128xf32>
    %c0_4 = arith.constant 0 : index
    %c0_5 = arith.constant 0 : index
    %6 = vector.load %arg4[%c0_4, %c0_5] : memref<1x128xf32, #tpu.memory_space<vmem>>, vector<1x128xf32>
    %c0_6 = arith.constant 0 : index
    %c0_7 = arith.constant 0 : index
    %7 = vector.load %arg5[%c0_6, %c0_7] : memref<1x128xf32, #tpu.memory_space<vmem>>, vector<1x128xf32>
    %cst = arith.constant 0.000000e+00 : bf16
    %8 = vector.broadcast %cst : bf16 to vector<10x24x128xbf16>
    %c0_8 = arith.constant 0 : index
    %c0_9 = arith.constant 0 : index
    %c0_10 = arith.constant 0 : index
    %9 = vector.load %arg8[%c0_8, %c0_9, %c0_10] : memref<10x24x128xbf16, #tpu.memory_space<vmem>>, vector<10x24x128xbf16>
    tpu.vector_store %arg8[%c0_8, %c0_9, %c0_10], %8 {strides = array<i32>} : memref<10x24x128xbf16, #tpu.memory_space<vmem>>, vector<10x24x128xbf16>,
    %c0_11 = arith.constant 0 : index
    %c0_12 = arith.constant 0 : index
    %c0_13 = arith.constant 0 : index
    %c0_14 = arith.constant 0 : index
    %10 = vector.load %arg2[%c0_11, %c0_12, %c0_13, %c0_14] : memref<1x8x8x128xbf16, #tpu.memory_space<vmem>>, vector<1x8x8x128xbf16>
    %11 = vector.shape_cast %10 : vector<1x8x8x128xbf16> to vector<8x8x128xbf16>
    %c1 = arith.constant 1 : index
    %c8 = arith.constant 8 : index
    %c0_15 = arith.constant 0 : index
    %12 = vector.load %arg8[%c1, %c8, %c0_15] : memref<10x24x128xbf16, #tpu.memory_space<vmem>>, vector<8x8x128xbf16>
    tpu.vector_store %arg8[%c1, %c8, %c0_15], %11 {strides = array<i32>} : memref<10x24x128xbf16, #tpu.memory_space<vmem>>, vector<8x8x128xbf16>,
    %cst_16 = arith.constant 0.000000e+00 : f32
    %13 = vector.broadcast %cst_16 : f32 to vector<8x8x128xf32>
    %c0_17 = arith.constant 0 : index
    %c7 = arith.constant 7 : index
    %c0_18 = arith.constant 0 : index
    %14 = vector.load %arg8[%c0_17, %c7, %c0_18] : memref<10x24x128xbf16, #tpu.memory_space<vmem>>, vector<8x8x128xbf16>
    %15 = arith.extf %14 : vector<8x8x128xbf16> to vector<8x8x128xf32>
    %16 = vector.extract_strided_slice %5 {offsets = [0, 0], sizes = [1, 128], strides = [1, 1]} : vector<9x128xf32> to vector<1x128xf32>
    %17 = vector.shape_cast %16 : vector<1x128xf32> to vector<128xf32>
    %18 = vector.shape_cast %17 : vector<128xf32> to vector<1x1x128xf32>
    %19 = vector.broadcast %18 : vector<1x1x128xf32> to vector<8x8x128xf32>
    %20 = arith.mulf %15, %19 : vector<8x8x128xf32>
    %21 = arith.addf %13, %20 : vector<8x8x128xf32>
    %c0_19 = arith.constant 0 : index
    %c8_20 = arith.constant 8 : index
    %c0_21 = arith.constant 0 : index
    %22 = vector.load %arg8[%c0_19, %c8_20, %c0_21] : memref<10x24x128xbf16, #tpu.memory_space<vmem>>, vector<8x8x128xbf16>
    %23 = arith.extf %22 : vector<8x8x128xbf16> to vector<8x8x128xf32>
    %24 = vector.extract_strided_slice %5 {offsets = [1, 0], sizes = [1, 128], strides = [1, 1]} : vector<9x128xf32> to vector<1x128xf32>
    %25 = vector.shape_cast %24 : vector<1x128xf32> to vector<128xf32>
    %26 = vector.shape_cast %25 : vector<128xf32> to vector<1x1x128xf32>
    %27 = vector.broadcast %26 : vector<1x1x128xf32> to vector<8x8x128xf32>
    %28 = arith.mulf %23, %27 : vector<8x8x128xf32>
    %29 = arith.addf %21, %28 : vector<8x8x128xf32>
    %c0_22 = arith.constant 0 : index
    %c9 = arith.constant 9 : index
    %c0_23 = arith.constant 0 : index
    %30 = vector.load %arg8[%c0_22, %c9, %c0_23] : memref<10x24x128xbf16, #tpu.memory_space<vmem>>, vector<8x8x128xbf16>
    %31 = arith.extf %30 : vector<8x8x128xbf16> to vector<8x8x128xf32>
    %32 = vector.extract_strided_slice %5 {offsets = [2, 0], sizes = [1, 128], strides = [1, 1]} : vector<9x128xf32> to vector<1x128xf32>
    %33 = vector.shape_cast %32 : vector<1x128xf32> to vector<128xf32>
    %34 = vector.shape_cast %33 : vector<128xf32> to vector<1x1x128xf32>
    %35 = vector.broadcast %34 : vector<1x1x128xf32> to vector<8x8x128xf32>
    %36 = arith.mulf %31, %35 : vector<8x8x128xf32>
    %37 = arith.addf %29, %36 : vector<8x8x128xf32>
    %c1_24 = arith.constant 1 : index
    %c7_25 = arith.constant 7 : index
    %c0_26 = arith.constant 0 : index
    %38 = vector.load %arg8[%c1_24, %c7_25, %c0_26] : memref<10x24x128xbf16, #tpu.memory_space<vmem>>, vector<8x8x128xbf16>
    %39 = arith.extf %38 : vector<8x8x128xbf16> to vector<8x8x128xf32>
    %40 = vector.extract_strided_slice %5 {offsets = [3, 0], sizes = [1, 128], strides = [1, 1]} : vector<9x128xf32> to vector<1x128xf32>
    %41 = vector.shape_cast %40 : vector<1x128xf32> to vector<128xf32>
    %42 = vector.shape_cast %41 : vector<128xf32> to vector<1x1x128xf32>
    %43 = vector.broadcast %42 : vector<1x1x128xf32> to vector<8x8x128xf32>
    %44 = arith.mulf %39, %43 : vector<8x8x128xf32>
    %45 = arith.addf %37, %44 : vector<8x8x128xf32>
    %c1_27 = arith.constant 1 : index
    %c8_28 = arith.constant 8 : index
    %c0_29 = arith.constant 0 : index
    %46 = vector.load %arg8[%c1_27, %c8_28, %c0_29] : memref<10x24x128xbf16, #tpu.memory_space<vmem>>, vector<8x8x128xbf16>
    %47 = arith.extf %46 : vector<8x8x128xbf16> to vector<8x8x128xf32>
    %48 = vector.extract_strided_slice %5 {offsets = [4, 0], sizes = [1, 128], strides = [1, 1]} : vector<9x128xf32> to vector<1x128xf32>
    %49 = vector.shape_cast %48 : vector<1x128xf32> to vector<128xf32>
    %50 = vector.shape_cast %49 : vector<128xf32> to vector<1x1x128xf32>
    %51 = vector.broadcast %50 : vector<1x1x128xf32> to vector<8x8x128xf32>
    %52 = arith.mulf %47, %51 : vector<8x8x128xf32>
    %53 = arith.addf %45, %52 : vector<8x8x128xf32>
    %c1_30 = arith.constant 1 : index
    %c9_31 = arith.constant 9 : index
    %c0_32 = arith.constant 0 : index
    %54 = vector.load %arg8[%c1_30, %c9_31, %c0_32] : memref<10x24x128xbf16, #tpu.memory_space<vmem>>, vector<8x8x128xbf16>
    %55 = arith.extf %54 : vector<8x8x128xbf16> to vector<8x8x128xf32>
    %56 = vector.extract_strided_slice %5 {offsets = [5, 0], sizes = [1, 128], strides = [1, 1]} : vector<9x128xf32> to vector<1x128xf32>
    %57 = vector.shape_cast %56 : vector<1x128xf32> to vector<128xf32>
    %58 = vector.shape_cast %57 : vector<128xf32> to vector<1x1x128xf32>
    %59 = vector.broadcast %58 : vector<1x1x128xf32> to vector<8x8x128xf32>
    %60 = arith.mulf %55, %59 : vector<8x8x128xf32>
    %61 = arith.addf %53, %60 : vector<8x8x128xf32>
    %c2 = arith.constant 2 : index
    %c7_33 = arith.constant 7 : index
    %c0_34 = arith.constant 0 : index
    %62 = vector.load %arg8[%c2, %c7_33, %c0_34] : memref<10x24x128xbf16, #tpu.memory_space<vmem>>, vector<8x8x128xbf16>
    %63 = arith.extf %62 : vector<8x8x128xbf16> to vector<8x8x128xf32>
    %64 = vector.extract_strided_slice %5 {offsets = [6, 0], sizes = [1, 128], strides = [1, 1]} : vector<9x128xf32> to vector<1x128xf32>
    %65 = vector.shape_cast %64 : vector<1x128xf32> to vector<128xf32>
    %66 = vector.shape_cast %65 : vector<128xf32> to vector<1x1x128xf32>
    %67 = vector.broadcast %66 : vector<1x1x128xf32> to vector<8x8x128xf32>
    %68 = arith.mulf %63, %67 : vector<8x8x128xf32>
    %69 = arith.addf %61, %68 : vector<8x8x128xf32>
    %c2_35 = arith.constant 2 : index
    %c8_36 = arith.constant 8 : index
    %c0_37 = arith.constant 0 : index
    %70 = vector.load %arg8[%c2_35, %c8_36, %c0_37] : memref<10x24x128xbf16, #tpu.memory_space<vmem>>, vector<8x8x128xbf16>
    %71 = arith.extf %70 : vector<8x8x128xbf16> to vector<8x8x128xf32>
    %72 = vector.extract_strided_slice %5 {offsets = [7, 0], sizes = [1, 128], strides = [1, 1]} : vector<9x128xf32> to vector<1x128xf32>
    %73 = vector.shape_cast %72 : vector<1x128xf32> to vector<128xf32>
    %74 = vector.shape_cast %73 : vector<128xf32> to vector<1x1x128xf32>
    %75 = vector.broadcast %74 : vector<1x1x128xf32> to vector<8x8x128xf32>
    %76 = arith.mulf %71, %75 : vector<8x8x128xf32>
    %77 = arith.addf %69, %76 : vector<8x8x128xf32>
    %c2_38 = arith.constant 2 : index
    %c9_39 = arith.constant 9 : index
    %c0_40 = arith.constant 0 : index
    %78 = vector.load %arg8[%c2_38, %c9_39, %c0_40] : memref<10x24x128xbf16, #tpu.memory_space<vmem>>, vector<8x8x128xbf16>
    %79 = arith.extf %78 : vector<8x8x128xbf16> to vector<8x8x128xf32>
    %80 = vector.extract_strided_slice %5 {offsets = [8, 0], sizes = [1, 128], strides = [1, 1]} : vector<9x128xf32> to vector<1x128xf32>
    %81 = vector.shape_cast %80 : vector<1x128xf32> to vector<128xf32>
    %82 = vector.shape_cast %81 : vector<128xf32> to vector<1x1x128xf32>
    %83 = vector.broadcast %82 : vector<1x1x128xf32> to vector<8x8x128xf32>
    %84 = arith.mulf %79, %83 : vector<8x8x128xf32>
    %85 = arith.addf %77, %84 : vector<8x8x128xf32>
    %86 = vector.shape_cast %6 : vector<1x128xf32> to vector<1x1x128xf32>
    %87 = vector.broadcast %86 : vector<1x1x128xf32> to vector<8x8x128xf32>
    %88 = arith.mulf %85, %87 : vector<8x8x128xf32>
    %89 = vector.shape_cast %7 : vector<1x128xf32> to vector<1x1x128xf32>
    %90 = vector.broadcast %89 : vector<1x1x128xf32> to vector<8x8x128xf32>
    %91 = arith.addf %88, %90 : vector<8x8x128xf32>
    %cst_41 = arith.constant 0.000000e+00 : f32
    %cst_42 = arith.constant 6.000000e+00 : f32
    %92 = vector.broadcast %cst_41 : f32 to vector<8x8x128xf32>
    %93 = arith.maximumf %92, %91 : vector<8x8x128xf32>
    %94 = vector.broadcast %cst_42 : f32 to vector<8x8x128xf32>
    %95 = arith.minimumf %94, %93 : vector<8x8x128xf32>
    %96 = arith.truncf %95 : vector<8x8x128xf32> to vector<8x8x128xbf16>
    %c0_43 = arith.constant 0 : index
    %c0_44 = arith.constant 0 : index
    %c0_45 = arith.constant 0 : index
    %c0_46 = arith.constant 0 : index
    %97 = vector.load %arg7[%c0_43, %c0_44, %c0_45, %c0_46] : memref<1x8x8x128xbf16, #tpu.memory_space<vmem>>, vector<1x8x8x128xbf16>
    %98 = vector.shape_cast %97 : vector<1x8x8x128xbf16> to vector<8x8x128xbf16>
    %99 = vector.shape_cast %96 : vector<8x8x128xbf16> to vector<1x8x8x128xbf16>
    tpu.vector_store %arg7[%c0_43, %c0_44, %c0_45, %c0_46], %99 {strides = array<i32>} : memref<1x8x8x128xbf16, #tpu.memory_space<vmem>>, vector<1x8x8x128xbf16>,
    return
  }
  func.func @transform_0(%arg0: i32, %arg1: i32) -> (i32, i32, i32, i32) {
    %c0_i32 = arith.constant 0 : i32
    %c0_i32_0 = arith.constant 0 : i32
    %c0_i32_1 = arith.constant 0 : i32
    return %arg0, %c0_i32, %c0_i32_0, %arg1 : i32, i32, i32, i32
  }
  func.func @transform_1(%arg0: i32, %arg1: i32) -> (i32, i32) {
    %c0_i32 = arith.constant 0 : i32
    %c0_i32_0 = arith.constant 0 : i32
    return %c0_i32, %arg1 : i32, i32
  }
  func.func @transform_2(%arg0: i32, %arg1: i32) -> (i32, i32) {
    %c0_i32 = arith.constant 0 : i32
    %c0_i32_0 = arith.constant 0 : i32
    return %c0_i32, %arg1 : i32, i32
  }
  func.func @transform_3(%arg0: i32, %arg1: i32) -> (i32, i32) {
    %c0_i32 = arith.constant 0 : i32
    %c0_i32_0 = arith.constant 0 : i32
    return %c0_i32, %arg1 : i32, i32
  }
  func.func @transform_4(%arg0: i32, %arg1: i32) -> (i32, i32, i32) {
    %c0_i32 = arith.constant 0 : i32
    %c0_i32_0 = arith.constant 0 : i32
    return %arg0, %c0_i32, %arg1 : i32, i32, i32
  }
  func.func @transform_5(%arg0: i32, %arg1: i32) -> (i32, i32, i32, i32) {
    %c0_i32 = arith.constant 0 : i32
    %c0_i32_0 = arith.constant 0 : i32
    %c0_i32_1 = arith.constant 0 : i32
    return %arg0, %c0_i32, %c0_i32_0, %arg1 : i32, i32, i32, i32
  }
}

module attributes {stable_mosaic.version = 11 : i64} {
  func.func @_conv1x1_kernel(%arg0: i32, %arg1: i32, %arg2: i32, %arg3: memref<1x16x512xbf16, #tpu.memory_space<vmem>>, %arg4: memref<512x128xbf16, #tpu.memory_space<vmem>>, %arg5: memref<1x128xf32, #tpu.memory_space<vmem>>, %arg6: memref<1x128xf32, #tpu.memory_space<vmem>>, %arg7: memref<1x16x128xbf16, #tpu.memory_space<vmem>>, %arg8: memref<1x1x8x128xf32, #tpu.memory_space<vmem>>) attributes {dimension_semantics = [#tpu.dimension_semantics<parallel>, #tpu.dimension_semantics<parallel>, #tpu.dimension_semantics<parallel>], iteration_bounds = array<i64: 2, 1, 1>, scalar_prefetch = 0 : i64, scratch_operands = 0 : i64, tpu.core_type = #tpu.core_type<tc>, window_params = [{transform_indices = @transform_0, window_bounds = array<i64: 1, 16, 512>}, {transform_indices = @transform_1, window_bounds = array<i64: 512, 128>}, {transform_indices = @transform_2, window_bounds = array<i64: 1, 128>}, {transform_indices = @transform_3, window_bounds = array<i64: 1, 128>}, {transform_indices = @transform_4, window_bounds = array<i64: 1, 16, 128>}, {transform_indices = @transform_5, window_bounds = array<i64: 1, 1, 8, 128>}]} {
    %c0 = arith.constant 0 : index
    %c0_0 = arith.constant 0 : index
    %c0_1 = arith.constant 0 : index
    %0 = vector.load %arg3[%c0, %c0_0, %c0_1] : memref<1x16x512xbf16, #tpu.memory_space<vmem>>, vector<1x16x512xbf16>
    %1 = vector.shape_cast %0 : vector<1x16x512xbf16> to vector<16x512xbf16>
    %c0_2 = arith.constant 0 : index
    %c0_3 = arith.constant 0 : index
    %2 = vector.load %arg4[%c0_2, %c0_3] : memref<512x128xbf16, #tpu.memory_space<vmem>>, vector<512x128xbf16>
    %cst = arith.constant dense<0.000000e+00> : vector<16x128xf32>
    %3 = tpu.matmul %1, %2, %cst {dimension_numbers = #tpu.dot_dimension_numbers<[1], [0], [0], [1], [0, 0, 1, 1], [], []>} : vector<16x512xbf16>, vector<512x128xbf16>, vector<16x128xf32> -> vector<16x128xf32>
    %c0_4 = arith.constant 0 : index
    %c0_5 = arith.constant 0 : index
    %4 = vector.load %arg5[%c0_4, %c0_5] : memref<1x128xf32, #tpu.memory_space<vmem>>, vector<1x128xf32>
    %5 = vector.broadcast %4 : vector<1x128xf32> to vector<16x128xf32>
    %6 = arith.mulf %3, %5 : vector<16x128xf32>
    %c0_6 = arith.constant 0 : index
    %c0_7 = arith.constant 0 : index
    %7 = vector.load %arg6[%c0_6, %c0_7] : memref<1x128xf32, #tpu.memory_space<vmem>>, vector<1x128xf32>
    %8 = vector.broadcast %7 : vector<1x128xf32> to vector<16x128xf32>
    %9 = arith.addf %6, %8 : vector<16x128xf32>
    %10 = arith.truncf %9 : vector<16x128xf32> to vector<16x128xbf16>
    %c0_8 = arith.constant 0 : index
    %c0_9 = arith.constant 0 : index
    %c0_10 = arith.constant 0 : index
    %11 = vector.load %arg7[%c0_8, %c0_9, %c0_10] : memref<1x16x128xbf16, #tpu.memory_space<vmem>>, vector<1x16x128xbf16>
    %12 = vector.shape_cast %11 : vector<1x16x128xbf16> to vector<16x128xbf16>
    %13 = vector.shape_cast %10 : vector<16x128xbf16> to vector<1x16x128xbf16>
    tpu.vector_store %arg7[%c0_8, %c0_9, %c0_10], %13 {strides = array<i32>} : memref<1x16x128xbf16, #tpu.memory_space<vmem>>, vector<1x16x128xbf16>,
    %14 = arith.mulf %9, %9 : vector<16x128xf32>
    %cst_11 = arith.constant dense<0.000000e+00> : vector<128xf32>
    %15 = vector.multi_reduction <add>, %14, %cst_11 [0] : vector<16x128xf32> to vector<128xf32>
    %16 = vector.shape_cast %15 : vector<128xf32> to vector<1x128xf32>
    %cst_12 = arith.constant 6.250000e-02 : f32
    %17 = vector.broadcast %cst_12 : f32 to vector<1x128xf32>
    %18 = arith.mulf %16, %17 : vector<1x128xf32>
    %19 = vector.shape_cast %18 : vector<1x128xf32> to vector<1x128xf32>
    %20 = vector.broadcast %19 : vector<1x128xf32> to vector<8x128xf32>
    %c0_13 = arith.constant 0 : index
    %c0_14 = arith.constant 0 : index
    %c0_15 = arith.constant 0 : index
    %c0_16 = arith.constant 0 : index
    %21 = vector.load %arg8[%c0_13, %c0_14, %c0_15, %c0_16] : memref<1x1x8x128xf32, #tpu.memory_space<vmem>>, vector<1x1x8x128xf32>
    %22 = vector.shape_cast %21 : vector<1x1x8x128xf32> to vector<8x128xf32>
    %23 = vector.shape_cast %20 : vector<8x128xf32> to vector<1x1x8x128xf32>
    tpu.vector_store %arg8[%c0_13, %c0_14, %c0_15, %c0_16], %23 {strides = array<i32>} : memref<1x1x8x128xf32, #tpu.memory_space<vmem>>, vector<1x1x8x128xf32>,
    return
  }
  func.func @transform_0(%arg0: i32, %arg1: i32, %arg2: i32) -> (i32, i32, i32) {
    %c0_i32 = arith.constant 0 : i32
    %c0_i32_0 = arith.constant 0 : i32
    return %arg0, %arg2, %c0_i32 : i32, i32, i32
  }
  func.func @transform_1(%arg0: i32, %arg1: i32, %arg2: i32) -> (i32, i32) {
    %c0_i32 = arith.constant 0 : i32
    %c0_i32_0 = arith.constant 0 : i32
    return %c0_i32, %arg1 : i32, i32
  }
  func.func @transform_2(%arg0: i32, %arg1: i32, %arg2: i32) -> (i32, i32) {
    %c0_i32 = arith.constant 0 : i32
    %c0_i32_0 = arith.constant 0 : i32
    return %c0_i32, %arg1 : i32, i32
  }
  func.func @transform_3(%arg0: i32, %arg1: i32, %arg2: i32) -> (i32, i32) {
    %c0_i32 = arith.constant 0 : i32
    %c0_i32_0 = arith.constant 0 : i32
    return %c0_i32, %arg1 : i32, i32
  }
  func.func @transform_4(%arg0: i32, %arg1: i32, %arg2: i32) -> (i32, i32, i32) {
    %c0_i32 = arith.constant 0 : i32
    return %arg0, %arg2, %arg1 : i32, i32, i32
  }
  func.func @transform_5(%arg0: i32, %arg1: i32, %arg2: i32) -> (i32, i32, i32, i32) {
    %c0_i32 = arith.constant 0 : i32
    %c0_i32_0 = arith.constant 0 : i32
    return %arg0, %arg2, %c0_i32, %arg1 : i32, i32, i32, i32
  }
}

module attributes {stable_mosaic.version = 11 : i64} {
  func.func @_conv1x1_kernel(%arg0: i32, %arg1: i32, %arg2: i32, %arg3: memref<1x16x128xbf16, #tpu.memory_space<vmem>>, %arg4: memref<128x128xbf16, #tpu.memory_space<vmem>>, %arg5: memref<1x128xf32, #tpu.memory_space<vmem>>, %arg6: memref<1x128xf32, #tpu.memory_space<vmem>>, %arg7: memref<1x1x128xf32, #tpu.memory_space<vmem>>, %arg8: memref<1x16x128xbf16, #tpu.memory_space<vmem>>) attributes {dimension_semantics = [#tpu.dimension_semantics<parallel>, #tpu.dimension_semantics<parallel>, #tpu.dimension_semantics<parallel>], iteration_bounds = array<i64: 2, 1, 1>, scalar_prefetch = 0 : i64, scratch_operands = 0 : i64, tpu.core_type = #tpu.core_type<tc>, window_params = [{transform_indices = @transform_0, window_bounds = array<i64: 1, 16, 128>}, {transform_indices = @transform_1, window_bounds = array<i64: 128, 128>}, {transform_indices = @transform_2, window_bounds = array<i64: 1, 128>}, {transform_indices = @transform_3, window_bounds = array<i64: 1, 128>}, {transform_indices = @transform_4, window_bounds = array<i64: 1, 1, 128>}, {transform_indices = @transform_5, window_bounds = array<i64: 1, 16, 128>}]} {
    %c0 = arith.constant 0 : index
    %c0_0 = arith.constant 0 : index
    %c0_1 = arith.constant 0 : index
    %0 = vector.load %arg3[%c0, %c0_0, %c0_1] : memref<1x16x128xbf16, #tpu.memory_space<vmem>>, vector<1x16x128xbf16>
    %1 = vector.shape_cast %0 : vector<1x16x128xbf16> to vector<16x128xbf16>
    %2 = arith.extf %1 : vector<16x128xbf16> to vector<16x128xf32>
    %c0_2 = arith.constant 0 : index
    %c0_3 = arith.constant 0 : index
    %c0_4 = arith.constant 0 : index
    %3 = vector.load %arg7[%c0_2, %c0_3, %c0_4] : memref<1x1x128xf32, #tpu.memory_space<vmem>>, vector<1x1x128xf32>
    %4 = vector.shape_cast %3 : vector<1x1x128xf32> to vector<1x128xf32>
    %5 = vector.broadcast %4 : vector<1x128xf32> to vector<16x128xf32>
    %6 = arith.mulf %2, %5 : vector<16x128xf32>
    %7 = arith.truncf %6 : vector<16x128xf32> to vector<16x128xbf16>
    %c0_5 = arith.constant 0 : index
    %c0_6 = arith.constant 0 : index
    %8 = vector.load %arg4[%c0_5, %c0_6] : memref<128x128xbf16, #tpu.memory_space<vmem>>, vector<128x128xbf16>
    %cst = arith.constant dense<0.000000e+00> : vector<16x128xf32>
    %9 = tpu.matmul %7, %8, %cst {dimension_numbers = #tpu.dot_dimension_numbers<[1], [0], [0], [1], [0, 0, 1, 1], [], []>} : vector<16x128xbf16>, vector<128x128xbf16>, vector<16x128xf32> -> vector<16x128xf32>
    %c0_7 = arith.constant 0 : index
    %c0_8 = arith.constant 0 : index
    %10 = vector.load %arg5[%c0_7, %c0_8] : memref<1x128xf32, #tpu.memory_space<vmem>>, vector<1x128xf32>
    %11 = vector.broadcast %10 : vector<1x128xf32> to vector<16x128xf32>
    %12 = arith.mulf %9, %11 : vector<16x128xf32>
    %c0_9 = arith.constant 0 : index
    %c0_10 = arith.constant 0 : index
    %13 = vector.load %arg6[%c0_9, %c0_10] : memref<1x128xf32, #tpu.memory_space<vmem>>, vector<1x128xf32>
    %14 = vector.broadcast %13 : vector<1x128xf32> to vector<16x128xf32>
    %15 = arith.addf %12, %14 : vector<16x128xf32>
    %16 = arith.truncf %15 : vector<16x128xf32> to vector<16x128xbf16>
    %c0_11 = arith.constant 0 : index
    %c0_12 = arith.constant 0 : index
    %c0_13 = arith.constant 0 : index
    %17 = vector.load %arg8[%c0_11, %c0_12, %c0_13] : memref<1x16x128xbf16, #tpu.memory_space<vmem>>, vector<1x16x128xbf16>
    %18 = vector.shape_cast %17 : vector<1x16x128xbf16> to vector<16x128xbf16>
    %19 = vector.shape_cast %16 : vector<16x128xbf16> to vector<1x16x128xbf16>
    tpu.vector_store %arg8[%c0_11, %c0_12, %c0_13], %19 {strides = array<i32>} : memref<1x16x128xbf16, #tpu.memory_space<vmem>>, vector<1x16x128xbf16>,
    return
  }
  func.func @transform_0(%arg0: i32, %arg1: i32, %arg2: i32) -> (i32, i32, i32) {
    %c0_i32 = arith.constant 0 : i32
    %c0_i32_0 = arith.constant 0 : i32
    return %arg0, %arg2, %c0_i32 : i32, i32, i32
  }
  func.func @transform_1(%arg0: i32, %arg1: i32, %arg2: i32) -> (i32, i32) {
    %c0_i32 = arith.constant 0 : i32
    %c0_i32_0 = arith.constant 0 : i32
    return %c0_i32, %arg1 : i32, i32
  }
  func.func @transform_2(%arg0: i32, %arg1: i32, %arg2: i32) -> (i32, i32) {
    %c0_i32 = arith.constant 0 : i32
    %c0_i32_0 = arith.constant 0 : i32
    return %c0_i32, %arg1 : i32, i32
  }
  func.func @transform_3(%arg0: i32, %arg1: i32, %arg2: i32) -> (i32, i32) {
    %c0_i32 = arith.constant 0 : i32
    %c0_i32_0 = arith.constant 0 : i32
    return %c0_i32, %arg1 : i32, i32
  }
  func.func @transform_4(%arg0: i32, %arg1: i32, %arg2: i32) -> (i32, i32, i32) {
    %c0_i32 = arith.constant 0 : i32
    %c0_i32_0 = arith.constant 0 : i32
    %c0_i32_1 = arith.constant 0 : i32
    return %arg0, %c0_i32, %c0_i32_0 : i32, i32, i32
  }
  func.func @transform_5(%arg0: i32, %arg1: i32, %arg2: i32) -> (i32, i32, i32) {
    %c0_i32 = arith.constant 0 : i32
    return %arg0, %arg2, %arg1 : i32, i32, i32
  }
}

module attributes {stable_mosaic.version = 11 : i64} {
  func.func @_conv1x1_kernel(%arg0: i32, %arg1: i32, %arg2: i32, %arg3: memref<1x16x128xbf16, #tpu.memory_space<vmem>>, %arg4: memref<128x256xbf16, #tpu.memory_space<vmem>>, %arg5: memref<1x256xf32, #tpu.memory_space<vmem>>, %arg6: memref<1x256xf32, #tpu.memory_space<vmem>>, %arg7: memref<1x16x256xbf16, #tpu.memory_space<vmem>>) attributes {dimension_semantics = [#tpu.dimension_semantics<parallel>, #tpu.dimension_semantics<parallel>, #tpu.dimension_semantics<parallel>], iteration_bounds = array<i64: 2, 1, 1>, scalar_prefetch = 0 : i64, scratch_operands = 0 : i64, tpu.core_type = #tpu.core_type<tc>, window_params = [{transform_indices = @transform_0, window_bounds = array<i64: 1, 16, 128>}, {transform_indices = @transform_1, window_bounds = array<i64: 128, 256>}, {transform_indices = @transform_2, window_bounds = array<i64: 1, 256>}, {transform_indices = @transform_3, window_bounds = array<i64: 1, 256>}, {transform_indices = @transform_4, window_bounds = array<i64: 1, 16, 256>}]} {
    %c0 = arith.constant 0 : index
    %c0_0 = arith.constant 0 : index
    %c0_1 = arith.constant 0 : index
    %0 = vector.load %arg3[%c0, %c0_0, %c0_1] : memref<1x16x128xbf16, #tpu.memory_space<vmem>>, vector<1x16x128xbf16>
    %1 = vector.shape_cast %0 : vector<1x16x128xbf16> to vector<16x128xbf16>
    %c0_2 = arith.constant 0 : index
    %c0_3 = arith.constant 0 : index
    %2 = vector.load %arg4[%c0_2, %c0_3] : memref<128x256xbf16, #tpu.memory_space<vmem>>, vector<128x256xbf16>
    %cst = arith.constant dense<0.000000e+00> : vector<16x256xf32>
    %3 = tpu.matmul %1, %2, %cst {dimension_numbers = #tpu.dot_dimension_numbers<[1], [0], [0], [1], [0, 0, 1, 1], [], []>} : vector<16x128xbf16>, vector<128x256xbf16>, vector<16x256xf32> -> vector<16x256xf32>
    %c0_4 = arith.constant 0 : index
    %c0_5 = arith.constant 0 : index
    %4 = vector.load %arg5[%c0_4, %c0_5] : memref<1x256xf32, #tpu.memory_space<vmem>>, vector<1x256xf32>
    %5 = vector.broadcast %4 : vector<1x256xf32> to vector<16x256xf32>
    %6 = arith.mulf %3, %5 : vector<16x256xf32>
    %c0_6 = arith.constant 0 : index
    %c0_7 = arith.constant 0 : index
    %7 = vector.load %arg6[%c0_6, %c0_7] : memref<1x256xf32, #tpu.memory_space<vmem>>, vector<1x256xf32>
    %8 = vector.broadcast %7 : vector<1x256xf32> to vector<16x256xf32>
    %9 = arith.addf %6, %8 : vector<16x256xf32>
    %cst_8 = arith.constant 0.000000e+00 : f32
    %cst_9 = arith.constant 6.000000e+00 : f32
    %10 = vector.broadcast %cst_8 : f32 to vector<16x256xf32>
    %11 = arith.maximumf %10, %9 : vector<16x256xf32>
    %12 = vector.broadcast %cst_9 : f32 to vector<16x256xf32>
    %13 = arith.minimumf %12, %11 : vector<16x256xf32>
    %14 = arith.truncf %13 : vector<16x256xf32> to vector<16x256xbf16>
    %c0_10 = arith.constant 0 : index
    %c0_11 = arith.constant 0 : index
    %c0_12 = arith.constant 0 : index
    %15 = vector.load %arg7[%c0_10, %c0_11, %c0_12] : memref<1x16x256xbf16, #tpu.memory_space<vmem>>, vector<1x16x256xbf16>
    %16 = vector.shape_cast %15 : vector<1x16x256xbf16> to vector<16x256xbf16>
    %17 = vector.shape_cast %14 : vector<16x256xbf16> to vector<1x16x256xbf16>
    tpu.vector_store %arg7[%c0_10, %c0_11, %c0_12], %17 {strides = array<i32>} : memref<1x16x256xbf16, #tpu.memory_space<vmem>>, vector<1x16x256xbf16>,
    return
  }
  func.func @transform_0(%arg0: i32, %arg1: i32, %arg2: i32) -> (i32, i32, i32) {
    %c0_i32 = arith.constant 0 : i32
    %c0_i32_0 = arith.constant 0 : i32
    return %arg0, %arg2, %c0_i32 : i32, i32, i32
  }
  func.func @transform_1(%arg0: i32, %arg1: i32, %arg2: i32) -> (i32, i32) {
    %c0_i32 = arith.constant 0 : i32
    %c0_i32_0 = arith.constant 0 : i32
    return %c0_i32, %arg1 : i32, i32
  }
  func.func @transform_2(%arg0: i32, %arg1: i32, %arg2: i32) -> (i32, i32) {
    %c0_i32 = arith.constant 0 : i32
    %c0_i32_0 = arith.constant 0 : i32
    return %c0_i32, %arg1 : i32, i32
  }
  func.func @transform_3(%arg0: i32, %arg1: i32, %arg2: i32) -> (i32, i32) {
    %c0_i32 = arith.constant 0 : i32
    %c0_i32_0 = arith.constant 0 : i32
    return %c0_i32, %arg1 : i32, i32
  }
  func.func @transform_4(%arg0: i32, %arg1: i32, %arg2: i32) -> (i32, i32, i32) {
    %c0_i32 = arith.constant 0 : i32
    return %arg0, %arg2, %arg1 : i32, i32, i32
  }
}

module attributes {stable_mosaic.version = 11 : i64} {
  func.func @_dw3x3_kernel(%arg0: i32, %arg1: i32, %arg2: memref<1x4x4x128xbf16, #tpu.memory_space<vmem>>, %arg3: memref<9x128xbf16, #tpu.memory_space<vmem>>, %arg4: memref<1x128xf32, #tpu.memory_space<vmem>>, %arg5: memref<1x128xf32, #tpu.memory_space<vmem>>, %arg6: memref<1x4x4x128xbf16, #tpu.memory_space<vmem>>, %arg7: memref<6x20x128xbf16, #tpu.memory_space<vmem>>) attributes {dimension_semantics = [#tpu.dimension_semantics<parallel>, #tpu.dimension_semantics<parallel>], iteration_bounds = array<i64: 2, 2>, scalar_prefetch = 0 : i64, scratch_operands = 1 : i64, tpu.core_type = #tpu.core_type<tc>, window_params = [{transform_indices = @transform_0, window_bounds = array<i64: 1, 4, 4, 128>}, {transform_indices = @transform_1, window_bounds = array<i64: 9, 128>}, {transform_indices = @transform_2, window_bounds = array<i64: 1, 128>}, {transform_indices = @transform_3, window_bounds = array<i64: 1, 128>}, {transform_indices = @transform_4, window_bounds = array<i64: 1, 4, 4, 128>}]} {
    %c0 = arith.constant 0 : index
    %c0_0 = arith.constant 0 : index
    %0 = vector.load %arg3[%c0, %c0_0] : memref<9x128xbf16, #tpu.memory_space<vmem>>, vector<9x128xbf16>
    %1 = arith.extf %0 : vector<9x128xbf16> to vector<9x128xf32>
    %c0_1 = arith.constant 0 : index
    %c0_2 = arith.constant 0 : index
    %2 = vector.load %arg4[%c0_1, %c0_2] : memref<1x128xf32, #tpu.memory_space<vmem>>, vector<1x128xf32>
    %c0_3 = arith.constant 0 : index
    %c0_4 = arith.constant 0 : index
    %3 = vector.load %arg5[%c0_3, %c0_4] : memref<1x128xf32, #tpu.memory_space<vmem>>, vector<1x128xf32>
    %cst = arith.constant 0.000000e+00 : bf16
    %4 = vector.broadcast %cst : bf16 to vector<6x20x128xbf16>
    %c0_5 = arith.constant 0 : index
    %c0_6 = arith.constant 0 : index
    %c0_7 = arith.constant 0 : index
    %5 = vector.load %arg7[%c0_5, %c0_6, %c0_7] : memref<6x20x128xbf16, #tpu.memory_space<vmem>>, vector<6x20x128xbf16>
    tpu.vector_store %arg7[%c0_5, %c0_6, %c0_7], %4 {strides = array<i32>} : memref<6x20x128xbf16, #tpu.memory_space<vmem>>, vector<6x20x128xbf16>,
    %c0_8 = arith.constant 0 : index
    %c0_9 = arith.constant 0 : index
    %c0_10 = arith.constant 0 : index
    %c0_11 = arith.constant 0 : index
    %6 = vector.load %arg2[%c0_8, %c0_9, %c0_10, %c0_11] : memref<1x4x4x128xbf16, #tpu.memory_space<vmem>>, vector<1x4x4x128xbf16>
    %7 = vector.shape_cast %6 : vector<1x4x4x128xbf16> to vector<4x4x128xbf16>
    %c1 = arith.constant 1 : index
    %c8 = arith.constant 8 : index
    %c0_12 = arith.constant 0 : index
    %8 = vector.load %arg7[%c1, %c8, %c0_12] : memref<6x20x128xbf16, #tpu.memory_space<vmem>>, vector<4x4x128xbf16>
    tpu.vector_store %arg7[%c1, %c8, %c0_12], %7 {strides = array<i32>} : memref<6x20x128xbf16, #tpu.memory_space<vmem>>, vector<4x4x128xbf16>,
    %cst_13 = arith.constant 0.000000e+00 : f32
    %9 = vector.broadcast %cst_13 : f32 to vector<4x4x128xf32>
    %c0_14 = arith.constant 0 : index
    %c7 = arith.constant 7 : index
    %c0_15 = arith.constant 0 : index
    %10 = vector.load %arg7[%c0_14, %c7, %c0_15] : memref<6x20x128xbf16, #tpu.memory_space<vmem>>, vector<4x4x128xbf16>
    %11 = arith.extf %10 : vector<4x4x128xbf16> to vector<4x4x128xf32>
    %12 = vector.extract_strided_slice %1 {offsets = [0, 0], sizes = [1, 128], strides = [1, 1]} : vector<9x128xf32> to vector<1x128xf32>
    %13 = vector.shape_cast %12 : vector<1x128xf32> to vector<128xf32>
    %14 = vector.shape_cast %13 : vector<128xf32> to vector<1x1x128xf32>
    %15 = vector.broadcast %14 : vector<1x1x128xf32> to vector<4x4x128xf32>
    %16 = arith.mulf %11, %15 : vector<4x4x128xf32>
    %17 = arith.addf %9, %16 : vector<4x4x128xf32>
    %c0_16 = arith.constant 0 : index
    %c8_17 = arith.constant 8 : index
    %c0_18 = arith.constant 0 : index
    %18 = vector.load %arg7[%c0_16, %c8_17, %c0_18] : memref<6x20x128xbf16, #tpu.memory_space<vmem>>, vector<4x4x128xbf16>
    %19 = arith.extf %18 : vector<4x4x128xbf16> to vector<4x4x128xf32>
    %20 = vector.extract_strided_slice %1 {offsets = [1, 0], sizes = [1, 128], strides = [1, 1]} : vector<9x128xf32> to vector<1x128xf32>
    %21 = vector.shape_cast %20 : vector<1x128xf32> to vector<128xf32>
    %22 = vector.shape_cast %21 : vector<128xf32> to vector<1x1x128xf32>
    %23 = vector.broadcast %22 : vector<1x1x128xf32> to vector<4x4x128xf32>
    %24 = arith.mulf %19, %23 : vector<4x4x128xf32>
    %25 = arith.addf %17, %24 : vector<4x4x128xf32>
    %c0_19 = arith.constant 0 : index
    %c9 = arith.constant 9 : index
    %c0_20 = arith.constant 0 : index
    %26 = vector.load %arg7[%c0_19, %c9, %c0_20] : memref<6x20x128xbf16, #tpu.memory_space<vmem>>, vector<4x4x128xbf16>
    %27 = arith.extf %26 : vector<4x4x128xbf16> to vector<4x4x128xf32>
    %28 = vector.extract_strided_slice %1 {offsets = [2, 0], sizes = [1, 128], strides = [1, 1]} : vector<9x128xf32> to vector<1x128xf32>
    %29 = vector.shape_cast %28 : vector<1x128xf32> to vector<128xf32>
    %30 = vector.shape_cast %29 : vector<128xf32> to vector<1x1x128xf32>
    %31 = vector.broadcast %30 : vector<1x1x128xf32> to vector<4x4x128xf32>
    %32 = arith.mulf %27, %31 : vector<4x4x128xf32>
    %33 = arith.addf %25, %32 : vector<4x4x128xf32>
    %c1_21 = arith.constant 1 : index
    %c7_22 = arith.constant 7 : index
    %c0_23 = arith.constant 0 : index
    %34 = vector.load %arg7[%c1_21, %c7_22, %c0_23] : memref<6x20x128xbf16, #tpu.memory_space<vmem>>, vector<4x4x128xbf16>
    %35 = arith.extf %34 : vector<4x4x128xbf16> to vector<4x4x128xf32>
    %36 = vector.extract_strided_slice %1 {offsets = [3, 0], sizes = [1, 128], strides = [1, 1]} : vector<9x128xf32> to vector<1x128xf32>
    %37 = vector.shape_cast %36 : vector<1x128xf32> to vector<128xf32>
    %38 = vector.shape_cast %37 : vector<128xf32> to vector<1x1x128xf32>
    %39 = vector.broadcast %38 : vector<1x1x128xf32> to vector<4x4x128xf32>
    %40 = arith.mulf %35, %39 : vector<4x4x128xf32>
    %41 = arith.addf %33, %40 : vector<4x4x128xf32>
    %c1_24 = arith.constant 1 : index
    %c8_25 = arith.constant 8 : index
    %c0_26 = arith.constant 0 : index
    %42 = vector.load %arg7[%c1_24, %c8_25, %c0_26] : memref<6x20x128xbf16, #tpu.memory_space<vmem>>, vector<4x4x128xbf16>
    %43 = arith.extf %42 : vector<4x4x128xbf16> to vector<4x4x128xf32>
    %44 = vector.extract_strided_slice %1 {offsets = [4, 0], sizes = [1, 128], strides = [1, 1]} : vector<9x128xf32> to vector<1x128xf32>
    %45 = vector.shape_cast %44 : vector<1x128xf32> to vector<128xf32>
    %46 = vector.shape_cast %45 : vector<128xf32> to vector<1x1x128xf32>
    %47 = vector.broadcast %46 : vector<1x1x128xf32> to vector<4x4x128xf32>
    %48 = arith.mulf %43, %47 : vector<4x4x128xf32>
    %49 = arith.addf %41, %48 : vector<4x4x128xf32>
    %c1_27 = arith.constant 1 : index
    %c9_28 = arith.constant 9 : index
    %c0_29 = arith.constant 0 : index
    %50 = vector.load %arg7[%c1_27, %c9_28, %c0_29] : memref<6x20x128xbf16, #tpu.memory_space<vmem>>, vector<4x4x128xbf16>
    %51 = arith.extf %50 : vector<4x4x128xbf16> to vector<4x4x128xf32>
    %52 = vector.extract_strided_slice %1 {offsets = [5, 0], sizes = [1, 128], strides = [1, 1]} : vector<9x128xf32> to vector<1x128xf32>
    %53 = vector.shape_cast %52 : vector<1x128xf32> to vector<128xf32>
    %54 = vector.shape_cast %53 : vector<128xf32> to vector<1x1x128xf32>
    %55 = vector.broadcast %54 : vector<1x1x128xf32> to vector<4x4x128xf32>
    %56 = arith.mulf %51, %55 : vector<4x4x128xf32>
    %57 = arith.addf %49, %56 : vector<4x4x128xf32>
    %c2 = arith.constant 2 : index
    %c7_30 = arith.constant 7 : index
    %c0_31 = arith.constant 0 : index
    %58 = vector.load %arg7[%c2, %c7_30, %c0_31] : memref<6x20x128xbf16, #tpu.memory_space<vmem>>, vector<4x4x128xbf16>
    %59 = arith.extf %58 : vector<4x4x128xbf16> to vector<4x4x128xf32>
    %60 = vector.extract_strided_slice %1 {offsets = [6, 0], sizes = [1, 128], strides = [1, 1]} : vector<9x128xf32> to vector<1x128xf32>
    %61 = vector.shape_cast %60 : vector<1x128xf32> to vector<128xf32>
    %62 = vector.shape_cast %61 : vector<128xf32> to vector<1x1x128xf32>
    %63 = vector.broadcast %62 : vector<1x1x128xf32> to vector<4x4x128xf32>
    %64 = arith.mulf %59, %63 : vector<4x4x128xf32>
    %65 = arith.addf %57, %64 : vector<4x4x128xf32>
    %c2_32 = arith.constant 2 : index
    %c8_33 = arith.constant 8 : index
    %c0_34 = arith.constant 0 : index
    %66 = vector.load %arg7[%c2_32, %c8_33, %c0_34] : memref<6x20x128xbf16, #tpu.memory_space<vmem>>, vector<4x4x128xbf16>
    %67 = arith.extf %66 : vector<4x4x128xbf16> to vector<4x4x128xf32>
    %68 = vector.extract_strided_slice %1 {offsets = [7, 0], sizes = [1, 128], strides = [1, 1]} : vector<9x128xf32> to vector<1x128xf32>
    %69 = vector.shape_cast %68 : vector<1x128xf32> to vector<128xf32>
    %70 = vector.shape_cast %69 : vector<128xf32> to vector<1x1x128xf32>
    %71 = vector.broadcast %70 : vector<1x1x128xf32> to vector<4x4x128xf32>
    %72 = arith.mulf %67, %71 : vector<4x4x128xf32>
    %73 = arith.addf %65, %72 : vector<4x4x128xf32>
    %c2_35 = arith.constant 2 : index
    %c9_36 = arith.constant 9 : index
    %c0_37 = arith.constant 0 : index
    %74 = vector.load %arg7[%c2_35, %c9_36, %c0_37] : memref<6x20x128xbf16, #tpu.memory_space<vmem>>, vector<4x4x128xbf16>
    %75 = arith.extf %74 : vector<4x4x128xbf16> to vector<4x4x128xf32>
    %76 = vector.extract_strided_slice %1 {offsets = [8, 0], sizes = [1, 128], strides = [1, 1]} : vector<9x128xf32> to vector<1x128xf32>
    %77 = vector.shape_cast %76 : vector<1x128xf32> to vector<128xf32>
    %78 = vector.shape_cast %77 : vector<128xf32> to vector<1x1x128xf32>
    %79 = vector.broadcast %78 : vector<1x1x128xf32> to vector<4x4x128xf32>
    %80 = arith.mulf %75, %79 : vector<4x4x128xf32>
    %81 = arith.addf %73, %80 : vector<4x4x128xf32>
    %82 = vector.shape_cast %2 : vector<1x128xf32> to vector<1x1x128xf32>
    %83 = vector.broadcast %82 : vector<1x1x128xf32> to vector<4x4x128xf32>
    %84 = arith.mulf %81, %83 : vector<4x4x128xf32>
    %85 = vector.shape_cast %3 : vector<1x128xf32> to vector<1x1x128xf32>
    %86 = vector.broadcast %85 : vector<1x1x128xf32> to vector<4x4x128xf32>
    %87 = arith.addf %84, %86 : vector<4x4x128xf32>
    %cst_38 = arith.constant 0.000000e+00 : f32
    %cst_39 = arith.constant 6.000000e+00 : f32
    %88 = vector.broadcast %cst_38 : f32 to vector<4x4x128xf32>
    %89 = arith.maximumf %88, %87 : vector<4x4x128xf32>
    %90 = vector.broadcast %cst_39 : f32 to vector<4x4x128xf32>
    %91 = arith.minimumf %90, %89 : vector<4x4x128xf32>
    %92 = arith.truncf %91 : vector<4x4x128xf32> to vector<4x4x128xbf16>
    %c0_40 = arith.constant 0 : index
    %c0_41 = arith.constant 0 : index
    %c0_42 = arith.constant 0 : index
    %c0_43 = arith.constant 0 : index
    %93 = vector.load %arg6[%c0_40, %c0_41, %c0_42, %c0_43] : memref<1x4x4x128xbf16, #tpu.memory_space<vmem>>, vector<1x4x4x128xbf16>
    %94 = vector.shape_cast %93 : vector<1x4x4x128xbf16> to vector<4x4x128xbf16>
    %95 = vector.shape_cast %92 : vector<4x4x128xbf16> to vector<1x4x4x128xbf16>
    tpu.vector_store %arg6[%c0_40, %c0_41, %c0_42, %c0_43], %95 {strides = array<i32>} : memref<1x4x4x128xbf16, #tpu.memory_space<vmem>>, vector<1x4x4x128xbf16>,
    return
  }
  func.func @transform_0(%arg0: i32, %arg1: i32) -> (i32, i32, i32, i32) {
    %c0_i32 = arith.constant 0 : i32
    %c0_i32_0 = arith.constant 0 : i32
    %c0_i32_1 = arith.constant 0 : i32
    return %arg0, %c0_i32, %c0_i32_0, %arg1 : i32, i32, i32, i32
  }
  func.func @transform_1(%arg0: i32, %arg1: i32) -> (i32, i32) {
    %c0_i32 = arith.constant 0 : i32
    %c0_i32_0 = arith.constant 0 : i32
    return %c0_i32, %arg1 : i32, i32
  }
  func.func @transform_2(%arg0: i32, %arg1: i32) -> (i32, i32) {
    %c0_i32 = arith.constant 0 : i32
    %c0_i32_0 = arith.constant 0 : i32
    return %c0_i32, %arg1 : i32, i32
  }
  func.func @transform_3(%arg0: i32, %arg1: i32) -> (i32, i32) {
    %c0_i32 = arith.constant 0 : i32
    %c0_i32_0 = arith.constant 0 : i32
    return %c0_i32, %arg1 : i32, i32
  }
  func.func @transform_4(%arg0: i32, %arg1: i32) -> (i32, i32, i32, i32) {
    %c0_i32 = arith.constant 0 : i32
    %c0_i32_0 = arith.constant 0 : i32
    %c0_i32_1 = arith.constant 0 : i32
    return %arg0, %c0_i32, %c0_i32_0, %arg1 : i32, i32, i32, i32
  }
}

module attributes {stable_mosaic.version = 11 : i64} {
  func.func @_conv1x1_kernel(%arg0: i32, %arg1: i32, %arg2: i32, %arg3: memref<1x16x256xbf16, #tpu.memory_space<vmem>>, %arg4: memref<256x128xbf16, #tpu.memory_space<vmem>>, %arg5: memref<1x128xf32, #tpu.memory_space<vmem>>, %arg6: memref<1x128xf32, #tpu.memory_space<vmem>>, %arg7: memref<1x16x128xbf16, #tpu.memory_space<vmem>>, %arg8: memref<1x16x128xbf16, #tpu.memory_space<vmem>>) attributes {dimension_semantics = [#tpu.dimension_semantics<parallel>, #tpu.dimension_semantics<parallel>, #tpu.dimension_semantics<parallel>], iteration_bounds = array<i64: 2, 1, 1>, scalar_prefetch = 0 : i64, scratch_operands = 0 : i64, tpu.core_type = #tpu.core_type<tc>, window_params = [{transform_indices = @transform_0, window_bounds = array<i64: 1, 16, 256>}, {transform_indices = @transform_1, window_bounds = array<i64: 256, 128>}, {transform_indices = @transform_2, window_bounds = array<i64: 1, 128>}, {transform_indices = @transform_3, window_bounds = array<i64: 1, 128>}, {transform_indices = @transform_4, window_bounds = array<i64: 1, 16, 128>}, {transform_indices = @transform_5, window_bounds = array<i64: 1, 16, 128>}]} {
    %c0 = arith.constant 0 : index
    %c0_0 = arith.constant 0 : index
    %c0_1 = arith.constant 0 : index
    %0 = vector.load %arg3[%c0, %c0_0, %c0_1] : memref<1x16x256xbf16, #tpu.memory_space<vmem>>, vector<1x16x256xbf16>
    %1 = vector.shape_cast %0 : vector<1x16x256xbf16> to vector<16x256xbf16>
    %c0_2 = arith.constant 0 : index
    %c0_3 = arith.constant 0 : index
    %2 = vector.load %arg4[%c0_2, %c0_3] : memref<256x128xbf16, #tpu.memory_space<vmem>>, vector<256x128xbf16>
    %cst = arith.constant dense<0.000000e+00> : vector<16x128xf32>
    %3 = tpu.matmul %1, %2, %cst {dimension_numbers = #tpu.dot_dimension_numbers<[1], [0], [0], [1], [0, 0, 1, 1], [], []>} : vector<16x256xbf16>, vector<256x128xbf16>, vector<16x128xf32> -> vector<16x128xf32>
    %c0_4 = arith.constant 0 : index
    %c0_5 = arith.constant 0 : index
    %4 = vector.load %arg5[%c0_4, %c0_5] : memref<1x128xf32, #tpu.memory_space<vmem>>, vector<1x128xf32>
    %5 = vector.broadcast %4 : vector<1x128xf32> to vector<16x128xf32>
    %6 = arith.mulf %3, %5 : vector<16x128xf32>
    %c0_6 = arith.constant 0 : index
    %c0_7 = arith.constant 0 : index
    %7 = vector.load %arg6[%c0_6, %c0_7] : memref<1x128xf32, #tpu.memory_space<vmem>>, vector<1x128xf32>
    %8 = vector.broadcast %7 : vector<1x128xf32> to vector<16x128xf32>
    %9 = arith.addf %6, %8 : vector<16x128xf32>
    %c0_8 = arith.constant 0 : index
    %c0_9 = arith.constant 0 : index
    %c0_10 = arith.constant 0 : index
    %10 = vector.load %arg7[%c0_8, %c0_9, %c0_10] : memref<1x16x128xbf16, #tpu.memory_space<vmem>>, vector<1x16x128xbf16>
    %11 = vector.shape_cast %10 : vector<1x16x128xbf16> to vector<16x128xbf16>
    %12 = arith.extf %11 : vector<16x128xbf16> to vector<16x128xf32>
    %13 = arith.addf %9, %12 : vector<16x128xf32>
    %14 = arith.truncf %13 : vector<16x128xf32> to vector<16x128xbf16>
    %c0_11 = arith.constant 0 : index
    %c0_12 = arith.constant 0 : index
    %c0_13 = arith.constant 0 : index
    %15 = vector.load %arg8[%c0_11, %c0_12, %c0_13] : memref<1x16x128xbf16, #tpu.memory_space<vmem>>, vector<1x16x128xbf16>
    %16 = vector.shape_cast %15 : vector<1x16x128xbf16> to vector<16x128xbf16>
    %17 = vector.shape_cast %14 : vector<16x128xbf16> to vector<1x16x128xbf16>
    tpu.vector_store %arg8[%c0_11, %c0_12, %c0_13], %17 {strides = array<i32>} : memref<1x16x128xbf16, #tpu.memory_space<vmem>>, vector<1x16x128xbf16>,
    return
  }
  func.func @transform_0(%arg0: i32, %arg1: i32, %arg2: i32) -> (i32, i32, i32) {
    %c0_i32 = arith.constant 0 : i32
    %c0_i32_0 = arith.constant 0 : i32
    return %arg0, %arg2, %c0_i32 : i32, i32, i32
  }
  func.func @transform_1(%arg0: i32, %arg1: i32, %arg2: i32) -> (i32, i32) {
    %c0_i32 = arith.constant 0 : i32
    %c0_i32_0 = arith.constant 0 : i32
    return %c0_i32, %arg1 : i32, i32
  }
  func.func @transform_2(%arg0: i32, %arg1: i32, %arg2: i32) -> (i32, i32) {
    %c0_i32 = arith.constant 0 : i32
    %c0_i32_0 = arith.constant 0 : i32
    return %c0_i32, %arg1 : i32, i32
  }
  func.func @transform_3(%arg0: i32, %arg1: i32, %arg2: i32) -> (i32, i32) {
    %c0_i32 = arith.constant 0 : i32
    %c0_i32_0 = arith.constant 0 : i32
    return %c0_i32, %arg1 : i32, i32
  }
  func.func @transform_4(%arg0: i32, %arg1: i32, %arg2: i32) -> (i32, i32, i32) {
    %c0_i32 = arith.constant 0 : i32
    return %arg0, %arg2, %arg1 : i32, i32, i32
  }
  func.func @transform_5(%arg0: i32, %arg1: i32, %arg2: i32) -> (i32, i32, i32) {
    %c0_i32 = arith.constant 0 : i32
    return %arg0, %arg2, %arg1 : i32, i32, i32
  }
}

module attributes {stable_mosaic.version = 11 : i64} {
  func.func @_conv1x1_kernel(%arg0: i32, %arg1: i32, %arg2: i32, %arg3: memref<1x4x256xbf16, #tpu.memory_space<vmem>>, %arg4: memref<256x128xbf16, #tpu.memory_space<vmem>>, %arg5: memref<1x128xf32, #tpu.memory_space<vmem>>, %arg6: memref<1x128xf32, #tpu.memory_space<vmem>>, %arg7: memref<1x1x256xf32, #tpu.memory_space<vmem>>, %arg8: memref<1x4x128xbf16, #tpu.memory_space<vmem>>) attributes {dimension_semantics = [#tpu.dimension_semantics<parallel>, #tpu.dimension_semantics<parallel>, #tpu.dimension_semantics<parallel>], iteration_bounds = array<i64: 2, 1, 1>, scalar_prefetch = 0 : i64, scratch_operands = 0 : i64, tpu.core_type = #tpu.core_type<tc>, window_params = [{transform_indices = @transform_0, window_bounds = array<i64: 1, 4, 256>}, {transform_indices = @transform_1, window_bounds = array<i64: 256, 128>}, {transform_indices = @transform_2, window_bounds = array<i64: 1, 128>}, {transform_indices = @transform_3, window_bounds = array<i64: 1, 128>}, {transform_indices = @transform_4, window_bounds = array<i64: 1, 1, 256>}, {transform_indices = @transform_5, window_bounds = array<i64: 1, 4, 128>}]} {
    %c0 = arith.constant 0 : index
    %c0_0 = arith.constant 0 : index
    %c0_1 = arith.constant 0 : index
    %0 = vector.load %arg3[%c0, %c0_0, %c0_1] : memref<1x4x256xbf16, #tpu.memory_space<vmem>>, vector<1x4x256xbf16>
    %1 = vector.shape_cast %0 : vector<1x4x256xbf16> to vector<4x256xbf16>
    %2 = arith.extf %1 : vector<4x256xbf16> to vector<4x256xf32>
    %c0_2 = arith.constant 0 : index
    %c0_3 = arith.constant 0 : index
    %c0_4 = arith.constant 0 : index
    %3 = vector.load %arg7[%c0_2, %c0_3, %c0_4] : memref<1x1x256xf32, #tpu.memory_space<vmem>>, vector<1x1x256xf32>
    %4 = vector.shape_cast %3 : vector<1x1x256xf32> to vector<1x256xf32>
    %5 = vector.broadcast %4 : vector<1x256xf32> to vector<4x256xf32>
    %6 = arith.mulf %2, %5 : vector<4x256xf32>
    %7 = arith.truncf %6 : vector<4x256xf32> to vector<4x256xbf16>
    %c0_5 = arith.constant 0 : index
    %c0_6 = arith.constant 0 : index
    %8 = vector.load %arg4[%c0_5, %c0_6] : memref<256x128xbf16, #tpu.memory_space<vmem>>, vector<256x128xbf16>
    %cst = arith.constant dense<0.000000e+00> : vector<4x128xf32>
    %9 = tpu.matmul %7, %8, %cst {dimension_numbers = #tpu.dot_dimension_numbers<[1], [0], [0], [1], [0, 0, 1, 1], [], []>} : vector<4x256xbf16>, vector<256x128xbf16>, vector<4x128xf32> -> vector<4x128xf32>
    %c0_7 = arith.constant 0 : index
    %c0_8 = arith.constant 0 : index
    %10 = vector.load %arg5[%c0_7, %c0_8] : memref<1x128xf32, #tpu.memory_space<vmem>>, vector<1x128xf32>
    %11 = vector.broadcast %10 : vector<1x128xf32> to vector<4x128xf32>
    %12 = arith.mulf %9, %11 : vector<4x128xf32>
    %c0_9 = arith.constant 0 : index
    %c0_10 = arith.constant 0 : index
    %13 = vector.load %arg6[%c0_9, %c0_10] : memref<1x128xf32, #tpu.memory_space<vmem>>, vector<1x128xf32>
    %14 = vector.broadcast %13 : vector<1x128xf32> to vector<4x128xf32>
    %15 = arith.addf %12, %14 : vector<4x128xf32>
    %16 = arith.truncf %15 : vector<4x128xf32> to vector<4x128xbf16>
    %c0_11 = arith.constant 0 : index
    %c0_12 = arith.constant 0 : index
    %c0_13 = arith.constant 0 : index
    %17 = vector.load %arg8[%c0_11, %c0_12, %c0_13] : memref<1x4x128xbf16, #tpu.memory_space<vmem>>, vector<1x4x128xbf16>
    %18 = vector.shape_cast %17 : vector<1x4x128xbf16> to vector<4x128xbf16>
    %19 = vector.shape_cast %16 : vector<4x128xbf16> to vector<1x4x128xbf16>
    tpu.vector_store %arg8[%c0_11, %c0_12, %c0_13], %19 {strides = array<i32>} : memref<1x4x128xbf16, #tpu.memory_space<vmem>>, vector<1x4x128xbf16>,
    return
  }
  func.func @transform_0(%arg0: i32, %arg1: i32, %arg2: i32) -> (i32, i32, i32) {
    %c0_i32 = arith.constant 0 : i32
    %c0_i32_0 = arith.constant 0 : i32
    return %arg0, %arg2, %c0_i32 : i32, i32, i32
  }
  func.func @transform_1(%arg0: i32, %arg1: i32, %arg2: i32) -> (i32, i32) {
    %c0_i32 = arith.constant 0 : i32
    %c0_i32_0 = arith.constant 0 : i32
    return %c0_i32, %arg1 : i32, i32
  }
  func.func @transform_2(%arg0: i32, %arg1: i32, %arg2: i32) -> (i32, i32) {
    %c0_i32 = arith.constant 0 : i32
    %c0_i32_0 = arith.constant 0 : i32
    return %c0_i32, %arg1 : i32, i32
  }
  func.func @transform_3(%arg0: i32, %arg1: i32, %arg2: i32) -> (i32, i32) {
    %c0_i32 = arith.constant 0 : i32
    %c0_i32_0 = arith.constant 0 : i32
    return %c0_i32, %arg1 : i32, i32
  }
  func.func @transform_4(%arg0: i32, %arg1: i32, %arg2: i32) -> (i32, i32, i32) {
    %c0_i32 = arith.constant 0 : i32
    %c0_i32_0 = arith.constant 0 : i32
    %c0_i32_1 = arith.constant 0 : i32
    return %arg0, %c0_i32, %c0_i32_0 : i32, i32, i32
  }
  func.func @transform_5(%arg0: i32, %arg1: i32, %arg2: i32) -> (i32, i32, i32) {
    %c0_i32 = arith.constant 0 : i32
    return %arg0, %arg2, %arg1 : i32, i32, i32
  }
}

module attributes {stable_mosaic.version = 11 : i64} {
  func.func @_conv1x1_kernel(%arg0: i32, %arg1: i32, %arg2: i32, %arg3: memref<1x4x1024xbf16, #tpu.memory_space<vmem>>, %arg4: memref<1024x256xbf16, #tpu.memory_space<vmem>>, %arg5: memref<1x256xf32, #tpu.memory_space<vmem>>, %arg6: memref<1x256xf32, #tpu.memory_space<vmem>>, %arg7: memref<1x4x256xbf16, #tpu.memory_space<vmem>>, %arg8: memref<1x1x8x256xf32, #tpu.memory_space<vmem>>) attributes {dimension_semantics = [#tpu.dimension_semantics<parallel>, #tpu.dimension_semantics<parallel>, #tpu.dimension_semantics<parallel>], iteration_bounds = array<i64: 2, 1, 1>, scalar_prefetch = 0 : i64, scratch_operands = 0 : i64, tpu.core_type = #tpu.core_type<tc>, window_params = [{transform_indices = @transform_0, window_bounds = array<i64: 1, 4, 1024>}, {transform_indices = @transform_1, window_bounds = array<i64: 1024, 256>}, {transform_indices = @transform_2, window_bounds = array<i64: 1, 256>}, {transform_indices = @transform_3, window_bounds = array<i64: 1, 256>}, {transform_indices = @transform_4, window_bounds = array<i64: 1, 4, 256>}, {transform_indices = @transform_5, window_bounds = array<i64: 1, 1, 8, 256>}]} {
    %c0 = arith.constant 0 : index
    %c0_0 = arith.constant 0 : index
    %c0_1 = arith.constant 0 : index
    %0 = vector.load %arg3[%c0, %c0_0, %c0_1] : memref<1x4x1024xbf16, #tpu.memory_space<vmem>>, vector<1x4x1024xbf16>
    %1 = vector.shape_cast %0 : vector<1x4x1024xbf16> to vector<4x1024xbf16>
    %c0_2 = arith.constant 0 : index
    %c0_3 = arith.constant 0 : index
    %2 = vector.load %arg4[%c0_2, %c0_3] : memref<1024x256xbf16, #tpu.memory_space<vmem>>, vector<1024x256xbf16>
    %cst = arith.constant dense<0.000000e+00> : vector<4x256xf32>
    %3 = tpu.matmul %1, %2, %cst {dimension_numbers = #tpu.dot_dimension_numbers<[1], [0], [0], [1], [0, 0, 1, 1], [], []>} : vector<4x1024xbf16>, vector<1024x256xbf16>, vector<4x256xf32> -> vector<4x256xf32>
    %c0_4 = arith.constant 0 : index
    %c0_5 = arith.constant 0 : index
    %4 = vector.load %arg5[%c0_4, %c0_5] : memref<1x256xf32, #tpu.memory_space<vmem>>, vector<1x256xf32>
    %5 = vector.broadcast %4 : vector<1x256xf32> to vector<4x256xf32>
    %6 = arith.mulf %3, %5 : vector<4x256xf32>
    %c0_6 = arith.constant 0 : index
    %c0_7 = arith.constant 0 : index
    %7 = vector.load %arg6[%c0_6, %c0_7] : memref<1x256xf32, #tpu.memory_space<vmem>>, vector<1x256xf32>
    %8 = vector.broadcast %7 : vector<1x256xf32> to vector<4x256xf32>
    %9 = arith.addf %6, %8 : vector<4x256xf32>
    %10 = arith.truncf %9 : vector<4x256xf32> to vector<4x256xbf16>
    %c0_8 = arith.constant 0 : index
    %c0_9 = arith.constant 0 : index
    %c0_10 = arith.constant 0 : index
    %11 = vector.load %arg7[%c0_8, %c0_9, %c0_10] : memref<1x4x256xbf16, #tpu.memory_space<vmem>>, vector<1x4x256xbf16>
    %12 = vector.shape_cast %11 : vector<1x4x256xbf16> to vector<4x256xbf16>
    %13 = vector.shape_cast %10 : vector<4x256xbf16> to vector<1x4x256xbf16>
    tpu.vector_store %arg7[%c0_8, %c0_9, %c0_10], %13 {strides = array<i32>} : memref<1x4x256xbf16, #tpu.memory_space<vmem>>, vector<1x4x256xbf16>,
    %14 = arith.mulf %9, %9 : vector<4x256xf32>
    %cst_11 = arith.constant dense<0.000000e+00> : vector<256xf32>
    %15 = vector.multi_reduction <add>, %14, %cst_11 [0] : vector<4x256xf32> to vector<256xf32>
    %16 = vector.shape_cast %15 : vector<256xf32> to vector<1x256xf32>
    %cst_12 = arith.constant 2.500000e-01 : f32
    %17 = vector.broadcast %cst_12 : f32 to vector<1x256xf32>
    %18 = arith.mulf %16, %17 : vector<1x256xf32>
    %19 = vector.shape_cast %18 : vector<1x256xf32> to vector<1x256xf32>
    %20 = vector.broadcast %19 : vector<1x256xf32> to vector<8x256xf32>
    %c0_13 = arith.constant 0 : index
    %c0_14 = arith.constant 0 : index
    %c0_15 = arith.constant 0 : index
    %c0_16 = arith.constant 0 : index
    %21 = vector.load %arg8[%c0_13, %c0_14, %c0_15, %c0_16] : memref<1x1x8x256xf32, #tpu.memory_space<vmem>>, vector<1x1x8x256xf32>
    %22 = vector.shape_cast %21 : vector<1x1x8x256xf32> to vector<8x256xf32>
    %23 = vector.shape_cast %20 : vector<8x256xf32> to vector<1x1x8x256xf32>
    tpu.vector_store %arg8[%c0_13, %c0_14, %c0_15, %c0_16], %23 {strides = array<i32>} : memref<1x1x8x256xf32, #tpu.memory_space<vmem>>, vector<1x1x8x256xf32>,
    return
  }
  func.func @transform_0(%arg0: i32, %arg1: i32, %arg2: i32) -> (i32, i32, i32) {
    %c0_i32 = arith.constant 0 : i32
    %c0_i32_0 = arith.constant 0 : i32
    return %arg0, %arg2, %c0_i32 : i32, i32, i32
  }
  func.func @transform_1(%arg0: i32, %arg1: i32, %arg2: i32) -> (i32, i32) {
    %c0_i32 = arith.constant 0 : i32
    %c0_i32_0 = arith.constant 0 : i32
    return %c0_i32, %arg1 : i32, i32
  }
  func.func @transform_2(%arg0: i32, %arg1: i32, %arg2: i32) -> (i32, i32) {
    %c0_i32 = arith.constant 0 : i32
    %c0_i32_0 = arith.constant 0 : i32
    return %c0_i32, %arg1 : i32, i32
  }
  func.func @transform_3(%arg0: i32, %arg1: i32, %arg2: i32) -> (i32, i32) {
    %c0_i32 = arith.constant 0 : i32
    %c0_i32_0 = arith.constant 0 : i32
    return %c0_i32, %arg1 : i32, i32
  }
  func.func @transform_4(%arg0: i32, %arg1: i32, %arg2: i32) -> (i32, i32, i32) {
    %c0_i32 = arith.constant 0 : i32
    return %arg0, %arg2, %arg1 : i32, i32, i32
  }
  func.func @transform_5(%arg0: i32, %arg1: i32, %arg2: i32) -> (i32, i32, i32, i32) {
    %c0_i32 = arith.constant 0 : i32
    %c0_i32_0 = arith.constant 0 : i32
    return %arg0, %arg2, %c0_i32, %arg1 : i32, i32, i32, i32
  }
}

module attributes {stable_mosaic.version = 11 : i64} {
  func.func @_conv1x1_kernel(%arg0: i32, %arg1: i32, %arg2: i32, %arg3: memref<1x4x128xbf16, #tpu.memory_space<vmem>>, %arg4: memref<128x256xbf16, #tpu.memory_space<vmem>>, %arg5: memref<1x256xf32, #tpu.memory_space<vmem>>, %arg6: memref<1x256xf32, #tpu.memory_space<vmem>>, %arg7: memref<1x4x256xbf16, #tpu.memory_space<vmem>>) attributes {dimension_semantics = [#tpu.dimension_semantics<parallel>, #tpu.dimension_semantics<parallel>, #tpu.dimension_semantics<parallel>], iteration_bounds = array<i64: 2, 1, 1>, scalar_prefetch = 0 : i64, scratch_operands = 0 : i64, tpu.core_type = #tpu.core_type<tc>, window_params = [{transform_indices = @transform_0, window_bounds = array<i64: 1, 4, 128>}, {transform_indices = @transform_1, window_bounds = array<i64: 128, 256>}, {transform_indices = @transform_2, window_bounds = array<i64: 1, 256>}, {transform_indices = @transform_3, window_bounds = array<i64: 1, 256>}, {transform_indices = @transform_4, window_bounds = array<i64: 1, 4, 256>}]} {
    %c0 = arith.constant 0 : index
    %c0_0 = arith.constant 0 : index
    %c0_1 = arith.constant 0 : index
    %0 = vector.load %arg3[%c0, %c0_0, %c0_1] : memref<1x4x128xbf16, #tpu.memory_space<vmem>>, vector<1x4x128xbf16>
    %1 = vector.shape_cast %0 : vector<1x4x128xbf16> to vector<4x128xbf16>
    %c0_2 = arith.constant 0 : index
    %c0_3 = arith.constant 0 : index
    %2 = vector.load %arg4[%c0_2, %c0_3] : memref<128x256xbf16, #tpu.memory_space<vmem>>, vector<128x256xbf16>
    %cst = arith.constant dense<0.000000e+00> : vector<4x256xf32>
    %3 = tpu.matmul %1, %2, %cst {dimension_numbers = #tpu.dot_dimension_numbers<[1], [0], [0], [1], [0, 0, 1, 1], [], []>} : vector<4x128xbf16>, vector<128x256xbf16>, vector<4x256xf32> -> vector<4x256xf32>
    %c0_4 = arith.constant 0 : index
    %c0_5 = arith.constant 0 : index
    %4 = vector.load %arg5[%c0_4, %c0_5] : memref<1x256xf32, #tpu.memory_space<vmem>>, vector<1x256xf32>
    %5 = vector.broadcast %4 : vector<1x256xf32> to vector<4x256xf32>
    %6 = arith.mulf %3, %5 : vector<4x256xf32>
    %c0_6 = arith.constant 0 : index
    %c0_7 = arith.constant 0 : index
    %7 = vector.load %arg6[%c0_6, %c0_7] : memref<1x256xf32, #tpu.memory_space<vmem>>, vector<1x256xf32>
    %8 = vector.broadcast %7 : vector<1x256xf32> to vector<4x256xf32>
    %9 = arith.addf %6, %8 : vector<4x256xf32>
    %cst_8 = arith.constant 0.000000e+00 : f32
    %cst_9 = arith.constant 6.000000e+00 : f32
    %10 = vector.broadcast %cst_8 : f32 to vector<4x256xf32>
    %11 = arith.maximumf %10, %9 : vector<4x256xf32>
    %12 = vector.broadcast %cst_9 : f32 to vector<4x256xf32>
    %13 = arith.minimumf %12, %11 : vector<4x256xf32>
    %14 = arith.truncf %13 : vector<4x256xf32> to vector<4x256xbf16>
    %c0_10 = arith.constant 0 : index
    %c0_11 = arith.constant 0 : index
    %c0_12 = arith.constant 0 : index
    %15 = vector.load %arg7[%c0_10, %c0_11, %c0_12] : memref<1x4x256xbf16, #tpu.memory_space<vmem>>, vector<1x4x256xbf16>
    %16 = vector.shape_cast %15 : vector<1x4x256xbf16> to vector<4x256xbf16>
    %17 = vector.shape_cast %14 : vector<4x256xbf16> to vector<1x4x256xbf16>
    tpu.vector_store %arg7[%c0_10, %c0_11, %c0_12], %17 {strides = array<i32>} : memref<1x4x256xbf16, #tpu.memory_space<vmem>>, vector<1x4x256xbf16>,
    return
  }
  func.func @transform_0(%arg0: i32, %arg1: i32, %arg2: i32) -> (i32, i32, i32) {
    %c0_i32 = arith.constant 0 : i32
    %c0_i32_0 = arith.constant 0 : i32
    return %arg0, %arg2, %c0_i32 : i32, i32, i32
  }
  func.func @transform_1(%arg0: i32, %arg1: i32, %arg2: i32) -> (i32, i32) {
    %c0_i32 = arith.constant 0 : i32
    %c0_i32_0 = arith.constant 0 : i32
    return %c0_i32, %arg1 : i32, i32
  }
  func.func @transform_2(%arg0: i32, %arg1: i32, %arg2: i32) -> (i32, i32) {
    %c0_i32 = arith.constant 0 : i32
    %c0_i32_0 = arith.constant 0 : i32
    return %c0_i32, %arg1 : i32, i32
  }
  func.func @transform_3(%arg0: i32, %arg1: i32, %arg2: i32) -> (i32, i32) {
    %c0_i32 = arith.constant 0 : i32
    %c0_i32_0 = arith.constant 0 : i32
    return %c0_i32, %arg1 : i32, i32
  }
  func.func @transform_4(%arg0: i32, %arg1: i32, %arg2: i32) -> (i32, i32, i32) {
    %c0_i32 = arith.constant 0 : i32
    return %arg0, %arg2, %arg1 : i32, i32, i32
  }
}

module attributes {stable_mosaic.version = 11 : i64} {
  func.func @_dw3x3_kernel(%arg0: i32, %arg1: i32, %arg2: memref<1x2x2x128xbf16, #tpu.memory_space<vmem>>, %arg3: memref<9x128xbf16, #tpu.memory_space<vmem>>, %arg4: memref<1x128xf32, #tpu.memory_space<vmem>>, %arg5: memref<1x128xf32, #tpu.memory_space<vmem>>, %arg6: memref<1x2x2x128xbf16, #tpu.memory_space<vmem>>, %arg7: memref<4x18x128xbf16, #tpu.memory_space<vmem>>) attributes {dimension_semantics = [#tpu.dimension_semantics<parallel>, #tpu.dimension_semantics<parallel>], iteration_bounds = array<i64: 2, 2>, scalar_prefetch = 0 : i64, scratch_operands = 1 : i64, tpu.core_type = #tpu.core_type<tc>, window_params = [{transform_indices = @transform_0, window_bounds = array<i64: 1, 2, 2, 128>}, {transform_indices = @transform_1, window_bounds = array<i64: 9, 128>}, {transform_indices = @transform_2, window_bounds = array<i64: 1, 128>}, {transform_indices = @transform_3, window_bounds = array<i64: 1, 128>}, {transform_indices = @transform_4, window_bounds = array<i64: 1, 2, 2, 128>}]} {
    %c0 = arith.constant 0 : index
    %c0_0 = arith.constant 0 : index
    %0 = vector.load %arg3[%c0, %c0_0] : memref<9x128xbf16, #tpu.memory_space<vmem>>, vector<9x128xbf16>
    %1 = arith.extf %0 : vector<9x128xbf16> to vector<9x128xf32>
    %c0_1 = arith.constant 0 : index
    %c0_2 = arith.constant 0 : index
    %2 = vector.load %arg4[%c0_1, %c0_2] : memref<1x128xf32, #tpu.memory_space<vmem>>, vector<1x128xf32>
    %c0_3 = arith.constant 0 : index
    %c0_4 = arith.constant 0 : index
    %3 = vector.load %arg5[%c0_3, %c0_4] : memref<1x128xf32, #tpu.memory_space<vmem>>, vector<1x128xf32>
    %cst = arith.constant 0.000000e+00 : bf16
    %4 = vector.broadcast %cst : bf16 to vector<4x18x128xbf16>
    %c0_5 = arith.constant 0 : index
    %c0_6 = arith.constant 0 : index
    %c0_7 = arith.constant 0 : index
    %5 = vector.load %arg7[%c0_5, %c0_6, %c0_7] : memref<4x18x128xbf16, #tpu.memory_space<vmem>>, vector<4x18x128xbf16>
    tpu.vector_store %arg7[%c0_5, %c0_6, %c0_7], %4 {strides = array<i32>} : memref<4x18x128xbf16, #tpu.memory_space<vmem>>, vector<4x18x128xbf16>,
    %c0_8 = arith.constant 0 : index
    %c0_9 = arith.constant 0 : index
    %c0_10 = arith.constant 0 : index
    %c0_11 = arith.constant 0 : index
    %6 = vector.load %arg2[%c0_8, %c0_9, %c0_10, %c0_11] : memref<1x2x2x128xbf16, #tpu.memory_space<vmem>>, vector<1x2x2x128xbf16>
    %7 = vector.shape_cast %6 : vector<1x2x2x128xbf16> to vector<2x2x128xbf16>
    %c1 = arith.constant 1 : index
    %c8 = arith.constant 8 : index
    %c0_12 = arith.constant 0 : index
    %8 = vector.load %arg7[%c1, %c8, %c0_12] : memref<4x18x128xbf16, #tpu.memory_space<vmem>>, vector<2x2x128xbf16>
    tpu.vector_store %arg7[%c1, %c8, %c0_12], %7 {strides = array<i32>} : memref<4x18x128xbf16, #tpu.memory_space<vmem>>, vector<2x2x128xbf16>,
    %cst_13 = arith.constant 0.000000e+00 : f32
    %9 = vector.broadcast %cst_13 : f32 to vector<2x2x128xf32>
    %c0_14 = arith.constant 0 : index
    %c7 = arith.constant 7 : index
    %c0_15 = arith.constant 0 : index
    %10 = vector.load %arg7[%c0_14, %c7, %c0_15] : memref<4x18x128xbf16, #tpu.memory_space<vmem>>, vector<2x2x128xbf16>
    %11 = arith.extf %10 : vector<2x2x128xbf16> to vector<2x2x128xf32>
    %12 = vector.extract_strided_slice %1 {offsets = [0, 0], sizes = [1, 128], strides = [1, 1]} : vector<9x128xf32> to vector<1x128xf32>
    %13 = vector.shape_cast %12 : vector<1x128xf32> to vector<128xf32>
    %14 = vector.shape_cast %13 : vector<128xf32> to vector<1x1x128xf32>
    %15 = vector.broadcast %14 : vector<1x1x128xf32> to vector<2x2x128xf32>
    %16 = arith.mulf %11, %15 : vector<2x2x128xf32>
    %17 = arith.addf %9, %16 : vector<2x2x128xf32>
    %c0_16 = arith.constant 0 : index
    %c8_17 = arith.constant 8 : index
    %c0_18 = arith.constant 0 : index
    %18 = vector.load %arg7[%c0_16, %c8_17, %c0_18] : memref<4x18x128xbf16, #tpu.memory_space<vmem>>, vector<2x2x128xbf16>
    %19 = arith.extf %18 : vector<2x2x128xbf16> to vector<2x2x128xf32>
    %20 = vector.extract_strided_slice %1 {offsets = [1, 0], sizes = [1, 128], strides = [1, 1]} : vector<9x128xf32> to vector<1x128xf32>
    %21 = vector.shape_cast %20 : vector<1x128xf32> to vector<128xf32>
    %22 = vector.shape_cast %21 : vector<128xf32> to vector<1x1x128xf32>
    %23 = vector.broadcast %22 : vector<1x1x128xf32> to vector<2x2x128xf32>
    %24 = arith.mulf %19, %23 : vector<2x2x128xf32>
    %25 = arith.addf %17, %24 : vector<2x2x128xf32>
    %c0_19 = arith.constant 0 : index
    %c9 = arith.constant 9 : index
    %c0_20 = arith.constant 0 : index
    %26 = vector.load %arg7[%c0_19, %c9, %c0_20] : memref<4x18x128xbf16, #tpu.memory_space<vmem>>, vector<2x2x128xbf16>
    %27 = arith.extf %26 : vector<2x2x128xbf16> to vector<2x2x128xf32>
    %28 = vector.extract_strided_slice %1 {offsets = [2, 0], sizes = [1, 128], strides = [1, 1]} : vector<9x128xf32> to vector<1x128xf32>
    %29 = vector.shape_cast %28 : vector<1x128xf32> to vector<128xf32>
    %30 = vector.shape_cast %29 : vector<128xf32> to vector<1x1x128xf32>
    %31 = vector.broadcast %30 : vector<1x1x128xf32> to vector<2x2x128xf32>
    %32 = arith.mulf %27, %31 : vector<2x2x128xf32>
    %33 = arith.addf %25, %32 : vector<2x2x128xf32>
    %c1_21 = arith.constant 1 : index
    %c7_22 = arith.constant 7 : index
    %c0_23 = arith.constant 0 : index
    %34 = vector.load %arg7[%c1_21, %c7_22, %c0_23] : memref<4x18x128xbf16, #tpu.memory_space<vmem>>, vector<2x2x128xbf16>
    %35 = arith.extf %34 : vector<2x2x128xbf16> to vector<2x2x128xf32>
    %36 = vector.extract_strided_slice %1 {offsets = [3, 0], sizes = [1, 128], strides = [1, 1]} : vector<9x128xf32> to vector<1x128xf32>
    %37 = vector.shape_cast %36 : vector<1x128xf32> to vector<128xf32>
    %38 = vector.shape_cast %37 : vector<128xf32> to vector<1x1x128xf32>
    %39 = vector.broadcast %38 : vector<1x1x128xf32> to vector<2x2x128xf32>
    %40 = arith.mulf %35, %39 : vector<2x2x128xf32>
    %41 = arith.addf %33, %40 : vector<2x2x128xf32>
    %c1_24 = arith.constant 1 : index
    %c8_25 = arith.constant 8 : index
    %c0_26 = arith.constant 0 : index
    %42 = vector.load %arg7[%c1_24, %c8_25, %c0_26] : memref<4x18x128xbf16, #tpu.memory_space<vmem>>, vector<2x2x128xbf16>
    %43 = arith.extf %42 : vector<2x2x128xbf16> to vector<2x2x128xf32>
    %44 = vector.extract_strided_slice %1 {offsets = [4, 0], sizes = [1, 128], strides = [1, 1]} : vector<9x128xf32> to vector<1x128xf32>
    %45 = vector.shape_cast %44 : vector<1x128xf32> to vector<128xf32>
    %46 = vector.shape_cast %45 : vector<128xf32> to vector<1x1x128xf32>
    %47 = vector.broadcast %46 : vector<1x1x128xf32> to vector<2x2x128xf32>
    %48 = arith.mulf %43, %47 : vector<2x2x128xf32>
    %49 = arith.addf %41, %48 : vector<2x2x128xf32>
    %c1_27 = arith.constant 1 : index
    %c9_28 = arith.constant 9 : index
    %c0_29 = arith.constant 0 : index
    %50 = vector.load %arg7[%c1_27, %c9_28, %c0_29] : memref<4x18x128xbf16, #tpu.memory_space<vmem>>, vector<2x2x128xbf16>
    %51 = arith.extf %50 : vector<2x2x128xbf16> to vector<2x2x128xf32>
    %52 = vector.extract_strided_slice %1 {offsets = [5, 0], sizes = [1, 128], strides = [1, 1]} : vector<9x128xf32> to vector<1x128xf32>
    %53 = vector.shape_cast %52 : vector<1x128xf32> to vector<128xf32>
    %54 = vector.shape_cast %53 : vector<128xf32> to vector<1x1x128xf32>
    %55 = vector.broadcast %54 : vector<1x1x128xf32> to vector<2x2x128xf32>
    %56 = arith.mulf %51, %55 : vector<2x2x128xf32>
    %57 = arith.addf %49, %56 : vector<2x2x128xf32>
    %c2 = arith.constant 2 : index
    %c7_30 = arith.constant 7 : index
    %c0_31 = arith.constant 0 : index
    %58 = vector.load %arg7[%c2, %c7_30, %c0_31] : memref<4x18x128xbf16, #tpu.memory_space<vmem>>, vector<2x2x128xbf16>
    %59 = arith.extf %58 : vector<2x2x128xbf16> to vector<2x2x128xf32>
    %60 = vector.extract_strided_slice %1 {offsets = [6, 0], sizes = [1, 128], strides = [1, 1]} : vector<9x128xf32> to vector<1x128xf32>
    %61 = vector.shape_cast %60 : vector<1x128xf32> to vector<128xf32>
    %62 = vector.shape_cast %61 : vector<128xf32> to vector<1x1x128xf32>
    %63 = vector.broadcast %62 : vector<1x1x128xf32> to vector<2x2x128xf32>
    %64 = arith.mulf %59, %63 : vector<2x2x128xf32>
    %65 = arith.addf %57, %64 : vector<2x2x128xf32>
    %c2_32 = arith.constant 2 : index
    %c8_33 = arith.constant 8 : index
    %c0_34 = arith.constant 0 : index
    %66 = vector.load %arg7[%c2_32, %c8_33, %c0_34] : memref<4x18x128xbf16, #tpu.memory_space<vmem>>, vector<2x2x128xbf16>
    %67 = arith.extf %66 : vector<2x2x128xbf16> to vector<2x2x128xf32>
    %68 = vector.extract_strided_slice %1 {offsets = [7, 0], sizes = [1, 128], strides = [1, 1]} : vector<9x128xf32> to vector<1x128xf32>
    %69 = vector.shape_cast %68 : vector<1x128xf32> to vector<128xf32>
    %70 = vector.shape_cast %69 : vector<128xf32> to vector<1x1x128xf32>
    %71 = vector.broadcast %70 : vector<1x1x128xf32> to vector<2x2x128xf32>
    %72 = arith.mulf %67, %71 : vector<2x2x128xf32>
    %73 = arith.addf %65, %72 : vector<2x2x128xf32>
    %c2_35 = arith.constant 2 : index
    %c9_36 = arith.constant 9 : index
    %c0_37 = arith.constant 0 : index
    %74 = vector.load %arg7[%c2_35, %c9_36, %c0_37] : memref<4x18x128xbf16, #tpu.memory_space<vmem>>, vector<2x2x128xbf16>
    %75 = arith.extf %74 : vector<2x2x128xbf16> to vector<2x2x128xf32>
    %76 = vector.extract_strided_slice %1 {offsets = [8, 0], sizes = [1, 128], strides = [1, 1]} : vector<9x128xf32> to vector<1x128xf32>
    %77 = vector.shape_cast %76 : vector<1x128xf32> to vector<128xf32>
    %78 = vector.shape_cast %77 : vector<128xf32> to vector<1x1x128xf32>
    %79 = vector.broadcast %78 : vector<1x1x128xf32> to vector<2x2x128xf32>
    %80 = arith.mulf %75, %79 : vector<2x2x128xf32>
    %81 = arith.addf %73, %80 : vector<2x2x128xf32>
    %82 = vector.shape_cast %2 : vector<1x128xf32> to vector<1x1x128xf32>
    %83 = vector.broadcast %82 : vector<1x1x128xf32> to vector<2x2x128xf32>
    %84 = arith.mulf %81, %83 : vector<2x2x128xf32>
    %85 = vector.shape_cast %3 : vector<1x128xf32> to vector<1x1x128xf32>
    %86 = vector.broadcast %85 : vector<1x1x128xf32> to vector<2x2x128xf32>
    %87 = arith.addf %84, %86 : vector<2x2x128xf32>
    %cst_38 = arith.constant 0.000000e+00 : f32
    %cst_39 = arith.constant 6.000000e+00 : f32
    %88 = vector.broadcast %cst_38 : f32 to vector<2x2x128xf32>
    %89 = arith.maximumf %88, %87 : vector<2x2x128xf32>
    %90 = vector.broadcast %cst_39 : f32 to vector<2x2x128xf32>
    %91 = arith.minimumf %90, %89 : vector<2x2x128xf32>
    %92 = arith.truncf %91 : vector<2x2x128xf32> to vector<2x2x128xbf16>
    %c0_40 = arith.constant 0 : index
    %c0_41 = arith.constant 0 : index
    %c0_42 = arith.constant 0 : index
    %c0_43 = arith.constant 0 : index
    %93 = vector.load %arg6[%c0_40, %c0_41, %c0_42, %c0_43] : memref<1x2x2x128xbf16, #tpu.memory_space<vmem>>, vector<1x2x2x128xbf16>
    %94 = vector.shape_cast %93 : vector<1x2x2x128xbf16> to vector<2x2x128xbf16>
    %95 = vector.shape_cast %92 : vector<2x2x128xbf16> to vector<1x2x2x128xbf16>
    tpu.vector_store %arg6[%c0_40, %c0_41, %c0_42, %c0_43], %95 {strides = array<i32>} : memref<1x2x2x128xbf16, #tpu.memory_space<vmem>>, vector<1x2x2x128xbf16>,
    return
  }
  func.func @transform_0(%arg0: i32, %arg1: i32) -> (i32, i32, i32, i32) {
    %c0_i32 = arith.constant 0 : i32
    %c0_i32_0 = arith.constant 0 : i32
    %c0_i32_1 = arith.constant 0 : i32
    return %arg0, %c0_i32, %c0_i32_0, %arg1 : i32, i32, i32, i32
  }
  func.func @transform_1(%arg0: i32, %arg1: i32) -> (i32, i32) {
    %c0_i32 = arith.constant 0 : i32
    %c0_i32_0 = arith.constant 0 : i32
    return %c0_i32, %arg1 : i32, i32
  }
  func.func @transform_2(%arg0: i32, %arg1: i32) -> (i32, i32) {
    %c0_i32 = arith.constant 0 : i32
    %c0_i32_0 = arith.constant 0 : i32
    return %c0_i32, %arg1 : i32, i32
  }
  func.func @transform_3(%arg0: i32, %arg1: i32) -> (i32, i32) {
    %c0_i32 = arith.constant 0 : i32
    %c0_i32_0 = arith.constant 0 : i32
    return %c0_i32, %arg1 : i32, i32
  }
  func.func @transform_4(%arg0: i32, %arg1: i32) -> (i32, i32, i32, i32) {
    %c0_i32 = arith.constant 0 : i32
    %c0_i32_0 = arith.constant 0 : i32
    %c0_i32_1 = arith.constant 0 : i32
    return %arg0, %c0_i32, %c0_i32_0, %arg1 : i32, i32, i32, i32
  }
}

module attributes {stable_mosaic.version = 11 : i64} {
  func.func @_conv1x1_kernel(%arg0: i32, %arg1: i32, %arg2: i32, %arg3: memref<1x4x256xbf16, #tpu.memory_space<vmem>>, %arg4: memref<256x128xbf16, #tpu.memory_space<vmem>>, %arg5: memref<1x128xf32, #tpu.memory_space<vmem>>, %arg6: memref<1x128xf32, #tpu.memory_space<vmem>>, %arg7: memref<1x4x128xbf16, #tpu.memory_space<vmem>>, %arg8: memref<1x4x128xbf16, #tpu.memory_space<vmem>>) attributes {dimension_semantics = [#tpu.dimension_semantics<parallel>, #tpu.dimension_semantics<parallel>, #tpu.dimension_semantics<parallel>], iteration_bounds = array<i64: 2, 1, 1>, scalar_prefetch = 0 : i64, scratch_operands = 0 : i64, tpu.core_type = #tpu.core_type<tc>, window_params = [{transform_indices = @transform_0, window_bounds = array<i64: 1, 4, 256>}, {transform_indices = @transform_1, window_bounds = array<i64: 256, 128>}, {transform_indices = @transform_2, window_bounds = array<i64: 1, 128>}, {transform_indices = @transform_3, window_bounds = array<i64: 1, 128>}, {transform_indices = @transform_4, window_bounds = array<i64: 1, 4, 128>}, {transform_indices = @transform_5, window_bounds = array<i64: 1, 4, 128>}]} {
    %c0 = arith.constant 0 : index
    %c0_0 = arith.constant 0 : index
    %c0_1 = arith.constant 0 : index
    %0 = vector.load %arg3[%c0, %c0_0, %c0_1] : memref<1x4x256xbf16, #tpu.memory_space<vmem>>, vector<1x4x256xbf16>
    %1 = vector.shape_cast %0 : vector<1x4x256xbf16> to vector<4x256xbf16>
    %c0_2 = arith.constant 0 : index
    %c0_3 = arith.constant 0 : index
    %2 = vector.load %arg4[%c0_2, %c0_3] : memref<256x128xbf16, #tpu.memory_space<vmem>>, vector<256x128xbf16>
    %cst = arith.constant dense<0.000000e+00> : vector<4x128xf32>
    %3 = tpu.matmul %1, %2, %cst {dimension_numbers = #tpu.dot_dimension_numbers<[1], [0], [0], [1], [0, 0, 1, 1], [], []>} : vector<4x256xbf16>, vector<256x128xbf16>, vector<4x128xf32> -> vector<4x128xf32>
    %c0_4 = arith.constant 0 : index
    %c0_5 = arith.constant 0 : index
    %4 = vector.load %arg5[%c0_4, %c0_5] : memref<1x128xf32, #tpu.memory_space<vmem>>, vector<1x128xf32>
    %5 = vector.broadcast %4 : vector<1x128xf32> to vector<4x128xf32>
    %6 = arith.mulf %3, %5 : vector<4x128xf32>
    %c0_6 = arith.constant 0 : index
    %c0_7 = arith.constant 0 : index
    %7 = vector.load %arg6[%c0_6, %c0_7] : memref<1x128xf32, #tpu.memory_space<vmem>>, vector<1x128xf32>
    %8 = vector.broadcast %7 : vector<1x128xf32> to vector<4x128xf32>
    %9 = arith.addf %6, %8 : vector<4x128xf32>
    %c0_8 = arith.constant 0 : index
    %c0_9 = arith.constant 0 : index
    %c0_10 = arith.constant 0 : index
    %10 = vector.load %arg7[%c0_8, %c0_9, %c0_10] : memref<1x4x128xbf16, #tpu.memory_space<vmem>>, vector<1x4x128xbf16>
    %11 = vector.shape_cast %10 : vector<1x4x128xbf16> to vector<4x128xbf16>
    %12 = arith.extf %11 : vector<4x128xbf16> to vector<4x128xf32>
    %13 = arith.addf %9, %12 : vector<4x128xf32>
    %14 = arith.truncf %13 : vector<4x128xf32> to vector<4x128xbf16>
    %c0_11 = arith.constant 0 : index
    %c0_12 = arith.constant 0 : index
    %c0_13 = arith.constant 0 : index
    %15 = vector.load %arg8[%c0_11, %c0_12, %c0_13] : memref<1x4x128xbf16, #tpu.memory_space<vmem>>, vector<1x4x128xbf16>
    %16 = vector.shape_cast %15 : vector<1x4x128xbf16> to vector<4x128xbf16>
    %17 = vector.shape_cast %14 : vector<4x128xbf16> to vector<1x4x128xbf16>
    tpu.vector_store %arg8[%c0_11, %c0_12, %c0_13], %17 {strides = array<i32>} : memref<1x4x128xbf16, #tpu.memory_space<vmem>>, vector<1x4x128xbf16>,
    return
  }
  func.func @transform_0(%arg0: i32, %arg1: i32, %arg2: i32) -> (i32, i32, i32) {
    %c0_i32 = arith.constant 0 : i32
    %c0_i32_0 = arith.constant 0 : i32
    return %arg0, %arg2, %c0_i32 : i32, i32, i32
  }
  func.func @transform_1(%arg0: i32, %arg1: i32, %arg2: i32) -> (i32, i32) {
    %c0_i32 = arith.constant 0 : i32
    %c0_i32_0 = arith.constant 0 : i32
    return %c0_i32, %arg1 : i32, i32
  }
  func.func @transform_2(%arg0: i32, %arg1: i32, %arg2: i32) -> (i32, i32) {
    %c0_i32 = arith.constant 0 : i32
    %c0_i32_0 = arith.constant 0 : i32
    return %c0_i32, %arg1 : i32, i32
  }
  func.func @transform_3(%arg0: i32, %arg1: i32, %arg2: i32) -> (i32, i32) {
    %c0_i32 = arith.constant 0 : i32
    %c0_i32_0 = arith.constant 0 : i32
    return %c0_i32, %arg1 : i32, i32
  }
  func.func @transform_4(%arg0: i32, %arg1: i32, %arg2: i32) -> (i32, i32, i32) {
    %c0_i32 = arith.constant 0 : i32
    return %arg0, %arg2, %arg1 : i32, i32, i32
  }
  func.func @transform_5(%arg0: i32, %arg1: i32, %arg2: i32) -> (i32, i32, i32) {
    %c0_i32 = arith.constant 0 : i32
    return %arg0, %arg2, %arg1 : i32, i32, i32
  }
}

module attributes {stable_mosaic.version = 11 : i64} {
  func.func @_conv1x1_kernel(%arg0: i32, %arg1: i32, %arg2: i32, %arg3: memref<1x4x128xbf16, #tpu.memory_space<vmem>>, %arg4: memref<128x1280xbf16, #tpu.memory_space<vmem>>, %arg5: memref<1x1280xf32, #tpu.memory_space<vmem>>, %arg6: memref<1x1280xf32, #tpu.memory_space<vmem>>, %arg7: memref<1x4x1280xbf16, #tpu.memory_space<vmem>>) attributes {dimension_semantics = [#tpu.dimension_semantics<parallel>, #tpu.dimension_semantics<parallel>, #tpu.dimension_semantics<parallel>], iteration_bounds = array<i64: 2, 1, 1>, scalar_prefetch = 0 : i64, scratch_operands = 0 : i64, tpu.core_type = #tpu.core_type<tc>, window_params = [{transform_indices = @transform_0, window_bounds = array<i64: 1, 4, 128>}, {transform_indices = @transform_1, window_bounds = array<i64: 128, 1280>}, {transform_indices = @transform_2, window_bounds = array<i64: 1, 1280>}, {transform_indices = @transform_3, window_bounds = array<i64: 1, 1280>}, {transform_indices = @transform_4, window_bounds = array<i64: 1, 4, 1280>}]} {
    %c0 = arith.constant 0 : index
    %c0_0 = arith.constant 0 : index
    %c0_1 = arith.constant 0 : index
    %0 = vector.load %arg3[%c0, %c0_0, %c0_1] : memref<1x4x128xbf16, #tpu.memory_space<vmem>>, vector<1x4x128xbf16>
    %1 = vector.shape_cast %0 : vector<1x4x128xbf16> to vector<4x128xbf16>
    %c0_2 = arith.constant 0 : index
    %c0_3 = arith.constant 0 : index
    %2 = vector.load %arg4[%c0_2, %c0_3] : memref<128x1280xbf16, #tpu.memory_space<vmem>>, vector<128x1280xbf16>
    %cst = arith.constant dense<0.000000e+00> : vector<4x1280xf32>
    %3 = tpu.matmul %1, %2, %cst {dimension_numbers = #tpu.dot_dimension_numbers<[1], [0], [0], [1], [0, 0, 1, 1], [], []>} : vector<4x128xbf16>, vector<128x1280xbf16>, vector<4x1280xf32> -> vector<4x1280xf32>
    %c0_4 = arith.constant 0 : index
    %c0_5 = arith.constant 0 : index
    %4 = vector.load %arg5[%c0_4, %c0_5] : memref<1x1280xf32, #tpu.memory_space<vmem>>, vector<1x1280xf32>
    %5 = vector.broadcast %4 : vector<1x1280xf32> to vector<4x1280xf32>
    %6 = arith.mulf %3, %5 : vector<4x1280xf32>
    %c0_6 = arith.constant 0 : index
    %c0_7 = arith.constant 0 : index
    %7 = vector.load %arg6[%c0_6, %c0_7] : memref<1x1280xf32, #tpu.memory_space<vmem>>, vector<1x1280xf32>
    %8 = vector.broadcast %7 : vector<1x1280xf32> to vector<4x1280xf32>
    %9 = arith.addf %6, %8 : vector<4x1280xf32>
    %cst_8 = arith.constant 0.000000e+00 : f32
    %cst_9 = arith.constant 6.000000e+00 : f32
    %10 = vector.broadcast %cst_8 : f32 to vector<4x1280xf32>
    %11 = arith.maximumf %10, %9 : vector<4x1280xf32>
    %12 = vector.broadcast %cst_9 : f32 to vector<4x1280xf32>
    %13 = arith.minimumf %12, %11 : vector<4x1280xf32>
    %14 = arith.truncf %13 : vector<4x1280xf32> to vector<4x1280xbf16>
    %c0_10 = arith.constant 0 : index
    %c0_11 = arith.constant 0 : index
    %c0_12 = arith.constant 0 : index
    %15 = vector.load %arg7[%c0_10, %c0_11, %c0_12] : memref<1x4x1280xbf16, #tpu.memory_space<vmem>>, vector<1x4x1280xbf16>
    %16 = vector.shape_cast %15 : vector<1x4x1280xbf16> to vector<4x1280xbf16>
    %17 = vector.shape_cast %14 : vector<4x1280xbf16> to vector<1x4x1280xbf16>
    tpu.vector_store %arg7[%c0_10, %c0_11, %c0_12], %17 {strides = array<i32>} : memref<1x4x1280xbf16, #tpu.memory_space<vmem>>, vector<1x4x1280xbf16>,
    return
  }
  func.func @transform_0(%arg0: i32, %arg1: i32, %arg2: i32) -> (i32, i32, i32) {
    %c0_i32 = arith.constant 0 : i32
    %c0_i32_0 = arith.constant 0 : i32
    return %arg0, %arg2, %c0_i32 : i32, i32, i32
  }
  func.func @transform_1(%arg0: i32, %arg1: i32, %arg2: i32) -> (i32, i32) {
    %c0_i32 = arith.constant 0 : i32
    %c0_i32_0 = arith.constant 0 : i32
    return %c0_i32, %arg1 : i32, i32
  }
  func.func @transform_2(%arg0: i32, %arg1: i32, %arg2: i32) -> (i32, i32) {
    %c0_i32 = arith.constant 0 : i32
    %c0_i32_0 = arith.constant 0 : i32
    return %c0_i32, %arg1 : i32, i32
  }
  func.func @transform_3(%arg0: i32, %arg1: i32, %arg2: i32) -> (i32, i32) {
    %c0_i32 = arith.constant 0 : i32
    %c0_i32_0 = arith.constant 0 : i32
    return %c0_i32, %arg1 : i32, i32
  }
  func.func @transform_4(%arg0: i32, %arg1: i32, %arg2: i32) -> (i32, i32, i32) {
    %c0_i32 = arith.constant 0 : i32
    return %arg0, %arg2, %arg1 : i32, i32, i32
  }
}

module attributes {stable_mosaic.version = 11 : i64} {
  func.func @_gap_kernel(%arg0: i32, %arg1: i32, %arg2: memref<1x4x128xbf16, #tpu.memory_space<vmem>>, %arg3: memref<1x1x128xf32, #tpu.memory_space<vmem>>) attributes {dimension_semantics = [#tpu.dimension_semantics<parallel>, #tpu.dimension_semantics<parallel>], iteration_bounds = array<i64: 2, 10>, scalar_prefetch = 0 : i64, scratch_operands = 0 : i64, tpu.core_type = #tpu.core_type<tc>, window_params = [{transform_indices = @transform_0, window_bounds = array<i64: 1, 4, 128>}, {transform_indices = @transform_1, window_bounds = array<i64: 1, 1, 128>}]} {
    %c0 = arith.constant 0 : index
    %c0_0 = arith.constant 0 : index
    %c0_1 = arith.constant 0 : index
    %0 = vector.load %arg2[%c0, %c0_0, %c0_1] : memref<1x4x128xbf16, #tpu.memory_space<vmem>>, vector<1x4x128xbf16>
    %1 = vector.shape_cast %0 : vector<1x4x128xbf16> to vector<4x128xbf16>
    %2 = arith.extf %1 : vector<4x128xbf16> to vector<4x128xf32>
    %cst = arith.constant dense<0.000000e+00> : vector<128xf32>
    %3 = vector.multi_reduction <add>, %2, %cst [0] : vector<4x128xf32> to vector<128xf32>
    %4 = vector.shape_cast %3 : vector<128xf32> to vector<1x128xf32>
    %cst_2 = arith.constant 2.500000e-01 : f32
    %5 = vector.broadcast %cst_2 : f32 to vector<1x128xf32>
    %6 = arith.mulf %4, %5 : vector<1x128xf32>
    %c0_3 = arith.constant 0 : index
    %c0_4 = arith.constant 0 : index
    %c0_5 = arith.constant 0 : index
    %7 = vector.load %arg3[%c0_3, %c0_4, %c0_5] : memref<1x1x128xf32, #tpu.memory_space<vmem>>, vector<1x1x128xf32>
    %8 = vector.shape_cast %7 : vector<1x1x128xf32> to vector<1x128xf32>
    %9 = vector.shape_cast %6 : vector<1x128xf32> to vector<1x1x128xf32>
    tpu.vector_store %arg3[%c0_3, %c0_4, %c0_5], %9 {strides = array<i32>} : memref<1x1x128xf32, #tpu.memory_space<vmem>>, vector<1x1x128xf32>,
    return
  }
  func.func @transform_0(%arg0: i32, %arg1: i32) -> (i32, i32, i32) {
    %c0_i32 = arith.constant 0 : i32
    %c0_i32_0 = arith.constant 0 : i32
    return %arg0, %c0_i32, %arg1 : i32, i32, i32
  }
  func.func @transform_1(%arg0: i32, %arg1: i32) -> (i32, i32, i32) {
    %c0_i32 = arith.constant 0 : i32
    %c0_i32_0 = arith.constant 0 : i32
    return %arg0, %c0_i32, %arg1 : i32, i32, i32
  }
}

module attributes {stable_mosaic.version = 11 : i64} {
  func.func @_conv1x1_kernel(%arg0: i32, %arg1: i32, %arg2: i32, %arg3: memref<1x2x1280xbf16, #tpu.memory_space<vmem>>, %arg4: memref<1280x128xbf16, #tpu.memory_space<vmem>>, %arg5: memref<1x128xf32, #tpu.memory_space<vmem>>, %arg6: memref<1x128xf32, #tpu.memory_space<vmem>>, %arg7: memref<1x2x128xf32, #tpu.memory_space<vmem>>) attributes {dimension_semantics = [#tpu.dimension_semantics<parallel>, #tpu.dimension_semantics<parallel>, #tpu.dimension_semantics<parallel>], iteration_bounds = array<i64: 1, 1, 1>, scalar_prefetch = 0 : i64, scratch_operands = 0 : i64, tpu.core_type = #tpu.core_type<tc>, window_params = [{transform_indices = @transform_0, window_bounds = array<i64: 1, 2, 1280>}, {transform_indices = @transform_1, window_bounds = array<i64: 1280, 128>}, {transform_indices = @transform_2, window_bounds = array<i64: 1, 128>}, {transform_indices = @transform_3, window_bounds = array<i64: 1, 128>}, {transform_indices = @transform_4, window_bounds = array<i64: 1, 2, 128>}]} {
    %c0 = arith.constant 0 : index
    %c0_0 = arith.constant 0 : index
    %c0_1 = arith.constant 0 : index
    %0 = vector.load %arg3[%c0, %c0_0, %c0_1] : memref<1x2x1280xbf16, #tpu.memory_space<vmem>>, vector<1x2x1280xbf16>
    %1 = vector.shape_cast %0 : vector<1x2x1280xbf16> to vector<2x1280xbf16>
    %c0_2 = arith.constant 0 : index
    %c0_3 = arith.constant 0 : index
    %2 = vector.load %arg4[%c0_2, %c0_3] : memref<1280x128xbf16, #tpu.memory_space<vmem>>, vector<1280x128xbf16>
    %cst = arith.constant dense<0.000000e+00> : vector<2x128xf32>
    %3 = tpu.matmul %1, %2, %cst {dimension_numbers = #tpu.dot_dimension_numbers<[1], [0], [0], [1], [0, 0, 1, 1], [], []>} : vector<2x1280xbf16>, vector<1280x128xbf16>, vector<2x128xf32> -> vector<2x128xf32>
    %c0_4 = arith.constant 0 : index
    %c0_5 = arith.constant 0 : index
    %4 = vector.load %arg5[%c0_4, %c0_5] : memref<1x128xf32, #tpu.memory_space<vmem>>, vector<1x128xf32>
    %5 = vector.broadcast %4 : vector<1x128xf32> to vector<2x128xf32>
    %6 = arith.mulf %3, %5 : vector<2x128xf32>
    %c0_6 = arith.constant 0 : index
    %c0_7 = arith.constant 0 : index
    %7 = vector.load %arg6[%c0_6, %c0_7] : memref<1x128xf32, #tpu.memory_space<vmem>>, vector<1x128xf32>
    %8 = vector.broadcast %7 : vector<1x128xf32> to vector<2x128xf32>
    %9 = arith.addf %6, %8 : vector<2x128xf32>
    %c0_8 = arith.constant 0 : index
    %c0_9 = arith.constant 0 : index
    %c0_10 = arith.constant 0 : index
    %10 = vector.load %arg7[%c0_8, %c0_9, %c0_10] : memref<1x2x128xf32, #tpu.memory_space<vmem>>, vector<1x2x128xf32>
    %11 = vector.shape_cast %10 : vector<1x2x128xf32> to vector<2x128xf32>
    %12 = vector.shape_cast %9 : vector<2x128xf32> to vector<1x2x128xf32>
    tpu.vector_store %arg7[%c0_8, %c0_9, %c0_10], %12 {strides = array<i32>} : memref<1x2x128xf32, #tpu.memory_space<vmem>>, vector<1x2x128xf32>,
    return
  }
  func.func @transform_0(%arg0: i32, %arg1: i32, %arg2: i32) -> (i32, i32, i32) {
    %c0_i32 = arith.constant 0 : i32
    %c0_i32_0 = arith.constant 0 : i32
    return %arg0, %arg2, %c0_i32 : i32, i32, i32
  }
  func.func @transform_1(%arg0: i32, %arg1: i32, %arg2: i32) -> (i32, i32) {
    %c0_i32 = arith.constant 0 : i32
    %c0_i32_0 = arith.constant 0 : i32
    return %c0_i32, %arg1 : i32, i32
  }
  func.func @transform_2(%arg0: i32, %arg1: i32, %arg2: i32) -> (i32, i32) {
    %c0_i32 = arith.constant 0 : i32
    %c0_i32_0 = arith.constant 0 : i32
    return %c0_i32, %arg1 : i32, i32
  }
  func.func @transform_3(%arg0: i32, %arg1: i32, %arg2: i32) -> (i32, i32) {
    %c0_i32 = arith.constant 0 : i32
    %c0_i32_0 = arith.constant 0 : i32
    return %c0_i32, %arg1 : i32, i32
  }
  func.func @transform_4(%arg0: i32, %arg1: i32, %arg2: i32) -> (i32, i32, i32) {
    %c0_i32 = arith.constant 0 : i32
    return %arg0, %arg2, %arg1 : i32, i32, i32
  }
}

</mosaic_0001>

<bundles_post_ra>
// kernel: a_call__.21
= control target key start
LH: loop header
LB: loop body
LE: loop exit
PB: predicated region body
PF: predicated region fallthrough
CT: control target
= control target key end

     0   :  { %s1437_s15 = smov 0   ;;  %s1439_s16 = smov 0   ;;  %s1609_s0 = inlined_call_operand.vmem [shape: bf16[2,256,32], index: 0, kind: input, shape index: {}]   ;;  %s1610_s1 = inlined_call_operand.vmem [shape: bf16[32,128], index: 1, kind: input, shape index: {}]   ;;  %s1611_s2 = inlined_call_operand.vmem [shape: f32[1,128], index: 2, kind: input, shape index: {}]   ;;  %s1612_s3 = inlined_call_operand.vmem [shape: f32[1,128], index: 3, kind: input, shape index: {}]   ;;  %s1613_s4 = inlined_call_operand.vmem [shape: bf16[2,256,128], index: 4, kind: output, shape index: {}]  }
   0x1   :  { %s1441_s17 = smov 0  }
   0x2 LB: > { %s33_s18 = sadd.s32 1, %s1406_s16  ;;  %p1084_p0 = scmp.ge.s32.totalorder %s1410_s17, 1  ;;  %s1410_s17 = sphi %s1441_s17, %s14_s17   ;;  %s1406_s16 = sphi %s1439_s16, %s1615_s16   ;;  %s1402_s15 = sphi %s1437_s15, %s1614_s15  }
   0x3   : > { %p35_p1 = scmp.ge.s32.totalorder %s33_s18, 2  ;;  %p217_p2 = scmp.lt.s32.totalorder %s1410_s17, 3 }
   0x5   : > { %s1617_s18 = smov (%p35_p1, %s33_s18), 0  ;;  %p218_p3 = pnand %p1084_p0, %p217_p2 }
   0x6   : > { %v1370_v0 = vld [vmem:[%s1610_s1] sm:$0xff] (!%p218_p3)   ;;  %p265_p4 = scmp.lt.s32.totalorder (!%p218_p3), %s1402_s15, 1  ;;  %v1371_v1 = vld [vmem:[%s1610_s1 + $0x8] sm:$0xff] (!%p218_p3)   ;;  %vm426_vm0 = vcmask (!%p218_p3), 261120  }
   0x7   : > { %221 = sbr.rel (%p218_p3) target bundleno = 273 (0x111), region = 36  ;;  %1306 = vmatprep.subr.bf16.mxu0 (!%p218_p3), %v1370_v0  ;;  %1342 = vmatprep.subr.bf16.mxu1 (!%p218_p3), %v1370_v0  ;;  %v1506_v18 = vld [vmem:[%s1611_s2] ss:$0 sm:$0xff] (!%p218_p3) }
   0x8   : > { %1307 = vmatpush3.bf16.msra.mxu0 (!%p218_p3), %v1370_v0  ;;  %1344 = vmatpush3.bf16.msra.mxu1 (!%p218_p3), %v1370_v0  ;;  %v1511_v20 = vld [vmem:[%s1612_s3] ss:$0 sm:$0xff] (!%p218_p3) }
   0x9   : > { %1308 = vmatprep.subr.bf16.mxu0 (!%p218_p3), %v1371_v1  ;;  %1343 = vmatprep.subr.bf16.mxu1 (!%p218_p3), %v1371_v1 }
   0xc   : > { %1309 = vmatpush3.bf16.msra.mxu0 (!%p218_p3), %v1371_v1  ;;  %1345 = vmatpush3.bf16.msra.mxu1 (!%p218_p3), %v1371_v1 }
   0xe   : > { %s1619_s15 = smov (!%p265_p4, %s1402_s15), 1 }
   0xf   : > { %s1159_s23 = sshll.u32 %s1619_s15, 7 }
  0x10   : > { %s1469_s26 = scalar_lea.vmem %s1609_s0, %s1159_s23  ;;  %s1535_s7 = scalar_lea.vmem %s1613_s4, %s1159_s23 }
  0x11   : > { %v1372_v2 = vld [vmem:[%s1469_s26] sm:$0xff]   ;;  %v1374_v4 = vld [vmem:[%s1469_s26 + $0x8] sm:$0xff]   ;;  %v1376_v6 = vld [vmem:[%s1469_s26 + $0x10] sm:$0xff]  }
  0x12   : > { %v1373_v3 = vld [vmem:[%s1469_s26 + $0x40] sm:$0xff]   ;;  %1310 = vmatprep.mubr.msk.bf16.mxu0 %vm426_vm0, %v1372_v2  ;;  %v1375_v5 = vld [vmem:[%s1469_s26 + $0x48] sm:$0xff]   ;;  %v1377_v7 = vld [vmem:[%s1469_s26 + $0x50] sm:$0xff]  }
  0x13   : > { %1326 = vmatprep.mubr.msk.bf16.mxu1 %vm426_vm0, %v1373_v3  ;;  %1311 = vmatmul.mubr.msk.bf16.vlgmr.msra.gmra.mrb[0].mxu0 %vm426_vm0, %v1374_v4  ;;  %v1378_v8 = vld [vmem:[%s1469_s26 + $0x18] sm:$0xff]   ;;  %v1380_v10 = vld [vmem:[%s1469_s26 + $0x20] sm:$0xff]   ;;  %v1382_v12 = vld [vmem:[%s1469_s26 + $0x28] sm:$0xff]  }
  0x14   : > { %1327 = vmatmul.mubr.msk.bf16.vlgmr.msra.gmra.mrb[0].mxu1 %vm426_vm0, %v1375_v5  ;;  %1314 = vmatprep.mubr.msk.bf16.mxu0 %vm426_vm0, %v1376_v6  ;;  %v1379_v9 = vld [vmem:[%s1469_s26 + $0x58] sm:$0xff]   ;;  %v1381_v11 = vld [vmem:[%s1469_s26 + $0x60] sm:$0xff]   ;;  %v1383_v13 = vld [vmem:[%s1469_s26 + $0x68] sm:$0xff]  }
  0x15   : > { %1330 = vmatprep.mubr.msk.bf16.mxu1 %vm426_vm0, %v1377_v7  ;;  %v1384_v14 = vld [vmem:[%s1469_s26 + $0x30] sm:$0xff]   ;;  %v1386_v16 = vld [vmem:[%s1469_s26 + $0x38] sm:$0xff]  }
  0x16   : > { %v1385_v15 = vld [vmem:[%s1469_s26 + $0x70] sm:$0xff]   ;;  %v1387_v17 = vld [vmem:[%s1469_s26 + $0x78] sm:$0xff]  }
  0x1b   : > { %1315 = vmatmul.mubr.msk.bf16.gmra.mrb[4].mxu0 %vm426_vm0, %v1378_v8 }
  0x1c   : > { %1331 = vmatmul.mubr.msk.bf16.gmra.mrb[4].mxu1 %vm426_vm0, %v1379_v9  ;;  %1318 = vmatprep.mubr.msk.bf16.mxu0 %vm426_vm0, %v1380_v10 }
  0x1d   : > { %1334 = vmatprep.mubr.msk.bf16.mxu1 %vm426_vm0, %v1381_v11 }
  0x23   : > { %1319 = vmatmul.mubr.msk.bf16.gmra.mrb[8].mxu0 %vm426_vm0, %v1382_v12 }
  0x24   : > { %1335 = vmatmul.mubr.msk.bf16.gmra.mrb[8].mxu1 %vm426_vm0, %v1383_v13  ;;  %1322 = vmatprep.mubr.msk.bf16.mxu0 %vm426_vm0, %v1384_v14 }
  0x25   : > { %1338 = vmatprep.mubr.msk.bf16.mxu1 %vm426_vm0, %v1385_v15 }
  0x2b   : > { %1323 = vmatmul.mubr.msk.bf16.gmra.mrb[12].mxu0 %vm426_vm0, %v1386_v16 }
  0x2c   : > { %1339 = vmatmul.mubr.msk.bf16.gmra.mrb[12].mxu1 %vm426_vm0, %v1387_v17 }
  0xe6   : > { %v1312_v19 = vpop.f32.mrb[0].mxu0 }
  0xe7   : > { %v645_v21 = vmul.f32 %v1312_v19, %v1506_v18  ;;  %v1328_v22 = vpop.f32.mrb[0].mxu1  ;;  %v509_v23 = vpop.f32.mrb[1].mxu0 }
  0xe8   : > { %v661_v24 = vmul.f32 %v1328_v22, %v1506_v18  ;;  %v643_v25 = vmul.f32 %v1506_v18, %v509_v23  ;;  %v573_v26 = vpop.f32.mrb[1].mxu1  ;;  %v1313_v27 = vpop.f32.mrb[2].mxu0 }
  0xe9   : > { %v684_v28 = vadd.f32 %v1511_v20, %v645_v21  ;;  %v659_v29 = vmul.f32 %v1506_v18, %v573_v26  ;;  %v646_v30 = vmul.f32 %v1313_v27, %v1506_v18  ;;  %v1329_v31 = vpop.f32.mrb[2].mxu1  ;;  %v512_v32 = vpop.f32.mrb[3].mxu0 }
  0xea   : > { %v700_v33 = vadd.f32 %v1511_v20, %v661_v24  ;;  %v682_v34 = vadd.f32 %v1511_v20, %v643_v25  ;;  %v662_v35 = vmul.f32 %v1329_v31, %v1506_v18  ;;  %v644_v36 = vmul.f32 %v1506_v18, %v512_v32  ;;  %v576_v37 = vpop.f32.mrb[3].mxu1 }
  0xeb   : > { %v716_v38 = vmax.f32 %v684_v28, 0.0  ;;  %v698_v39 = vadd.f32 %v1511_v20, %v659_v29  ;;  %v685_v40 = vadd.f32 %v1511_v20, %v646_v30  ;;  %v660_v41 = vmul.f32 %v1506_v18, %v576_v37 }
  0xec   : > { %v732_v42 = vmax.f32 %v700_v33, 0.0  ;;  %v714_v43 = vmax.f32 %v682_v34, 0.0  ;;  %v701_v44 = vadd.f32 %v1511_v20, %v662_v35  ;;  %v683_v45 = vadd.f32 %v1511_v20, %v644_v36 }
  0xed   : > { %v748_v46 = vmin.f32 %v716_v38, 6.0  ;;  %v730_v47 = vmax.f32 %v698_v39, 0.0  ;;  %v717_v48 = vmax.f32 %v685_v40, 0.0  ;;  %v699_v49 = vadd.f32 %v1511_v20, %v660_v41 }
  0xee   : > { %v764_v50 = vmin.f32 %v732_v42, 6.0  ;;  %v746_v51 = vmin.f32 %v714_v43, 6.0  ;;  %v733_v52 = vmax.f32 %v701_v44, 0.0  ;;  %v715_v53 = vmax.f32 %v683_v45, 0.0  ;;  %v1316_v54 = vpop.f32.mrb[4].mxu0 }
  0xef   : > { %v762_v55 = vmin.f32 %v730_v47, 6.0  ;;  %v749_v56 = vmin.f32 %v717_v48, 6.0  ;;  %v731_v57 = vmax.f32 %v699_v49, 0.0  ;;  %v649_v58 = vmul.f32 %v1316_v54, %v1506_v18  ;;  %v1332_v59 = vpop.f32.mrb[4].mxu1  ;;  %v525_v60 = vpop.f32.mrb[5].mxu0 }
  0xf0   : > { %v765_v61 = vmin.f32 %v733_v52, 6.0  ;;  %v747_v62 = vmin.f32 %v715_v53, 6.0  ;;  %v665_v63 = vmul.f32 %v1332_v59, %v1506_v18  ;;  %v647_v0 = vmul.f32 %v1506_v18, %v525_v60  ;;  %v589_v1 = vpop.f32.mrb[5].mxu1  ;;  %v1317_v2 = vpop.f32.mrb[6].mxu0 }
  0xf1   : > { %v1201_v3 = vpack.c.bf16 %v749_v56, %v748_v46  ;;  %v763_v4 = vmin.f32 %v731_v57, 6.0  ;;  %v688_v5 = vadd.f32 %v1511_v20, %v649_v58  ;;  %v663_v6 = vmul.f32 %v1506_v18, %v589_v1  ;;  %v1333_v7 = vpop.f32.mrb[6].mxu1  ;;  %v528_v8 = vpop.f32.mrb[7].mxu0 }
  0xf2   : > { %v1241_v9 = vpack.c.bf16 %v765_v61, %v764_v50  ;;  %v1196_v10 = vpack.c.bf16 %v747_v62, %v746_v51  ;;  %v704_v11 = vadd.f32 %v1511_v20, %v665_v63  ;;  %v686_v12 = vadd.f32 %v1511_v20, %v647_v0  ;;  %v592_v13 = vpop.f32.mrb[7].mxu1 }
  0xf3   : > { %1273 = vst [vmem:[%s1535_s7 + $0x8] sm:$0xff] %v1201_v3   ;;  %v1236_v14 = vpack.c.bf16 %v763_v4, %v762_v55  ;;  %v720_v15 = vmax.f32 %v688_v5, 0.0  ;;  %v702_v16 = vadd.f32 %v1511_v20, %v663_v6  ;;  %v650_v17 = vmul.f32 %v1317_v2, %v1506_v18 }
  0xf4   : > { %1281 = vst [vmem:[%s1535_s7 + $0x48] sm:$0xff] %v1241_v9   ;;  %1197 = vst [vmem:[%s1535_s7] sm:$0xff] %v1196_v10   ;;  %v666_v19 = vmul.f32 %v1333_v7, %v1506_v18  ;;  %v648_v21 = vmul.f32 %v1506_v18, %v528_v8  ;;  %v736_v22 = vmax.f32 %v704_v11, 0.0  ;;  %v664_v24 = vmul.f32 %v1506_v18, %v592_v13 }
  0xf5   : > { %1280 = vst [vmem:[%s1535_s7 + $0x40] sm:$0xff] %v1236_v14   ;;  %v689_v23 = vadd.f32 %v1511_v20, %v650_v17  ;;  %v718_v25 = vmax.f32 %v686_v12, 0.0  ;;  %v734_v26 = vmax.f32 %v702_v16, 0.0  ;;  %v752_v30 = vmin.f32 %v720_v15, 6.0 }
  0xf6   : > { %v705_v27 = vadd.f32 %v1511_v20, %v666_v19  ;;  %v687_v28 = vadd.f32 %v1511_v20, %v648_v21  ;;  %v1320_v29 = vpop.f32.mrb[8].mxu0  ;;  %v703_v32 = vadd.f32 %v1511_v20, %v664_v24  ;;  %v768_v42 = vmin.f32 %v736_v22, 6.0 }
  0xf7   : > { %v721_v31 = vmax.f32 %v689_v23, 0.0  ;;  %v653_v33 = vmul.f32 %v1320_v29, %v1506_v18  ;;  %v1336_v34 = vpop.f32.mrb[8].mxu1  ;;  %v541_v35 = vpop.f32.mrb[9].mxu0  ;;  %v750_v48 = vmin.f32 %v718_v25, 6.0  ;;  %v766_v49 = vmin.f32 %v734_v26, 6.0 }
  0xf8   : > { %v737_v36 = vmax.f32 %v705_v27, 0.0  ;;  %v719_v37 = vmax.f32 %v687_v28, 0.0  ;;  %v669_v38 = vmul.f32 %v1336_v34, %v1506_v18  ;;  %v651_v39 = vmul.f32 %v1506_v18, %v541_v35  ;;  %v605_v40 = vpop.f32.mrb[9].mxu1  ;;  %v1321_v41 = vpop.f32.mrb[10].mxu0 }
  0xf9   : > { %v753_v43 = vmin.f32 %v721_v31, 6.0  ;;  %v735_v44 = vmax.f32 %v703_v32, 0.0  ;;  %v667_v45 = vmul.f32 %v1506_v18, %v605_v40  ;;  %v1337_v46 = vpop.f32.mrb[10].mxu1  ;;  %v544_v47 = vpop.f32.mrb[11].mxu0  ;;  %v692_v55 = vadd.f32 %v1511_v20, %v653_v33 }
  0xfa   : > { %v769_v50 = vmin.f32 %v737_v36, 6.0  ;;  %v751_v51 = vmin.f32 %v719_v37, 6.0  ;;  %v608_v52 = vpop.f32.mrb[11].mxu1  ;;  %v708_v56 = vadd.f32 %v1511_v20, %v669_v38  ;;  %v690_v59 = vadd.f32 %v1511_v20, %v651_v39 }
  0xfb   : > { %v1211_v53 = vpack.c.bf16 %v753_v43, %v752_v30  ;;  %v767_v54 = vmin.f32 %v735_v44, 6.0  ;;  %v706_v60 = vadd.f32 %v1511_v20, %v667_v45  ;;  %v654_v62 = vmul.f32 %v1321_v41, %v1506_v18 }
  0xfc   : > { %v1251_v57 = vpack.c.bf16 %v769_v50, %v768_v42  ;;  %v1206_v58 = vpack.c.bf16 %v751_v51, %v750_v48  ;;  %v670_v63 = vmul.f32 %v1337_v46, %v1506_v18  ;;  %v652_v0 = vmul.f32 %v1506_v18, %v544_v47 }
  0xfd   : > { %1275 = vst [vmem:[%s1535_s7 + $0x18] sm:$0xff] %v1211_v53   ;;  %v1246_v61 = vpack.c.bf16 %v767_v54, %v766_v49  ;;  %v724_v2 = vmax.f32 %v692_v55, 0.0  ;;  %v740_v3 = vmax.f32 %v708_v56, 0.0  ;;  %v693_v4 = vadd.f32 %v1511_v20, %v654_v62 }
  0xfe   : > { %1283 = vst [vmem:[%s1535_s7 + $0x58] sm:$0xff] %v1251_v57   ;;  %1274 = vst [vmem:[%s1535_s7 + $0x10] sm:$0xff] %v1206_v58   ;;  %v1324_v1 = vpop.f32.mrb[12].mxu0  ;;  %v668_v5 = vmul.f32 %v1506_v18, %v608_v52  ;;  %v722_v8 = vmax.f32 %v690_v59, 0.0  ;;  %v738_v9 = vmax.f32 %v706_v60, 0.0  ;;  %v709_v10 = vadd.f32 %v1511_v20, %v670_v63 }
  0xff   : > { %1282 = vst [vmem:[%s1535_s7 + $0x50] sm:$0xff] %v1246_v61   ;;  %v1340_v6 = vpop.f32.mrb[12].mxu1  ;;  %v557_v7 = vpop.f32.mrb[13].mxu0  ;;  %v691_v11 = vadd.f32 %v1511_v20, %v652_v0  ;;  %v725_v14 = vmax.f32 %v693_v4, 0.0  ;;  %v657_v16 = vmul.f32 %v1324_v1, %v1506_v18  ;;  %v756_v27 = vmin.f32 %v724_v2, 6.0 }
 0x100   : > { %v621_v12 = vpop.f32.mrb[13].mxu1  ;;  %v1325_v13 = vpop.f32.mrb[14].mxu0  ;;  %v707_v15 = vadd.f32 %v1511_v20, %v668_v5  ;;  %v673_v17 = vmul.f32 %v1340_v6, %v1506_v18  ;;  %v741_v22 = vmax.f32 %v709_v10, 0.0  ;;  %v655_v24 = vmul.f32 %v1506_v18, %v557_v7 }
 0x101   : > { %v1341_v19 = vpop.f32.mrb[14].mxu1  ;;  %v560_v21 = vpop.f32.mrb[15].mxu0  ;;  %v723_v23 = vmax.f32 %v691_v11, 0.0  ;;  %v671_v25 = vmul.f32 %v1506_v18, %v621_v12  ;;  %v772_v28 = vmin.f32 %v740_v3, 6.0  ;;  %v757_v29 = vmin.f32 %v725_v14, 6.0 }
 0x102   : > { %v624_v26 = vpop.f32.mrb[15].mxu1  ;;  %v739_v30 = vmax.f32 %v707_v15, 0.0  ;;  %v754_v31 = vmin.f32 %v722_v8, 6.0  ;;  %v770_v32 = vmin.f32 %v738_v9, 6.0  ;;  %v773_v33 = vmin.f32 %v741_v22, 6.0 }
 0x103   : > { %v755_v34 = vmin.f32 %v723_v23, 6.0  ;;  %v1221_v35 = vpack.c.bf16 %v757_v29, %v756_v27  ;;  %v696_v37 = vadd.f32 %v1511_v20, %v657_v16  ;;  %v712_v38 = vadd.f32 %v1511_v20, %v673_v17 }
 0x104   : > { %v771_v36 = vmin.f32 %v739_v30, 6.0  ;;  %v1261_v39 = vpack.c.bf16 %v773_v33, %v772_v28  ;;  %v694_v41 = vadd.f32 %v1511_v20, %v655_v24  ;;  %v710_v42 = vadd.f32 %v1511_v20, %v671_v25 }
 0x105   : > { %v1216_v40 = vpack.c.bf16 %v755_v34, %v754_v31  ;;  %1277 = vst [vmem:[%s1535_s7 + $0x28] sm:$0xff] %v1221_v35   ;;  %v658_v44 = vmul.f32 %v1325_v13, %v1506_v18  ;;  %v674_v45 = vmul.f32 %v1341_v19, %v1506_v18  ;;  %v656_v46 = vmul.f32 %v1506_v18, %v560_v21 }
 0x106   : > { %v1256_v43 = vpack.c.bf16 %v771_v36, %v770_v32  ;;  %1285 = vst [vmem:[%s1535_s7 + $0x68] sm:$0xff] %v1261_v39   ;;  %v672_v47 = vmul.f32 %v1506_v18, %v624_v26  ;;  %v728_v48 = vmax.f32 %v696_v37, 0.0  ;;  %v744_v49 = vmax.f32 %v712_v38, 0.0 }
 0x107   : > { %1276 = vst [vmem:[%s1535_s7 + $0x20] sm:$0xff] %v1216_v40   ;;  %v697_v50 = vadd.f32 %v1511_v20, %v658_v44  ;;  %v713_v51 = vadd.f32 %v1511_v20, %v674_v45  ;;  %v726_v52 = vmax.f32 %v694_v41, 0.0  ;;  %v742_v53 = vmax.f32 %v710_v42, 0.0 }
 0x108   : > { %1284 = vst [vmem:[%s1535_s7 + $0x60] sm:$0xff] %v1256_v43   ;;  %v695_v54 = vadd.f32 %v1511_v20, %v656_v46  ;;  %v711_v55 = vadd.f32 %v1511_v20, %v672_v47  ;;  %v760_v59 = vmin.f32 %v728_v48, 6.0  ;;  %v776_v60 = vmin.f32 %v744_v49, 6.0 }
 0x109   : > { %v729_v56 = vmax.f32 %v697_v50, 0.0  ;;  %v745_v57 = vmax.f32 %v713_v51, 0.0  ;;  %v758_v63 = vmin.f32 %v726_v52, 6.0  ;;  %v774_v0 = vmin.f32 %v742_v53, 6.0 }
 0x10a   : > { %v727_v58 = vmax.f32 %v695_v54, 0.0  ;;  %v743_v18 = vmax.f32 %v711_v55, 0.0 }
 0x10b   : > { %v761_v61 = vmin.f32 %v729_v56, 6.0  ;;  %v777_v62 = vmin.f32 %v745_v57, 6.0 }
 0x10c   : > { %v759_v1 = vmin.f32 %v727_v58, 6.0  ;;  %v775_v2 = vmin.f32 %v743_v18, 6.0 }
 0x10d   : > { %v1231_v3 = vpack.c.bf16 %v761_v61, %v760_v59  ;;  %v1271_v4 = vpack.c.bf16 %v777_v62, %v776_v60 }
 0x10e   : > { %v1226_v5 = vpack.c.bf16 %v759_v1, %v758_v63  ;;  %v1266_v20 = vpack.c.bf16 %v775_v2, %v774_v0 }
 0x10f   : > { %1279 = vst [vmem:[%s1535_s7 + $0x38] sm:$0xff] %v1231_v3   ;;  %1287 = vst [vmem:[%s1535_s7 + $0x78] sm:$0xff] %v1271_v4  }
 0x110   : > { %1278 = vst [vmem:[%s1535_s7 + $0x30] sm:$0xff] %v1226_v5   ;;  %1286 = vst [vmem:[%s1535_s7 + $0x70] sm:$0xff] %v1266_v20  }
 0x111 PF: > { %s14_s17 = sadd.s32 1, %s1410_s17   ;;  %s1614_s15 = smov %s1406_s16 }
 0x112   : > { %p11_p5 = scmp.ge.s32.totalorder %s14_s17, 4   ;;  %s1615_s16 = smov %s1617_s18 }
 0x114   :  { %13 = sbr.rel (!%p11_p5) target bundleno = 2 (0x2), region = 75 }

// kernel: a_call__.22
= control target key start
LH: loop header
LB: loop body
LE: loop exit
PB: predicated region body
PF: predicated region fallthrough
CT: control target
= control target key end

     0   :  { %s1443_s18 = smov 0   ;;  %s1445_s19 = smov 0   ;;  %s1634_s0 = inlined_call_operand.vmem [shape: bf16[2,64,512], index: 0, kind: input, shape index: {}]   ;;  %s1635_s1 = inlined_call_operand.vmem [shape: bf16[512,128], index: 1, kind: input, shape index: {}]   ;;  %s1636_s2 = inlined_call_operand.vmem [shape: f32[1,128], index: 2, kind: input, shape index: {}]   ;;  %s1637_s3 = inlined_call_operand.vmem [shape: f32[1,128], index: 3, kind: input, shape index: {}]   ;;  %s1638_s4 = inlined_call_operand.vmem [shape: bf16[2,64,128], index: 4, kind: output, shape index: {0}]   ;;  %s1639_s5 = inlined_call_operand.vmem [shape: f32[2,1,8,128], index: 5, kind: output, shape index: {1}]  }
   0x1   :  { %s1447_s20 = smov 0  }
   0x2 LB: > { %s35_s21 = sadd.s32 1, %s1407_s19  ;;  %p1130_p0 = scmp.ge.s32.totalorder %s1411_s20, 1  ;;  %s1411_s20 = sphi %s1447_s20, %s16_s20   ;;  %s1407_s19 = sphi %s1445_s19, %s1641_s19   ;;  %s1403_s18 = sphi %s1443_s18, %s1640_s18  }
   0x3   : > { %p37_p1 = scmp.ge.s32.totalorder %s35_s21, 2  ;;  %p250_p2 = scmp.lt.s32.totalorder %s1411_s20, 3 }
   0x5   : > { %s1643_s21 = smov (%p37_p1, %s35_s21), 0  ;;  %p251_p3 = pnand %p1130_p0, %p250_p2 }
   0x6   : > { %v1333_v0 = vld [vmem:[%s1635_s1 + $0x40] sm:$0xff] (!%p251_p3)   ;;  %v1337_v4 = vld [vmem:[%s1635_s1 + $0x48] sm:$0xff] (!%p251_p3)   ;;  %v1341_v8 = vld [vmem:[%s1635_s1 + $0x50] sm:$0xff] (!%p251_p3)   ;;  %p311_p4 = scmp.lt.s32.totalorder (!%p251_p3), %s1403_s18, 1 }
   0x7   : > { %254 = sbr.rel (%p251_p3) target bundleno = 307 (0x133), region = 36  ;;  %v1334_v1 = vld [vmem:[%s1635_s1 + $0xc0] sm:$0xff] (!%p251_p3)   ;;  %1229 = vmatprep.subr.bf16.mxu0 (!%p251_p3), %v1333_v0  ;;  %v1338_v5 = vld [vmem:[%s1635_s1 + $0xc8] sm:$0xff] (!%p251_p3)   ;;  %v1342_v9 = vld [vmem:[%s1635_s1 + $0xd0] sm:$0xff] (!%p251_p3)  }
   0x8   : > { %v1335_v2 = vld [vmem:[%s1635_s1] sm:$0xff] (!%p251_p3)   ;;  %1269 = vmatprep.subr.bf16.mxu1 (!%p251_p3), %v1334_v1  ;;  %v1339_v6 = vld [vmem:[%s1635_s1 + $0x8] sm:$0xff] (!%p251_p3)   ;;  %v1343_v10 = vld [vmem:[%s1635_s1 + $0x10] sm:$0xff] (!%p251_p3)  }
   0x9   : > { %v1336_v3 = vld [vmem:[%s1635_s1 + $0x80] sm:$0xff] (!%p251_p3)   ;;  %1230 = vmatpush3.bf16.msra.mxu0 (!%p251_p3), %v1335_v2  ;;  %v1340_v7 = vld [vmem:[%s1635_s1 + $0x88] sm:$0xff] (!%p251_p3)   ;;  %v1344_v11 = vld [vmem:[%s1635_s1 + $0x90] sm:$0xff] (!%p251_p3)  }
   0xa   : > { %1270 = vmatpush3.bf16.msra.mxu1 (!%p251_p3), %v1336_v3  ;;  %1231 = vmatprep.subr.bf16.mxu0 (!%p251_p3), %v1337_v4  ;;  %v1345_v12 = vld [vmem:[%s1635_s1 + $0x58] sm:$0xff] (!%p251_p3)   ;;  %v1349_v16 = vld [vmem:[%s1635_s1 + $0x60] sm:$0xff] (!%p251_p3)   ;;  %v1353_v20 = vld [vmem:[%s1635_s1 + $0x68] sm:$0xff] (!%p251_p3)  }
   0xb   : > { %1271 = vmatprep.subr.bf16.mxu1 (!%p251_p3), %v1338_v5  ;;  %v1346_v13 = vld [vmem:[%s1635_s1 + $0xd8] sm:$0xff] (!%p251_p3)   ;;  %v1350_v17 = vld [vmem:[%s1635_s1 + $0xe0] sm:$0xff] (!%p251_p3)   ;;  %v1354_v21 = vld [vmem:[%s1635_s1 + $0xe8] sm:$0xff] (!%p251_p3)  }
   0xc   : > { %v1347_v14 = vld [vmem:[%s1635_s1 + $0x18] sm:$0xff] (!%p251_p3)   ;;  %v1351_v18 = vld [vmem:[%s1635_s1 + $0x20] sm:$0xff] (!%p251_p3)   ;;  %v1355_v22 = vld [vmem:[%s1635_s1 + $0x28] sm:$0xff] (!%p251_p3)  }
   0xd   : > { %1232 = vmatpush3.bf16.msra.mxu0 (!%p251_p3), %v1339_v6  ;;  %v1348_v15 = vld [vmem:[%s1635_s1 + $0x98] sm:$0xff] (!%p251_p3)   ;;  %v1352_v19 = vld [vmem:[%s1635_s1 + $0xa0] sm:$0xff] (!%p251_p3)   ;;  %v1356_v23 = vld [vmem:[%s1635_s1 + $0xa8] sm:$0xff] (!%p251_p3)  }
   0xe   : > { %1272 = vmatpush3.bf16.msra.mxu1 %v1340_v7  ;;  %1233 = vmatprep.subr.bf16.mxu0 %v1341_v8  ;;  %s1645_s18 = smov (!%p311_p4, %s1403_s18), 1  ;;  %v1357_v24 = vld [vmem:[%s1635_s1 + $0x70] sm:$0xff]   ;;  %v1361_v28 = vld [vmem:[%s1635_s1 + $0x78] sm:$0xff]   ;;  %v1588_v57 = vld [vmem:[%s1636_s2] ss:$0 sm:$0xff] }
   0xf   : > { %1273 = vmatprep.subr.bf16.mxu1 %v1342_v9  ;;  %v1358_v25 = vld [vmem:[%s1635_s1 + $0xf0] sm:$0xff]   ;;  %s1196_s9 = sshll.u32 %s1645_s18, 7  ;;  %v1362_v29 = vld [vmem:[%s1635_s1 + $0xf8] sm:$0xff]   ;;  %v1593_v62 = vld [vmem:[%s1637_s3] ss:$0 sm:$0xff]  ;;  %s1197_s6 = sshll.u32 %s1645_s18, 5 }
  0x10   : > { %v1359_v26 = vld [vmem:[%s1635_s1 + $0x30] sm:$0xff]   ;;  %s1561_s22 = scalar_lea.vmem %s1634_s0, %s1196_s9  ;;  %v1363_v30 = vld [vmem:[%s1635_s1 + $0x38] sm:$0xff]   ;;  %s1603_s9 = scalar_lea.vmem %s1638_s4, %s1197_s6 }
  0x11   : > { %1234 = vmatpush3.bf16.msra.mxu0 %v1343_v10  ;;  %v1360_v27 = vld [vmem:[%s1635_s1 + $0xb0] sm:$0xff]   ;;  %v1364_v31 = vld [vmem:[%s1635_s1 + $0xb8] sm:$0xff]   ;;  %s1135_s10 = sshll.u32 %s1645_s18, 3 }
  0x12   : > { %1274 = vmatpush3.bf16.msra.mxu1 %v1344_v11  ;;  %1235 = vmatprep.subr.bf16.mxu0 %v1345_v12  ;;  %v1365_v32 = vld [vmem:[%s1561_s22] ss:$16 sps:$4 sm:$0xff]   ;;  %v1367_v33 = vld [vmem:[%s1561_s22 + $0x4] ss:$16 sps:$4 sm:$0xff]   ;;  %v1368_v34 = vld [vmem:[%s1561_s22 + $0x8] ss:$16 sps:$4 sm:$0xff]   ;;  %s353_s13 = scalar_lea.vmem %s1639_s5, %s1135_s10 }
  0x13   : > { %1275 = vmatprep.subr.bf16.mxu1 %v1346_v13  ;;  %v1370_v35 = vld [vmem:[%s1561_s22 + $0xc] ss:$16 sps:$4 sm:$0xff]   ;;  %739 = vmatprep.mubr.bf16.mxu0 %v1367_v33  ;;  %v1371_v36 = vld [vmem:[%s1561_s22 + $0x24] ss:$16 sps:$4 sm:$0xff]   ;;  %v1375_v38 = vld [vmem:[%s1561_s22 + $0x20] ss:$16 sps:$4 sm:$0xff]  }
  0x14   : > { %804 = vmatprep.mubr.bf16.mxu1 %v1370_v35  ;;  %v1373_v37 = vld [vmem:[%s1561_s22 + $0x2c] ss:$16 sps:$4 sm:$0xff]   ;;  %v1376_v39 = vld [vmem:[%s1561_s22 + $0x28] ss:$16 sps:$4 sm:$0xff]   ;;  %v1377_v40 = vld [vmem:[%s1561_s22 + $0x44] ss:$16 sps:$4 sm:$0xff]  }
  0x15   : > { %1236 = vmatpush3.bf16.msra.mxu0 %v1347_v14  ;;  %v1379_v41 = vld [vmem:[%s1561_s22 + $0x4c] ss:$16 sps:$4 sm:$0xff]   ;;  %v1381_v42 = vld [vmem:[%s1561_s22 + $0x40] ss:$16 sps:$4 sm:$0xff]   ;;  %v1382_v43 = vld [vmem:[%s1561_s22 + $0x48] ss:$16 sps:$4 sm:$0xff]  }
  0x16   : > { %1276 = vmatpush3.bf16.msra.mxu1 %v1348_v15  ;;  %1237 = vmatprep.subr.bf16.mxu0 %v1349_v16  ;;  %v1383_v44 = vld [vmem:[%s1561_s22 + $0x64] ss:$16 sps:$4 sm:$0xff]   ;;  %v1385_v45 = vld [vmem:[%s1561_s22 + $0x6c] ss:$16 sps:$4 sm:$0xff]   ;;  %v1387_v46 = vld [vmem:[%s1561_s22 + $0x60] ss:$16 sps:$4 sm:$0xff]  }
  0x17   : > { %1277 = vmatprep.subr.bf16.mxu1 %v1350_v17  ;;  %v1388_v47 = vld [vmem:[%s1561_s22 + $0x68] ss:$16 sps:$4 sm:$0xff]  }
  0x19   : > { %1238 = vmatpush3.bf16.msra.mxu0 %v1351_v18 }
  0x1a   : > { %1278 = vmatpush3.bf16.msra.mxu1 %v1352_v19  ;;  %1239 = vmatprep.subr.bf16.mxu0 %v1353_v20 }
  0x1b   : > { %1279 = vmatprep.subr.bf16.mxu1 %v1354_v21 }
  0x1d   : > { %1240 = vmatpush3.bf16.msra.mxu0 %v1355_v22 }
  0x1e   : > { %1280 = vmatpush3.bf16.msra.mxu1 %v1356_v23  ;;  %1241 = vmatprep.subr.bf16.mxu0 %v1357_v24 }
  0x1f   : > { %1281 = vmatprep.subr.bf16.mxu1 %v1358_v25 }
  0x21   : > { %1242 = vmatpush3.bf16.msra.mxu0 %v1359_v26 }
  0x22   : > { %1282 = vmatpush3.bf16.msra.mxu1 %v1360_v27  ;;  %1243 = vmatprep.subr.bf16.mxu0 %v1361_v28 }
  0x23   : > { %1283 = vmatprep.subr.bf16.mxu1 %v1362_v29 }
  0x25   : > { %1244 = vmatpush3.bf16.msra.mxu0 %v1363_v30 }
  0x26   : > { %1284 = vmatpush3.bf16.msra.mxu1 %v1364_v31 }
  0x28   : > { %740 = vmatmul.mubr.bf16.vlgmr.msra.gmra.mrb[0].mxu0 %v1365_v32 }
  0x29   : > { %805 = vmatmul.mubr.bf16.vlgmr.msra.gmra.mrb[0].mxu1 %v1368_v34  ;;  %747 = vmatprep.mubr.bf16.mxu0 %v1371_v36 }
  0x2a   : > { %812 = vmatprep.mubr.bf16.mxu1 %v1373_v37 }
  0x30   : > { %748 = vmatmul.mubr.bf16.gmra.mrb[4].mxu0 %v1375_v38 }
  0x31   : > { %813 = vmatmul.mubr.bf16.gmra.mrb[4].mxu1 %v1376_v39  ;;  %755 = vmatprep.mubr.bf16.mxu0 %v1377_v40 }
  0x32   : > { %820 = vmatprep.mubr.bf16.mxu1 %v1379_v41 }
  0x38   : > { %756 = vmatmul.mubr.bf16.gmra.mrb[8].mxu0 %v1381_v42 }
  0x39   : > { %821 = vmatmul.mubr.bf16.gmra.mrb[8].mxu1 %v1382_v43  ;;  %763 = vmatprep.mubr.bf16.mxu0 %v1383_v44 }
  0x3a   : > { %828 = vmatprep.mubr.bf16.mxu1 %v1385_v45 }
  0x40   : > { %764 = vmatmul.mubr.bf16.gmra.mrb[12].mxu0 %v1387_v46 }
  0x41   : > { %829 = vmatmul.mubr.bf16.gmra.mrb[12].mxu1 %v1388_v47 }
  0xfb   : > { %v1245_v48 = vpop.f32.mrb[0].mxu0 }
  0xfc   : > { %v1285_v49 = vpop.f32.mrb[0].mxu1  ;;  %v1246_v50 = vpop.f32.mrb[1].mxu0 }
  0xfd   : > { %v1247_v51 = vadd.f32 %v1246_v50, %v1245_v48  ;;  %v1286_v52 = vpop.f32.mrb[1].mxu1  ;;  %v1248_v53 = vpop.f32.mrb[2].mxu0 }
  0xfe   : > { %v1287_v54 = vadd.f32 %v1286_v52, %v1285_v49  ;;  %v1288_v55 = vpop.f32.mrb[2].mxu1  ;;  %v1249_v56 = vpop.f32.mrb[3].mxu0 }
  0xff   : > { %v1250_v58 = vadd.f32 %v1249_v56, %v1248_v53  ;;  %v1289_v59 = vpop.f32.mrb[3].mxu1 }
 0x100   : > { %v807_v60 = vadd.f32 %v1287_v54, %v1247_v51  ;;  %v1290_v61 = vadd.f32 %v1289_v59, %v1288_v55 }
 0x102   : > { %v844_v63 = vmul.f32 %v1588_v57, %v807_v60  ;;  %v810_v0 = vadd.f32 %v1290_v61, %v1250_v58 }
 0x103   : > { %v1251_v1 = vpop.f32.mrb[4].mxu0 }
 0x104   : > { %v859_v2 = vadd.f32 %v1593_v62, %v844_v63  ;;  %v845_v3 = vmul.f32 %v1588_v57, %v810_v0  ;;  %v1291_v4 = vpop.f32.mrb[4].mxu1  ;;  %v1252_v5 = vpop.f32.mrb[5].mxu0 }
 0x105   : > { %v1253_v6 = vadd.f32 %v1252_v5, %v1251_v1  ;;  %v1292_v7 = vpop.f32.mrb[5].mxu1  ;;  %v1254_v8 = vpop.f32.mrb[6].mxu0 }
 0x106   : > { %v860_v9 = vadd.f32 %v1593_v62, %v845_v3  ;;  %v1293_v10 = vadd.f32 %v1292_v7, %v1291_v4  ;;  %v1294_v11 = vpop.f32.mrb[6].mxu1  ;;  %v1255_v12 = vpop.f32.mrb[7].mxu0  ;;  %v907_v13 = vmul.f32 %v859_v2, %v859_v2 }
 0x107   : > { %v1256_v14 = vadd.f32 %v1255_v12, %v1254_v8  ;;  %v1295_v15 = vpop.f32.mrb[7].mxu1 }
 0x108   : > { %v1209_v16 = vpack.c.bf16 %v860_v9, %v859_v2  ;;  %v908_v17 = vmul.f32 %v860_v9, %v860_v9  ;;  %v815_v18 = vadd.f32 %v1293_v10, %v1253_v6  ;;  %v1296_v19 = vadd.f32 %v1295_v15, %v1294_v11 }
 0x10a   : > { %1210 = vst [vmem:[%s1603_s9] sm:$0xff] %v1209_v16   ;;  %v915_v20 = vadd.f32 %v908_v17, %v907_v13  ;;  %v846_v21 = vmul.f32 %v1588_v57, %v815_v18  ;;  %v818_v22 = vadd.f32 %v1296_v19, %v1256_v14 }
 0x10b   : > { %v1257_v23 = vpop.f32.mrb[8].mxu0 }
 0x10c   : > { %v861_v24 = vadd.f32 %v1593_v62, %v846_v21  ;;  %v847_v25 = vmul.f32 %v1588_v57, %v818_v22  ;;  %v1297_v26 = vpop.f32.mrb[8].mxu1  ;;  %v1258_v27 = vpop.f32.mrb[9].mxu0 }
 0x10d   : > { %v1259_v28 = vadd.f32 %v1258_v27, %v1257_v23  ;;  %v1298_v29 = vpop.f32.mrb[9].mxu1  ;;  %v1260_v30 = vpop.f32.mrb[10].mxu0 }
 0x10e   : > { %v909_v31 = vmul.f32 %v861_v24, %v861_v24  ;;  %v862_v32 = vadd.f32 %v1593_v62, %v847_v25  ;;  %v1299_v33 = vadd.f32 %v1298_v29, %v1297_v26  ;;  %v1300_v34 = vpop.f32.mrb[10].mxu1  ;;  %v1261_v35 = vpop.f32.mrb[11].mxu0 }
 0x10f   : > { %v1262_v36 = vadd.f32 %v1261_v35, %v1260_v30  ;;  %v1301_v37 = vpop.f32.mrb[11].mxu1 }
 0x110   : > { %v916_v38 = vadd.f32 %v915_v20, %v909_v31  ;;  %v1214_v39 = vpack.c.bf16 %v862_v32, %v861_v24  ;;  %v910_v40 = vmul.f32 %v862_v32, %v862_v32  ;;  %v823_v41 = vadd.f32 %v1299_v33, %v1259_v28 }
 0x111   : > { %v1302_v42 = vadd.f32 %v1301_v37, %v1300_v34 }
 0x112   : > { %1226 = vst [vmem:[%s1603_s9 + $0x8] sm:$0xff] %v1214_v39   ;;  %v917_v43 = vadd.f32 %v916_v38, %v910_v40  ;;  %v848_v44 = vmul.f32 %v1588_v57, %v823_v41 }
 0x113   : > { %v826_v45 = vadd.f32 %v1302_v42, %v1262_v36  ;;  %v1263_v46 = vpop.f32.mrb[12].mxu0 }
 0x114   : > { %v863_v47 = vadd.f32 %v1593_v62, %v848_v44  ;;  %v1303_v48 = vpop.f32.mrb[12].mxu1  ;;  %v1264_v49 = vpop.f32.mrb[13].mxu0 }
 0x115   : > { %v849_v50 = vmul.f32 %v1588_v57, %v826_v45  ;;  %v1265_v51 = vadd.f32 %v1264_v49, %v1263_v46  ;;  %v1304_v52 = vpop.f32.mrb[13].mxu1  ;;  %v1266_v53 = vpop.f32.mrb[14].mxu0 }
 0x116   : > { %v911_v54 = vmul.f32 %v863_v47, %v863_v47  ;;  %v1305_v55 = vadd.f32 %v1304_v52, %v1303_v48  ;;  %v1306_v56 = vpop.f32.mrb[14].mxu1  ;;  %v1267_v58 = vpop.f32.mrb[15].mxu0 }
 0x117   : > { %v864_v59 = vadd.f32 %v1593_v62, %v849_v50  ;;  %v1268_v60 = vadd.f32 %v1267_v58, %v1266_v53  ;;  %v1307_v61 = vpop.f32.mrb[15].mxu1 }
 0x118   : > { %v918_v63 = vadd.f32 %v917_v43, %v911_v54  ;;  %v831_v0 = vadd.f32 %v1305_v55, %v1265_v51  ;;  %v1308_v1 = vadd.f32 %v1307_v61, %v1306_v56 }
 0x119   : > { %v1219_v2 = vpack.c.bf16 %v864_v59, %v863_v47  ;;  %v912_v3 = vmul.f32 %v864_v59, %v864_v59 }
 0x11a   : > { %v850_v4 = vmul.f32 %v1588_v57, %v831_v0  ;;  %v834_v5 = vadd.f32 %v1308_v1, %v1268_v60 }
 0x11b   : > { %1227 = vst [vmem:[%s1603_s9 + $0x10] sm:$0xff] %v1219_v2   ;;  %v919_v6 = vadd.f32 %v918_v63, %v912_v3 }
 0x11c   : > { %v865_v7 = vadd.f32 %v1593_v62, %v850_v4  ;;  %v851_v8 = vmul.f32 %v1588_v57, %v834_v5 }
 0x11e   : > { %v913_v9 = vmul.f32 %v865_v7, %v865_v7  ;;  %v866_v10 = vadd.f32 %v1593_v62, %v851_v8 }
 0x120   : > { %v920_v11 = vadd.f32 %v919_v6, %v913_v9  ;;  %v1224_v12 = vpack.c.bf16 %v866_v10, %v865_v7  ;;  %v914_v13 = vmul.f32 %v866_v10, %v866_v10 }
 0x122   : > { %1228 = vst [vmem:[%s1603_s9 + $0x18] sm:$0xff] %v1224_v12   ;;  %v921_v14 = vadd.f32 %v920_v11, %v914_v13 }
 0x124   : > { %v922_v15 = vrot.slane %v921_v14, 4 }
 0x126   : > { %v923_v16 = vadd.f32 %v922_v15, %v921_v14 }
 0x128   : > { %v924_v17 = vrot.slane %v923_v16, 2 }
 0x12a   : > { %v925_v18 = vadd.f32 %v924_v17, %v923_v16 }
 0x12c   : > { %v926_v19 = vrot.slane %v925_v18, 1 }
 0x12e   : > { %v927_v20 = vadd.f32 %v926_v19, %v925_v18 }
 0x130   : > { %v928_v57 = vmul.f32 0.015625, %v927_v20 }
 0x132   : > { %929 = vst [vmem:[%s353_s13] sm:$0xff] %v928_v57 }
 0x133 PF: > { %s16_s20 = sadd.s32 1, %s1411_s20   ;;  %s1640_s18 = smov %s1407_s19 }
 0x134   : > { %p13_p5 = scmp.ge.s32.totalorder %s16_s20, 4   ;;  %s1641_s19 = smov %s1643_s21 }
 0x136   :  { %15 = sbr.rel (!%p13_p5) target bundleno = 2 (0x2), region = 87 }

// kernel: a_call__.25
= control target key start
LH: loop header
LB: loop body
LE: loop exit
PB: predicated region body
PF: predicated region fallthrough
CT: control target
= control target key end

     0   :  { %s890_s15 = smov 0   ;;  %s892_s16 = smov 0   ;;  %s966_s0 = inlined_call_operand.vmem [shape: bf16[2,64,128], index: 0, kind: input, shape index: {}]   ;;  %s967_s1 = inlined_call_operand.vmem [shape: bf16[128,128], index: 1, kind: input, shape index: {}]   ;;  %s968_s2 = inlined_call_operand.vmem [shape: f32[1,128], index: 2, kind: input, shape index: {}]   ;;  %s969_s3 = inlined_call_operand.vmem [shape: f32[1,128], index: 3, kind: input, shape index: {}]   ;;  %s970_s4 = inlined_call_operand.vmem [shape: bf16[2,64,128], index: 4, kind: output, shape index: {}]  }
   0x1   :  { %s894_s17 = smov 0  }
   0x2 LB: > { %s33_s18 = sadd.s32 1, %s859_s16  ;;  %p691_p0 = scmp.ge.s32.totalorder %s863_s17, 1  ;;  %s863_s17 = sphi %s894_s17, %s14_s17   ;;  %s859_s16 = sphi %s892_s16, %s972_s16   ;;  %s855_s15 = sphi %s890_s15, %s971_s15  }
   0x3   : > { %p35_p1 = scmp.ge.s32.totalorder %s33_s18, 2  ;;  %p217_p2 = scmp.lt.s32.totalorder %s863_s17, 3 }
   0x5   : > { %s974_s18 = smov (%p35_p1, %s33_s18), 0  ;;  %p218_p3 = pnand %p691_p0, %p217_p2 }
   0x6   : > { %v829_v0 = vld [vmem:[%s967_s1] sm:$0xff] (!%p218_p3)   ;;  %p265_p4 = scmp.lt.s32.totalorder (!%p218_p3), %s855_s15, 1  ;;  %v830_v1 = vld [vmem:[%s967_s1 + $0x8] sm:$0xff] (!%p218_p3)   ;;  %v831_v2 = vld [vmem:[%s967_s1 + $0x10] sm:$0xff] (!%p218_p3)  }
   0x7   : > { %221 = sbr.rel (%p218_p3) target bundleno = 265 (0x109), region = 36  ;;  %765 = vmatprep.subr.bf16.mxu0 (!%p218_p3), %v829_v0  ;;  %789 = vmatprep.subr.bf16.mxu1 (!%p218_p3), %v829_v0  ;;  %v832_v3 = vld [vmem:[%s967_s1 + $0x18] sm:$0xff] (!%p218_p3)   ;;  %v833_v6 = vld [vmem:[%s967_s1 + $0x20] sm:$0xff] (!%p218_p3)   ;;  %v834_v7 = vld [vmem:[%s967_s1 + $0x28] sm:$0xff] (!%p218_p3)  }
   0x8   : > { %766 = vmatpush3.bf16.msra.mxu0 (!%p218_p3), %v829_v0  ;;  %797 = vmatpush3.bf16.msra.mxu1 (!%p218_p3), %v829_v0  ;;  %v835_v8 = vld [vmem:[%s967_s1 + $0x30] sm:$0xff] (!%p218_p3)   ;;  %v836_v9 = vld [vmem:[%s967_s1 + $0x38] sm:$0xff] (!%p218_p3)   ;;  %v708_v12 = vld [vmem:[%s968_s2] ss:$0 sm:$0xff] (!%p218_p3) }
   0x9   : > { %767 = vmatprep.subr.bf16.mxu0 (!%p218_p3), %v830_v1  ;;  %790 = vmatprep.subr.bf16.mxu1 (!%p218_p3), %v830_v1  ;;  %v709_v14 = vld [vmem:[%s969_s3] ss:$0 sm:$0xff] (!%p218_p3) }
   0xc   : > { %768 = vmatpush3.bf16.msra.mxu0 (!%p218_p3), %v830_v1  ;;  %798 = vmatpush3.bf16.msra.mxu1 (!%p218_p3), %v830_v1 }
   0xd   : > { %769 = vmatprep.subr.bf16.mxu0 (!%p218_p3), %v831_v2  ;;  %791 = vmatprep.subr.bf16.mxu1 (!%p218_p3), %v831_v2 }
   0xe   : > { %s976_s15 = smov (!%p265_p4, %s855_s15), 1 }
   0xf   : > { %s720_s25 = sshll.u32 %s976_s15, 5 }
  0x10   : > { %s925_s28 = scalar_lea.vmem %s966_s0, %s720_s25  ;;  %770 = vmatpush3.bf16.msra.mxu0 %v831_v2  ;;  %799 = vmatpush3.bf16.msra.mxu1 %v831_v2  ;;  %s295_s23 = scalar_lea.vmem %s970_s4, %s720_s25 }
  0x11   : > { %v837_v4 = vld [vmem:[%s925_s28] sm:$0xff]   ;;  %v838_v5 = vld [vmem:[%s925_s28 + $0x10] sm:$0xff]   ;;  %771 = vmatprep.subr.bf16.mxu0 %v832_v3  ;;  %792 = vmatprep.subr.bf16.mxu1 %v832_v3  ;;  %v839_v10 = vld [vmem:[%s925_s28 + $0x8] sm:$0xff]  }
  0x12   : > { %781 = vmatprep.mubr.bf16.mxu0 %v837_v4  ;;  %785 = vmatprep.mubr.bf16.mxu1 %v838_v5  ;;  %v840_v11 = vld [vmem:[%s925_s28 + $0x18] sm:$0xff]  }
  0x14   : > { %772 = vmatpush3.bf16.msra.mxu0 %v832_v3  ;;  %800 = vmatpush3.bf16.msra.mxu1 %v832_v3 }
  0x15   : > { %773 = vmatprep.subr.bf16.mxu0 %v833_v6  ;;  %793 = vmatprep.subr.bf16.mxu1 %v833_v6 }
  0x18   : > { %774 = vmatpush3.bf16.msra.mxu0 %v833_v6  ;;  %801 = vmatpush3.bf16.msra.mxu1 %v833_v6 }
  0x19   : > { %775 = vmatprep.subr.bf16.mxu0 %v834_v7  ;;  %794 = vmatprep.subr.bf16.mxu1 %v834_v7 }
  0x1c   : > { %776 = vmatpush3.bf16.msra.mxu0 %v834_v7  ;;  %802 = vmatpush3.bf16.msra.mxu1 %v834_v7 }
  0x1d   : > { %777 = vmatprep.subr.bf16.mxu0 %v835_v8  ;;  %795 = vmatprep.subr.bf16.mxu1 %v835_v8 }
  0x20   : > { %778 = vmatpush3.bf16.msra.mxu0 %v835_v8  ;;  %803 = vmatpush3.bf16.msra.mxu1 %v835_v8 }
  0x21   : > { %779 = vmatprep.subr.bf16.mxu0 %v836_v9  ;;  %796 = vmatprep.subr.bf16.mxu1 %v836_v9 }
  0x24   : > { %780 = vmatpush3.bf16.msra.mxu0 %v836_v9  ;;  %804 = vmatpush3.bf16.msra.mxu1 %v836_v9 }
  0x27   : > { %782 = vmatmul.mubr.bf16.vlgmr.msra.gmra.mrb[0].mxu0 %v839_v10  ;;  %786 = vmatmul.mubr.bf16.vlgmr.msra.gmra.mrb[0].mxu1 %v840_v11 }
  0xfa   : > { %v783_v13 = vpop.f32.mrb[0].mxu0  ;;  %v787_v15 = vpop.f32.mrb[0].mxu1 }
  0xfb   : > { %v468_v16 = vmul.f32 %v783_v13, %v708_v12  ;;  %v472_v17 = vmul.f32 %v787_v15, %v708_v12  ;;  %v428_v18 = vpop.f32.mrb[1].mxu0  ;;  %v444_v19 = vpop.f32.mrb[1].mxu1 }
  0xfc   : > { %v466_v20 = vmul.f32 %v708_v12, %v428_v18  ;;  %v470_v21 = vmul.f32 %v708_v12, %v444_v19  ;;  %v784_v22 = vpop.f32.mrb[2].mxu0  ;;  %v788_v23 = vpop.f32.mrb[2].mxu1 }
  0xfd   : > { %v483_v24 = vadd.f32 %v709_v14, %v468_v16  ;;  %v487_v25 = vadd.f32 %v709_v14, %v472_v17  ;;  %v469_v26 = vmul.f32 %v784_v22, %v708_v12  ;;  %v473_v27 = vmul.f32 %v788_v23, %v708_v12  ;;  %v431_v28 = vpop.f32.mrb[3].mxu0  ;;  %v447_v29 = vpop.f32.mrb[3].mxu1 }
  0xfe   : > { %v481_v30 = vadd.f32 %v709_v14, %v466_v20  ;;  %v485_v31 = vadd.f32 %v709_v14, %v470_v21  ;;  %v467_v32 = vmul.f32 %v708_v12, %v431_v28  ;;  %v471_v33 = vmul.f32 %v708_v12, %v447_v29 }
  0xff   : > { %v491_v34 = vmax.f32 %v483_v24, 0.0  ;;  %v495_v35 = vmax.f32 %v487_v25, 0.0  ;;  %v484_v36 = vadd.f32 %v709_v14, %v469_v26  ;;  %v488_v37 = vadd.f32 %v709_v14, %v473_v27 }
 0x100   : > { %v489_v38 = vmax.f32 %v481_v30, 0.0  ;;  %v493_v39 = vmax.f32 %v485_v31, 0.0  ;;  %v482_v40 = vadd.f32 %v709_v14, %v467_v32  ;;  %v486_v41 = vadd.f32 %v709_v14, %v471_v33 }
 0x101   : > { %v492_v42 = vmax.f32 %v484_v36, 0.0  ;;  %v496_v43 = vmax.f32 %v488_v37, 0.0  ;;  %v499_v46 = vmin.f32 %v491_v34, 6.0  ;;  %v503_v47 = vmin.f32 %v495_v35, 6.0 }
 0x102   : > { %v490_v44 = vmax.f32 %v482_v40, 0.0  ;;  %v494_v45 = vmax.f32 %v486_v41, 0.0  ;;  %v497_v50 = vmin.f32 %v489_v38, 6.0  ;;  %v501_v51 = vmin.f32 %v493_v39, 6.0 }
 0x103   : > { %v500_v48 = vmin.f32 %v492_v42, 6.0  ;;  %v504_v49 = vmin.f32 %v496_v43, 6.0 }
 0x104   : > { %v498_v52 = vmin.f32 %v490_v44, 6.0  ;;  %v502_v53 = vmin.f32 %v494_v45, 6.0 }
 0x105   : > { %v738_v54 = vpack.c.bf16 %v500_v48, %v499_v46  ;;  %v748_v55 = vpack.c.bf16 %v504_v49, %v503_v47 }
 0x106   : > { %v733_v56 = vpack.c.bf16 %v498_v52, %v497_v50  ;;  %v743_v57 = vpack.c.bf16 %v502_v53, %v501_v51 }
 0x107   : > { %750 = vst [vmem:[%s295_s23 + $0x8] sm:$0xff] %v738_v54   ;;  %752 = vst [vmem:[%s295_s23 + $0x18] sm:$0xff] %v748_v55  }
 0x108   : > { %734 = vst [vmem:[%s295_s23] sm:$0xff] %v733_v56   ;;  %751 = vst [vmem:[%s295_s23 + $0x10] sm:$0xff] %v743_v57  }
 0x109 PF: > { %s14_s17 = sadd.s32 1, %s863_s17   ;;  %s971_s15 = smov %s859_s16 }
 0x10a   : > { %p11_p5 = scmp.ge.s32.totalorder %s14_s17, 4   ;;  %s972_s16 = smov %s974_s18 }
 0x10c   :  { %13 = sbr.rel (!%p11_p5) target bundleno = 2 (0x2), region = 75 }

// kernel: a_call__.24
= control target key start
LH: loop header
LB: loop body
LE: loop exit
PB: predicated region body
PF: predicated region fallthrough
CT: control target
= control target key end

     0   :  { %s874_s15 = smov 0   ;;  %s876_s16 = smov 0   ;;  %s950_s0 = inlined_call_operand.vmem [shape: bf16[2,64,128], index: 0, kind: input, shape index: {}]   ;;  %s951_s1 = inlined_call_operand.vmem [shape: bf16[128,128], index: 1, kind: input, shape index: {}]   ;;  %s952_s2 = inlined_call_operand.vmem [shape: f32[1,128], index: 2, kind: input, shape index: {}]   ;;  %s953_s3 = inlined_call_operand.vmem [shape: f32[1,128], index: 3, kind: input, shape index: {}]   ;;  %s954_s4 = inlined_call_operand.vmem [shape: bf16[2,64,128], index: 4, kind: output, shape index: {}]  }
   0x1   :  { %s878_s17 = smov 0  }
   0x2 LB: > { %s33_s18 = sadd.s32 1, %s843_s16  ;;  %p675_p0 = scmp.ge.s32.totalorder %s847_s17, 1  ;;  %s847_s17 = sphi %s878_s17, %s14_s17   ;;  %s843_s16 = sphi %s876_s16, %s956_s16   ;;  %s839_s15 = sphi %s874_s15, %s955_s15  }
   0x3   : > { %p35_p1 = scmp.ge.s32.totalorder %s33_s18, 2  ;;  %p217_p2 = scmp.lt.s32.totalorder %s847_s17, 3 }
   0x5   : > { %s958_s18 = smov (%p35_p1, %s33_s18), 0  ;;  %p218_p3 = pnand %p675_p0, %p217_p2 }
   0x6   : > { %v813_v0 = vld [vmem:[%s951_s1] sm:$0xff] (!%p218_p3)   ;;  %p265_p4 = scmp.lt.s32.totalorder (!%p218_p3), %s839_s15, 1  ;;  %v814_v1 = vld [vmem:[%s951_s1 + $0x8] sm:$0xff] (!%p218_p3)   ;;  %v815_v2 = vld [vmem:[%s951_s1 + $0x10] sm:$0xff] (!%p218_p3)  }
   0x7   : > { %221 = sbr.rel (%p218_p3) target bundleno = 261 (0x105), region = 36  ;;  %749 = vmatprep.subr.bf16.mxu0 (!%p218_p3), %v813_v0  ;;  %773 = vmatprep.subr.bf16.mxu1 (!%p218_p3), %v813_v0  ;;  %v816_v3 = vld [vmem:[%s951_s1 + $0x18] sm:$0xff] (!%p218_p3)   ;;  %v817_v6 = vld [vmem:[%s951_s1 + $0x20] sm:$0xff] (!%p218_p3)   ;;  %v818_v7 = vld [vmem:[%s951_s1 + $0x28] sm:$0xff] (!%p218_p3)  }
   0x8   : > { %750 = vmatpush3.bf16.msra.mxu0 (!%p218_p3), %v813_v0  ;;  %781 = vmatpush3.bf16.msra.mxu1 (!%p218_p3), %v813_v0  ;;  %v819_v8 = vld [vmem:[%s951_s1 + $0x30] sm:$0xff] (!%p218_p3)   ;;  %v820_v9 = vld [vmem:[%s951_s1 + $0x38] sm:$0xff] (!%p218_p3)   ;;  %v692_v12 = vld [vmem:[%s952_s2] ss:$0 sm:$0xff] (!%p218_p3) }
   0x9   : > { %751 = vmatprep.subr.bf16.mxu0 (!%p218_p3), %v814_v1  ;;  %774 = vmatprep.subr.bf16.mxu1 (!%p218_p3), %v814_v1  ;;  %v693_v19 = vld [vmem:[%s953_s3] ss:$0 sm:$0xff] (!%p218_p3) }
   0xc   : > { %752 = vmatpush3.bf16.msra.mxu0 (!%p218_p3), %v814_v1  ;;  %782 = vmatpush3.bf16.msra.mxu1 (!%p218_p3), %v814_v1 }
   0xd   : > { %753 = vmatprep.subr.bf16.mxu0 (!%p218_p3), %v815_v2  ;;  %775 = vmatprep.subr.bf16.mxu1 (!%p218_p3), %v815_v2 }
   0xe   : > { %s960_s15 = smov (!%p265_p4, %s839_s15), 1 }
   0xf   : > { %s704_s25 = sshll.u32 %s960_s15, 5 }
  0x10   : > { %s909_s28 = scalar_lea.vmem %s950_s0, %s704_s25  ;;  %754 = vmatpush3.bf16.msra.mxu0 %v815_v2  ;;  %783 = vmatpush3.bf16.msra.mxu1 %v815_v2  ;;  %s295_s23 = scalar_lea.vmem %s954_s4, %s704_s25 }
  0x11   : > { %v821_v4 = vld [vmem:[%s909_s28] sm:$0xff]   ;;  %v822_v5 = vld [vmem:[%s909_s28 + $0x10] sm:$0xff]   ;;  %755 = vmatprep.subr.bf16.mxu0 %v816_v3  ;;  %776 = vmatprep.subr.bf16.mxu1 %v816_v3  ;;  %v823_v10 = vld [vmem:[%s909_s28 + $0x8] sm:$0xff]  }
  0x12   : > { %765 = vmatprep.mubr.bf16.mxu0 %v821_v4  ;;  %769 = vmatprep.mubr.bf16.mxu1 %v822_v5  ;;  %v824_v11 = vld [vmem:[%s909_s28 + $0x18] sm:$0xff]  }
  0x14   : > { %756 = vmatpush3.bf16.msra.mxu0 %v816_v3  ;;  %784 = vmatpush3.bf16.msra.mxu1 %v816_v3 }
  0x15   : > { %757 = vmatprep.subr.bf16.mxu0 %v817_v6  ;;  %777 = vmatprep.subr.bf16.mxu1 %v817_v6 }
  0x18   : > { %758 = vmatpush3.bf16.msra.mxu0 %v817_v6  ;;  %785 = vmatpush3.bf16.msra.mxu1 %v817_v6 }
  0x19   : > { %759 = vmatprep.subr.bf16.mxu0 %v818_v7  ;;  %778 = vmatprep.subr.bf16.mxu1 %v818_v7 }
  0x1c   : > { %760 = vmatpush3.bf16.msra.mxu0 %v818_v7  ;;  %786 = vmatpush3.bf16.msra.mxu1 %v818_v7 }
  0x1d   : > { %761 = vmatprep.subr.bf16.mxu0 %v819_v8  ;;  %779 = vmatprep.subr.bf16.mxu1 %v819_v8 }
  0x20   : > { %762 = vmatpush3.bf16.msra.mxu0 %v819_v8  ;;  %787 = vmatpush3.bf16.msra.mxu1 %v819_v8 }
  0x21   : > { %763 = vmatprep.subr.bf16.mxu0 %v820_v9  ;;  %780 = vmatprep.subr.bf16.mxu1 %v820_v9 }
  0x24   : > { %764 = vmatpush3.bf16.msra.mxu0 %v820_v9  ;;  %788 = vmatpush3.bf16.msra.mxu1 %v820_v9 }
  0x27   : > { %766 = vmatmul.mubr.bf16.vlgmr.msra.gmra.mrb[0].mxu0 %v823_v10  ;;  %770 = vmatmul.mubr.bf16.vlgmr.msra.gmra.mrb[0].mxu1 %v824_v11 }
  0xfa   : > { %v767_v13 = vpop.f32.mrb[0].mxu0  ;;  %v771_v14 = vpop.f32.mrb[0].mxu1 }
  0xfb   : > { %v468_v15 = vmul.f32 %v767_v13, %v692_v12  ;;  %v472_v16 = vmul.f32 %v771_v14, %v692_v12  ;;  %v428_v17 = vpop.f32.mrb[1].mxu0  ;;  %v444_v18 = vpop.f32.mrb[1].mxu1 }
  0xfc   : > { %v466_v20 = vmul.f32 %v692_v12, %v428_v17  ;;  %v470_v21 = vmul.f32 %v692_v12, %v444_v18  ;;  %v768_v22 = vpop.f32.mrb[2].mxu0  ;;  %v772_v23 = vpop.f32.mrb[2].mxu1 }
  0xfd   : > { %v469_v24 = vmul.f32 %v768_v22, %v692_v12  ;;  %v473_v25 = vmul.f32 %v772_v23, %v692_v12  ;;  %v431_v26 = vpop.f32.mrb[3].mxu0  ;;  %v447_v27 = vpop.f32.mrb[3].mxu1  ;;  %v483_v30 = vadd.f32 %v693_v19, %v468_v15  ;;  %v487_v31 = vadd.f32 %v693_v19, %v472_v16 }
  0xfe   : > { %v467_v28 = vmul.f32 %v692_v12, %v431_v26  ;;  %v471_v29 = vmul.f32 %v692_v12, %v447_v27  ;;  %v481_v34 = vadd.f32 %v693_v19, %v466_v20  ;;  %v485_v35 = vadd.f32 %v693_v19, %v470_v21 }
  0xff   : > { %v484_v32 = vadd.f32 %v693_v19, %v469_v24  ;;  %v488_v33 = vadd.f32 %v693_v19, %v473_v25 }
 0x100   : > { %v482_v36 = vadd.f32 %v693_v19, %v467_v28  ;;  %v486_v37 = vadd.f32 %v693_v19, %v471_v29 }
 0x101   : > { %v722_v38 = vpack.c.bf16 %v484_v32, %v483_v30  ;;  %v732_v39 = vpack.c.bf16 %v488_v33, %v487_v31 }
 0x102   : > { %v717_v40 = vpack.c.bf16 %v482_v36, %v481_v34  ;;  %v727_v41 = vpack.c.bf16 %v486_v37, %v485_v35 }
 0x103   : > { %734 = vst [vmem:[%s295_s23 + $0x8] sm:$0xff] %v722_v38   ;;  %736 = vst [vmem:[%s295_s23 + $0x18] sm:$0xff] %v732_v39  }
 0x104   : > { %718 = vst [vmem:[%s295_s23] sm:$0xff] %v717_v40   ;;  %735 = vst [vmem:[%s295_s23 + $0x10] sm:$0xff] %v727_v41  }
 0x105 PF: > { %s14_s17 = sadd.s32 1, %s847_s17   ;;  %s955_s15 = smov %s843_s16 }
 0x106   : > { %p11_p5 = scmp.ge.s32.totalorder %s14_s17, 4   ;;  %s956_s16 = smov %s958_s18 }
 0x108   :  { %13 = sbr.rel (!%p11_p5) target bundleno = 2 (0x2), region = 75 }

// kernel: a_call__.26
= control target key start
LH: loop header
LB: loop body
LE: loop exit
PB: predicated region body
PF: predicated region fallthrough
CT: control target
= control target key end

     0   :  { %s1517_s15 = smov 0   ;;  %s1519_s16 = smov 0   ;;  %s1850_s0 = inlined_call_operand.vmem [shape: bf16[2,8,8,128], index: 0, kind: input, shape index: {}]   ;;  %s1851_s1 = inlined_call_operand.vmem [shape: bf16[9,128], index: 1, kind: input, shape index: {}]   ;;  %s1852_s2 = inlined_call_operand.vmem [shape: f32[1,128], index: 2, kind: input, shape index: {}]   ;;  %s1853_s3 = inlined_call_operand.vmem [shape: f32[1,128], index: 3, kind: input, shape index: {}]   ;;  %s1854_s4 = inlined_call_operand.vmem [shape: bf16[2,8,8,128], index: 4, kind: output, shape index: {}]  }
   0x1   :  { %s1521_s17 = smov 0  }
   0x2 LB: > { %s26_s18 = sadd.s32 1, %s1485_s16  ;;  %p1391_p0 = scmp.ge.s32.totalorder %s1489_s17, 1  ;;  %s1489_s17 = sphi %s1521_s17, %s14_s17   ;;  %s1485_s16 = sphi %s1519_s16, %s1858_s16   ;;  %s1481_s15 = sphi %s1517_s15, %s1857_s15  }
   0x3   : > { %p28_p1 = scmp.ge.s32.totalorder %s26_s18, 2  ;;  %p206_p2 = scmp.lt.s32.totalorder %s1489_s17, 3 }
   0x5   : > { %s1860_s18 = smov (%p28_p1, %s26_s18), 0  ;;  %p207_p3 = pnand %p1391_p0, %p206_p2 }
   0x6   : > { %p248_p4 = scmp.lt.s32.totalorder (!%p207_p3), %s1481_s15, 1  ;;  %v275_v0 = vld [vmem:[%s1851_s1] sm:$0xf] (!%p207_p3)  ;;  %v360_v1 = vlaneseq (!%p207_p3)  ;;  %v1491_v2 = vmov (!%p207_p3), 0   ;;  %v276_v4 = vld [vmem:[%s1851_s1 + $0x4] sm:$0x1] (!%p207_p3) }
   0x7   : > { %210 = sbr.rel (%p207_p3) target bundleno = 181 (0xb5), region = 36  ;;  %282 = vst [vmem:[#allocation2 + $0x4] sm:$0xf] (!%p207_p3), %v1491_v2  ;;  %281 = vst [vmem:[#allocation2] sm:$0xf] (!%p207_p3), %v1491_v2  ;;  %v277_v5 = vunpack.c.l.bf16 (!%p207_p3), %v275_v0  ;;  %v278_v17 = vunpack.c.l.bf16 (!%p207_p3), %v276_v4  ;;  %vm500_vm0 = vcmask (!%p207_p3), 1045504  }
   0x8   : > { %283 = vst [vmem:[#allocation2 + $0x8] sm:$0xf] (!%p207_p3), %v1491_v2  ;;  %284 = vst [vmem:[#allocation2 + $0xc] sm:$0xf] (!%p207_p3), %v1491_v2  ;;  %v361_v3 = vshrl.u32 (!%p207_p3), %v360_v1, 7 }
   0x9   : > { %285 = vst [vmem:[#allocation2 + $0x10] sm:$0xf] (!%p207_p3), %v1491_v2  ;;  %286 = vst [vmem:[#allocation2 + $0x14] sm:$0xf] (!%p207_p3), %v1491_v2  ;;  %vm1138_vm1 = vsmask.f32 (!%p207_p3), 256 }
   0xa   : > { %287 = vst [vmem:[#allocation2 + $0x18] sm:$0xf] (!%p207_p3), %v1491_v2  ;;  %288 = vst [vmem:[#allocation2 + $0x1c] sm:$0xf] (!%p207_p3), %v1491_v2  ;;  %v362_v6 = vsub.s32 (!%p207_p3), 0, %v361_v3  ;;  %v398_v7 = vsub.s32 (!%p207_p3), 1, %v361_v3 }
   0xb   : > { %289 = vst [vmem:[#allocation2 + $0x20] sm:$0xf] (!%p207_p3), %v1491_v2  ;;  %290 = vst [vmem:[#allocation2 + $0x24] sm:$0xf] (!%p207_p3), %v1491_v2  ;;  %v466_v8 = vsub.s32 (!%p207_p3), 2, %v361_v3  ;;  %v591_v9 = vsub.s32 (!%p207_p3), 3, %v361_v3 }
   0xc   : > { %291 = vst [vmem:[#allocation2 + $0x28] sm:$0xf] (!%p207_p3), %v1491_v2  ;;  %292 = vst [vmem:[#allocation2 + $0x2c] sm:$0xf] (!%p207_p3), %v1491_v2  ;;  %v627_v10 = vsub.s32 (!%p207_p3), 4, %v361_v3  ;;  %v695_v11 = vsub.s32 (!%p207_p3), 5, %v361_v3  ;;  %v1563_v21 = vrot.slane (!%p207_p3), %v277_v5, %v362_v6  ;;  %v1565_v22 = vrot.slane (!%p207_p3), %v277_v5, %v398_v7 }
   0xd   : > { %293 = vst [vmem:[#allocation2 + $0x30] sm:$0xf] (!%p207_p3), %v1491_v2  ;;  %294 = vst [vmem:[#allocation2 + $0x34] sm:$0xf] (!%p207_p3), %v1491_v2  ;;  %v820_v12 = vsub.s32 (!%p207_p3), 6, %v361_v3  ;;  %v856_v13 = vsub.s32 (!%p207_p3), 7, %v361_v3  ;;  %v1567_v23 = vrot.slane (!%p207_p3), %v277_v5, %v466_v8  ;;  %v1569_v27 = vrot.slane (!%p207_p3), %v277_v5, %v591_v9 }
   0xe   : > { %295 = vst [vmem:[#allocation2 + $0x38] sm:$0xf] %v1491_v2  ;;  %296 = vst [vmem:[#allocation2 + $0x3c] sm:$0xf] %v1491_v2  ;;  %s1862_s15 = smov (!%p248_p4, %s1481_s15), 1  ;;  %v1571_v28 = vrot.slane %v277_v5, %v627_v10  ;;  %v1573_v29 = vrot.slane %v277_v5, %v695_v11  ;;  %v1590_v44 = vrot.slane %v278_v17, %v362_v6 }
   0xf   : > { %297 = vst [vmem:[#allocation2 + $0x40] sm:$0xf] %v1491_v2  ;;  %298 = vst [vmem:[#allocation2 + $0x44] sm:$0xf] %v1491_v2  ;;  %s1424_s23 = sshll.u32 %s1862_s15, 5  ;;  %v1575_v30 = vrot.slane %v277_v5, %v820_v12  ;;  %v1581_v37 = vrot.slane %v277_v5, %v856_v13 }
  0x10   : > { %299 = vst [vmem:[#allocation2 + $0x48] sm:$0xf] %v1491_v2  ;;  %300 = vst [vmem:[#allocation2 + $0x4c] sm:$0xf] %v1491_v2  ;;  %s1555_s26 = scalar_lea.vmem %s1850_s0, %s1424_s23  ;;  %v448_v24 = vld [vmem:[#allocation2 + $0x8] sm:$0x1]  ;;  %s1686_s7 = scalar_lea.vmem %s1854_s4, %s1424_s23 }
  0x11   : > { %301 = vst [vmem:[#allocation2 + $0x50] sm:$0xf] %v1491_v2  ;;  %302 = vst [vmem:[#allocation2 + $0x54] sm:$0xf] %v1491_v2  ;;  %v311_v14 = vld [vmem:[%s1555_s26] sm:$0xf]  ;;  %v456_v34 = vunpack.c.l.bf16 %v448_v24 }
  0x12   : > { %303 = vst [vmem:[#allocation2 + $0x58] sm:$0xf] %v1491_v2  ;;  %304 = vst [vmem:[#allocation2 + $0x5c] sm:$0xf] %v1491_v2  ;;  %v312_v15 = vld [vmem:[%s1555_s26 + $0x4] sm:$0xf] }
  0x13   : > { %305 = vst [vmem:[#allocation2 + $0x60] sm:$0xf] %v1491_v2  ;;  %306 = vst [vmem:[#allocation2 + $0x64] sm:$0xf] %v1491_v2  ;;  %v313_v16 = vld [vmem:[%s1555_s26 + $0x8] sm:$0xf]  ;;  %v469_v49 = vmul.f32 %v1567_v23, %v456_v34 }
  0x14   : > { %307 = vst [vmem:[#allocation2 + $0x68] sm:$0xf] %v1491_v2  ;;  %308 = vst [vmem:[#allocation2 + $0x6c] sm:$0xf] %v1491_v2  ;;  %v314_v18 = vld [vmem:[%s1555_s26 + $0xc] sm:$0xf] }
  0x15   : > { %309 = vst [vmem:[#allocation2 + $0x70] sm:$0xf] %v1491_v2  ;;  %310 = vst [vmem:[#allocation2 + $0x74] sm:$0xf] %v1491_v2  ;;  %v315_v19 = vld [vmem:[%s1555_s26 + $0x10] sm:$0xf] }
  0x16   : > { %320 = vst [vmem:[#allocation2 + $0x10] sm:$0xf] %v311_v14  ;;  %321 = vst [vmem:[#allocation2 + $0x1c] sm:$0xf] %v312_v15  ;;  %v316_v20 = vld [vmem:[%s1555_s26 + $0x14] sm:$0xf] }
  0x17   : > { %322 = vst [vmem:[#allocation2 + $0x28] sm:$0xf] %v313_v16  ;;  %v449_v25 = vld [vmem:[#allocation2 + $0x14] sm:$0x1]  ;;  %v450_v26 = vld [vmem:[#allocation2 + $0x20] sm:$0x1] }
  0x18   : > { %323 = vst [vmem:[#allocation2 + $0x34] sm:$0xf] %v314_v18  ;;  %324 = vst [vmem:[#allocation2 + $0x40] sm:$0xf] %v315_v19  ;;  %v451_v31 = vld [vmem:[#allocation2 + $0x2c] sm:$0x1]  ;;  %v457_v35 = vunpack.c.l.bf16 %v449_v25  ;;  %v458_v36 = vunpack.c.l.bf16 %v450_v26 }
  0x19   : > { %325 = vst [vmem:[#allocation2 + $0x4c] sm:$0xf] %v316_v20  ;;  %v1577_v32 = vld [vmem:[#allocation2 + $0x38] sm:$0x1]  ;;  %v1579_v33 = vld [vmem:[#allocation2 + $0x44] sm:$0x1]  ;;  %v459_v40 = vunpack.c.l.bf16 %v451_v31 }
  0x1a   : > { %v1583_v38 = vld [vmem:[#allocation2 + $0x50] sm:$0x1]  ;;  %v1585_v39 = vld [vmem:[#allocation2 + $0x5c] sm:$0x1]  ;;  %v460_v41 = vunpack.c.l.bf16 %v1577_v32  ;;  %v461_v42 = vunpack.c.l.bf16 %v1579_v33  ;;  %v317_v43 = vld [vmem:[%s1555_s26 + $0x18] sm:$0xf]  ;;  %v1597_v51 = vmul.f32 %v1567_v23, %v457_v35  ;;  %v1600_v57 = vmul.f32 %v1567_v23, %v458_v36 }
  0x1b   : > { %v462_v45 = vunpack.c.l.bf16 %v1583_v38  ;;  %v463_v46 = vunpack.c.l.bf16 %v1585_v39  ;;  %326 = vst [vmem:[#allocation2 + $0x58] sm:$0xf] %v317_v43  ;;  %v318_v47 = vld [vmem:[%s1555_s26 + $0x1c] sm:$0xf]  ;;  %v328_v48 = vld [vmem:[#allocation2] sm:$0x8]  ;;  %v1603_v58 = vmul.f32 %v1567_v23, %v459_v40 }
  0x1c   : > { %v557_v50 = vld [vmem:[#allocation2 + $0xc] sm:$0x8]  ;;  %327 = vst [vmem:[#allocation2 + $0x64] sm:$0xf] %v318_v47  ;;  %v344_v52 = vunpack.c.l.bf16 %v328_v48  ;;  %v677_v54 = vld [vmem:[#allocation2 + $0x14] sm:$0x1] }
  0x1d   : > { %v573_v53 = vunpack.c.l.bf16 %v557_v50  ;;  %v786_v55 = vld [vmem:[#allocation2 + $0x18] sm:$0x8]  ;;  %v906_v56 = vld [vmem:[#allocation2 + $0x20] sm:$0x1]  ;;  %v502_v59 = vrot.slane %v469_v49, 2  ;;  %v685_v60 = vunpack.c.l.bf16 %v677_v54  ;;  %v505_v5 = vrot.slane %v1597_v51, 2 }
  0x1e   : > { %v802_v61 = vunpack.c.l.bf16 %v786_v55  ;;  %v914_v62 = vunpack.c.l.bf16 %v906_v56  ;;  %v330_v63 = vld [vmem:[#allocation2 + $0xc] sm:$0x8]  ;;  %v329_v0 = vld [vmem:[#allocation2 + $0x4] ss:$12 sps:$4 sm:$0xff]   ;;  %v364_v1 = vmul.f32 %v1563_v21, %v344_v52  ;;  %v559_v35 = vld [vmem:[#allocation2 + $0x18] sm:$0x8] }
  0x1f   : > { %v593_v2 = vmul.f32 %v1569_v27, %v573_v53  ;;  %v787_v3 = vld [vmem:[#allocation2 + $0x10] ss:$12 sps:$4 sm:$0xff]   ;;  %v346_v4 = vunpack.c.l.bf16 %v330_v63  ;;  %v345_v6 = vunpack.c.l.bf16 %v329_v0  ;;  %v574_v7 = vunpack.c.h.bf16 %v329_v0  ;;  %v678_v53 = vld [vmem:[#allocation2 + $0x20] sm:$0x1]  ;;  %v794_v32 = vld [vmem:[#allocation2 + $0x48] sm:$0x8] }
  0x20   : > { %v698_v8 = vmul.f32 %v1573_v29, %v685_v60  ;;  %v803_v9 = vunpack.c.h.bf16 %v787_v3  ;;  %v1610_v10 = vmul.f32 %v1575_v30, %v802_v61  ;;  %v927_v11 = vmul.f32 %v1590_v44, %v914_v62  ;;  %v560_v48 = vld [vmem:[#allocation2 + $0x1c] ss:$12 sps:$4 sm:$0xff]   ;;  %v800_v39 = vld [vmem:[#allocation2 + $0x6c] sm:$0x8] }
  0x21   : > { %v347_v12 = vunpack.c.l.bf16 %v787_v3  ;;  %v366_v13 = vmul.f32 %v1563_v21, %v346_v4  ;;  %v365_v14 = vmul.f32 %v1563_v21, %v345_v6  ;;  %v400_v15 = vmul.f32 %v1565_v22, %v345_v6 }
  0x22   : > { %v468_v16 = vmul.f32 %v1567_v23, %v345_v6  ;;  %v594_v17 = vmul.f32 %v1569_v27, %v574_v7  ;;  %v629_v18 = vmul.f32 %v1571_v28, %v574_v7  ;;  %v697_v19 = vmul.f32 %v1573_v29, %v574_v7 }
  0x23   : > { %v730_v20 = vrot.slane %v698_v8, 2  ;;  %v823_v24 = vmul.f32 %v1575_v30, %v803_v9  ;;  %v416_v25 = vrot.slane %v400_v15, 1  ;;  %v858_v31 = vmul.f32 %v1581_v37, %v803_v9 }
  0x24   : > { %v501_v26 = vrot.slane %v468_v16, 2  ;;  %v1623_v34 = vmul.f32 %v1590_v44, %v803_v9  ;;  %v645_v36 = vrot.slane %v629_v18, 1  ;;  %v729_v40 = vrot.slane %v697_v19, 2 }
  0x25   : > { %v959_v43 = vrot.slane %v927_v11, 2  ;;  %v367_v47 = vmul.f32 %v1563_v21, %v347_v12  ;;  %v432_v49 = vadd.f32 %v416_v25, %v364_v1  ;;  %v433_v50 = vadd.f32 %v416_v25, %v365_v14  ;;  %v788_v11 = vld [vmem:[#allocation2 + $0x24] sm:$0x8] }
  0x26   : > { %v503_v51 = vsel %vm500_vm0, %v501_v26, %v502_v59  ;;  %v874_v52 = vrot.slane %v858_v31, 1  ;;  %v731_v54 = vsel %vm500_vm0, %v729_v40, %v730_v20  ;;  %v958_v55 = vrot.slane %v1623_v34, 2  ;;  %v907_v34 = vld [vmem:[#allocation2 + $0x2c] sm:$0x1] }
  0x27   : > { %v401_v56 = vmul.f32 %v1565_v22, %v347_v12  ;;  %v470_v60 = vmul.f32 %v1567_v23, %v347_v12  ;;  %v541_v61 = vadd.f32 %v501_v26, %v432_v49  ;;  %v542_v62 = vadd.f32 %v503_v51, %v433_v50 }
  0x28   : > { %v575_v63 = vunpack.c.l.bf16 %v559_v35  ;;  %v576_v0 = vunpack.c.l.bf16 %v560_v48  ;;  %v960_v3 = vsel %vm500_vm0, %v958_v55, %v959_v43  ;;  %v686_v6 = vunpack.c.l.bf16 %v678_v53 }
  0x29   : > { %v417_v1 = vrot.slane %v401_v56, 1  ;;  %v504_v4 = vrot.slane %v470_v60, 2  ;;  %v609_v59 = vadd.f32 %v593_v2, %v541_v61  ;;  %v610_v7 = vadd.f32 %v594_v17, %v542_v62  ;;  %v332_v61 = vld [vmem:[#allocation2 + $0x18] sm:$0x8] }
  0x2a   : > { %v595_v8 = vmul.f32 %v1569_v27, %v575_v63  ;;  %v596_v9 = vmul.f32 %v1569_v27, %v576_v0  ;;  %v630_v16 = vmul.f32 %v1571_v28, %v576_v0  ;;  %v699_v20 = vmul.f32 %v1573_v29, %v576_v0 }
  0x2b   : > { %v434_v14 = vadd.f32 %v417_v1, %v366_v13  ;;  %v435_v15 = vadd.f32 %v417_v1, %v367_v47  ;;  %v506_v12 = vsel %vm500_vm0, %v504_v4, %v505_v5  ;;  %v661_v18 = vadd.f32 %v645_v36, %v609_v59 }
  0x2c   : > { %v662_v19 = vadd.f32 %v645_v36, %v610_v7  ;;  %v700_v25 = vmul.f32 %v1573_v29, %v686_v6  ;;  %v646_v17 = vrot.slane %v630_v16, 1  ;;  %v804_v31 = vunpack.c.l.bf16 %v788_v11  ;;  %v333_v6 = vld [vmem:[#allocation2 + $0x1c] ss:$12 sps:$4 sm:$0xff]  }
  0x2d   : > { %v543_v26 = vadd.f32 %v504_v4, %v434_v14  ;;  %v544_v2 = vadd.f32 %v506_v12, %v435_v15  ;;  %v769_v35 = vadd.f32 %v729_v40, %v661_v18  ;;  %v732_v49 = vrot.slane %v699_v20, 2  ;;  %v561_v20 = vld [vmem:[#allocation2 + $0x24] sm:$0x8] }
  0x2e   : > { %v770_v43 = vadd.f32 %v731_v54, %v662_v19  ;;  %v733_v13 = vrot.slane %v700_v25, 2  ;;  %v805_v5 = vunpack.c.h.bf16 %v560_v48  ;;  %v824_v51 = vmul.f32 %v1575_v30, %v804_v31 }
  0x2f   : > { %v611_v47 = vadd.f32 %v595_v8, %v543_v26  ;;  %v612_v50 = vadd.f32 %v596_v9, %v544_v2  ;;  %v838_v36 = vadd.f32 %v1610_v10, %v769_v35  ;;  %v915_v60 = vunpack.c.l.bf16 %v907_v34  ;;  %v1648_v10 = vld [vmem:[%s1852_s2] ss:$0 sm:$0xff] }
  0x30   : > { %v839_v53 = vadd.f32 %v823_v24, %v770_v43  ;;  %v734_v56 = vsel %vm500_vm0, %v732_v49, %v733_v13  ;;  %v825_v0 = vmul.f32 %v1575_v30, %v805_v5  ;;  %v859_v40 = vmul.f32 %v1581_v37, %v805_v5 }
  0x31   : > { %v663_v62 = vadd.f32 %v646_v17, %v611_v47  ;;  %v664_v63 = vadd.f32 %v646_v17, %v612_v50  ;;  %v890_v54 = vadd.f32 %v874_v52, %v838_v36  ;;  %v928_v4 = vmul.f32 %v1590_v44, %v805_v5 }
  0x32   : > { %v891_v1 = vadd.f32 %v874_v52, %v839_v53  ;;  %v929_v48 = vmul.f32 %v1590_v44, %v915_v60  ;;  %v875_v7 = vrot.slane %v859_v40, 1  ;;  %v348_v8 = vunpack.c.l.bf16 %v332_v61  ;;  %v1653_v52 = vld [vmem:[%s1853_s3] ss:$0 sm:$0xff] }
  0x33   : > { %v771_v24 = vadd.f32 %v732_v49, %v663_v62  ;;  %v772_v59 = vadd.f32 %v734_v56, %v664_v63  ;;  %v998_v9 = vadd.f32 %v958_v55, %v890_v54  ;;  %v961_v14 = vrot.slane %v928_v4, 2 }
  0x34   : > { %v999_v11 = vadd.f32 %v960_v3, %v891_v1  ;;  %v962_v15 = vrot.slane %v929_v48, 2  ;;  %v349_v18 = vunpack.c.l.bf16 %v333_v6  ;;  %v368_v19 = vmul.f32 %v1563_v21, %v348_v8 }
  0x35   : > { %v840_v12 = vadd.f32 %v824_v51, %v771_v24  ;;  %v841_v16 = vadd.f32 %v825_v0, %v772_v59  ;;  %v1020_v25 = vmul.f32 %v1648_v10, %v998_v9  ;;  %v508_v3 = vrot.slane %v1600_v57, 2  ;;  %v679_v0 = vld [vmem:[#allocation2 + $0x2c] sm:$0x1] }
  0x36   : > { %v1021_v26 = vmul.f32 %v1648_v10, %v999_v11  ;;  %v963_v55 = vsel %vm500_vm0, %v961_v14, %v962_v15  ;;  %v369_v31 = vmul.f32 %v1563_v21, %v349_v18  ;;  %v402_v34 = vmul.f32 %v1565_v22, %v349_v18 }
  0x37   : > { %v892_v2 = vadd.f32 %v875_v7, %v840_v12  ;;  %v893_v17 = vadd.f32 %v875_v7, %v841_v16  ;;  %v1042_v35 = vadd.f32 %v1653_v52, %v1020_v25  ;;  %vm1139_vm2 = vsmask.f32 4368 }
  0x38   : > { %v1043_v43 = vadd.f32 %v1653_v52, %v1021_v26  ;;  %v472_v49 = vmul.f32 %v1567_v23, %v349_v18  ;;  %v577_v13 = vunpack.c.l.bf16 %v561_v20  ;;  %v418_v5 = vrot.slane %v402_v34, 1  ;;  %v790_v26 = vld [vmem:[#allocation2 + $0x30] sm:$0x8]  ;;  %v908_v34 = vld [vmem:[#allocation2 + $0x38] sm:$0x1]  ;;  %vm1677_vm3 = vmor %vm1138_vm1, %vm1139_vm2 }
  0x39   : > { %v1000_v47 = vadd.f32 %v961_v14, %v892_v2  ;;  %v1001_v50 = vadd.f32 %v963_v55, %v893_v17  ;;  %v578_v51 = vunpack.c.h.bf16 %v333_v6  ;;  %v1058_v57 = vmax.f32 %v1042_v35, 0.0 }
  0x3a   : > { %v1059_v36 = vmax.f32 %v1043_v43, 0.0  ;;  %v507_v53 = vrot.slane %v472_v49, 2  ;;  %v597_v56 = vmul.f32 %v1569_v27, %v577_v13  ;;  %v436_v62 = vadd.f32 %v418_v5, %v368_v19 }
  0x3b   : > { %v1022_v60 = vmul.f32 %v1648_v10, %v1000_v47  ;;  %v1023_v61 = vmul.f32 %v1648_v10, %v1001_v50  ;;  %v437_v63 = vadd.f32 %v418_v5, %v369_v31  ;;  %v1074_v40 = vmin.f32 %v1058_v57, 6.0  ;;  %v791_v31 = vld [vmem:[#allocation2 + $0x28] ss:$12 sps:$4 sm:$0xff]  }
  0x3c   : > { %v1075_v54 = vmin.f32 %v1059_v36, 6.0  ;;  %v509_v1 = vsel %vm500_vm0, %v507_v53, %v508_v3  ;;  %v598_v4 = vmul.f32 %v1569_v27, %v578_v51  ;;  %v545_v24 = vadd.f32 %v507_v53, %v436_v62 }
  0x3d   : > { %v1044_v48 = vadd.f32 %v1653_v52, %v1022_v60  ;;  %v1045_v6 = vadd.f32 %v1653_v52, %v1023_v61  ;;  %v546_v59 = vadd.f32 %v509_v1, %v437_v63  ;;  %v1426_v7 = vpack.c.bf16 %v1074_v40, %v1074_v40  ;;  %v334_v40 = vld [vmem:[#allocation2 + $0x24] sm:$0x8] }
  0x3e   : > { %v1427_v8 = vpack.c.bf16 %v1075_v54, %v1075_v54  ;;  %v631_v9 = vmul.f32 %v1571_v28, %v578_v51  ;;  %v687_v11 = vunpack.c.l.bf16 %v679_v0  ;;  %v613_v12 = vadd.f32 %v597_v56, %v545_v24 }
  0x3f   : > { %v1060_v14 = vmax.f32 %v1044_v48, 0.0  ;;  %v1061_v15 = vmax.f32 %v1045_v6, 0.0  ;;  %v614_v16 = vadd.f32 %v598_v4, %v546_v59  ;;  %v1142_v18 = vshrl.u32 %v1426_v7, 16 }
  0x40   : > { %v1147_v19 = vshrl.u32 %v1427_v8, 16  ;;  %v1150_v20 = vshll.u32 %v1427_v8, 16  ;;  %v647_v25 = vrot.slane %v631_v9, 1  ;;  %v701_v2 = vmul.f32 %v1573_v29, %v578_v51 }
  0x41   : > { %v1076_v55 = vmin.f32 %v1060_v14, 6.0  ;;  %v1077_v3 = vmin.f32 %v1061_v15, 6.0  ;;  %v702_v17 = vmul.f32 %v1573_v29, %v687_v11  ;;  %v1414_v35 = vrot.slane %v1142_v18, 11 }
  0x42   : > { %v1149_v43 = vrot.slane %v1147_v19, 7  ;;  %v665_v49 = vadd.f32 %v647_v25, %v613_v12  ;;  %v666_v13 = vadd.f32 %v647_v25, %v614_v16  ;;  %v735_v57 = vrot.slane %v701_v2, 2  ;;  %v563_v19 = vld [vmem:[#allocation2 + $0x30] sm:$0x8]  ;;  %v680_v2 = vld [vmem:[#allocation2 + $0x38] sm:$0x1] }
  0x43   : > { %v1428_v50 = vpack.c.bf16 %v1076_v55, %v1076_v55  ;;  %v1429_v5 = vpack.c.bf16 %v1077_v3, %v1077_v3  ;;  %v736_v36 = vrot.slane %v702_v17, 2  ;;  %v806_v53 = vunpack.c.l.bf16 %v790_v26 }
  0x44   : > { %v1152_v51 = vor.u32 %v1150_v20, %v1149_v43  ;;  %v807_v56 = vunpack.c.h.bf16 %v791_v31  ;;  %v916_v60 = vunpack.c.l.bf16 %v908_v34  ;;  %v773_v1 = vadd.f32 %v735_v57, %v665_v49  ;;  %v564_v20 = vld [vmem:[#allocation2 + $0x34] ss:$12 sps:$4 sm:$0xff]   ;;  %v792_v49 = vld [vmem:[#allocation2 + $0x3c] sm:$0x8] }
  0x45   : > { %v1155_v61 = vshrl.u32 %v1428_v50, 16  ;;  %v1160_v62 = vshrl.u32 %v1429_v5, 16  ;;  %v1163_v63 = vshll.u32 %v1429_v5, 16  ;;  %v737_v0 = vsel %vm500_vm0, %v735_v57, %v736_v36 }
  0x46   : > { %v1153_v54 = vsel %vm1677_vm3, %v1414_v35, %v1152_v51  ;;  %v774_v4 = vadd.f32 %v737_v0, %v666_v13  ;;  %v826_v48 = vmul.f32 %v1575_v30, %v806_v53  ;;  %v827_v59 = vmul.f32 %v1575_v30, %v807_v56 }
  0x47   : > { %1253 = vst [vmem:[%s1686_s7] sm:$0xf] %v1153_v54  ;;  %v1415_v6 = vrot.slane %v1155_v61, 11  ;;  %v1162_v24 = vrot.slane %v1160_v62, 7  ;;  %v860_v7 = vmul.f32 %v1581_v37, %v807_v56  ;;  %v930_v9 = vmul.f32 %v1590_v44, %v807_v56 }
  0x48   : > { %v842_v8 = vadd.f32 %v826_v48, %v773_v1  ;;  %v931_v11 = vmul.f32 %v1590_v44, %v916_v60  ;;  %v350_v14 = vunpack.c.l.bf16 %v334_v40  ;;  %v843_v12 = vadd.f32 %v827_v59, %v774_v4 }
  0x49   : > { %v1165_v15 = vor.u32 %v1163_v63, %v1162_v24  ;;  %v876_v16 = vrot.slane %v860_v7, 1  ;;  %v351_v18 = vunpack.c.l.bf16 %v791_v31  ;;  %v964_v25 = vrot.slane %v930_v9, 2 }
  0x4a   : > { %v965_v26 = vrot.slane %v931_v11, 2  ;;  %v370_v55 = vmul.f32 %v1563_v21, %v350_v14  ;;  %v511_v3 = vrot.slane %v1603_v58, 2  ;;  %v579_v5 = vunpack.c.l.bf16 %v563_v19 }
  0x4b   : > { %v1166_v17 = vsel %vm1677_vm3, %v1415_v6, %v1165_v15  ;;  %v894_v34 = vadd.f32 %v876_v16, %v842_v8  ;;  %v895_v35 = vadd.f32 %v876_v16, %v843_v12  ;;  %v371_v43 = vmul.f32 %v1563_v21, %v351_v18  ;;  %v909_v15 = vld [vmem:[#allocation2 + $0x44] sm:$0x1] }
  0x4c   : > { %1254 = vst [vmem:[%s1686_s7 + $0x4] sm:$0xf] %v1166_v17  ;;  %v966_v31 = vsel %vm500_vm0, %v964_v25, %v965_v26  ;;  %v403_v13 = vmul.f32 %v1565_v22, %v351_v18  ;;  %v474_v50 = vmul.f32 %v1567_v23, %v351_v18  ;;  %v580_v58 = vunpack.c.l.bf16 %v564_v20 }
  0x4d   : > { %v1002_v57 = vadd.f32 %v964_v25, %v894_v34  ;;  %v1003_v36 = vadd.f32 %v966_v31, %v895_v35  ;;  %v688_v51 = vunpack.c.l.bf16 %v680_v2  ;;  %v599_v60 = vmul.f32 %v1569_v27, %v579_v5  ;;  %v336_v2 = vld [vmem:[#allocation2 + $0x30] sm:$0x8] }
  0x4e   : > { %v419_v53 = vrot.slane %v403_v13, 1  ;;  %v510_v56 = vrot.slane %v474_v50, 2  ;;  %v808_v61 = vunpack.c.l.bf16 %v792_v49  ;;  %v600_v0 = vmul.f32 %v1569_v27, %v580_v58  ;;  %v337_v49 = vld [vmem:[#allocation2 + $0x34] ss:$12 sps:$4 sm:$0xff]  }
  0x4f   : > { %v1024_v62 = vmul.f32 %v1648_v10, %v1002_v57  ;;  %v1025_v63 = vmul.f32 %v1648_v10, %v1003_v36  ;;  %v632_v40 = vmul.f32 %v1571_v28, %v580_v58  ;;  %v703_v48 = vmul.f32 %v1573_v29, %v580_v58 }
  0x50   : > { %v438_v54 = vadd.f32 %v419_v53, %v370_v55  ;;  %v439_v1 = vadd.f32 %v419_v53, %v371_v43  ;;  %v512_v4 = vsel %vm500_vm0, %v510_v56, %v511_v3  ;;  %v704_v7 = vmul.f32 %v1573_v29, %v688_v51 }
  0x51   : > { %v1046_v6 = vadd.f32 %v1653_v52, %v1024_v62  ;;  %v1047_v24 = vadd.f32 %v1653_v52, %v1025_v63  ;;  %v648_v59 = vrot.slane %v632_v40, 1  ;;  %v738_v11 = vrot.slane %v703_v48, 2  ;;  %v565_v48 = vld [vmem:[#allocation2 + $0x3c] sm:$0x8] }
  0x52   : > { %v547_v8 = vadd.f32 %v510_v56, %v438_v54  ;;  %v548_v9 = vadd.f32 %v512_v4, %v439_v1  ;;  %v809_v14 = vunpack.c.h.bf16 %v564_v20  ;;  %v739_v18 = vrot.slane %v704_v7, 2 }
  0x53   : > { %v1062_v12 = vmax.f32 %v1046_v6, 0.0  ;;  %v1063_v16 = vmax.f32 %v1047_v24, 0.0  ;;  %v828_v19 = vmul.f32 %v1575_v30, %v808_v61  ;;  %v917_v43 = vunpack.c.l.bf16 %v909_v15 }
  0x54   : > { %v615_v25 = vadd.f32 %v599_v60, %v547_v8  ;;  %v616_v26 = vadd.f32 %v600_v0, %v548_v9  ;;  %v829_v55 = vmul.f32 %v1575_v30, %v809_v14  ;;  %v861_v3 = vmul.f32 %v1581_v37, %v809_v14 }
  0x55   : > { %v1078_v17 = vmin.f32 %v1062_v12, 6.0  ;;  %v1079_v34 = vmin.f32 %v1063_v16, 6.0  ;;  %v740_v35 = vsel %vm500_vm0, %v738_v11, %v739_v18  ;;  %v932_v50 = vmul.f32 %v1590_v44, %v809_v14 }
  0x56   : > { %v667_v20 = vadd.f32 %v648_v59, %v615_v25  ;;  %v668_v31 = vadd.f32 %v648_v59, %v616_v26  ;;  %v877_v13 = vrot.slane %v861_v3, 1  ;;  %v933_v36 = vmul.f32 %v1590_v44, %v917_v43  ;;  %v681_v3 = vld [vmem:[#allocation2 + $0x44] sm:$0x1] }
  0x57   : > { %v1430_v5 = vpack.c.bf16 %v1078_v17, %v1078_v17  ;;  %v1431_v57 = vpack.c.bf16 %v1079_v34, %v1079_v34  ;;  %v352_v58 = vunpack.c.l.bf16 %v336_v2  ;;  %v967_v56 = vrot.slane %v932_v50, 2 }
  0x58   : > { %v775_v51 = vadd.f32 %v738_v11, %v667_v20  ;;  %v776_v53 = vadd.f32 %v740_v35, %v668_v31  ;;  %v353_v60 = vunpack.c.l.bf16 %v337_v49  ;;  %v968_v0 = vrot.slane %v933_v36, 2 }
  0x59   : > { %v1168_v61 = vshrl.u32 %v1430_v5, 16  ;;  %v1173_v62 = vshrl.u32 %v1431_v57, 16  ;;  %v1176_v63 = vshll.u32 %v1431_v57, 16  ;;  %v372_v1 = vmul.f32 %v1563_v21, %v352_v58  ;;  %v795_v57 = vld [vmem:[#allocation2 + $0x40] ss:$12 sps:$4 sm:$0xff]  }
  0x5a   : > { %v844_v40 = vadd.f32 %v828_v19, %v775_v51  ;;  %v845_v54 = vadd.f32 %v829_v55, %v776_v53  ;;  %v373_v4 = vmul.f32 %v1563_v21, %v353_v60  ;;  %v969_v59 = vsel %vm500_vm0, %v967_v56, %v968_v0 }
  0x5b   : > { %v1416_v6 = vrot.slane %v1168_v61, 11  ;;  %v1175_v24 = vrot.slane %v1173_v62, 7  ;;  %v404_v7 = vmul.f32 %v1565_v22, %v353_v60  ;;  %v476_v11 = vmul.f32 %v1567_v23, %v353_v60 }
  0x5c   : > { %v896_v8 = vadd.f32 %v877_v13, %v844_v40  ;;  %v897_v9 = vadd.f32 %v877_v13, %v845_v54  ;;  %v477_v14 = vmul.f32 %v1567_v23, %v460_v41  ;;  %v581_v16 = vunpack.c.l.bf16 %v565_v48 }
  0x5d   : > { %v1178_v15 = vor.u32 %v1176_v63, %v1175_v24  ;;  %v420_v12 = vrot.slane %v404_v7, 1  ;;  %v582_v18 = vunpack.c.h.bf16 %v337_v49  ;;  %v513_v26 = vrot.slane %v476_v11, 2  ;;  %v338_v11 = vld [vmem:[#allocation2 + $0x3c] sm:$0x8] }
  0x5e   : > { %v1004_v19 = vadd.f32 %v967_v56, %v896_v8  ;;  %v1005_v25 = vadd.f32 %v969_v59, %v897_v9  ;;  %v514_v55 = vrot.slane %v477_v14, 2  ;;  %v601_v35 = vmul.f32 %v1569_v27, %v581_v16 }
  0x5f   : > { %v1179_v2 = vsel %vm1677_vm3, %v1416_v6, %v1178_v15  ;;  %v440_v17 = vadd.f32 %v420_v12, %v372_v1  ;;  %v441_v34 = vadd.f32 %v420_v12, %v373_v4  ;;  %v602_v20 = vmul.f32 %v1569_v27, %v582_v18  ;;  %v910_v1 = vld [vmem:[#allocation2 + $0x50] sm:$0x1] }
  0x60   : > { %1255 = vst [vmem:[%s1686_s7 + $0x8] sm:$0xf] %v1179_v2  ;;  %v1026_v41 = vmul.f32 %v1648_v10, %v1004_v19  ;;  %v1027_v43 = vmul.f32 %v1648_v10, %v1005_v25  ;;  %v515_v49 = vsel %vm500_vm0, %v513_v26, %v514_v55  ;;  %v633_v50 = vmul.f32 %v1571_v28, %v582_v18 }
  0x61   : > { %v549_v31 = vadd.f32 %v513_v26, %v440_v17  ;;  %v550_v13 = vadd.f32 %v515_v49, %v441_v34  ;;  %v689_v5 = vunpack.c.l.bf16 %v681_v3  ;;  %v705_v51 = vmul.f32 %v1573_v29, %v582_v18 }
  0x62   : > { %v1048_v36 = vadd.f32 %v1653_v52, %v1026_v41  ;;  %v1049_v58 = vadd.f32 %v1653_v52, %v1027_v43  ;;  %v810_v53 = vunpack.c.l.bf16 %v794_v32  ;;  %v649_v61 = vrot.slane %v633_v50, 1 }
  0x63   : > { %v617_v56 = vadd.f32 %v601_v35, %v549_v31  ;;  %v618_v60 = vadd.f32 %v602_v20, %v550_v13  ;;  %v706_v62 = vmul.f32 %v1573_v29, %v689_v5  ;;  %v741_v40 = vrot.slane %v705_v51, 2  ;;  %v568_v51 = vld [vmem:[#allocation2 + $0x4c] ss:$12 sps:$4 sm:$0xff]  }
  0x64   : > { %v1064_v63 = vmax.f32 %v1048_v36, 0.0  ;;  %v1065_v0 = vmax.f32 %v1049_v58, 0.0  ;;  %v811_v54 = vunpack.c.h.bf16 %v795_v57  ;;  %v830_v24 = vmul.f32 %v1575_v30, %v810_v53  ;;  %v567_v58 = vld [vmem:[#allocation2 + $0x48] sm:$0x8] }
  0x65   : > { %v669_v4 = vadd.f32 %v649_v61, %v617_v56  ;;  %v670_v48 = vadd.f32 %v649_v61, %v618_v60  ;;  %v742_v6 = vrot.slane %v706_v62, 2  ;;  %v918_v12 = vunpack.c.l.bf16 %v910_v1 }
  0x66   : > { %v1080_v59 = vmin.f32 %v1064_v63, 6.0  ;;  %v1081_v7 = vmin.f32 %v1065_v0, 6.0  ;;  %v831_v8 = vmul.f32 %v1575_v30, %v811_v54  ;;  %v862_v9 = vmul.f32 %v1581_v37, %v811_v54 }
  0x67   : > { %v743_v14 = vsel %vm500_vm0, %v741_v40, %v742_v6  ;;  %v777_v15 = vadd.f32 %v741_v40, %v669_v4  ;;  %v934_v16 = vmul.f32 %v1590_v44, %v811_v54  ;;  %v935_v3 = vmul.f32 %v1590_v44, %v918_v12 }
  0x68   : > { %v1432_v18 = vpack.c.bf16 %v1080_v59, %v1080_v59  ;;  %v1433_v19 = vpack.c.bf16 %v1081_v7, %v1081_v7  ;;  %v778_v25 = vadd.f32 %v743_v14, %v670_v48  ;;  %v878_v26 = vrot.slane %v862_v9, 1 }
  0x69   : > { %v846_v55 = vadd.f32 %v830_v24, %v777_v15  ;;  %v970_v2 = vrot.slane %v934_v16, 2  ;;  %v354_v17 = vunpack.c.l.bf16 %v338_v11  ;;  %v971_v49 = vrot.slane %v935_v3, 2  ;;  %v796_v11 = vld [vmem:[#allocation2 + $0x54] sm:$0x8] }
  0x6a   : > { %v1181_v34 = vshrl.u32 %v1432_v18, 16  ;;  %v1186_v35 = vshrl.u32 %v1433_v19, 16  ;;  %v1189_v32 = vshll.u32 %v1433_v19, 16  ;;  %v847_v41 = vadd.f32 %v831_v8, %v778_v25 }
  0x6b   : > { %v898_v43 = vadd.f32 %v878_v26, %v846_v55  ;;  %v355_v20 = vunpack.c.l.bf16 %v795_v57  ;;  %v374_v31 = vmul.f32 %v1563_v21, %v354_v17  ;;  %v479_v36 = vmul.f32 %v1567_v23, %v461_v42  ;;  %v682_v57 = vld [vmem:[#allocation2 + $0x50] sm:$0x1] }
  0x6c   : > { %v1417_v13 = vrot.slane %v1181_v34, 11  ;;  %v1188_v50 = vrot.slane %v1186_v35, 7  ;;  %v899_v5 = vadd.f32 %v878_v26, %v847_v41  ;;  %v972_v53 = vsel %vm500_vm0, %v970_v2, %v971_v49  ;;  %v911_v34 = vld [vmem:[#allocation2 + $0x5c] sm:$0x1] }
  0x6d   : > { %v1006_v56 = vadd.f32 %v970_v2, %v898_v43  ;;  %v375_v60 = vmul.f32 %v1563_v21, %v355_v20  ;;  %v405_v61 = vmul.f32 %v1565_v22, %v355_v20  ;;  %v478_v0 = vmul.f32 %v1567_v23, %v355_v20 }
  0x6e   : > { %v1191_v62 = vor.u32 %v1189_v32, %v1188_v50  ;;  %v1007_v63 = vadd.f32 %v972_v53, %v899_v5  ;;  %v517_v40 = vrot.slane %v479_v36, 2  ;;  %v583_v42 = vunpack.c.l.bf16 %v567_v58 }
  0x6f   : > { %v1028_v33 = vmul.f32 %v1648_v10, %v1006_v56  ;;  %v421_v54 = vrot.slane %v405_v61, 1  ;;  %v584_v1 = vunpack.c.l.bf16 %v568_v51  ;;  %v516_v6 = vrot.slane %v478_v0, 2 }
  0x70   : > { %v1192_v4 = vsel %vm1677_vm3, %v1417_v13, %v1191_v62  ;;  %v1029_v48 = vmul.f32 %v1648_v10, %v1007_v63  ;;  %v690_v24 = vunpack.c.l.bf16 %v682_v57  ;;  %v603_v9 = vmul.f32 %v1569_v27, %v583_v42 }
  0x71   : > { %1256 = vst [vmem:[%s1686_s7 + $0xc] sm:$0xf] %v1192_v4  ;;  %v1050_v59 = vadd.f32 %v1653_v52, %v1028_v33  ;;  %v442_v7 = vadd.f32 %v421_v54, %v374_v31  ;;  %v443_v8 = vadd.f32 %v421_v54, %v375_v60  ;;  %v518_v15 = vsel %vm500_vm0, %v516_v6, %v517_v40  ;;  %v340_v40 = vld [vmem:[#allocation2 + $0x48] sm:$0x8]  ;;  %v569_v4 = vld [vmem:[#allocation2 + $0x54] sm:$0x8] }
  0x72   : > { %v1051_v14 = vadd.f32 %v1653_v52, %v1029_v48  ;;  %v604_v12 = vmul.f32 %v1569_v27, %v584_v1  ;;  %v634_v16 = vmul.f32 %v1571_v28, %v584_v1  ;;  %v707_v26 = vmul.f32 %v1573_v29, %v584_v1 }
  0x73   : > { %v1066_v18 = vmax.f32 %v1050_v59, 0.0  ;;  %v551_v19 = vadd.f32 %v516_v6, %v442_v7  ;;  %v552_v25 = vadd.f32 %v518_v15, %v443_v8  ;;  %v708_v2 = vmul.f32 %v1573_v29, %v690_v24 }
  0x74   : > { %v1067_v55 = vmax.f32 %v1051_v14, 0.0  ;;  %v650_v3 = vrot.slane %v634_v16, 1  ;;  %v812_v17 = vunpack.c.l.bf16 %v796_v11  ;;  %v744_v43 = vrot.slane %v707_v26, 2 }
  0x75   : > { %v1082_v35 = vmin.f32 %v1066_v18, 6.0  ;;  %v619_v32 = vadd.f32 %v603_v9, %v551_v19  ;;  %v620_v41 = vadd.f32 %v604_v12, %v552_v25  ;;  %v745_v20 = vrot.slane %v708_v2, 2 }
  0x76   : > { %v1083_v49 = vmin.f32 %v1067_v55, 6.0  ;;  %v813_v31 = vunpack.c.h.bf16 %v568_v51  ;;  %v832_v13 = vmul.f32 %v1575_v30, %v812_v17  ;;  %v919_v58 = vunpack.c.l.bf16 %v911_v34  ;;  %v341_v51 = vld [vmem:[#allocation2 + $0x4c] ss:$12 sps:$4 sm:$0xff]   ;;  %v683_v34 = vld [vmem:[#allocation2 + $0x5c] sm:$0x1] }
  0x77   : > { %v1434_v50 = vpack.c.bf16 %v1082_v35, %v1082_v35  ;;  %v671_v5 = vadd.f32 %v650_v3, %v619_v32  ;;  %v672_v36 = vadd.f32 %v650_v3, %v620_v41  ;;  %v746_v56 = vsel %vm500_vm0, %v744_v43, %v745_v20 }
  0x78   : > { %v1435_v53 = vpack.c.bf16 %v1083_v49, %v1083_v49  ;;  %v833_v60 = vmul.f32 %v1575_v30, %v813_v31  ;;  %v863_v61 = vmul.f32 %v1581_v37, %v813_v31  ;;  %v936_v0 = vmul.f32 %v1590_v44, %v813_v31 }
  0x79   : > { %v1194_v57 = vshrl.u32 %v1434_v50, 16  ;;  %v779_v62 = vadd.f32 %v744_v43, %v671_v5  ;;  %v780_v63 = vadd.f32 %v746_v56, %v672_v36  ;;  %v937_v1 = vmul.f32 %v1590_v44, %v919_v58 }
  0x7a   : > { %v1199_v33 = vshrl.u32 %v1435_v53, 16  ;;  %v1202_v54 = vshll.u32 %v1435_v53, 16  ;;  %v879_v42 = vrot.slane %v863_v61, 1  ;;  %v973_v59 = vrot.slane %v936_v0, 2  ;;  %v799_v61 = vld [vmem:[#allocation2 + $0x58] ss:$12 sps:$4 sm:$0xff]  }
  0x7b   : > { %v1418_v48 = vrot.slane %v1194_v57, 11  ;;  %v848_v6 = vadd.f32 %v832_v13, %v779_v62  ;;  %v849_v24 = vadd.f32 %v833_v60, %v780_v63  ;;  %v974_v8 = vrot.slane %v937_v1, 2  ;;  %v798_v60 = vld [vmem:[#allocation2 + $0x60] sm:$0x8]  ;;  %v912_v57 = vld [vmem:[#allocation2 + $0x68] sm:$0x1] }
  0x7c   : > { %v1201_v7 = vrot.slane %v1199_v33, 7  ;;  %v356_v9 = vunpack.c.l.bf16 %v340_v40  ;;  %v357_v11 = vunpack.c.l.bf16 %v341_v51  ;;  %v481_v12 = vmul.f32 %v1567_v23, %v462_v45 }
  0x7d   : > { %v900_v14 = vadd.f32 %v879_v42, %v848_v6  ;;  %v901_v15 = vadd.f32 %v879_v42, %v849_v24  ;;  %v585_v16 = vunpack.c.l.bf16 %v569_v4  ;;  %v975_v19 = vsel %vm500_vm0, %v973_v59, %v974_v8 }
  0x7e   : > { %v1204_v18 = vor.u32 %v1202_v54, %v1201_v7  ;;  %v376_v25 = vmul.f32 %v1563_v21, %v356_v9  ;;  %v377_v26 = vmul.f32 %v1563_v21, %v357_v11  ;;  %v406_v2 = vmul.f32 %v1565_v22, %v357_v11  ;;  %v342_v9 = vld [vmem:[#allocation2 + $0x54] sm:$0x8] }
  0x7f   : > { %v1008_v55 = vadd.f32 %v973_v59, %v900_v14  ;;  %v1009_v3 = vadd.f32 %v975_v19, %v901_v15  ;;  %v480_v17 = vmul.f32 %v1567_v23, %v357_v11  ;;  %v520_v35 = vrot.slane %v481_v12, 2 }
  0x80   : > { %v1205_v38 = vsel %vm1677_vm3, %v1418_v48, %v1204_v18  ;;  %v586_v45 = vunpack.c.h.bf16 %v341_v51  ;;  %v605_v32 = vmul.f32 %v1569_v27, %v585_v16  ;;  %v422_v49 = vrot.slane %v406_v2, 1 }
  0x81   : > { %1257 = vst [vmem:[%s1686_s7 + $0x10] sm:$0xf] %v1205_v38  ;;  %v1030_v41 = vmul.f32 %v1648_v10, %v1008_v55  ;;  %v1031_v43 = vmul.f32 %v1648_v10, %v1009_v3  ;;  %v519_v20 = vrot.slane %v480_v17, 2  ;;  %v691_v50 = vunpack.c.l.bf16 %v683_v34 }
  0x82   : > { %v606_v31 = vmul.f32 %v1569_v27, %v586_v45  ;;  %v635_v13 = vmul.f32 %v1571_v28, %v586_v45  ;;  %v709_v5 = vmul.f32 %v1573_v29, %v586_v45  ;;  %v444_v53 = vadd.f32 %v422_v49, %v376_v25 }
  0x83   : > { %v1052_v36 = vadd.f32 %v1653_v52, %v1030_v41  ;;  %v1053_v58 = vadd.f32 %v1653_v52, %v1031_v43  ;;  %v445_v56 = vadd.f32 %v422_v49, %v377_v26  ;;  %v521_v62 = vsel %vm500_vm0, %v519_v20, %v520_v35 }
  0x84   : > { %v651_v63 = vrot.slane %v635_v13, 1  ;;  %v710_v0 = vmul.f32 %v1573_v29, %v691_v50  ;;  %v747_v40 = vrot.slane %v709_v5, 2  ;;  %v553_v54 = vadd.f32 %v519_v20, %v444_v53  ;;  %v571_v50 = vld [vmem:[#allocation2 + $0x60] sm:$0x8]  ;;  %v572_v5 = vld [vmem:[#allocation2 + $0x64] ss:$12 sps:$4 sm:$0xff]  }
  0x85   : > { %v1068_v51 = vmax.f32 %v1052_v36, 0.0  ;;  %v1069_v33 = vmax.f32 %v1053_v58, 0.0  ;;  %v554_v42 = vadd.f32 %v521_v62, %v445_v56  ;;  %v814_v4 = vunpack.c.l.bf16 %v798_v60 }
  0x86   : > { %v748_v1 = vrot.slane %v710_v0, 2  ;;  %v815_v48 = vunpack.c.h.bf16 %v799_v61  ;;  %v920_v6 = vunpack.c.l.bf16 %v912_v57  ;;  %v621_v7 = vadd.f32 %v605_v32, %v553_v54 }
  0x87   : > { %v1084_v24 = vmin.f32 %v1068_v51, 6.0  ;;  %v1085_v59 = vmin.f32 %v1069_v33, 6.0  ;;  %v622_v8 = vadd.f32 %v606_v31, %v554_v42  ;;  %v834_v14 = vmul.f32 %v1575_v30, %v814_v4 }
  0x88   : > { %v749_v11 = vsel %vm500_vm0, %v747_v40, %v748_v1  ;;  %v835_v15 = vmul.f32 %v1575_v30, %v815_v48  ;;  %v864_v12 = vmul.f32 %v1581_v37, %v815_v48  ;;  %v673_v19 = vadd.f32 %v651_v63, %v621_v7  ;;  %v684_v1 = vld [vmem:[#allocation2 + $0x68] sm:$0x1] }
  0x89   : > { %v1436_v16 = vpack.c.bf16 %v1084_v24, %v1084_v24  ;;  %v1437_v18 = vpack.c.bf16 %v1085_v59, %v1085_v59  ;;  %v674_v25 = vadd.f32 %v651_v63, %v622_v8  ;;  %v938_v55 = vmul.f32 %v1590_v44, %v815_v48 }
  0x8a   : > { %v880_v26 = vrot.slane %v864_v12, 1  ;;  %v939_v3 = vmul.f32 %v1590_v44, %v920_v6  ;;  %v358_v2 = vunpack.c.l.bf16 %v342_v9  ;;  %v781_v35 = vadd.f32 %v747_v40, %v673_v19 }
  0x8b   : > { %v1207_v17 = vshrl.u32 %v1436_v16, 16  ;;  %v1212_v34 = vshrl.u32 %v1437_v18, 16  ;;  %v1215_v38 = vshll.u32 %v1437_v18, 16  ;;  %v782_v45 = vadd.f32 %v749_v11, %v674_v25 }
  0x8c   : > { %v976_v32 = vrot.slane %v938_v55, 2  ;;  %v977_v41 = vrot.slane %v939_v3, 2  ;;  %v359_v43 = vunpack.c.l.bf16 %v799_v61  ;;  %v850_v31 = vadd.f32 %v834_v14, %v781_v35 }
  0x8d   : > { %v1419_v49 = vrot.slane %v1207_v17, 11  ;;  %v1214_v20 = vrot.slane %v1212_v34, 7  ;;  %v378_v13 = vmul.f32 %v1563_v21, %v358_v2  ;;  %v851_v36 = vadd.f32 %v835_v15, %v782_v45 }
  0x8e   : > { %v978_v58 = vsel %vm500_vm0, %v976_v32, %v977_v41  ;;  %v379_v53 = vmul.f32 %v1563_v21, %v359_v43  ;;  %v407_v56 = vmul.f32 %v1565_v22, %v359_v43  ;;  %v902_v57 = vadd.f32 %v880_v26, %v850_v31 }
  0x8f   : > { %v1217_v60 = vor.u32 %v1215_v38, %v1214_v20  ;;  %v482_v62 = vmul.f32 %v1567_v23, %v359_v43  ;;  %v483_v61 = vmul.f32 %v1567_v23, %v463_v46  ;;  %v903_v63 = vadd.f32 %v880_v26, %v851_v36 }
  0x90   : > { %v423_v0 = vrot.slane %v407_v56, 1  ;;  %v587_v40 = vunpack.c.l.bf16 %v571_v50  ;;  %v588_v51 = vunpack.c.l.bf16 %v572_v5  ;;  %v1010_v54 = vadd.f32 %v976_v32, %v902_v57 }
  0x91   : > { %v1218_v33 = vsel %vm1677_vm3, %v1419_v49, %v1217_v60  ;;  %v522_v42 = vrot.slane %v482_v62, 2  ;;  %v523_v21 = vrot.slane %v483_v61, 2  ;;  %v1011_v22 = vadd.f32 %v978_v58, %v903_v63 }
  0x92   : > { %1258 = vst [vmem:[%s1686_s7 + $0x14] sm:$0xf] %v1218_v33  ;;  %v446_v4 = vadd.f32 %v423_v0, %v378_v13  ;;  %v447_v48 = vadd.f32 %v423_v0, %v379_v53  ;;  %v607_v6 = vmul.f32 %v1569_v27, %v587_v40  ;;  %v1032_v23 = vmul.f32 %v1648_v10, %v1010_v54 }
  0x93   : > { %v524_v46 = vsel %vm500_vm0, %v522_v42, %v523_v21  ;;  %v608_v24 = vmul.f32 %v1569_v27, %v588_v51  ;;  %v636_v59 = vmul.f32 %v1571_v28, %v588_v51  ;;  %v1033_v7 = vmul.f32 %v1648_v10, %v1011_v22  ;;  %v913_v27 = vld [vmem:[#allocation2 + $0x74] sm:$0x1] }
  0x94   : > { %v555_v8 = vadd.f32 %v522_v42, %v446_v4  ;;  %v556_v9 = vadd.f32 %v524_v46, %v447_v48  ;;  %v692_v11 = vunpack.c.l.bf16 %v684_v1  ;;  %v1054_v14 = vadd.f32 %v1653_v52, %v1032_v23 }
  0x95   : > { %v652_v15 = vrot.slane %v636_v59, 1  ;;  %v711_v12 = vmul.f32 %v1573_v29, %v588_v51  ;;  %v816_v16 = vunpack.c.l.bf16 %v800_v39  ;;  %v1055_v18 = vadd.f32 %v1653_v52, %v1033_v7 }
  0x96   : > { %v623_v19 = vadd.f32 %v607_v6, %v555_v8  ;;  %v624_v25 = vadd.f32 %v608_v24, %v556_v9  ;;  %v712_v26 = vmul.f32 %v1573_v29, %v692_v11  ;;  %v1070_v55 = vmax.f32 %v1054_v14, 0.0 }
  0x97   : > { %v750_v28 = vrot.slane %v711_v12, 2  ;;  %v817_v3 = vunpack.c.h.bf16 %v572_v5  ;;  %v836_v2 = vmul.f32 %v1575_v30, %v816_v16  ;;  %v1071_v17 = vmax.f32 %v1055_v18, 0.0 }
  0x98   : > { %v675_v34 = vadd.f32 %v652_v15, %v623_v19  ;;  %v676_v38 = vadd.f32 %v652_v15, %v624_v25  ;;  %v751_v35 = vrot.slane %v712_v26, 2  ;;  %v1086_v45 = vmin.f32 %v1070_v55, 6.0 }
  0x99   : > { %v865_v32 = vmul.f32 %v1581_v37, %v817_v3  ;;  %v921_v41 = vunpack.c.l.bf16 %v913_v27  ;;  %v1087_v43 = vmin.f32 %v1071_v17, 6.0  ;;  %v940_v29 = vmul.f32 %v1590_v44, %v817_v3 }
  0x9a   : > { %v752_v49 = vsel %vm500_vm0, %v750_v28, %v751_v35  ;;  %v783_v20 = vadd.f32 %v750_v28, %v675_v34  ;;  %v1438_v31 = vpack.c.bf16 %v1086_v45, %v1086_v45  ;;  %v837_v50 = vmul.f32 %v1575_v30, %v817_v3 }
  0x9b   : > { %v784_v13 = vadd.f32 %v752_v49, %v676_v38  ;;  %v941_v5 = vmul.f32 %v1590_v44, %v921_v41  ;;  %v1439_v36 = vpack.c.bf16 %v1087_v43, %v1087_v43  ;;  %v881_v53 = vrot.slane %v865_v32, 1 }
  0x9c   : > { %v852_v58 = vadd.f32 %v836_v2, %v783_v20  ;;  %v979_v56 = vrot.slane %v940_v29, 2  ;;  %v1220_v37 = vshrl.u32 %v1438_v31, 16 }
  0x9d   : > { %v853_v60 = vadd.f32 %v837_v50, %v784_v13  ;;  %v980_v57 = vrot.slane %v941_v5, 2  ;;  %v1225_v62 = vshrl.u32 %v1439_v36, 16  ;;  %v1228_v40 = vshll.u32 %v1439_v36, 16 }
  0x9e   : > { %v904_v61 = vadd.f32 %v881_v53, %v852_v58  ;;  %v1420_v30 = vrot.slane %v1220_v37, 11 }
  0x9f   : > { %v905_v63 = vadd.f32 %v881_v53, %v853_v60  ;;  %v1227_v0 = vrot.slane %v1225_v62, 7  ;;  %v981_v51 = vsel %vm500_vm0, %v979_v56, %v980_v57 }
  0xa0   : > { %v1012_v33 = vadd.f32 %v979_v56, %v904_v61 }
  0xa1   : > { %v1013_v54 = vadd.f32 %v981_v51, %v905_v63  ;;  %v1230_v42 = vor.u32 %v1228_v40, %v1227_v0 }
  0xa2   : > { %v1034_v44 = vmul.f32 %v1648_v10, %v1012_v33 }
  0xa3   : > { %v1035_v21 = vmul.f32 %v1648_v10, %v1013_v54  ;;  %v1231_v1 = vsel %vm1677_vm3, %v1420_v30, %v1230_v42 }
  0xa4   : > { %v1056_v22 = vadd.f32 %v1653_v52, %v1034_v44  ;;  %1259 = vst [vmem:[%s1686_s7 + $0x18] sm:$0xf] %v1231_v1 }
  0xa5   : > { %v1057_v4 = vadd.f32 %v1653_v52, %v1035_v21 }
  0xa6   : > { %v1072_v48 = vmax.f32 %v1056_v22, 0.0 }
  0xa7   : > { %v1073_v6 = vmax.f32 %v1057_v4, 0.0 }
  0xa8   : > { %v1088_v39 = vmin.f32 %v1072_v48, 6.0 }
  0xa9   : > { %v1089_v23 = vmin.f32 %v1073_v6, 6.0 }
  0xaa   : > { %v1440_v46 = vpack.c.bf16 %v1088_v39, %v1088_v39 }
  0xab   : > { %v1441_v24 = vpack.c.bf16 %v1089_v23, %v1089_v23 }
  0xac   : > { %v1233_v59 = vshrl.u32 %v1440_v46, 16 }
  0xad   : > { %v1238_v7 = vshrl.u32 %v1441_v24, 16  ;;  %v1241_v9 = vshll.u32 %v1441_v24, 16 }
  0xae   : > { %v1421_v10 = vrot.slane %v1233_v59, 11 }
  0xaf   : > { %v1240_v8 = vrot.slane %v1238_v7, 7 }
  0xb1   : > { %v1243_v11 = vor.u32 %v1241_v9, %v1240_v8 }
  0xb3   : > { %v1244_v14 = vsel %vm1677_vm3, %v1421_v10, %v1243_v11 }
  0xb4   : > { %1260 = vst [vmem:[%s1686_s7 + $0x1c] sm:$0xf] %v1244_v14 }
  0xb5 PF: > { %s14_s17 = sadd.s32 1, %s1489_s17   ;;  %s1857_s15 = smov %s1485_s16 }
  0xb6   : > { %p11_p5 = scmp.ge.s32.totalorder %s14_s17, 4   ;;  %s1858_s16 = smov %s1860_s18 }
  0xb8   :  { %13 = sbr.rel (!%p11_p5) target bundleno = 2 (0x2), region = 77 }

// kernel: a_call__.23
= control target key start
LH: loop header
LB: loop body
LE: loop exit
PB: predicated region body
PF: predicated region fallthrough
CT: control target
= control target key end

     0   :  { %s1596_s18 = smov 0   ;;  %s1598_s19 = smov 0   ;;  %s1944_s0 = inlined_call_operand.vmem [shape: bf16[2,8,8,128], index: 0, kind: input, shape index: {}]   ;;  %s1945_s1 = inlined_call_operand.vmem [shape: bf16[9,128], index: 1, kind: input, shape index: {}]   ;;  %s1946_s2 = inlined_call_operand.vmem [shape: f32[1,128], index: 2, kind: input, shape index: {}]   ;;  %s1947_s3 = inlined_call_operand.vmem [shape: f32[1,128], index: 3, kind: input, shape index: {}]   ;;  %s1948_s4 = inlined_call_operand.vmem [shape: f32[2,1,128], index: 4, kind: input, shape index: {}]   ;;  %s1949_s5 = inlined_call_operand.vmem [shape: bf16[2,8,8,128], index: 5, kind: output, shape index: {}]  }
   0x1   :  { %s1600_s20 = smov 0  }
   0x2 LB: > { %s27_s21 = sadd.s32 1, %s1559_s19  ;;  %p1464_p0 = scmp.ge.s32.totalorder %s1563_s20, 1  ;;  %s1563_s20 = sphi %s1600_s20, %s15_s20   ;;  %s1559_s19 = sphi %s1598_s19, %s1953_s19   ;;  %s1555_s18 = sphi %s1596_s18, %s1952_s18  }
   0x3   : > { %p29_p1 = scmp.ge.s32.totalorder %s27_s21, 2  ;;  %p244_p2 = scmp.lt.s32.totalorder %s1563_s20, 3 }
   0x5   : > { %s1955_s21 = smov (%p29_p1, %s27_s21), 0  ;;  %p245_p3 = pnand %p1464_p0, %p244_p2 }
   0x6   : > { %p294_p4 = scmp.lt.s32.totalorder (!%p245_p3), %s1555_s18, 1  ;;  %v327_v0 = vld [vmem:[%s1945_s1] sm:$0xf] (!%p245_p3)  ;;  %v328_v1 = vld [vmem:[%s1945_s1 + $0x4] sm:$0x1] (!%p245_p3)  ;;  %v421_v2 = vlaneseq (!%p245_p3)  ;;  %v1565_v3 = vmov (!%p245_p3), 0  }
   0x7   : > { %248 = sbr.rel (%p245_p3) target bundleno = 182 (0xb6), region = 40  ;;  %343 = vst [vmem:[#allocation2 + $0x4] sm:$0xf] (!%p245_p3), %v1565_v3  ;;  %342 = vst [vmem:[#allocation2] sm:$0xf] (!%p245_p3), %v1565_v3  ;;  %v329_v4 = vunpack.c.l.bf16 (!%p245_p3), %v327_v0  ;;  %v330_v6 = vunpack.c.l.bf16 (!%p245_p3), %v328_v1  ;;  %vm561_vm0 = vcmask (!%p245_p3), 1045504  }
   0x8   : > { %344 = vst [vmem:[#allocation2 + $0x8] sm:$0xf] (!%p245_p3), %v1565_v3  ;;  %345 = vst [vmem:[#allocation2 + $0xc] sm:$0xf] (!%p245_p3), %v1565_v3  ;;  %v1628_v5 = vshrl.u32 (!%p245_p3), %v421_v2, 7 }
   0x9   : > { %346 = vst [vmem:[#allocation2 + $0x10] sm:$0xf] (!%p245_p3), %v1565_v3  ;;  %347 = vst [vmem:[#allocation2 + $0x14] sm:$0xf] (!%p245_p3), %v1565_v3  ;;  %vm1199_vm1 = vsmask.f32 (!%p245_p3), 256 }
   0xa   : > { %348 = vst [vmem:[#allocation2 + $0x18] sm:$0xf] (!%p245_p3), %v1565_v3  ;;  %349 = vst [vmem:[#allocation2 + $0x1c] sm:$0xf] (!%p245_p3), %v1565_v3  ;;  %v423_v7 = vsub.s32 (!%p245_p3), 0, %v1628_v5  ;;  %v459_v8 = vsub.s32 (!%p245_p3), 1, %v1628_v5 }
   0xb   : > { %350 = vst [vmem:[#allocation2 + $0x20] sm:$0xf] (!%p245_p3), %v1565_v3  ;;  %351 = vst [vmem:[#allocation2 + $0x24] sm:$0xf] (!%p245_p3), %v1565_v3  ;;  %v527_v9 = vsub.s32 (!%p245_p3), 2, %v1628_v5  ;;  %v652_v10 = vsub.s32 (!%p245_p3), 3, %v1628_v5 }
   0xc   : > { %352 = vst [vmem:[#allocation2 + $0x28] sm:$0xf] (!%p245_p3), %v1565_v3  ;;  %353 = vst [vmem:[#allocation2 + $0x2c] sm:$0xf] (!%p245_p3), %v1565_v3  ;;  %v756_v12 = vsub.s32 (!%p245_p3), 5, %v1628_v5  ;;  %v881_v13 = vsub.s32 (!%p245_p3), 6, %v1628_v5 }
   0xd   : > { %354 = vst [vmem:[#allocation2 + $0x30] sm:$0xf] (!%p245_p3), %v1565_v3  ;;  %355 = vst [vmem:[#allocation2 + $0x34] sm:$0xf] (!%p245_p3), %v1565_v3  ;;  %v688_v14 = vsub.s32 (!%p245_p3), 4, %v1628_v5  ;;  %v917_v15 = vsub.s32 (!%p245_p3), 7, %v1628_v5 }
   0xe   : > { %356 = vst [vmem:[#allocation2 + $0x38] sm:$0xf] %v1565_v3  ;;  %357 = vst [vmem:[#allocation2 + $0x3c] sm:$0xf] %v1565_v3  ;;  %s1957_s18 = smov (!%p294_p4, %s1555_s18), 1 }
   0xf   : > { %358 = vst [vmem:[#allocation2 + $0x40] sm:$0xf] %v1565_v3  ;;  %359 = vst [vmem:[#allocation2 + $0x44] sm:$0xf] %v1565_v3  ;;  %s1498_s26 = sshll.u32 %s1957_s18, 5  ;;  %s317_s29 = scalar_lea.vmem %s1948_s4, %s1957_s18 }
  0x10   : > { %360 = vst [vmem:[#allocation2 + $0x48] sm:$0xf] %v1565_v3  ;;  %361 = vst [vmem:[#allocation2 + $0x4c] sm:$0xf] %v1565_v3  ;;  %s1644_s7 = scalar_lea.vmem %s1944_s0, %s1498_s26  ;;  %v1469_v11 = vld [vmem:[%s317_s29] ss:$0 sm:$0xff]  ;;  %s1778_s14 = scalar_lea.vmem %s1949_s5, %s1498_s26 }
  0x11   : > { %362 = vst [vmem:[#allocation2 + $0x50] sm:$0xf] %v1565_v3  ;;  %363 = vst [vmem:[#allocation2 + $0x54] sm:$0xf] %v1565_v3  ;;  %v338_v16 = vmul.f32 %v1469_v11, %v329_v4  ;;  %v372_v17 = vld [vmem:[%s1644_s7] sm:$0xf]  ;;  %v339_v20 = vmul.f32 %v1469_v11, %v330_v6 }
  0x12   : > { %364 = vst [vmem:[#allocation2 + $0x58] sm:$0xf] %v1565_v3  ;;  %365 = vst [vmem:[#allocation2 + $0x5c] sm:$0xf] %v1565_v3  ;;  %v373_v18 = vld [vmem:[%s1644_s7 + $0x4] sm:$0xf] }
  0x13   : > { %366 = vst [vmem:[#allocation2 + $0x60] sm:$0xf] %v1565_v3  ;;  %367 = vst [vmem:[#allocation2 + $0x64] sm:$0xf] %v1565_v3  ;;  %v374_v19 = vld [vmem:[%s1644_s7 + $0x8] sm:$0xf]  ;;  %v1658_v27 = vrot.slane %v338_v16, %v423_v7  ;;  %v1660_v28 = vrot.slane %v338_v16, %v459_v8  ;;  %v1662_v29 = vrot.slane %v338_v16, %v527_v9 }
  0x14   : > { %368 = vst [vmem:[#allocation2 + $0x68] sm:$0xf] %v1565_v3  ;;  %369 = vst [vmem:[#allocation2 + $0x6c] sm:$0xf] %v1565_v3  ;;  %v375_v21 = vld [vmem:[%s1644_s7 + $0xc] sm:$0xf]  ;;  %v1664_v30 = vrot.slane %v338_v16, %v652_v10  ;;  %v1673_v37 = vrot.slane %v338_v16, %v756_v12  ;;  %v1682_v43 = vrot.slane %v338_v16, %v881_v13 }
  0x15   : > { %370 = vst [vmem:[#allocation2 + $0x70] sm:$0xf] %v1565_v3  ;;  %371 = vst [vmem:[#allocation2 + $0x74] sm:$0xf] %v1565_v3  ;;  %v376_v22 = vld [vmem:[%s1644_s7 + $0x10] sm:$0xf]  ;;  %v1687_v47 = vrot.slane %v339_v20, %v423_v7  ;;  %v1691_v54 = vrot.slane %v338_v16, %v688_v14  ;;  %v1693_v57 = vrot.slane %v338_v16, %v917_v15 }
  0x16   : > { %381 = vst [vmem:[#allocation2 + $0x10] sm:$0xf] %v372_v17  ;;  %382 = vst [vmem:[#allocation2 + $0x1c] sm:$0xf] %v373_v18  ;;  %v377_v23 = vld [vmem:[%s1644_s7 + $0x14] sm:$0xf] }
  0x17   : > { %383 = vst [vmem:[#allocation2 + $0x28] sm:$0xf] %v374_v19  ;;  %v509_v24 = vld [vmem:[#allocation2 + $0x8] sm:$0x1]  ;;  %v510_v25 = vld [vmem:[#allocation2 + $0x14] sm:$0x1] }
  0x18   : > { %v1656_v26 = vld [vmem:[#allocation2 + $0x20] sm:$0x1]  ;;  %384 = vst [vmem:[#allocation2 + $0x34] sm:$0xf] %v375_v21  ;;  %385 = vst [vmem:[#allocation2 + $0x40] sm:$0xf] %v376_v22  ;;  %v517_v34 = vunpack.c.l.bf16 %v509_v24  ;;  %v518_v35 = vunpack.c.l.bf16 %v510_v25 }
  0x19   : > { %386 = vst [vmem:[#allocation2 + $0x4c] sm:$0xf] %v377_v23  ;;  %v1666_v31 = vld [vmem:[#allocation2 + $0x2c] sm:$0x1]  ;;  %v1668_v32 = vld [vmem:[#allocation2 + $0x38] sm:$0x1]  ;;  %v519_v36 = vunpack.c.l.bf16 %v1656_v26 }
  0x1a   : > { %v1670_v33 = vld [vmem:[#allocation2 + $0x44] sm:$0x1]  ;;  %v1675_v38 = vld [vmem:[#allocation2 + $0x50] sm:$0x1]  ;;  %v1677_v39 = vld [vmem:[#allocation2 + $0x5c] sm:$0x1]  ;;  %v520_v40 = vunpack.c.l.bf16 %v1666_v31  ;;  %v521_v41 = vunpack.c.l.bf16 %v1668_v32  ;;  %v530_v50 = vmul.f32 %v1662_v29, %v517_v34  ;;  %v532_v5 = vmul.f32 %v1662_v29, %v518_v35 }
  0x1b   : > { %v522_v42 = vunpack.c.l.bf16 %v1670_v33  ;;  %v378_v44 = vld [vmem:[%s1644_s7 + $0x18] sm:$0xf]  ;;  %v523_v45 = vunpack.c.l.bf16 %v1675_v38  ;;  %v524_v46 = vunpack.c.l.bf16 %v1677_v39  ;;  %v379_v48 = vld [vmem:[%s1644_s7 + $0x1c] sm:$0xf]  ;;  %v389_v49 = vld [vmem:[#allocation2] sm:$0x8] }
  0x1c   : > { %387 = vst [vmem:[#allocation2 + $0x58] sm:$0xf] %v378_v44  ;;  %v618_v51 = vld [vmem:[#allocation2 + $0xc] sm:$0x8]  ;;  %388 = vst [vmem:[#allocation2 + $0x64] sm:$0xf] %v379_v48  ;;  %v405_v52 = vunpack.c.l.bf16 %v389_v49 }
  0x1d   : > { %v634_v53 = vunpack.c.l.bf16 %v618_v51  ;;  %v738_v55 = vld [vmem:[#allocation2 + $0x14] sm:$0x1]  ;;  %v847_v56 = vld [vmem:[#allocation2 + $0x18] sm:$0x8]  ;;  %v967_v58 = vld [vmem:[#allocation2 + $0x20] sm:$0x1] }
  0x1e   : > { %v563_v59 = vrot.slane %v530_v50, 2  ;;  %v746_v60 = vunpack.c.l.bf16 %v738_v55  ;;  %v863_v61 = vunpack.c.l.bf16 %v847_v56  ;;  %v975_v62 = vunpack.c.l.bf16 %v967_v58  ;;  %v391_v63 = vld [vmem:[#allocation2 + $0xc] sm:$0x8]  ;;  %v390_v0 = vld [vmem:[#allocation2 + $0x4] ss:$12 sps:$4 sm:$0xff]  }
  0x1f   : > { %v425_v1 = vmul.f32 %v1658_v27, %v405_v52  ;;  %v654_v2 = vmul.f32 %v1664_v30, %v634_v53  ;;  %v848_v3 = vld [vmem:[#allocation2 + $0x10] ss:$12 sps:$4 sm:$0xff]   ;;  %v407_v4 = vunpack.c.l.bf16 %v391_v63  ;;  %v406_v6 = vunpack.c.l.bf16 %v390_v0  ;;  %v620_v49 = vld [vmem:[#allocation2 + $0x18] sm:$0x8] }
  0x20   : > { %v635_v7 = vunpack.c.h.bf16 %v390_v0  ;;  %v759_v8 = vmul.f32 %v1673_v37, %v746_v60  ;;  %v864_v9 = vunpack.c.h.bf16 %v848_v3  ;;  %v1700_v10 = vmul.f32 %v1682_v43, %v863_v61  ;;  %v621_v55 = vld [vmem:[#allocation2 + $0x1c] ss:$12 sps:$4 sm:$0xff]  }
  0x21   : > { %v988_v11 = vmul.f32 %v1687_v47, %v975_v62  ;;  %v408_v12 = vunpack.c.l.bf16 %v848_v3  ;;  %v427_v13 = vmul.f32 %v1658_v27, %v407_v4  ;;  %v426_v14 = vmul.f32 %v1658_v27, %v406_v6  ;;  %v739_v62 = vld [vmem:[#allocation2 + $0x20] sm:$0x1] }
  0x22   : > { %v461_v15 = vmul.f32 %v1660_v28, %v406_v6  ;;  %v529_v16 = vmul.f32 %v1662_v29, %v406_v6  ;;  %v655_v17 = vmul.f32 %v1664_v30, %v635_v7  ;;  %v690_v18 = vmul.f32 %v1691_v54, %v635_v7 }
  0x23   : > { %v758_v19 = vmul.f32 %v1673_v37, %v635_v7  ;;  %v791_v20 = vrot.slane %v759_v8, 2  ;;  %v884_v21 = vmul.f32 %v1682_v43, %v864_v9  ;;  %v919_v24 = vmul.f32 %v1693_v57, %v864_v9 }
  0x24   : > { %v477_v22 = vrot.slane %v461_v15, 1  ;;  %v562_v23 = vrot.slane %v529_v16, 2  ;;  %v1713_v25 = vmul.f32 %v1687_v47, %v864_v9  ;;  %v706_v34 = vrot.slane %v690_v18, 1  ;;  %v849_v15 = vld [vmem:[#allocation2 + $0x24] sm:$0x8] }
  0x25   : > { %v790_v35 = vrot.slane %v758_v19, 2  ;;  %v1020_v44 = vrot.slane %v988_v11, 2  ;;  %v428_v48 = vmul.f32 %v1658_v27, %v408_v12  ;;  %v935_v53 = vrot.slane %v919_v24, 1 }
  0x26   : > { %v493_v50 = vadd.f32 %v477_v22, %v425_v1  ;;  %v494_v51 = vadd.f32 %v477_v22, %v426_v14  ;;  %v564_v52 = vsel %vm561_vm0, %v562_v23, %v563_v59  ;;  %v1019_v58 = vrot.slane %v1713_v25, 2 }
  0x27   : > { %v792_v56 = vsel %vm561_vm0, %v790_v35, %v791_v20  ;;  %v462_v60 = vmul.f32 %v1660_v28, %v408_v12  ;;  %v531_v61 = vmul.f32 %v1662_v29, %v408_v12  ;;  %v566_v3 = vrot.slane %v532_v5, 2 }
  0x28   : > { %v602_v63 = vadd.f32 %v562_v23, %v493_v50  ;;  %v603_v0 = vadd.f32 %v564_v52, %v494_v51  ;;  %v636_v4 = vunpack.c.l.bf16 %v620_v49  ;;  %v1021_v1 = vsel %vm561_vm0, %v1019_v58, %v1020_v44  ;;  %v968_v44 = vld [vmem:[#allocation2 + $0x2c] sm:$0x1] }
  0x29   : > { %v478_v6 = vrot.slane %v462_v60, 1  ;;  %v565_v7 = vrot.slane %v531_v61, 2  ;;  %v637_v59 = vunpack.c.l.bf16 %v621_v55  ;;  %v747_v14 = vunpack.c.l.bf16 %v739_v62 }
  0x2a   : > { %v670_v8 = vadd.f32 %v654_v2, %v602_v63  ;;  %v671_v9 = vadd.f32 %v655_v17, %v603_v0  ;;  %v656_v11 = vmul.f32 %v1664_v30, %v636_v4  ;;  %v865_v17 = vunpack.c.l.bf16 %v849_v15 }
  0x2b   : > { %v495_v16 = vadd.f32 %v478_v6, %v427_v13  ;;  %v496_v18 = vadd.f32 %v478_v6, %v428_v48  ;;  %v567_v12 = vsel %vm561_vm0, %v565_v7, %v566_v3  ;;  %v657_v19 = vmul.f32 %v1664_v30, %v637_v59  ;;  %v393_v3 = vld [vmem:[#allocation2 + $0x18] sm:$0x8] }
  0x2c   : > { %v722_v20 = vadd.f32 %v706_v34, %v670_v8  ;;  %v723_v5 = vadd.f32 %v706_v34, %v671_v9  ;;  %v691_v22 = vmul.f32 %v1691_v54, %v637_v59  ;;  %v760_v23 = vmul.f32 %v1673_v37, %v637_v59 }
  0x2d   : > { %v604_v24 = vadd.f32 %v565_v7, %v495_v16  ;;  %v605_v25 = vadd.f32 %v567_v12, %v496_v18  ;;  %v761_v2 = vmul.f32 %v1673_v37, %v747_v14  ;;  %v866_v61 = vunpack.c.h.bf16 %v621_v55  ;;  %v394_v55 = vld [vmem:[#allocation2 + $0x1c] ss:$12 sps:$4 sm:$0xff]  }
  0x2e   : > { %v830_v49 = vadd.f32 %v790_v35, %v722_v20  ;;  %v831_v50 = vadd.f32 %v792_v56, %v723_v5  ;;  %v707_v13 = vrot.slane %v691_v22, 1  ;;  %v793_v48 = vrot.slane %v760_v23, 2 }
  0x2f   : > { %v672_v51 = vadd.f32 %v656_v11, %v604_v24  ;;  %v673_v52 = vadd.f32 %v657_v19, %v605_v25  ;;  %v794_v60 = vrot.slane %v761_v2, 2  ;;  %v885_v63 = vmul.f32 %v1682_v43, %v865_v17 }
  0x30   : > { %v899_v34 = vadd.f32 %v1700_v10, %v830_v49  ;;  %v900_v62 = vadd.f32 %v884_v21, %v831_v50  ;;  %v976_v0 = vunpack.c.l.bf16 %v968_v44  ;;  %v886_v35 = vmul.f32 %v1682_v43, %v866_v61  ;;  %v1737_v10 = vld [vmem:[%s1946_s2] ss:$0 sm:$0xff] }
  0x31   : > { %v724_v4 = vadd.f32 %v707_v13, %v672_v51  ;;  %v725_v6 = vadd.f32 %v707_v13, %v673_v52  ;;  %v795_v7 = vsel %vm561_vm0, %v793_v48, %v794_v60  ;;  %v920_v8 = vmul.f32 %v1693_v57, %v866_v61 }
  0x32   : > { %v951_v56 = vadd.f32 %v935_v53, %v899_v34  ;;  %v952_v59 = vadd.f32 %v935_v53, %v900_v62  ;;  %v989_v9 = vmul.f32 %v1687_v47, %v866_v61  ;;  %v990_v14 = vmul.f32 %v1687_v47, %v976_v0  ;;  %v1743_v53 = vld [vmem:[%s1947_s3] ss:$0 sm:$0xff] }
  0x33   : > { %v832_v21 = vadd.f32 %v793_v48, %v724_v4  ;;  %v833_v11 = vadd.f32 %v795_v7, %v725_v6  ;;  %v409_v15 = vunpack.c.l.bf16 %v393_v3  ;;  %v936_v12 = vrot.slane %v920_v8, 1 }
  0x34   : > { %v1059_v16 = vadd.f32 %v1019_v58, %v951_v56  ;;  %v1060_v18 = vadd.f32 %v1021_v1, %v952_v59  ;;  %v1022_v19 = vrot.slane %v989_v9, 2  ;;  %v1023_v22 = vrot.slane %v990_v14, 2  ;;  %v622_v1 = vld [vmem:[#allocation2 + $0x24] sm:$0x8]  ;;  %v740_v9 = vld [vmem:[#allocation2 + $0x2c] sm:$0x1] }
  0x35   : > { %v901_v20 = vadd.f32 %v885_v63, %v832_v21  ;;  %v902_v5 = vadd.f32 %v886_v35, %v833_v11  ;;  %v410_v23 = vunpack.c.l.bf16 %v394_v55  ;;  %v429_v2 = vmul.f32 %v1658_v27, %v409_v15 }
  0x36   : > { %v1081_v24 = vmul.f32 %v1737_v10, %v1059_v16  ;;  %v1082_v25 = vmul.f32 %v1737_v10, %v1060_v18  ;;  %v534_v58 = vmul.f32 %v1662_v29, %v519_v36  ;;  %v1024_v49 = vsel %vm561_vm0, %v1022_v19, %v1023_v22 }
  0x37   : > { %v953_v17 = vadd.f32 %v936_v12, %v901_v20  ;;  %v954_v44 = vadd.f32 %v936_v12, %v902_v5  ;;  %v430_v50 = vmul.f32 %v1658_v27, %v410_v23  ;;  %vm1200_vm2 = vsmask.f32 4368 }
  0x38   : > { %v1103_v13 = vadd.f32 %v1743_v53, %v1081_v24  ;;  %v1104_v48 = vadd.f32 %v1743_v53, %v1082_v25  ;;  %v463_v51 = vmul.f32 %v1660_v28, %v410_v23  ;;  %v533_v52 = vmul.f32 %v1662_v29, %v410_v23  ;;  %vm1769_vm3 = vmor %vm1199_vm1, %vm1200_vm2 }
  0x39   : > { %v1061_v26 = vadd.f32 %v1022_v19, %v953_v17  ;;  %v1062_v60 = vadd.f32 %v1024_v49, %v954_v44  ;;  %v569_v36 = vrot.slane %v534_v58, 2  ;;  %v638_v61 = vunpack.c.l.bf16 %v622_v1  ;;  %v851_v49 = vld [vmem:[#allocation2 + $0x30] sm:$0x8] }
  0x3a   : > { %v1119_v34 = vmax.f32 %v1103_v13, 0.0  ;;  %v1120_v62 = vmax.f32 %v1104_v48, 0.0  ;;  %v479_v63 = vrot.slane %v463_v51, 1  ;;  %v568_v0 = vrot.slane %v533_v52, 2  ;;  %v852_v52 = vld [vmem:[#allocation2 + $0x28] ss:$12 sps:$4 sm:$0xff]  }
  0x3b   : > { %v1083_v3 = vmul.f32 %v1737_v10, %v1061_v26  ;;  %v1084_v4 = vmul.f32 %v1737_v10, %v1062_v60  ;;  %v639_v6 = vunpack.c.h.bf16 %v394_v55  ;;  %v658_v7 = vmul.f32 %v1664_v30, %v638_v61 }
  0x3c   : > { %v1135_v35 = vmin.f32 %v1119_v34, 6.0  ;;  %v1136_v56 = vmin.f32 %v1120_v62, 6.0  ;;  %v497_v59 = vadd.f32 %v479_v63, %v429_v2  ;;  %v498_v8 = vadd.f32 %v479_v63, %v430_v50 }
  0x3d   : > { %v1105_v21 = vadd.f32 %v1743_v53, %v1083_v3  ;;  %v1106_v11 = vadd.f32 %v1743_v53, %v1084_v4  ;;  %v570_v14 = vsel %vm561_vm0, %v568_v0, %v569_v36  ;;  %v659_v15 = vmul.f32 %v1664_v30, %v639_v6 }
  0x3e   : > { %v1500_v16 = vpack.c.bf16 %v1135_v35, %v1135_v35  ;;  %v1501_v18 = vpack.c.bf16 %v1136_v56, %v1136_v56  ;;  %v606_v12 = vadd.f32 %v568_v0, %v497_v59  ;;  %v607_v19 = vadd.f32 %v570_v14, %v498_v8  ;;  %v969_v56 = vld [vmem:[#allocation2 + $0x38] sm:$0x1] }
  0x3f   : > { %v1121_v55 = vmax.f32 %v1105_v21, 0.0  ;;  %v1122_v20 = vmax.f32 %v1106_v11, 0.0  ;;  %v692_v5 = vmul.f32 %v1691_v54, %v639_v6  ;;  %v748_v22 = vunpack.c.l.bf16 %v740_v9  ;;  %v395_v11 = vld [vmem:[#allocation2 + $0x24] sm:$0x8] }
  0x40   : > { %v1203_v23 = vshrl.u32 %v1500_v16, 16  ;;  %v1208_v24 = vshrl.u32 %v1501_v18, 16  ;;  %v1211_v25 = vshll.u32 %v1501_v18, 16  ;;  %v674_v2 = vadd.f32 %v658_v7, %v606_v12 }
  0x41   : > { %v1137_v58 = vmin.f32 %v1121_v55, 6.0  ;;  %v1138_v1 = vmin.f32 %v1122_v20, 6.0  ;;  %v675_v17 = vadd.f32 %v659_v15, %v607_v19  ;;  %v708_v44 = vrot.slane %v692_v5, 1 }
  0x42   : > { %v1488_v50 = vrot.slane %v1203_v23, 11  ;;  %v1210_v13 = vrot.slane %v1208_v24, 7  ;;  %v762_v48 = vmul.f32 %v1673_v37, %v639_v6  ;;  %v763_v51 = vmul.f32 %v1673_v37, %v748_v22 }
  0x43   : > { %v1502_v60 = vpack.c.bf16 %v1137_v58, %v1137_v58  ;;  %v1503_v36 = vpack.c.bf16 %v1138_v1, %v1138_v1  ;;  %v726_v61 = vadd.f32 %v708_v44, %v674_v2  ;;  %v727_v34 = vadd.f32 %v708_v44, %v675_v17  ;;  %v624_v17 = vld [vmem:[#allocation2 + $0x30] sm:$0x8]  ;;  %v625_v44 = vld [vmem:[#allocation2 + $0x34] ss:$12 sps:$4 sm:$0xff]  }
  0x44   : > { %v1213_v62 = vor.u32 %v1211_v25, %v1210_v13  ;;  %v796_v63 = vrot.slane %v762_v48, 2  ;;  %v797_v0 = vrot.slane %v763_v51, 2  ;;  %v867_v3 = vunpack.c.l.bf16 %v851_v49  ;;  %v741_v51 = vld [vmem:[#allocation2 + $0x38] sm:$0x1] }
  0x45   : > { %v1216_v4 = vshrl.u32 %v1502_v60, 16  ;;  %v1221_v6 = vshrl.u32 %v1503_v36, 16  ;;  %v1224_v7 = vshll.u32 %v1503_v36, 16  ;;  %v868_v35 = vunpack.c.h.bf16 %v852_v52 }
  0x46   : > { %v1214_v59 = vsel %vm1769_vm3, %v1488_v50, %v1213_v62  ;;  %v798_v8 = vsel %vm561_vm0, %v796_v63, %v797_v0  ;;  %v834_v9 = vadd.f32 %v796_v63, %v726_v61  ;;  %v887_v21 = vmul.f32 %v1682_v43, %v867_v3 }
  0x47   : > { %1314 = vst [vmem:[%s1778_s14] sm:$0xf] %v1214_v59  ;;  %v1489_v14 = vrot.slane %v1216_v4, 11  ;;  %v1223_v15 = vrot.slane %v1221_v6, 7  ;;  %v835_v16 = vadd.f32 %v798_v8, %v727_v34  ;;  %v888_v18 = vmul.f32 %v1682_v43, %v868_v35  ;;  %v853_v59 = vld [vmem:[#allocation2 + $0x3c] sm:$0x8] }
  0x48   : > { %v903_v12 = vadd.f32 %v887_v21, %v834_v9  ;;  %v921_v19 = vmul.f32 %v1693_v57, %v868_v35  ;;  %v977_v55 = vunpack.c.l.bf16 %v969_v56  ;;  %v991_v20 = vmul.f32 %v1687_v47, %v868_v35 }
  0x49   : > { %v1226_v5 = vor.u32 %v1224_v7, %v1223_v15  ;;  %v904_v22 = vadd.f32 %v888_v18, %v835_v16  ;;  %v411_v23 = vunpack.c.l.bf16 %v395_v11  ;;  %v412_v24 = vunpack.c.l.bf16 %v852_v52 }
  0x4a   : > { %v937_v25 = vrot.slane %v921_v19, 1  ;;  %v992_v2 = vmul.f32 %v1687_v47, %v977_v55  ;;  %v1025_v58 = vrot.slane %v991_v20, 2  ;;  %v536_v1 = vmul.f32 %v1662_v29, %v520_v40 }
  0x4b   : > { %v1227_v49 = vsel %vm1769_vm3, %v1489_v14, %v1226_v5  ;;  %v431_v50 = vmul.f32 %v1658_v27, %v411_v23  ;;  %v432_v13 = vmul.f32 %v1658_v27, %v412_v24  ;;  %v464_v48 = vmul.f32 %v1660_v28, %v412_v24  ;;  %v970_v5 = vld [vmem:[#allocation2 + $0x44] sm:$0x1] }
  0x4c   : > { %1315 = vst [vmem:[%s1778_s14 + $0x4] sm:$0xf] %v1227_v49  ;;  %v955_v52 = vadd.f32 %v937_v25, %v903_v12  ;;  %v956_v60 = vadd.f32 %v937_v25, %v904_v22  ;;  %v1026_v36 = vrot.slane %v992_v2, 2  ;;  %v535_v31 = vmul.f32 %v1662_v29, %v412_v24 }
  0x4d   : > { %v480_v61 = vrot.slane %v464_v48, 1  ;;  %v572_v40 = vrot.slane %v536_v1, 2  ;;  %v640_v34 = vunpack.c.l.bf16 %v624_v17  ;;  %v641_v62 = vunpack.c.l.bf16 %v625_v44 }
  0x4e   : > { %v1027_v63 = vsel %vm561_vm0, %v1025_v58, %v1026_v36  ;;  %v1063_v0 = vadd.f32 %v1025_v58, %v955_v52  ;;  %v571_v3 = vrot.slane %v535_v31, 2  ;;  %v749_v4 = vunpack.c.l.bf16 %v741_v51  ;;  %v397_v51 = vld [vmem:[#allocation2 + $0x30] sm:$0x8] }
  0x4f   : > { %v1064_v6 = vadd.f32 %v1027_v63, %v956_v60  ;;  %v499_v7 = vadd.f32 %v480_v61, %v431_v50  ;;  %v500_v35 = vadd.f32 %v480_v61, %v432_v13  ;;  %v660_v56 = vmul.f32 %v1664_v30, %v640_v34 }
  0x50   : > { %v1085_v8 = vmul.f32 %v1737_v10, %v1063_v0  ;;  %v573_v9 = vsel %vm561_vm0, %v571_v3, %v572_v40  ;;  %v661_v21 = vmul.f32 %v1664_v30, %v641_v62  ;;  %v693_v11 = vmul.f32 %v1691_v54, %v641_v62 }
  0x51   : > { %v1086_v14 = vmul.f32 %v1737_v10, %v1064_v6  ;;  %v608_v15 = vadd.f32 %v571_v3, %v499_v7  ;;  %v609_v16 = vadd.f32 %v573_v9, %v500_v35  ;;  %v764_v18 = vmul.f32 %v1673_v37, %v641_v62 }
  0x52   : > { %v1107_v12 = vadd.f32 %v1743_v53, %v1085_v8  ;;  %v709_v19 = vrot.slane %v693_v11, 1  ;;  %v765_v55 = vmul.f32 %v1673_v37, %v749_v4  ;;  %v869_v20 = vunpack.c.l.bf16 %v853_v59 }
  0x53   : > { %v1108_v22 = vadd.f32 %v1743_v53, %v1086_v14  ;;  %v676_v23 = vadd.f32 %v660_v56, %v608_v15  ;;  %v677_v24 = vadd.f32 %v661_v21, %v609_v16  ;;  %v799_v25 = vrot.slane %v764_v18, 2  ;;  %v626_v18 = vld [vmem:[#allocation2 + $0x3c] sm:$0x8] }
  0x54   : > { %v1123_v2 = vmax.f32 %v1107_v12, 0.0  ;;  %v800_v58 = vrot.slane %v765_v55, 2  ;;  %v870_v1 = vunpack.c.h.bf16 %v625_v44  ;;  %v889_v17 = vmul.f32 %v1682_v43, %v869_v20  ;;  %v398_v44 = vld [vmem:[#allocation2 + $0x34] ss:$12 sps:$4 sm:$0xff]  }
  0x55   : > { %v1124_v49 = vmax.f32 %v1108_v22, 0.0  ;;  %v728_v50 = vadd.f32 %v709_v19, %v676_v23  ;;  %v729_v13 = vadd.f32 %v709_v19, %v677_v24  ;;  %v978_v48 = vunpack.c.l.bf16 %v970_v5 }
  0x56   : > { %v1139_v52 = vmin.f32 %v1123_v2, 6.0  ;;  %v801_v60 = vsel %vm561_vm0, %v799_v25, %v800_v58  ;;  %v890_v36 = vmul.f32 %v1682_v43, %v870_v1  ;;  %v922_v31 = vmul.f32 %v1693_v57, %v870_v1 }
  0x57   : > { %v1140_v61 = vmin.f32 %v1124_v49, 6.0  ;;  %v836_v40 = vadd.f32 %v799_v25, %v728_v50  ;;  %v837_v34 = vadd.f32 %v801_v60, %v729_v13  ;;  %v993_v62 = vmul.f32 %v1687_v47, %v870_v1 }
  0x58   : > { %v1504_v63 = vpack.c.bf16 %v1139_v52, %v1139_v52  ;;  %v938_v0 = vrot.slane %v922_v31, 1  ;;  %v994_v3 = vmul.f32 %v1687_v47, %v978_v48  ;;  %v413_v4 = vunpack.c.l.bf16 %v397_v51  ;;  %v742_v48 = vld [vmem:[#allocation2 + $0x44] sm:$0x1] }
  0x59   : > { %v1505_v6 = vpack.c.bf16 %v1140_v61, %v1140_v61  ;;  %v905_v7 = vadd.f32 %v889_v17, %v836_v40  ;;  %v906_v35 = vadd.f32 %v890_v36, %v837_v34  ;;  %v1028_v56 = vrot.slane %v993_v62, 2  ;;  %v855_v40 = vld [vmem:[#allocation2 + $0x48] sm:$0x8] }
  0x5a   : > { %v1229_v59 = vshrl.u32 %v1504_v63, 16  ;;  %v1029_v8 = vrot.slane %v994_v3, 2  ;;  %v414_v9 = vunpack.c.l.bf16 %v398_v44  ;;  %v433_v21 = vmul.f32 %v1658_v27, %v413_v4 }
  0x5b   : > { %v1234_v11 = vshrl.u32 %v1505_v6, 16  ;;  %v1237_v14 = vshll.u32 %v1505_v6, 16  ;;  %v957_v15 = vadd.f32 %v938_v0, %v905_v7  ;;  %v958_v16 = vadd.f32 %v938_v0, %v906_v35  ;;  %v856_v7 = vld [vmem:[#allocation2 + $0x40] ss:$12 sps:$4 sm:$0xff]  }
  0x5c   : > { %v1490_v12 = vrot.slane %v1229_v59, 11  ;;  %v1030_v19 = vsel %vm561_vm0, %v1028_v56, %v1029_v8  ;;  %v434_v55 = vmul.f32 %v1658_v27, %v414_v9  ;;  %v465_v20 = vmul.f32 %v1660_v28, %v414_v9 }
  0x5d   : > { %v1236_v5 = vrot.slane %v1234_v11, 7  ;;  %v1065_v22 = vadd.f32 %v1028_v56, %v957_v15  ;;  %v1066_v23 = vadd.f32 %v1030_v19, %v958_v16  ;;  %v537_v24 = vmul.f32 %v1662_v29, %v414_v9  ;;  %v971_v9 = vld [vmem:[#allocation2 + $0x50] sm:$0x1] }
  0x5e   : > { %v481_v25 = vrot.slane %v465_v20, 1  ;;  %v538_v2 = vmul.f32 %v1662_v29, %v521_v41  ;;  %v642_v58 = vunpack.c.l.bf16 %v626_v18  ;;  %v643_v1 = vunpack.c.h.bf16 %v398_v44 }
  0x5f   : > { %v1239_v17 = vor.u32 %v1237_v14, %v1236_v5  ;;  %v1087_v49 = vmul.f32 %v1737_v10, %v1065_v22  ;;  %v1088_v50 = vmul.f32 %v1737_v10, %v1066_v23  ;;  %v574_v13 = vrot.slane %v537_v24, 2 }
  0x60   : > { %v501_v51 = vadd.f32 %v481_v25, %v433_v21  ;;  %v502_v52 = vadd.f32 %v481_v25, %v434_v55  ;;  %v575_v60 = vrot.slane %v538_v2, 2  ;;  %v662_v36 = vmul.f32 %v1664_v30, %v642_v58  ;;  %v399_v58 = vld [vmem:[#allocation2 + $0x3c] sm:$0x8] }
  0x61   : > { %v1240_v32 = vsel %vm1769_vm3, %v1490_v12, %v1239_v17  ;;  %v1109_v41 = vadd.f32 %v1743_v53, %v1087_v49  ;;  %v1110_v31 = vadd.f32 %v1743_v53, %v1088_v50  ;;  %v663_v61 = vmul.f32 %v1664_v30, %v643_v1 }
  0x62   : > { %1316 = vst [vmem:[%s1778_s14 + $0x8] sm:$0xf] %v1240_v32  ;;  %v576_v34 = vsel %vm561_vm0, %v574_v13, %v575_v60  ;;  %v610_v62 = vadd.f32 %v574_v13, %v501_v51  ;;  %v694_v44 = vmul.f32 %v1691_v54, %v643_v1  ;;  %v750_v63 = vunpack.c.l.bf16 %v742_v48 }
  0x63   : > { %v1125_v0 = vmax.f32 %v1109_v41, 0.0  ;;  %v1126_v3 = vmax.f32 %v1110_v31, 0.0  ;;  %v611_v4 = vadd.f32 %v576_v34, %v502_v52  ;;  %v766_v6 = vmul.f32 %v1673_v37, %v643_v1 }
  0x64   : > { %v678_v35 = vadd.f32 %v662_v36, %v610_v62  ;;  %v710_v56 = vrot.slane %v694_v44, 1  ;;  %v767_v59 = vmul.f32 %v1673_v37, %v750_v63  ;;  %v871_v8 = vunpack.c.l.bf16 %v855_v40 }
  0x65   : > { %v1141_v21 = vmin.f32 %v1125_v0, 6.0  ;;  %v1142_v11 = vmin.f32 %v1126_v3, 6.0  ;;  %v679_v14 = vadd.f32 %v663_v61, %v611_v4  ;;  %v802_v15 = vrot.slane %v766_v6, 2  ;;  %v628_v3 = vld [vmem:[#allocation2 + $0x48] sm:$0x8] }
  0x66   : > { %v730_v16 = vadd.f32 %v710_v56, %v678_v35  ;;  %v803_v18 = vrot.slane %v767_v59, 2  ;;  %v872_v12 = vunpack.c.h.bf16 %v856_v7  ;;  %v891_v19 = vmul.f32 %v1682_v43, %v871_v8  ;;  %v629_v4 = vld [vmem:[#allocation2 + $0x4c] ss:$12 sps:$4 sm:$0xff]   ;;  %v743_v8 = vld [vmem:[#allocation2 + $0x50] sm:$0x1] }
  0x67   : > { %v1506_v55 = vpack.c.bf16 %v1141_v21, %v1141_v21  ;;  %v1507_v20 = vpack.c.bf16 %v1142_v11, %v1142_v11  ;;  %v731_v5 = vadd.f32 %v710_v56, %v679_v14  ;;  %v979_v22 = vunpack.c.l.bf16 %v971_v9 }
  0x68   : > { %v804_v23 = vsel %vm561_vm0, %v802_v15, %v803_v18  ;;  %v838_v24 = vadd.f32 %v802_v15, %v730_v16  ;;  %v892_v25 = vmul.f32 %v1682_v43, %v872_v12  ;;  %v923_v2 = vmul.f32 %v1693_v57, %v872_v12 }
  0x69   : > { %v1242_v1 = vshrl.u32 %v1506_v55, 16  ;;  %v1247_v17 = vshrl.u32 %v1507_v20, 16  ;;  %v1250_v49 = vshll.u32 %v1507_v20, 16  ;;  %v839_v50 = vadd.f32 %v804_v23, %v731_v5 }
  0x6a   : > { %v907_v13 = vadd.f32 %v891_v19, %v838_v24  ;;  %v939_v48 = vrot.slane %v923_v2, 1  ;;  %v995_v51 = vmul.f32 %v1687_v47, %v872_v12  ;;  %v996_v52 = vmul.f32 %v1687_v47, %v979_v22 }
  0x6b   : > { %v1491_v60 = vrot.slane %v1242_v1, 11  ;;  %v1249_v36 = vrot.slane %v1247_v17, 7  ;;  %v908_v32 = vadd.f32 %v892_v25, %v839_v50  ;;  %v415_v41 = vunpack.c.l.bf16 %v399_v58 }
  0x6c   : > { %v959_v31 = vadd.f32 %v939_v48, %v907_v13  ;;  %v1031_v61 = vrot.slane %v995_v51, 2  ;;  %v1032_v40 = vrot.slane %v996_v52, 2  ;;  %v416_v34 = vunpack.c.l.bf16 %v856_v7  ;;  %v857_v7 = vld [vmem:[#allocation2 + $0x54] sm:$0x8] }
  0x6d   : > { %v1252_v62 = vor.u32 %v1250_v49, %v1249_v36  ;;  %v960_v44 = vadd.f32 %v939_v48, %v908_v32  ;;  %v435_v63 = vmul.f32 %v1658_v27, %v415_v41  ;;  %v540_v0 = vmul.f32 %v1662_v29, %v522_v42 }
  0x6e   : > { %v1033_v6 = vsel %vm561_vm0, %v1031_v61, %v1032_v40  ;;  %v1067_v35 = vadd.f32 %v1031_v61, %v959_v31  ;;  %v436_v56 = vmul.f32 %v1658_v27, %v416_v34  ;;  %v466_v59 = vmul.f32 %v1660_v28, %v416_v34  ;;  %v972_v31 = vld [vmem:[#allocation2 + $0x5c] sm:$0x1] }
  0x6f   : > { %v1253_v9 = vsel %vm1769_vm3, %v1491_v60, %v1252_v62  ;;  %v1068_v21 = vadd.f32 %v1033_v6, %v960_v44  ;;  %v539_v11 = vmul.f32 %v1662_v29, %v416_v34  ;;  %v578_v33 = vrot.slane %v540_v0, 2 }
  0x70   : > { %1317 = vst [vmem:[%s1778_s14 + $0xc] sm:$0xf] %v1253_v9  ;;  %v1089_v42 = vmul.f32 %v1737_v10, %v1067_v35  ;;  %v482_v14 = vrot.slane %v466_v59, 1  ;;  %v644_v15 = vunpack.c.l.bf16 %v628_v3  ;;  %v645_v16 = vunpack.c.l.bf16 %v629_v4  ;;  %v401_v59 = vld [vmem:[#allocation2 + $0x48] sm:$0x8] }
  0x71   : > { %v1090_v18 = vmul.f32 %v1737_v10, %v1068_v21  ;;  %v577_v12 = vrot.slane %v539_v11, 2  ;;  %v751_v19 = vunpack.c.l.bf16 %v743_v8  ;;  %v873_v55 = vunpack.c.l.bf16 %v857_v7  ;;  %v402_v11 = vld [vmem:[#allocation2 + $0x4c] ss:$12 sps:$4 sm:$0xff]  }
  0x72   : > { %v1111_v20 = vadd.f32 %v1743_v53, %v1089_v42  ;;  %v503_v5 = vadd.f32 %v482_v14, %v435_v63  ;;  %v504_v22 = vadd.f32 %v482_v14, %v436_v56  ;;  %v664_v23 = vmul.f32 %v1664_v30, %v644_v15 }
  0x73   : > { %v1112_v24 = vadd.f32 %v1743_v53, %v1090_v18  ;;  %v579_v25 = vsel %vm561_vm0, %v577_v12, %v578_v33  ;;  %v665_v2 = vmul.f32 %v1664_v30, %v645_v16  ;;  %v695_v58 = vmul.f32 %v1691_v54, %v645_v16 }
  0x74   : > { %v1127_v1 = vmax.f32 %v1111_v20, 0.0  ;;  %v612_v17 = vadd.f32 %v577_v12, %v503_v5  ;;  %v613_v49 = vadd.f32 %v579_v25, %v504_v22  ;;  %v768_v50 = vmul.f32 %v1673_v37, %v645_v16  ;;  %v630_v16 = vld [vmem:[#allocation2 + $0x54] sm:$0x8] }
  0x75   : > { %v1128_v13 = vmax.f32 %v1112_v24, 0.0  ;;  %v711_v48 = vrot.slane %v695_v58, 1  ;;  %v769_v51 = vmul.f32 %v1673_v37, %v751_v19  ;;  %v874_v52 = vunpack.c.h.bf16 %v629_v4 }
  0x76   : > { %v1143_v60 = vmin.f32 %v1127_v1, 6.0  ;;  %v680_v36 = vadd.f32 %v664_v23, %v612_v17  ;;  %v681_v32 = vadd.f32 %v665_v2, %v613_v49  ;;  %v805_v41 = vrot.slane %v768_v50, 2 }
  0x77   : > { %v1144_v61 = vmin.f32 %v1128_v13, 6.0  ;;  %v806_v40 = vrot.slane %v769_v51, 2  ;;  %v893_v34 = vmul.f32 %v1682_v43, %v873_v55  ;;  %v894_v62 = vmul.f32 %v1682_v43, %v874_v52  ;;  %v744_v13 = vld [vmem:[#allocation2 + $0x5c] sm:$0x1] }
  0x78   : > { %v1508_v44 = vpack.c.bf16 %v1143_v60, %v1143_v60  ;;  %v732_v63 = vadd.f32 %v711_v48, %v680_v36  ;;  %v733_v0 = vadd.f32 %v711_v48, %v681_v32  ;;  %v924_v3 = vmul.f32 %v1693_v57, %v874_v52 }
  0x79   : > { %v1509_v6 = vpack.c.bf16 %v1144_v61, %v1144_v61  ;;  %v807_v35 = vsel %vm561_vm0, %v805_v41, %v806_v40  ;;  %v980_v4 = vunpack.c.l.bf16 %v972_v31  ;;  %v997_v56 = vmul.f32 %v1687_v47, %v874_v52 }
  0x7a   : > { %v1255_v8 = vshrl.u32 %v1508_v44, 16  ;;  %v840_v7 = vadd.f32 %v805_v41, %v732_v63  ;;  %v841_v9 = vadd.f32 %v807_v35, %v733_v0  ;;  %v940_v21 = vrot.slane %v924_v3, 1  ;;  %v859_v0 = vld [vmem:[#allocation2 + $0x60] sm:$0x8] }
  0x7b   : > { %v1260_v33 = vshrl.u32 %v1509_v6, 16  ;;  %v1263_v42 = vshll.u32 %v1509_v6, 16  ;;  %v998_v14 = vmul.f32 %v1687_v47, %v980_v4  ;;  %v1034_v15 = vrot.slane %v997_v56, 2  ;;  %v860_v56 = vld [vmem:[#allocation2 + $0x58] ss:$12 sps:$4 sm:$0xff]  }
  0x7c   : > { %v1492_v18 = vrot.slane %v1255_v8, 11  ;;  %v909_v12 = vadd.f32 %v893_v34, %v840_v7  ;;  %v910_v19 = vadd.f32 %v894_v62, %v841_v9  ;;  %v417_v55 = vunpack.c.l.bf16 %v401_v59 }
  0x7d   : > { %v1262_v20 = vrot.slane %v1260_v33, 7  ;;  %v1035_v5 = vrot.slane %v998_v14, 2  ;;  %v418_v22 = vunpack.c.l.bf16 %v402_v11  ;;  %v542_v23 = vmul.f32 %v1662_v29, %v523_v45 }
  0x7e   : > { %v961_v24 = vadd.f32 %v940_v21, %v909_v12  ;;  %v962_v25 = vadd.f32 %v940_v21, %v910_v19  ;;  %v437_v2 = vmul.f32 %v1658_v27, %v417_v55  ;;  %v646_v58 = vunpack.c.l.bf16 %v630_v16  ;;  %v973_v21 = vld [vmem:[#allocation2 + $0x68] sm:$0x1] }
  0x7f   : > { %v1265_v1 = vor.u32 %v1263_v42, %v1262_v20  ;;  %v1036_v17 = vsel %vm561_vm0, %v1034_v15, %v1035_v5  ;;  %v438_v49 = vmul.f32 %v1658_v27, %v418_v22  ;;  %v467_v50 = vmul.f32 %v1660_v28, %v418_v22 }
  0x80   : > { %v1069_v48 = vadd.f32 %v1034_v15, %v961_v24  ;;  %v1070_v51 = vadd.f32 %v1036_v17, %v962_v25  ;;  %v541_v38 = vmul.f32 %v1662_v29, %v418_v22  ;;  %v581_v52 = vrot.slane %v542_v23, 2  ;;  %v403_v22 = vld [vmem:[#allocation2 + $0x54] sm:$0x8] }
  0x81   : > { %v1266_v45 = vsel %vm1769_vm3, %v1492_v18, %v1265_v1  ;;  %v483_v60 = vrot.slane %v467_v50, 1  ;;  %v647_v36 = vunpack.c.h.bf16 %v402_v11  ;;  %v666_v32 = vmul.f32 %v1664_v30, %v646_v58 }
  0x82   : > { %1318 = vst [vmem:[%s1778_s14 + $0x10] sm:$0xf] %v1266_v45  ;;  %v1091_v41 = vmul.f32 %v1737_v10, %v1069_v48  ;;  %v1092_v31 = vmul.f32 %v1737_v10, %v1070_v51  ;;  %v580_v61 = vrot.slane %v541_v38, 2  ;;  %v752_v40 = vunpack.c.l.bf16 %v744_v13 }
  0x83   : > { %v505_v34 = vadd.f32 %v483_v60, %v437_v2  ;;  %v506_v62 = vadd.f32 %v483_v60, %v438_v49  ;;  %v667_v44 = vmul.f32 %v1664_v30, %v647_v36  ;;  %v696_v63 = vmul.f32 %v1691_v54, %v647_v36 }
  0x84   : > { %v1113_v3 = vadd.f32 %v1743_v53, %v1091_v41  ;;  %v1114_v6 = vadd.f32 %v1743_v53, %v1092_v31  ;;  %v582_v35 = vsel %vm561_vm0, %v580_v61, %v581_v52  ;;  %v770_v4 = vmul.f32 %v1673_v37, %v647_v36 }
  0x85   : > { %v614_v59 = vadd.f32 %v580_v61, %v505_v34  ;;  %v615_v8 = vadd.f32 %v582_v35, %v506_v62  ;;  %v712_v7 = vrot.slane %v696_v63, 1  ;;  %v771_v9 = vmul.f32 %v1673_v37, %v752_v40  ;;  %v633_v35 = vld [vmem:[#allocation2 + $0x64] ss:$12 sps:$4 sm:$0xff]  }
  0x86   : > { %v1129_v11 = vmax.f32 %v1113_v3, 0.0  ;;  %v1130_v33 = vmax.f32 %v1114_v6, 0.0  ;;  %v808_v42 = vrot.slane %v770_v4, 2  ;;  %v875_v14 = vunpack.c.l.bf16 %v859_v0 }
  0x87   : > { %v682_v15 = vadd.f32 %v666_v32, %v614_v59  ;;  %v683_v16 = vadd.f32 %v667_v44, %v615_v8  ;;  %v809_v18 = vrot.slane %v771_v9, 2  ;;  %v876_v12 = vunpack.c.h.bf16 %v860_v56  ;;  %v632_v44 = vld [vmem:[#allocation2 + $0x60] sm:$0x8] }
  0x88   : > { %v1145_v19 = vmin.f32 %v1129_v11, 6.0  ;;  %v1146_v55 = vmin.f32 %v1130_v33, 6.0  ;;  %v895_v20 = vmul.f32 %v1682_v43, %v875_v14  ;;  %v981_v5 = vunpack.c.l.bf16 %v973_v21 }
  0x89   : > { %v734_v23 = vadd.f32 %v712_v7, %v682_v15  ;;  %v735_v24 = vadd.f32 %v712_v7, %v683_v16  ;;  %v810_v25 = vsel %vm561_vm0, %v808_v42, %v809_v18  ;;  %v896_v2 = vmul.f32 %v1682_v43, %v876_v12  ;;  %v745_v7 = vld [vmem:[#allocation2 + $0x68] sm:$0x1] }
  0x8a   : > { %v1510_v58 = vpack.c.bf16 %v1145_v19, %v1145_v19  ;;  %v1511_v1 = vpack.c.bf16 %v1146_v55, %v1146_v55  ;;  %v925_v17 = vmul.f32 %v1693_v57, %v876_v12  ;;  %v999_v49 = vmul.f32 %v1687_v47, %v876_v12 }
  0x8b   : > { %v842_v50 = vadd.f32 %v808_v42, %v734_v23  ;;  %v843_v13 = vadd.f32 %v810_v25, %v735_v24  ;;  %v1000_v48 = vmul.f32 %v1687_v47, %v981_v5  ;;  %v419_v51 = vunpack.c.l.bf16 %v403_v22 }
  0x8c   : > { %v1268_v38 = vshrl.u32 %v1510_v58, 16  ;;  %v1273_v52 = vshrl.u32 %v1511_v1, 16  ;;  %v1276_v45 = vshll.u32 %v1511_v1, 16  ;;  %v941_v60 = vrot.slane %v925_v17, 1  ;;  %v974_v1 = vld [vmem:[#allocation2 + $0x74] sm:$0x1] }
  0x8d   : > { %v911_v36 = vadd.f32 %v895_v20, %v842_v50  ;;  %v912_v32 = vadd.f32 %v896_v2, %v843_v13  ;;  %v1037_v41 = vrot.slane %v999_v49, 2  ;;  %v1038_v31 = vrot.slane %v1000_v48, 2 }
  0x8e   : > { %v1493_v61 = vrot.slane %v1268_v38, 11  ;;  %v1275_v40 = vrot.slane %v1273_v52, 7  ;;  %v420_v34 = vunpack.c.l.bf16 %v860_v56  ;;  %v439_v62 = vmul.f32 %v1658_v27, %v419_v51 }
  0x8f   : > { %v963_v63 = vadd.f32 %v941_v60, %v911_v36  ;;  %v964_v0 = vadd.f32 %v941_v60, %v912_v32  ;;  %v1039_v3 = vsel %vm561_vm0, %v1037_v41, %v1038_v31  ;;  %v544_v6 = vmul.f32 %v1662_v29, %v524_v46 }
  0x90   : > { %v1278_v4 = vor.u32 %v1276_v45, %v1275_v40  ;;  %v440_v59 = vmul.f32 %v1658_v27, %v420_v34  ;;  %v468_v8 = vmul.f32 %v1660_v28, %v420_v34  ;;  %v543_v56 = vmul.f32 %v1662_v29, %v420_v34  ;;  %v861_v29 = vld [vmem:[#allocation2 + $0x6c] sm:$0x8] }
  0x91   : > { %v1071_v9 = vadd.f32 %v1037_v41, %v963_v63  ;;  %v1072_v21 = vadd.f32 %v1039_v3, %v964_v0  ;;  %v584_v11 = vrot.slane %v544_v6, 2  ;;  %v648_v33 = vunpack.c.l.bf16 %v632_v44 }
  0x92   : > { %v1279_v42 = vsel %vm1769_vm3, %v1493_v61, %v1278_v4  ;;  %v484_v39 = vrot.slane %v468_v8, 1  ;;  %v583_v14 = vrot.slane %v543_v56, 2  ;;  %v649_v15 = vunpack.c.l.bf16 %v633_v35 }
  0x93   : > { %1319 = vst [vmem:[%s1778_s14 + $0x14] sm:$0xf] %v1279_v42  ;;  %v1093_v46 = vmul.f32 %v1737_v10, %v1071_v9  ;;  %v1094_v27 = vmul.f32 %v1737_v10, %v1072_v21  ;;  %v668_v28 = vmul.f32 %v1664_v30, %v648_v33  ;;  %v753_v16 = vunpack.c.l.bf16 %v745_v7 }
  0x94   : > { %v507_v18 = vadd.f32 %v484_v39, %v439_v62  ;;  %v508_v12 = vadd.f32 %v484_v39, %v440_v59  ;;  %v585_v19 = vsel %vm561_vm0, %v583_v14, %v584_v11  ;;  %v669_v55 = vmul.f32 %v1664_v30, %v649_v15 }
  0x95   : > { %v1115_v20 = vadd.f32 %v1743_v53, %v1093_v46  ;;  %v1116_v5 = vadd.f32 %v1743_v53, %v1094_v27  ;;  %v697_v22 = vmul.f32 %v1691_v54, %v649_v15  ;;  %v772_v23 = vmul.f32 %v1673_v37, %v649_v15 }
  0x96   : > { %v616_v24 = vadd.f32 %v583_v14, %v507_v18  ;;  %v617_v25 = vadd.f32 %v585_v19, %v508_v12  ;;  %v773_v2 = vmul.f32 %v1673_v37, %v753_v16  ;;  %v877_v58 = vunpack.c.l.bf16 %v861_v29 }
  0x97   : > { %v1131_v17 = vmax.f32 %v1115_v20, 0.0  ;;  %v1132_v49 = vmax.f32 %v1116_v5, 0.0  ;;  %v713_v50 = vrot.slane %v697_v22, 1  ;;  %v811_v13 = vrot.slane %v772_v23, 2 }
  0x98   : > { %v684_v48 = vadd.f32 %v668_v28, %v616_v24  ;;  %v685_v30 = vadd.f32 %v669_v55, %v617_v25  ;;  %v812_v51 = vrot.slane %v773_v2, 2  ;;  %v878_v38 = vunpack.c.h.bf16 %v633_v35 }
  0x99   : > { %v1147_v52 = vmin.f32 %v1131_v17, 6.0  ;;  %v1148_v45 = vmin.f32 %v1132_v49, 6.0  ;;  %v982_v60 = vunpack.c.l.bf16 %v974_v1  ;;  %v897_v41 = vmul.f32 %v1682_v43, %v877_v58 }
  0x9a   : > { %v736_v54 = vadd.f32 %v713_v50, %v684_v48  ;;  %v737_v36 = vadd.f32 %v713_v50, %v685_v30  ;;  %v813_v32 = vsel %vm561_vm0, %v811_v13, %v812_v51  ;;  %v926_v61 = vmul.f32 %v1693_v57, %v878_v38 }
  0x9b   : > { %v1512_v37 = vpack.c.bf16 %v1147_v52, %v1147_v52  ;;  %v1513_v31 = vpack.c.bf16 %v1148_v45, %v1148_v45  ;;  %v1001_v40 = vmul.f32 %v1687_v47, %v878_v38  ;;  %v898_v44 = vmul.f32 %v1682_v43, %v878_v38 }
  0x9c   : > { %v844_v34 = vadd.f32 %v811_v13, %v736_v54  ;;  %v845_v62 = vadd.f32 %v813_v32, %v737_v36  ;;  %v1002_v63 = vmul.f32 %v1687_v47, %v982_v60  ;;  %v942_v6 = vrot.slane %v926_v61, 1 }
  0x9d   : > { %v1281_v0 = vshrl.u32 %v1512_v37, 16  ;;  %v1286_v3 = vshrl.u32 %v1513_v31, 16  ;;  %v1040_v59 = vrot.slane %v1001_v40, 2  ;;  %v1289_v7 = vshll.u32 %v1513_v31, 16 }
  0x9e   : > { %v913_v35 = vadd.f32 %v897_v41, %v844_v34  ;;  %v914_v4 = vadd.f32 %v898_v44, %v845_v62  ;;  %v1041_v8 = vrot.slane %v1002_v63, 2 }
  0x9f   : > { %v1288_v56 = vrot.slane %v1286_v3, 7  ;;  %v1494_v21 = vrot.slane %v1281_v0, 11 }
  0xa0   : > { %v965_v9 = vadd.f32 %v942_v6, %v913_v35  ;;  %v966_v57 = vadd.f32 %v942_v6, %v914_v4  ;;  %v1042_v33 = vsel %vm561_vm0, %v1040_v59, %v1041_v8 }
  0xa1   : > { %v1291_v11 = vor.u32 %v1289_v7, %v1288_v56 }
  0xa2   : > { %v1073_v42 = vadd.f32 %v1040_v59, %v965_v9  ;;  %v1074_v43 = vadd.f32 %v1042_v33, %v966_v57 }
  0xa3   : > { %v1292_v47 = vsel %vm1769_vm3, %v1494_v21, %v1291_v11 }
  0xa4   : > { %1320 = vst [vmem:[%s1778_s14 + $0x18] sm:$0xf] %v1292_v47  ;;  %v1095_v39 = vmul.f32 %v1737_v10, %v1073_v42  ;;  %v1096_v14 = vmul.f32 %v1737_v10, %v1074_v43 }
  0xa6   : > { %v1117_v15 = vadd.f32 %v1743_v53, %v1095_v39  ;;  %v1118_v46 = vadd.f32 %v1743_v53, %v1096_v14 }
  0xa8   : > { %v1133_v27 = vmax.f32 %v1117_v15, 0.0  ;;  %v1134_v28 = vmax.f32 %v1118_v46, 0.0 }
  0xaa   : > { %v1149_v16 = vmin.f32 %v1133_v27, 6.0  ;;  %v1150_v29 = vmin.f32 %v1134_v28, 6.0 }
  0xac   : > { %v1514_v18 = vpack.c.bf16 %v1149_v16, %v1149_v16  ;;  %v1515_v12 = vpack.c.bf16 %v1150_v29, %v1150_v29 }
  0xae   : > { %v1294_v19 = vshrl.u32 %v1514_v18, 16  ;;  %v1299_v55 = vshrl.u32 %v1515_v12, 16  ;;  %v1302_v5 = vshll.u32 %v1515_v12, 16 }
  0xb0   : > { %v1301_v20 = vrot.slane %v1299_v55, 7  ;;  %v1495_v22 = vrot.slane %v1294_v19, 11 }
  0xb2   : > { %v1304_v23 = vor.u32 %v1302_v5, %v1301_v20 }
  0xb4   : > { %v1305_v10 = vsel %vm1769_vm3, %v1495_v22, %v1304_v23 }
  0xb5   : > { %1321 = vst [vmem:[%s1778_s14 + $0x1c] sm:$0xf] %v1305_v10 }
  0xb6 PF: > { %s15_s20 = sadd.s32 1, %s1563_s20   ;;  %s1952_s18 = smov %s1559_s19 }
  0xb7   : > { %p12_p5 = scmp.ge.s32.totalorder %s15_s20, 4   ;;  %s1953_s19 = smov %s1955_s21 }
  0xb9   :  { %14 = sbr.rel (!%p12_p5) target bundleno = 2 (0x2), region = 84 }

// kernel: a_call__.28
= control target key start
LH: loop header
LB: loop body
LE: loop exit
PB: predicated region body
PF: predicated region fallthrough
CT: control target
= control target key end

     0   :  { %s793_s18 = smov 0   ;;  %s795_s19 = smov 0   ;;  %s867_s0 = inlined_call_operand.vmem [shape: bf16[2,16,128], index: 0, kind: input, shape index: {}]   ;;  %s868_s1 = inlined_call_operand.vmem [shape: bf16[128,128], index: 1, kind: input, shape index: {}]   ;;  %s869_s2 = inlined_call_operand.vmem [shape: f32[1,128], index: 2, kind: input, shape index: {}]   ;;  %s870_s3 = inlined_call_operand.vmem [shape: f32[1,128], index: 3, kind: input, shape index: {}]   ;;  %s871_s4 = inlined_call_operand.vmem [shape: f32[2,1,128], index: 4, kind: input, shape index: {}]   ;;  %s872_s5 = inlined_call_operand.vmem [shape: bf16[2,16,128], index: 5, kind: output, shape index: {}]  }
   0x1   :  { %s797_s20 = smov 0  }
   0x2 LB: > { %s34_s21 = sadd.s32 1, %s755_s19  ;;  %p641_p0 = scmp.ge.s32.totalorder %s759_s20, 1  ;;  %s759_s20 = sphi %s797_s20, %s15_s20   ;;  %s755_s19 = sphi %s795_s19, %s874_s19   ;;  %s751_s18 = sphi %s793_s18, %s873_s18  }
   0x3   : > { %p36_p1 = scmp.ge.s32.totalorder %s34_s21, 2  ;;  %p250_p2 = scmp.lt.s32.totalorder %s759_s20, 3 }
   0x5   : > { %s876_s21 = smov (%p36_p1, %s34_s21), 0  ;;  %p251_p3 = pnand %p641_p0, %p250_p2 }
   0x6   : > { %v729_v0 = vld [vmem:[%s868_s1] sm:$0xff] (!%p251_p3)   ;;  %v761_v1 = vmov (!%p251_p3), 0.0   ;;  %v730_v2 = vld [vmem:[%s868_s1 + $0x8] sm:$0xff] (!%p251_p3)   ;;  %vm762_vm0 = vmmov (!%p251_p3), 0   ;;  %p303_p4 = scmp.lt.s32.totalorder (!%p251_p3), %s751_s18, 1  ;;  %v731_v3 = vld [vmem:[%s868_s1 + $0x10] sm:$0xff] (!%p251_p3)  }
   0x7   : > { %254 = sbr.rel (%p251_p3) target bundleno = 260 (0x104), region = 40  ;;  %683 = vmatprep.subr.bf16.mxu0 (!%p251_p3), %v761_v1  ;;  %699 = vmatprep.mubr.msk.bf16.mxu0 (!%p251_p3), %vm762_vm0, %v761_v1  ;;  %v732_v4 = vld [vmem:[%s868_s1 + $0x18] sm:$0xff] (!%p251_p3)   ;;  %v733_v5 = vld [vmem:[%s868_s1 + $0x20] sm:$0xff] (!%p251_p3)   ;;  %v734_v6 = vld [vmem:[%s868_s1 + $0x28] sm:$0xff] (!%p251_p3)  }
   0x8   : > { %684 = vmatpush3.bf16.msra.mxu0 (!%p251_p3), %v729_v0  ;;  %v735_v10 = vld [vmem:[%s868_s1 + $0x30] sm:$0xff] (!%p251_p3)   ;;  %v736_v14 = vld [vmem:[%s868_s1 + $0x38] sm:$0xff] (!%p251_p3)   ;;  %v655_v16 = vld [vmem:[%s869_s2] ss:$0 sm:$0xff] (!%p251_p3) }
   0x9   : > { %685 = vmatprep.subr.bf16.mxu0 (!%p251_p3), %v761_v1  ;;  %v656_v20 = vld [vmem:[%s870_s3] ss:$0 sm:$0xff] (!%p251_p3) }
   0xc   : > { %686 = vmatpush3.bf16.msra.mxu0 (!%p251_p3), %v730_v2 }
   0xd   : > { %687 = vmatprep.subr.bf16.mxu0 (!%p251_p3), %v761_v1 }
   0xe   : > { %s878_s18 = smov (!%p303_p4, %s751_s18), 1 }
   0xf   : > { %s661_s30 = sshll.u32 %s878_s18, 3  ;;  %s324_s15 = scalar_lea.vmem %s871_s4, %s878_s18 }
  0x10   : > { %688 = vmatpush3.bf16.msra.mxu0 %v731_v3  ;;  %s310_s10 = scalar_lea.vmem %s867_s0, %s661_s30  ;;  %v646_v11 = vld [vmem:[%s324_s15] ss:$0 sm:$0xff]  ;;  %s336_s6 = scalar_lea.vmem %s872_s5, %s661_s30 }
  0x11   : > { %689 = vmatprep.subr.bf16.mxu0 %v761_v1  ;;  %v666_v7 = vld [vmem:[%s310_s10] sm:$0xff]  }
  0x12   : > { %v667_v8 = vunpack.c.l.bf16 %v666_v7  ;;  %v668_v9 = vunpack.c.h.bf16 %v666_v7 }
  0x14   : > { %690 = vmatpush3.bf16.msra.mxu0 %v732_v4  ;;  %v350_v12 = vmul.f32 %v667_v8, %v646_v11  ;;  %v351_v13 = vmul.f32 %v668_v9, %v646_v11 }
  0x15   : > { %691 = vmatprep.subr.bf16.mxu0 %v761_v1 }
  0x16   : > { %v352_v15 = vpack.c.bf16 %v351_v13, %v350_v12 }
  0x18   : > { %692 = vmatpush3.bf16.msra.mxu0 %v733_v5 }
  0x19   : > { %693 = vmatprep.subr.bf16.mxu0 %v761_v1 }
  0x1c   : > { %694 = vmatpush3.bf16.msra.mxu0 %v734_v6 }
  0x1d   : > { %695 = vmatprep.subr.bf16.mxu0 %v761_v1 }
  0x20   : > { %696 = vmatpush3.bf16.msra.mxu0 %v735_v10 }
  0x21   : > { %697 = vmatprep.subr.bf16.mxu0 %v761_v1 }
  0x24   : > { %698 = vmatpush3.bf16.msra.mxu0 %v736_v14 }
  0x27   : > { %700 = vmatmul.mubr.bf16.vlgmr.msra.gmra.mrb[0].mxu0 %v352_v15 }
  0xfa   : > { %v451_v17 = vpop.f32.mrb[0].mxu0 }
  0xfb   : > { %v465_v18 = vmul.f32 %v655_v16, %v451_v17  ;;  %v701_v19 = vpop.f32.mrb[1].mxu0 }
  0xfc   : > { %v454_v21 = vpop.f32.mrb[2].mxu0 }
  0xfd   : > { %v466_v22 = vmul.f32 %v655_v16, %v454_v21  ;;  %v702_v23 = vpop.f32.mrb[3].mxu0  ;;  %v474_v24 = vadd.f32 %v656_v20, %v465_v18 }
  0xff   : > { %v475_v25 = vadd.f32 %v656_v20, %v466_v22 }
 0x101   : > { %v672_v26 = vpack.c.bf16 %v475_v25, %v474_v24 }
 0x103   : > { %673 = vst [vmem:[%s336_s6] sm:$0xff] %v672_v26  }
 0x104 PF: > { %s15_s20 = sadd.s32 1, %s759_s20   ;;  %s873_s18 = smov %s755_s19 }
 0x105   : > { %p12_p5 = scmp.ge.s32.totalorder %s15_s20, 4   ;;  %s874_s19 = smov %s876_s21 }
 0x107   :  { %14 = sbr.rel (!%p12_p5) target bundleno = 2 (0x2), region = 82 }

// kernel: a_call__.27
= control target key start
LH: loop header
LB: loop body
LE: loop exit
PB: predicated region body
PF: predicated region fallthrough
CT: control target
= control target key end

     0   :  { %s1173_s18 = smov 0   ;;  %s1175_s19 = smov 0   ;;  %s1319_s0 = inlined_call_operand.vmem [shape: bf16[2,16,512], index: 0, kind: input, shape index: {}]   ;;  %s1320_s1 = inlined_call_operand.vmem [shape: bf16[512,128], index: 1, kind: input, shape index: {}]   ;;  %s1321_s2 = inlined_call_operand.vmem [shape: f32[1,128], index: 2, kind: input, shape index: {}]   ;;  %s1322_s3 = inlined_call_operand.vmem [shape: f32[1,128], index: 3, kind: input, shape index: {}]   ;;  %s1323_s4 = inlined_call_operand.vmem [shape: bf16[2,16,128], index: 4, kind: output, shape index: {0}]   ;;  %s1324_s5 = inlined_call_operand.vmem [shape: f32[2,1,8,128], index: 5, kind: output, shape index: {1}]  }
   0x1   :  { %s1177_s20 = smov 0  }
   0x2 LB: > { %s35_s21 = sadd.s32 1, %s1137_s19  ;;  %p956_p0 = scmp.ge.s32.totalorder %s1141_s20, 1  ;;  %s1141_s20 = sphi %s1177_s20, %s16_s20   ;;  %s1137_s19 = sphi %s1175_s19, %s1326_s19   ;;  %s1133_s18 = sphi %s1173_s18, %s1325_s18  }
   0x3   : > { %p37_p1 = scmp.ge.s32.totalorder %s35_s21, 2  ;;  %p250_p2 = scmp.lt.s32.totalorder %s1141_s20, 3 }
   0x5   : > { %s1328_s21 = smov (%p37_p1, %s35_s21), 0  ;;  %p251_p3 = pnand %p956_p0, %p250_p2 }
   0x6   : > { %v1081_v0 = vld [vmem:[%s1320_s1 + $0x40] sm:$0xff] (!%p251_p3)   ;;  %v1085_v4 = vld [vmem:[%s1320_s1 + $0x48] sm:$0xff] (!%p251_p3)   ;;  %v1089_v8 = vld [vmem:[%s1320_s1 + $0x50] sm:$0xff] (!%p251_p3)   ;;  %p311_p4 = scmp.lt.s32.totalorder (!%p251_p3), %s1133_s18, 1 }
   0x7   : > { %254 = sbr.rel (%p251_p3) target bundleno = 283 (0x11b), region = 36  ;;  %v1082_v1 = vld [vmem:[%s1320_s1 + $0xc0] sm:$0xff] (!%p251_p3)   ;;  %1013 = vmatprep.subr.bf16.mxu0 (!%p251_p3), %v1081_v0  ;;  %v1086_v5 = vld [vmem:[%s1320_s1 + $0xc8] sm:$0xff] (!%p251_p3)   ;;  %v1090_v9 = vld [vmem:[%s1320_s1 + $0xd0] sm:$0xff] (!%p251_p3)  }
   0x8   : > { %v1083_v2 = vld [vmem:[%s1320_s1] sm:$0xff] (!%p251_p3)   ;;  %1035 = vmatprep.subr.bf16.mxu1 (!%p251_p3), %v1082_v1  ;;  %v1087_v6 = vld [vmem:[%s1320_s1 + $0x8] sm:$0xff] (!%p251_p3)   ;;  %v1091_v10 = vld [vmem:[%s1320_s1 + $0x10] sm:$0xff] (!%p251_p3)  }
   0x9   : > { %v1084_v3 = vld [vmem:[%s1320_s1 + $0x80] sm:$0xff] (!%p251_p3)   ;;  %1014 = vmatpush3.bf16.msra.mxu0 (!%p251_p3), %v1083_v2  ;;  %v1088_v7 = vld [vmem:[%s1320_s1 + $0x88] sm:$0xff] (!%p251_p3)   ;;  %v1092_v11 = vld [vmem:[%s1320_s1 + $0x90] sm:$0xff] (!%p251_p3)  }
   0xa   : > { %1036 = vmatpush3.bf16.msra.mxu1 (!%p251_p3), %v1084_v3  ;;  %1015 = vmatprep.subr.bf16.mxu0 (!%p251_p3), %v1085_v4  ;;  %v1093_v12 = vld [vmem:[%s1320_s1 + $0x58] sm:$0xff] (!%p251_p3)   ;;  %v1097_v16 = vld [vmem:[%s1320_s1 + $0x60] sm:$0xff] (!%p251_p3)   ;;  %v1101_v20 = vld [vmem:[%s1320_s1 + $0x68] sm:$0xff] (!%p251_p3)  }
   0xb   : > { %1037 = vmatprep.subr.bf16.mxu1 (!%p251_p3), %v1086_v5  ;;  %v1094_v13 = vld [vmem:[%s1320_s1 + $0xd8] sm:$0xff] (!%p251_p3)   ;;  %v1098_v17 = vld [vmem:[%s1320_s1 + $0xe0] sm:$0xff] (!%p251_p3)   ;;  %v1102_v21 = vld [vmem:[%s1320_s1 + $0xe8] sm:$0xff] (!%p251_p3)  }
   0xc   : > { %v1095_v14 = vld [vmem:[%s1320_s1 + $0x18] sm:$0xff] (!%p251_p3)   ;;  %v1099_v18 = vld [vmem:[%s1320_s1 + $0x20] sm:$0xff] (!%p251_p3)   ;;  %v1103_v22 = vld [vmem:[%s1320_s1 + $0x28] sm:$0xff] (!%p251_p3)  }
   0xd   : > { %1016 = vmatpush3.bf16.msra.mxu0 (!%p251_p3), %v1087_v6  ;;  %v1096_v15 = vld [vmem:[%s1320_s1 + $0x98] sm:$0xff] (!%p251_p3)   ;;  %v1100_v19 = vld [vmem:[%s1320_s1 + $0xa0] sm:$0xff] (!%p251_p3)   ;;  %v1104_v23 = vld [vmem:[%s1320_s1 + $0xa8] sm:$0xff] (!%p251_p3)  }
   0xe   : > { %1038 = vmatpush3.bf16.msra.mxu1 %v1088_v7  ;;  %1017 = vmatprep.subr.bf16.mxu0 %v1089_v8  ;;  %s1330_s18 = smov (!%p311_p4, %s1133_s18), 1  ;;  %v1105_v24 = vld [vmem:[%s1320_s1 + $0x70] sm:$0xff]   ;;  %v1109_v28 = vld [vmem:[%s1320_s1 + $0x78] sm:$0xff]   ;;  %v998_v45 = vld [vmem:[%s1321_s2] ss:$0 sm:$0xff] }
   0xf   : > { %1039 = vmatprep.subr.bf16.mxu1 %v1090_v9  ;;  %v1106_v25 = vld [vmem:[%s1320_s1 + $0xf0] sm:$0xff]   ;;  %s1004_s9 = sshll.u32 %s1330_s18, 5  ;;  %v1110_v29 = vld [vmem:[%s1320_s1 + $0xf8] sm:$0xff]   ;;  %v999_v50 = vld [vmem:[%s1322_s3] ss:$0 sm:$0xff]  ;;  %s1005_s6 = sshll.u32 %s1330_s18, 3 }
  0x10   : > { %v1107_v26 = vld [vmem:[%s1320_s1 + $0x30] sm:$0xff]   ;;  %s319_s22 = scalar_lea.vmem %s1319_s0, %s1004_s9  ;;  %v1111_v30 = vld [vmem:[%s1320_s1 + $0x38] sm:$0xff]   ;;  %s342_s9 = scalar_lea.vmem %s1323_s4, %s1005_s6 }
  0x11   : > { %1018 = vmatpush3.bf16.msra.mxu0 %v1091_v10  ;;  %v1108_v27 = vld [vmem:[%s1320_s1 + $0xb0] sm:$0xff]   ;;  %v1112_v31 = vld [vmem:[%s1320_s1 + $0xb8] sm:$0xff]   ;;  %s353_s11 = scalar_lea.vmem %s1324_s5, %s1005_s6 }
  0x12   : > { %1040 = vmatpush3.bf16.msra.mxu1 %v1092_v11  ;;  %1019 = vmatprep.subr.bf16.mxu0 %v1093_v12  ;;  %v1113_v32 = vld [vmem:[%s319_s22] ss:$16 sps:$4 sm:$0xff]   ;;  %v1115_v33 = vld [vmem:[%s319_s22 + $0x4] ss:$16 sps:$4 sm:$0xff]   ;;  %v1116_v34 = vld [vmem:[%s319_s22 + $0x8] ss:$16 sps:$4 sm:$0xff]  }
  0x13   : > { %1041 = vmatprep.subr.bf16.mxu1 %v1094_v13  ;;  %v1118_v35 = vld [vmem:[%s319_s22 + $0xc] ss:$16 sps:$4 sm:$0xff]   ;;  %667 = vmatprep.mubr.bf16.mxu0 %v1115_v33 }
  0x14   : > { %708 = vmatprep.mubr.bf16.mxu1 %v1118_v35 }
  0x15   : > { %1020 = vmatpush3.bf16.msra.mxu0 %v1095_v14 }
  0x16   : > { %1042 = vmatpush3.bf16.msra.mxu1 %v1096_v15  ;;  %1021 = vmatprep.subr.bf16.mxu0 %v1097_v16 }
  0x17   : > { %1043 = vmatprep.subr.bf16.mxu1 %v1098_v17 }
  0x19   : > { %1022 = vmatpush3.bf16.msra.mxu0 %v1099_v18 }
  0x1a   : > { %1044 = vmatpush3.bf16.msra.mxu1 %v1100_v19  ;;  %1023 = vmatprep.subr.bf16.mxu0 %v1101_v20 }
  0x1b   : > { %1045 = vmatprep.subr.bf16.mxu1 %v1102_v21 }
  0x1d   : > { %1024 = vmatpush3.bf16.msra.mxu0 %v1103_v22 }
  0x1e   : > { %1046 = vmatpush3.bf16.msra.mxu1 %v1104_v23  ;;  %1025 = vmatprep.subr.bf16.mxu0 %v1105_v24 }
  0x1f   : > { %1047 = vmatprep.subr.bf16.mxu1 %v1106_v25 }
  0x21   : > { %1026 = vmatpush3.bf16.msra.mxu0 %v1107_v26 }
  0x22   : > { %1048 = vmatpush3.bf16.msra.mxu1 %v1108_v27  ;;  %1027 = vmatprep.subr.bf16.mxu0 %v1109_v28 }
  0x23   : > { %1049 = vmatprep.subr.bf16.mxu1 %v1110_v29 }
  0x25   : > { %1028 = vmatpush3.bf16.msra.mxu0 %v1111_v30 }
  0x26   : > { %1050 = vmatpush3.bf16.msra.mxu1 %v1112_v31 }
  0x28   : > { %668 = vmatmul.mubr.bf16.vlgmr.msra.gmra.mrb[0].mxu0 %v1113_v32 }
  0x29   : > { %709 = vmatmul.mubr.bf16.vlgmr.msra.gmra.mrb[0].mxu1 %v1116_v34 }
  0xfb   : > { %v1029_v36 = vpop.f32.mrb[0].mxu0 }
  0xfc   : > { %v1051_v37 = vpop.f32.mrb[0].mxu1  ;;  %v1030_v38 = vpop.f32.mrb[1].mxu0 }
  0xfd   : > { %v1031_v39 = vadd.f32 %v1030_v38, %v1029_v36  ;;  %v1052_v40 = vpop.f32.mrb[1].mxu1  ;;  %v1032_v41 = vpop.f32.mrb[2].mxu0 }
  0xfe   : > { %v1053_v42 = vadd.f32 %v1052_v40, %v1051_v37  ;;  %v1054_v43 = vpop.f32.mrb[2].mxu1  ;;  %v1033_v44 = vpop.f32.mrb[3].mxu0 }
  0xff   : > { %v1034_v46 = vadd.f32 %v1033_v44, %v1032_v41  ;;  %v1055_v47 = vpop.f32.mrb[3].mxu1 }
 0x100   : > { %v711_v48 = vadd.f32 %v1053_v42, %v1031_v39  ;;  %v1056_v49 = vadd.f32 %v1055_v47, %v1054_v43 }
 0x102   : > { %v724_v51 = vmul.f32 %v998_v45, %v711_v48  ;;  %v714_v52 = vadd.f32 %v1056_v49, %v1034_v46 }
 0x104   : > { %v733_v53 = vadd.f32 %v999_v50, %v724_v51  ;;  %v725_v54 = vmul.f32 %v998_v45, %v714_v52 }
 0x106   : > { %v734_v55 = vadd.f32 %v999_v50, %v725_v54  ;;  %v745_v56 = vmul.f32 %v733_v53, %v733_v53 }
 0x108   : > { %v1011_v57 = vpack.c.bf16 %v734_v55, %v733_v53  ;;  %v746_v58 = vmul.f32 %v734_v55, %v734_v55 }
 0x10a   : > { %1012 = vst [vmem:[%s342_s9] sm:$0xff] %v1011_v57   ;;  %v747_v59 = vadd.f32 %v746_v58, %v745_v56 }
 0x10c   : > { %v748_v60 = vrot.slane %v747_v59, 4 }
 0x10e   : > { %v749_v61 = vadd.f32 %v748_v60, %v747_v59 }
 0x110   : > { %v750_v62 = vrot.slane %v749_v61, 2 }
 0x112   : > { %v751_v63 = vadd.f32 %v750_v62, %v749_v61 }
 0x114   : > { %v752_v0 = vrot.slane %v751_v63, 1 }
 0x116   : > { %v753_v1 = vadd.f32 %v752_v0, %v751_v63 }
 0x118   : > { %v754_v2 = vmul.f32 0.0625, %v753_v1 }
 0x11a   : > { %755 = vst [vmem:[%s353_s11] sm:$0xff] %v754_v2 }
 0x11b PF: > { %s16_s20 = sadd.s32 1, %s1141_s20   ;;  %s1325_s18 = smov %s1137_s19 }
 0x11c   : > { %p13_p5 = scmp.ge.s32.totalorder %s16_s20, 4   ;;  %s1326_s19 = smov %s1328_s21 }
 0x11e   :  { %15 = sbr.rel (!%p13_p5) target bundleno = 2 (0x2), region = 87 }

// kernel: a_call__.29
= control target key start
LH: loop header
LB: loop body
LE: loop exit
PB: predicated region body
PF: predicated region fallthrough
CT: control target
= control target key end

     0   :  { %s804_s15 = smov 0   ;;  %s806_s16 = smov 0   ;;  %s895_s0 = inlined_call_operand.vmem [shape: bf16[2,16,128], index: 0, kind: input, shape index: {}]   ;;  %s896_s1 = inlined_call_operand.vmem [shape: bf16[128,256], index: 1, kind: input, shape index: {}]   ;;  %s897_s2 = inlined_call_operand.vmem [shape: f32[1,256], index: 2, kind: input, shape index: {}]   ;;  %s898_s3 = inlined_call_operand.vmem [shape: f32[1,256], index: 3, kind: input, shape index: {}]   ;;  %s899_s4 = inlined_call_operand.vmem [shape: bf16[2,16,256], index: 4, kind: output, shape index: {}]  }
   0x1   :  { %s808_s17 = smov 0  }
   0x2 LB: > { %s33_s18 = sadd.s32 1, %s772_s16  ;;  %p674_p0 = scmp.ge.s32.totalorder %s776_s17, 1  ;;  %s776_s17 = sphi %s808_s17, %s14_s17   ;;  %s772_s16 = sphi %s806_s16, %s901_s16   ;;  %s768_s15 = sphi %s804_s15, %s900_s15  }
   0x3   : > { %p35_p1 = scmp.ge.s32.totalorder %s33_s18, 2  ;;  %p223_p2 = scmp.lt.s32.totalorder %s776_s17, 3 }
   0x5   : > { %s903_s18 = smov (%p35_p1, %s33_s18), 0  ;;  %p224_p3 = pnand %p674_p0, %p223_p2 }
   0x6   : > { %v729_v0 = vld [vmem:[%s896_s1 + $0x4] ss:$8 sps:$4 sm:$0xff] (!%p224_p3)   ;;  %p276_p4 = scmp.lt.s32.totalorder (!%p224_p3), %s768_s15, 1  ;;  %v731_v1 = vld [vmem:[%s896_s1] ss:$8 sps:$4 sm:$0xff] (!%p224_p3)   ;;  %v778_v2 = vmov (!%p224_p3), 0   ;;  %v467_v18 = vlaneseq (!%p224_p3) }
   0x7   : > { %227 = sbr.rel (%p224_p3) target bundleno = 265 (0x109), region = 36  ;;  %454 = vmatprep.mubr.bf16.mxu0 (!%p224_p3), %v778_v2  ;;  %422 = vmatprep.subr.bf16.mxu0 (!%p224_p3), %v729_v0  ;;  %v732_v3 = vld [vmem:[%s896_s1 + $0x14] ss:$8 sps:$4 sm:$0xff] (!%p224_p3)   ;;  %v734_v4 = vld [vmem:[%s896_s1 + $0x10] ss:$8 sps:$4 sm:$0xff] (!%p224_p3)  }
   0x8   : > { %423 = vmatpush1.bf16.msra.mxu0 (!%p224_p3), %v731_v1  ;;  %v735_v5 = vld [vmem:[%s896_s1 + $0x24] ss:$8 sps:$4 sm:$0xff] (!%p224_p3)   ;;  %v737_v6 = vld [vmem:[%s896_s1 + $0x20] ss:$8 sps:$4 sm:$0xff] (!%p224_p3)   ;;  %v738_v7 = vld [vmem:[%s896_s1 + $0x34] ss:$8 sps:$4 sm:$0xff] (!%p224_p3)  }
   0x9   : > { %424 = vmatprep.subr.bf16.mxu0 (!%p224_p3), %v732_v3  ;;  %v740_v8 = vld [vmem:[%s896_s1 + $0x30] ss:$8 sps:$4 sm:$0xff] (!%p224_p3)   ;;  %v741_v9 = vld [vmem:[%s896_s1 + $0x44] ss:$8 sps:$4 sm:$0xff] (!%p224_p3)   ;;  %v743_v10 = vld [vmem:[%s896_s1 + $0x40] ss:$8 sps:$4 sm:$0xff] (!%p224_p3)  }
   0xa   : > { %v744_v11 = vld [vmem:[%s896_s1 + $0x54] ss:$8 sps:$4 sm:$0xff] (!%p224_p3)   ;;  %v746_v12 = vld [vmem:[%s896_s1 + $0x50] ss:$8 sps:$4 sm:$0xff] (!%p224_p3)   ;;  %v747_v13 = vld [vmem:[%s896_s1 + $0x64] ss:$8 sps:$4 sm:$0xff] (!%p224_p3)  }
   0xb   : > { %v749_v14 = vld [vmem:[%s896_s1 + $0x60] ss:$8 sps:$4 sm:$0xff] (!%p224_p3)   ;;  %v750_v15 = vld [vmem:[%s896_s1 + $0x74] ss:$8 sps:$4 sm:$0xff] (!%p224_p3)   ;;  %v752_v16 = vld [vmem:[%s896_s1 + $0x70] ss:$8 sps:$4 sm:$0xff] (!%p224_p3)  }
   0xc   : > { %425 = vmatpush1.bf16.msra.mxu0 (!%p224_p3), %v734_v4  ;;  %v468_v19 = vshrl.u32 (!%p224_p3), %v467_v18, 7  ;;  %v465_v21 = vld [vmem:[%s897_s2] sm:$0x3] (!%p224_p3) }
   0xd   : > { %426 = vmatprep.subr.bf16.mxu0 (!%p224_p3), %v735_v5  ;;  %v481_v23 = vld [vmem:[%s898_s3] sm:$0x3] (!%p224_p3) }
   0xe   : > { %s905_s15 = smov (!%p276_p4, %s768_s15), 1  ;;  %v469_v20 = vsub.s32 0, %v468_v19  ;;  %v473_v22 = vsub.s32 1, %v468_v19 }
   0xf   : > { %s700_s29 = sshll.u32 %s905_s15, 3 }
  0x10   : > { %s283_s10 = scalar_lea.vmem %s895_s0, %s700_s29  ;;  %427 = vmatpush1.bf16.msra.mxu0 %v737_v6  ;;  %v470_v24 = vrot.slane %v465_v21, %v469_v20  ;;  %v474_v25 = vrot.slane %v465_v21, %v473_v22  ;;  %v486_v26 = vrot.slane %v481_v23, %v469_v20  ;;  %v490_v28 = vrot.slane %v481_v23, %v473_v22 }
  0x11   : > { %428 = vmatprep.subr.bf16.mxu0 %v738_v7  ;;  %v753_v17 = vld [vmem:[%s283_s10] sm:$0xff]   ;;  %s701_s10 = sshll.u32 %s905_s15, 4 }
  0x12   : > { %s314_s14 = scalar_lea.vmem %s899_s4, %s701_s10 }
  0x14   : > { %429 = vmatpush1.bf16.msra.mxu0 %v740_v8 }
  0x15   : > { %430 = vmatprep.subr.bf16.mxu0 %v741_v9 }
  0x18   : > { %431 = vmatpush1.bf16.msra.mxu0 %v743_v10 }
  0x19   : > { %432 = vmatprep.subr.bf16.mxu0 %v744_v11 }
  0x1c   : > { %433 = vmatpush1.bf16.msra.mxu0 %v746_v12 }
  0x1d   : > { %434 = vmatprep.subr.bf16.mxu0 %v747_v13 }
  0x20   : > { %435 = vmatpush1.bf16.msra.mxu0 %v749_v14 }
  0x21   : > { %436 = vmatprep.subr.bf16.mxu0 %v750_v15 }
  0x24   : > { %437 = vmatpush1.bf16.msra.mxu0 %v752_v16 }
  0x27   : > { %455 = vmatmul.mubr.bf16.vlgmr.msra.gmra.mrb[0].mxu0 %v753_v17 }
  0xfa   : > { %v456_v27 = vpop.f32.mrb[0].mxu0 }
  0xfb   : > { %v477_v29 = vmul.f32 %v470_v24, %v456_v27  ;;  %v458_v30 = vpop.f32.mrb[1].mxu0 }
  0xfc   : > { %v478_v31 = vmul.f32 %v474_v25, %v458_v30  ;;  %v460_v32 = vpop.f32.mrb[2].mxu0 }
  0xfd   : > { %v493_v33 = vadd.f32 %v486_v26, %v477_v29  ;;  %v479_v34 = vmul.f32 %v470_v24, %v460_v32  ;;  %v462_v35 = vpop.f32.mrb[3].mxu0 }
  0xfe   : > { %v494_v36 = vadd.f32 %v490_v28, %v478_v31  ;;  %v480_v37 = vmul.f32 %v474_v25, %v462_v35 }
  0xff   : > { %v497_v38 = vmax.f32 %v493_v33, 0.0  ;;  %v495_v39 = vadd.f32 %v486_v26, %v479_v34 }
 0x100   : > { %v498_v40 = vmax.f32 %v494_v36, 0.0  ;;  %v496_v41 = vadd.f32 %v490_v28, %v480_v37 }
 0x101   : > { %v501_v42 = vmin.f32 %v497_v38, 6.0  ;;  %v499_v43 = vmax.f32 %v495_v39, 0.0 }
 0x102   : > { %v502_v44 = vmin.f32 %v498_v40, 6.0  ;;  %v500_v45 = vmax.f32 %v496_v41, 0.0 }
 0x103   : > { %v503_v46 = vmin.f32 %v499_v43, 6.0 }
 0x104   : > { %v702_v47 = vpack.c.bf16 %v502_v44, %v501_v42  ;;  %v504_v48 = vmin.f32 %v500_v45, 6.0 }
 0x106   : > { %517 = vst [vmem:[%s314_s14] sm:$0xff] %v702_v47  ;;  %v703_v49 = vpack.c.bf16 %v504_v48, %v503_v46 }
 0x108   : > { %518 = vst [vmem:[%s314_s14 + $0x8] sm:$0xff] %v703_v49 }
 0x109 PF: > { %s14_s17 = sadd.s32 1, %s776_s17   ;;  %s900_s15 = smov %s772_s16 }
 0x10a   : > { %p11_p5 = scmp.ge.s32.totalorder %s14_s17, 4   ;;  %s901_s16 = smov %s903_s18 }
 0x10c   :  { %13 = sbr.rel (!%p11_p5) target bundleno = 2 (0x2), region = 75 }

// kernel: a_call__.31
= control target key start
LH: loop header
LB: loop body
LE: loop exit
PB: predicated region body
PF: predicated region fallthrough
CT: control target
= control target key end

     0   :  { %s924_s18 = smov 0   ;;  %s926_s19 = smov 0   ;;  %s1018_s0 = inlined_call_operand.vmem [shape: bf16[2,16,256], index: 0, kind: input, shape index: {}]   ;;  %s1019_s1 = inlined_call_operand.vmem [shape: bf16[256,128], index: 1, kind: input, shape index: {}]   ;;  %s1020_s2 = inlined_call_operand.vmem [shape: f32[1,128], index: 2, kind: input, shape index: {}]   ;;  %s1021_s3 = inlined_call_operand.vmem [shape: f32[1,128], index: 3, kind: input, shape index: {}]   ;;  %s1022_s4 = inlined_call_operand.vmem [shape: bf16[2,16,128], index: 4, kind: input, shape index: {}]   ;;  %s1023_s5 = inlined_call_operand.vmem [shape: bf16[2,16,128], index: 5, kind: output, shape index: {}]  }
   0x1   :  { %s928_s20 = smov 0  }
   0x2 LB: > { %s34_s21 = sadd.s32 1, %s888_s19  ;;  %p760_p0 = scmp.ge.s32.totalorder %s892_s20, 1  ;;  %s892_s20 = sphi %s928_s20, %s15_s20   ;;  %s888_s19 = sphi %s926_s19, %s1025_s19   ;;  %s884_s18 = sphi %s924_s18, %s1024_s18  }
   0x3   : > { %p36_p1 = scmp.ge.s32.totalorder %s34_s21, 2  ;;  %p265_p2 = scmp.lt.s32.totalorder %s892_s20, 3 }
   0x5   : > { %s1027_s21 = smov (%p36_p1, %s34_s21), 0  ;;  %p266_p3 = pnand %p760_p0, %p265_p2 }
   0x6   : > { %v851_v0 = vld [vmem:[%s1019_s1 + $0x40] sm:$0xff] (!%p266_p3)   ;;  %v853_v2 = vld [vmem:[%s1019_s1 + $0x48] sm:$0xff] (!%p266_p3)   ;;  %p328_p4 = scmp.lt.s32.totalorder (!%p266_p3), %s884_s18, 1  ;;  %v855_v4 = vld [vmem:[%s1019_s1 + $0x50] sm:$0xff] (!%p266_p3)  }
   0x7   : > { %269 = sbr.rel (%p266_p3) target bundleno = 265 (0x109), region = 40  ;;  %v852_v1 = vld [vmem:[%s1019_s1] sm:$0xff] (!%p266_p3)   ;;  %805 = vmatprep.subr.bf16.mxu0 (!%p266_p3), %v851_v0  ;;  %v854_v3 = vld [vmem:[%s1019_s1 + $0x8] sm:$0xff] (!%p266_p3)   ;;  %v856_v5 = vld [vmem:[%s1019_s1 + $0x10] sm:$0xff] (!%p266_p3)  }
   0x8   : > { %806 = vmatpush3.bf16.msra.mxu0 (!%p266_p3), %v852_v1  ;;  %v857_v6 = vld [vmem:[%s1019_s1 + $0x58] sm:$0xff] (!%p266_p3)   ;;  %v859_v8 = vld [vmem:[%s1019_s1 + $0x60] sm:$0xff] (!%p266_p3)   ;;  %v861_v10 = vld [vmem:[%s1019_s1 + $0x68] sm:$0xff] (!%p266_p3)  }
   0x9   : > { %807 = vmatprep.subr.bf16.mxu0 (!%p266_p3), %v853_v2  ;;  %v858_v7 = vld [vmem:[%s1019_s1 + $0x18] sm:$0xff] (!%p266_p3)   ;;  %v860_v9 = vld [vmem:[%s1019_s1 + $0x20] sm:$0xff] (!%p266_p3)   ;;  %v862_v12 = vld [vmem:[%s1019_s1 + $0x28] sm:$0xff] (!%p266_p3)  }
   0xa   : > { %v863_v13 = vld [vmem:[%s1019_s1 + $0x70] sm:$0xff] (!%p266_p3)   ;;  %v865_v15 = vld [vmem:[%s1019_s1 + $0x78] sm:$0xff] (!%p266_p3)   ;;  %v785_v21 = vld [vmem:[%s1020_s2] ss:$0 sm:$0xff] (!%p266_p3) }
   0xb   : > { %v864_v14 = vld [vmem:[%s1019_s1 + $0x30] sm:$0xff] (!%p266_p3)   ;;  %v866_v16 = vld [vmem:[%s1019_s1 + $0x38] sm:$0xff] (!%p266_p3)   ;;  %v786_v24 = vld [vmem:[%s1021_s3] ss:$0 sm:$0xff] (!%p266_p3) }
   0xc   : > { %808 = vmatpush3.bf16.msra.mxu0 (!%p266_p3), %v854_v3 }
   0xd   : > { %809 = vmatprep.subr.bf16.mxu0 (!%p266_p3), %v855_v4 }
   0xe   : > { %s1029_s18 = smov (!%p328_p4, %s884_s18), 1 }
   0xf   : > { %s791_s13 = sshll.u32 %s1029_s18, 4  ;;  %s792_s12 = sshll.u32 %s1029_s18, 3 }
  0x10   : > { %810 = vmatpush3.bf16.msra.mxu0 %v856_v5  ;;  %s336_s22 = scalar_lea.vmem %s1018_s0, %s791_s13  ;;  %s359_s15 = scalar_lea.vmem %s1022_s4, %s792_s12 }
  0x11   : > { %811 = vmatprep.subr.bf16.mxu0 %v857_v6  ;;  %v869_v11 = vld [vmem:[%s336_s22 + $0x4] ss:$8 sps:$4 sm:$0xff]   ;;  %v867_v17 = vld [vmem:[%s336_s22] ss:$8 sps:$4 sm:$0xff]   ;;  %s372_s25 = scalar_lea.vmem %s1023_s5, %s792_s12 }
  0x12   : > { %547 = vmatprep.mubr.bf16.mxu0 %v869_v11  ;;  %v797_v19 = vld [vmem:[%s359_s15] sm:$0xff]  }
  0x13   : > { %v798_v27 = vunpack.c.l.bf16 %v797_v19  ;;  %v799_v31 = vunpack.c.h.bf16 %v797_v19 }
  0x14   : > { %812 = vmatpush3.bf16.msra.mxu0 %v858_v7 }
  0x15   : > { %813 = vmatprep.subr.bf16.mxu0 %v859_v8 }
  0x18   : > { %814 = vmatpush3.bf16.msra.mxu0 %v860_v9 }
  0x19   : > { %815 = vmatprep.subr.bf16.mxu0 %v861_v10 }
  0x1c   : > { %816 = vmatpush3.bf16.msra.mxu0 %v862_v12 }
  0x1d   : > { %817 = vmatprep.subr.bf16.mxu0 %v863_v13 }
  0x20   : > { %818 = vmatpush3.bf16.msra.mxu0 %v864_v14 }
  0x21   : > { %819 = vmatprep.subr.bf16.mxu0 %v865_v15 }
  0x24   : > { %820 = vmatpush3.bf16.msra.mxu0 %v866_v16 }
  0x27   : > { %548 = vmatmul.mubr.bf16.vlgmr.msra.gmra.mrb[0].mxu0 %v867_v17 }
  0xfa   : > { %v821_v18 = vpop.f32.mrb[0].mxu0 }
  0xfb   : > { %v822_v20 = vpop.f32.mrb[1].mxu0 }
  0xfc   : > { %v823_v22 = vadd.f32 %v822_v20, %v821_v18  ;;  %v824_v23 = vpop.f32.mrb[2].mxu0 }
  0xfd   : > { %v825_v25 = vpop.f32.mrb[3].mxu0 }
  0xfe   : > { %v563_v26 = vmul.f32 %v823_v22, %v785_v21  ;;  %v826_v28 = vadd.f32 %v825_v25, %v824_v23 }
 0x100   : > { %v572_v29 = vadd.f32 %v786_v24, %v563_v26  ;;  %v564_v30 = vmul.f32 %v826_v28, %v785_v21 }
 0x102   : > { %v578_v32 = vadd.f32 %v798_v27, %v572_v29  ;;  %v573_v33 = vadd.f32 %v786_v24, %v564_v30 }
 0x104   : > { %v579_v34 = vadd.f32 %v799_v31, %v573_v33 }
 0x106   : > { %v803_v35 = vpack.c.bf16 %v579_v34, %v578_v32 }
 0x108   : > { %804 = vst [vmem:[%s372_s25] sm:$0xff] %v803_v35  }
 0x109 PF: > { %s15_s20 = sadd.s32 1, %s892_s20   ;;  %s1024_s18 = smov %s888_s19 }
 0x10a   : > { %p12_p5 = scmp.ge.s32.totalorder %s15_s20, 4   ;;  %s1025_s19 = smov %s1027_s21 }
 0x10c   :  { %14 = sbr.rel (!%p12_p5) target bundleno = 2 (0x2), region = 82 }

// kernel: a_call__.30
= control target key start
LH: loop header
LB: loop body
LE: loop exit
PB: predicated region body
PF: predicated region fallthrough
CT: control target
= control target key end

     0   :  { %s1245_s15 = smov 0   ;;  %s1247_s16 = smov 0   ;;  %s1588_s0 = inlined_call_operand.vmem [shape: bf16[2,4,4,256], index: 0, kind: input, shape index: {}]   ;;  %s1589_s1 = inlined_call_operand.vmem [shape: bf16[9,256], index: 1, kind: input, shape index: {}]   ;;  %s1590_s2 = inlined_call_operand.vmem [shape: f32[1,256], index: 2, kind: input, shape index: {}]   ;;  %s1591_s3 = inlined_call_operand.vmem [shape: f32[1,256], index: 3, kind: input, shape index: {}]   ;;  %s1592_s4 = inlined_call_operand.vmem [shape: bf16[2,4,4,256], index: 4, kind: output, shape index: {}]  }
   0x1   :  { %s1249_s17 = smov 0   ;;  %s1251_s18 = smov 0  }
   0x2   :  { %s1253_s19 = smov 0   ;;  %s1255_s20 = smov 0  }
   0x3   :  { %s1257_s21 = smov 0   ;;  %s1259_s22 = smov 0  }
   0x4   :  { %s1261_s23 = smov 0  }
   0x5 LB: > { %s1044_s24 = sadd.s32 4294967295, %s1216_s23   ;;  %s23_s25 = sadd.s32 1, %s1208_s21  ;;  %s1216_s23 = sphi %s1261_s23, %s14_s23   ;;  %s1212_s22 = sphi %s1259_s22, %s1607_s22   ;;  %s1208_s21 = sphi %s1257_s21, %s1606_s21   ;;  %s1204_s20 = sphi %s1255_s20, %s1605_s20   ;;  %s1200_s19 = sphi %s1253_s19, %s1604_s19   ;;  %s1196_s18 = sphi %s1251_s18, %s1603_s18   ;;  %s1192_s17 = sphi %s1249_s17, %s1602_s17   ;;  %s1188_s16 = sphi %s1247_s16, %s1601_s16   ;;  %s1184_s15 = sphi %s1245_s15, %s1600_s15  }
   0x6   : > { %p24_p0 = scmp.ge.s32.totalorder %s23_s25, 2  ;;  %s26_s26 = sadd.s32 1, %s1212_s22 }
   0x7   : > { %s35_s27 = sadd.s32 1, %s1196_s18  ;;  %p42_p1 = scmp.ne.s32.totalorder %s1196_s18, %s1192_s17 }
   0x8   : > { %s1609_s25 = smov (%p24_p0, %s23_s25), 0  ;;  %s1611_s26 = smov (!%p24_p0, %s26_s26), %s1212_s22 }
   0x9   : > { %s31_s28 = ssub.s32 %s1208_s21, %s1609_s25  ;;  %p43_p2 = scmp.eq.s32.totalorder %s1216_s23, 0 }
   0xa   : > { %p28_p3 = scmp.ge.s32.totalorder %s1611_s26, 2  ;;  %p59_p4 = scmp.eq.s32.totalorder %s31_s28, 0 }
   0xb   : > { %p1305_p5 = por %p43_p2, %p42_p1  ;;  %s61_s30 = sadd.s32 1, %s1188_s16 }
   0xc   : > { %s1613_s26 = smov (%p28_p3, %s1611_s26), 0  ;;  %p68_p6 = scmp.ne.s32.totalorder %s1188_s16, %s1184_s15 }
   0xd   : > { %s1313_s5 = scalar_select %p59_p4, %s1188_s16, %s61_s30  }
   0xe   : > { %s30_s6 = ssub.s32 %s1212_s22, %s1613_s26  ;;  %p152_p7 = scmp.eq.s32.totalorder %s1044_s24, 3 }
   0xf   : > { %s32_s7 = sor.u32 %s31_s28, %s30_s6  ;;  %p1319_p9 = por %p68_p6, %p43_p2 }
  0x10   : > { %p33_p8 = scmp.eq.s32.totalorder %s32_s7, 0  ;;  %p1326_p10 = por %p152_p7, %p42_p1 }
  0x11   : > { %p1047_p11 = scmp.ge.s32.totalorder %s1216_s23, 4 }
  0x12   : > { %s1331_s10 = scalar_select %p33_p8, %s1196_s18, %s35_s27  }
  0x13   : > { %174 = sbr.rel (%p1047_p11) target bundleno = 41 (0x29), region = 16 }
  0x1a   : > { %177 = sbr.rel (!%p1305_p5) target bundleno = 34 (0x22), region = 20  ;;  %s179_s11 = sand.u32 (%p1305_p5), 1, %s1196_s18  }
  0x1b   : > { %s1049_s12 = sshll.u32 (%p1305_p5), %s1212_s22, 3  ;;  %s1048_s13 = sshll.u32 (%p1305_p5), %s179_s11, 3 }
  0x1c   : > { %s183_s14 = sadd.s32 (%p1305_p5), %s1208_s21, %s1049_s12  ;;  %s181_s27 = scalar_lea.vmem (%p1305_p5), [#allocation3], %s1048_s13 }
  0x1d   : > { %s1050_s24 = sshll.u32 (%p1305_p5), %s183_s14, 1 }
  0x1e   : > { %s185_s6 = scalar_lea.vmem (%p1305_p5), %s1588_s0, %s1050_s24 }
  0x1f   : > { %v201_v0 = vld [vmem:[%s185_s6] sm:$0x3] (%p1305_p5)  ;;  %v203_v1 = vld [vmem:[%s185_s6 + $0x4] sm:$0x3] (%p1305_p5)  ;;  %v205_v2 = vld [vmem:[%s185_s6 + $0x8] sm:$0x3] (%p1305_p5) }
  0x20   : > { %202 = vst [vmem:[%s181_s27] sm:$0x3] (%p1305_p5), %v201_v0  ;;  %204 = vst [vmem:[%s181_s27 + $0x2] sm:$0x3] (%p1305_p5), %v203_v1  ;;  %v207_v3 = vld [vmem:[%s185_s6 + $0xc] sm:$0x3] (%p1305_p5) }
  0x21   : > { %206 = vst [vmem:[%s181_s27 + $0x4] sm:$0x3] %v205_v2  ;;  %208 = vst [vmem:[%s181_s27 + $0x6] sm:$0x3] %v207_v3 }
  0x22 PF: > { %239 = sbr.rel (!%p1319_p9) target bundleno = 41 (0x29), region = 61  ;;  %s241_s29 = sand.u32 (%p1319_p9), 1, %s1188_s16  }
  0x23   : > { %s1052_s7 = sshll.u32 (%p1319_p9), %s1208_s21, 2  ;;  %s1051_s11 = sshll.u32 (%p1319_p9), %s241_s29, 3 }
  0x24   : > { %s245_s24 = scalar_lea.vmem (%p1319_p9), %s1589_s1, %s1052_s7  ;;  %s243_s13 = scalar_lea.vmem (%p1319_p9), [#allocation4], %s1051_s11 }
  0x25   : > { %v261_v4 = vld [vmem:[%s245_s24] sm:$0xf] (%p1319_p9)  ;;  %v263_v5 = vld [vmem:[%s245_s24 + $0x8] sm:$0xf] (%p1319_p9) }
  0x26   : > { %262 = vst [vmem:[%s243_s13] sm:$0xf] (%p1319_p9), %v261_v4  ;;  %264 = vst [vmem:[%s243_s13 + $0x4] sm:$0xf] (%p1319_p9), %v263_v5 }
  0x29 PF: > { %p1053_p12 = scmp.ge.s32.totalorder %s1216_s23, 1  ;;  %p302_p13 = scmp.lt.s32.totalorder %s1216_s23, 5 }
  0x2b   : > { %p303_p0 = pnand %p1053_p12, %p302_p13 }
  0x2c   : > { %s309_s8 = sand.u32 (!%p303_p0), 1, %s1192_s17   ;;  %s316_s28 = sand.u32 (!%p303_p0), 1, %s1184_s15   ;;  %v406_v6 = vlaneseq (!%p303_p0)  ;;  %v1218_v7 = vmov (!%p303_p0), 0   ;;  %v1219_v14 = vmov (!%p303_p0), 1983009808  }
  0x2d   : > { %306 = sbr.rel (%p303_p0) target bundleno = 147 (0x93), region = 110  ;;  %364 = vst [vmem:[#allocation2 + $0x4] sm:$0xf] (!%p303_p0), %v1218_v7  ;;  %363 = vst [vmem:[#allocation2] sm:$0xf] (!%p303_p0), %v1218_v7  ;;  %s1353_s30 = sshll.u32 (!%p303_p0), %s309_s8, 3  ;;  %v745_v15 = vunpack.c.l.s4 (!%p303_p0), %v1219_v14 }
  0x2e   : > { %366 = vst [vmem:[#allocation2 + $0xc] sm:$0xf] (!%p303_p0), %v1218_v7  ;;  %367 = vst [vmem:[#allocation2 + $0x10] sm:$0xf] (!%p303_p0), %v1218_v7  ;;  %s1055_s6 = sshll.u32 (!%p303_p0), %s316_s28, 3  ;;  %v1355_v8 = vshrl.u32 (!%p303_p0), %v406_v6, 7 }
  0x2f   : > { %369 = vst [vmem:[#allocation2 + $0x18] sm:$0xf] (!%p303_p0), %v1218_v7  ;;  %370 = vst [vmem:[#allocation2 + $0x1c] sm:$0xf] (!%p303_p0), %v1218_v7  ;;  %s311_s15 = scalar_lea.vmem (!%p303_p0), [#allocation3], %s1353_s30  ;;  %s318_s17 = scalar_lea.vmem (!%p303_p0), [#allocation4], %s1055_s6  ;;  %v746_v35 = vunpack.c.0.s8 (!%p303_p0), %v745_v15 }
  0x30   : > { %372 = vst [vmem:[#allocation2 + $0x24] sm:$0xf] (!%p303_p0), %v1218_v7  ;;  %373 = vst [vmem:[#allocation2 + $0x28] sm:$0xf] (!%p303_p0), %v1218_v7  ;;  %v381_v9 = vld [vmem:[%s311_s15] sm:$0x3] (!%p303_p0) }
  0x31   : > { %375 = vst [vmem:[#allocation2 + $0x30] sm:$0xf] (!%p303_p0), %v1218_v7  ;;  %376 = vst [vmem:[#allocation2 + $0x34] sm:$0xf] (!%p303_p0), %v1218_v7  ;;  %v382_v10 = vld [vmem:[%s311_s15 + $0x2] sm:$0x3] (!%p303_p0)  ;;  %v1409_v61 = vsub.s32 (!%p303_p0), %v746_v35, %v1355_v8 }
  0x32   : > { %378 = vst [vmem:[#allocation2 + $0x3c] sm:$0xf] (!%p303_p0), %v1218_v7  ;;  %379 = vst [vmem:[#allocation2 + $0x40] sm:$0xf] (!%p303_p0), %v1218_v7  ;;  %v383_v11 = vld [vmem:[%s311_s15 + $0x4] sm:$0x3] (!%p303_p0) }
  0x33   : > { %386 = vst [vmem:[#allocation2 + $0x10] sm:$0x3] (!%p303_p0), %v381_v9  ;;  %387 = vst [vmem:[#allocation2 + $0x1c] sm:$0x3] (!%p303_p0), %v382_v10  ;;  %v384_v12 = vld [vmem:[%s311_s15 + $0x6] sm:$0x3] (!%p303_p0) }
  0x34   : > { %388 = vst [vmem:[#allocation2 + $0x28] sm:$0x3] %v383_v11  ;;  %v357_v13 = vld [vmem:[%s318_s17] sm:$0xf]  ;;  %389 = vst [vmem:[#allocation2 + $0x34] sm:$0x3] %v384_v12 }
  0x35   : > { %v358_v16 = vld [vmem:[%s318_s17 + $0x4] sm:$0x1]  ;;  %v1358_v17 = vunpack.c.l.bf16 %v357_v13  ;;  %v408_v18 = vsub.s32 0, %v1355_v8  ;;  %v428_v19 = vsub.s32 1, %v1355_v8  ;;  %v464_v20 = vsub.s32 2, %v1355_v8  ;;  %p350_p1 = scmp.lt.s32.totalorder %s1200_s19, 1 }
  0x36   : > { %v360_v21 = vunpack.c.l.bf16 %v358_v16  ;;  %v508_v22 = vsub.s32 3, %v1355_v8  ;;  %v528_v23 = vsub.s32 4, %v1355_v8  ;;  %v564_v24 = vsub.s32 5, %v1355_v8  ;;  %v391_v29 = vld [vmem:[#allocation2 + $0x4] sm:$0x3]  ;;  %s1510_s13 = scalar_lea.vmem [#allocation5], %s1353_s30 }
  0x37   : > { %v1367_v25 = vrot.slane %v1358_v17, %v408_v18  ;;  %v1370_v26 = vrot.slane %v1358_v17, %v428_v19  ;;  %v1373_v27 = vrot.slane %v1358_v17, %v464_v20  ;;  %v609_v28 = vsub.s32 6, %v1355_v8  ;;  %v454_v30 = vld [vmem:[#allocation2 + $0x4] sm:$0x7]  ;;  %v390_v31 = vld [vmem:[#allocation2] sm:$0x8]  ;;  %s1434_s27 = scalar_select %p350_p1, %s1200_s19, 1 }
  0x38   : > { %v1377_v32 = vrot.slane %v1358_v17, %v508_v22  ;;  %v1380_v33 = vrot.slane %v1358_v17, %v528_v23  ;;  %v1383_v34 = vrot.slane %v1358_v17, %v564_v24  ;;  %v399_v36 = vunpack.c.l.bf16 %v391_v29  ;;  %v392_v38 = vld [vmem:[#allocation2 + $0xc] sm:$0x8]  ;;  %v1385_v39 = vld [vmem:[#allocation2 + $0x18] sm:$0x8]  ;;  %v1387_v40 = vld [vmem:[#allocation2 + $0x24] sm:$0x8] }
  0x39   : > { %v458_v37 = vunpack.c.l.bf16 %v454_v30  ;;  %v398_v41 = vunpack.c.l.bf16 %v390_v31  ;;  %v1389_v42 = vrot.slane %v360_v21, %v408_v18  ;;  %v400_v43 = vunpack.c.l.bf16 %v392_v38  ;;  %v490_v46 = vld [vmem:[#allocation2 + $0xc] sm:$0x8]  ;;  %v591_v9 = vld [vmem:[#allocation2 + $0x18] sm:$0x8]  ;;  %s352_s11 = scalar_lea.vmem %s1590_s2, %s1434_s27  ;;  %s355_s24 = scalar_lea.vmem %s1591_s3, %s1434_s27 }
  0x3a   : > { %v402_v44 = vunpack.c.l.bf16 %v1385_v39  ;;  %v404_v45 = vunpack.c.l.bf16 %v1387_v40  ;;  %v1394_v47 = vrot.slane %v1358_v17, %v609_v28  ;;  %v393_v48 = vld [vmem:[#allocation2 + $0x10] sm:$0x3]  ;;  %v1396_v50 = vld [vmem:[#allocation2 + $0x1c] sm:$0x3]  ;;  %v411_v52 = vmul.f32 %v1367_v25, %v399_v36  ;;  %v492_v35 = vld [vmem:[#allocation2 + $0x18] sm:$0x8] }
  0x3b   : > { %v455_v49 = vld [vmem:[#allocation2 + $0x10] sm:$0x7]  ;;  %v410_v51 = vmul.f32 %v1367_v25, %v398_v41  ;;  %v430_v53 = vmul.f32 %v1370_v26, %v399_v36  ;;  %v466_v54 = vmul.f32 %v1373_v27, %v458_v37  ;;  %v401_v55 = vunpack.c.l.bf16 %v393_v48  ;;  %v1402_v57 = vld [vmem:[#allocation2 + $0x1c] sm:$0x7]  ;;  %v1404_v58 = vld [vmem:[#allocation2 + $0x28] sm:$0x3] }
  0x3c   : > { %v459_v56 = vunpack.c.l.bf16 %v455_v49  ;;  %v1406_v59 = vld [vmem:[#allocation2 + $0x28] sm:$0x7]  ;;  %v498_v60 = vunpack.c.l.bf16 %v490_v46  ;;  %v403_v62 = vunpack.c.l.bf16 %v1396_v50  ;;  %v460_v63 = vunpack.c.l.bf16 %v1402_v57  ;;  %v491_v2 = vld [vmem:[#allocation2 + $0x10] sm:$0x3]  ;;  %v592_v10 = vld [vmem:[#allocation2 + $0x1c] sm:$0x3] }
  0x3d   : > { %v405_v0 = vunpack.c.l.bf16 %v1404_v58  ;;  %v438_v1 = vrot.slane %v430_v53, 1  ;;  %v554_v3 = vld [vmem:[#allocation2 + $0x10] sm:$0x7]  ;;  %v474_v4 = vrot.slane %v466_v54, 2  ;;  %v499_v5 = vunpack.c.l.bf16 %v491_v2  ;;  %v655_v15 = vld [vmem:[#allocation2 + $0x1c] sm:$0x7] }
  0x3e   : > { %v510_v6 = vmul.f32 %v1377_v32, %v498_v60  ;;  %v558_v7 = vunpack.c.l.bf16 %v554_v3  ;;  %v599_v13 = vunpack.c.l.bf16 %v591_v9  ;;  %v600_v14 = vunpack.c.l.bf16 %v592_v10  ;;  %v493_v41 = vld [vmem:[#allocation2 + $0x1c] sm:$0x3]  ;;  %v594_v9 = vld [vmem:[#allocation2 + $0x28] sm:$0x3]  ;;  %s1068_s8 = sshll.u32 (%p1326_p10), %s1204_s20, 3 }
  0x3f   : > { %v446_v11 = vadd.f32 %v438_v1, %v410_v51  ;;  %v447_v12 = vadd.f32 %v438_v1, %v411_v52  ;;  %v461_v16 = vunpack.c.l.bf16 %v1406_v59  ;;  %v530_v18 = vmul.f32 %v1380_v33, %v499_v5  ;;  %v555_v60 = vld [vmem:[#allocation2 + $0x1c] sm:$0x7]  ;;  %s882_s28 = sadd.s32 (%p1326_p10), %s1200_s19, %s1068_s8 }
  0x40   : > { %v566_v19 = vmul.f32 %v1383_v34, %v558_v7  ;;  %v629_v20 = vsub.s32 7, %v1355_v8  ;;  %v511_v23 = vmul.f32 %v1377_v32, %v499_v5  ;;  %v611_v24 = vmul.f32 %v1394_v47, %v599_v13  ;;  %s1069_s30 = sshll.u32 (%p1326_p10), %s882_s28, 1 }
  0x41   : > { %v482_v21 = vadd.f32 %v474_v4, %v446_v11  ;;  %v483_v22 = vadd.f32 %v474_v4, %v447_v12  ;;  %v538_v28 = vrot.slane %v530_v18, 1  ;;  %v612_v29 = vmul.f32 %v1394_v47, %v600_v14  ;;  %v593_v4 = vld [vmem:[#allocation2 + $0x24] sm:$0x8]  ;;  %s884_s17 = scalar_lea.vmem (%p1326_p10), %s1592_s4, %s1069_s30 }
  0x42   : > { %v1424_v30 = vrot.slane %v1358_v17, %v629_v20  ;;  %v659_v31 = vunpack.c.l.bf16 %v655_v15  ;;  %v574_v8 = vrot.slane %v566_v19, 2  ;;  %v412_v38 = vmul.f32 %v1367_v25, %v400_v43 }
  0x43   : > { %v518_v36 = vadd.f32 %v510_v6, %v482_v21  ;;  %v519_v37 = vadd.f32 %v511_v23, %v483_v22  ;;  %v413_v49 = vmul.f32 %v1367_v25, %v401_v55  ;;  %v431_v51 = vmul.f32 %v1370_v26, %v401_v55  ;;  %v656_v23 = vld [vmem:[#allocation2 + $0x28] sm:$0x7] }
  0x44   : > { %v631_v46 = vmul.f32 %v1424_v30, %v600_v14  ;;  %v667_v48 = vmul.f32 %v1389_v42, %v659_v31  ;;  %v467_v53 = vmul.f32 %v1373_v27, %v459_v56  ;;  %v500_v54 = vunpack.c.l.bf16 %v492_v35 }
  0x45   : > { %v546_v17 = vadd.f32 %v538_v28, %v518_v36  ;;  %v547_v52 = vadd.f32 %v538_v28, %v519_v37  ;;  %v439_v2 = vrot.slane %v431_v51, 1  ;;  %v501_v3 = vunpack.c.l.bf16 %v493_v41  ;;  %v1450_v37 = vld [vmem:[%s352_s11] ss:$0 sm:$0xff] }
  0x46   : > { %v639_v43 = vrot.slane %v631_v46, 1  ;;  %v675_v1 = vrot.slane %v667_v48, 2  ;;  %v475_v7 = vrot.slane %v467_v53, 2  ;;  %v512_v55 = vmul.f32 %v1377_v32, %v500_v54  ;;  %v1454_v51 = vld [vmem:[%s355_s24] ss:$0 sm:$0xff] }
  0x47   : > { %v582_v5 = vadd.f32 %v574_v8, %v546_v17  ;;  %v583_v6 = vadd.f32 %v574_v8, %v547_v52  ;;  %v448_v10 = vadd.f32 %v439_v2, %v412_v38  ;;  %v449_v11 = vadd.f32 %v439_v2, %v413_v49 }
  0x48   : > { %v513_v12 = vmul.f32 %v1377_v32, %v501_v3  ;;  %v531_v56 = vmul.f32 %v1380_v33, %v501_v3  ;;  %v559_v15 = vunpack.c.l.bf16 %v555_v60  ;;  %v601_v18 = vunpack.c.l.bf16 %v593_v4  ;;  %v494_v60 = vld [vmem:[#allocation2 + $0x24] sm:$0x8] }
  0x49   : > { %v619_v13 = vadd.f32 %v611_v24, %v582_v5  ;;  %v620_v14 = vadd.f32 %v612_v29, %v583_v6  ;;  %v484_v19 = vadd.f32 %v475_v7, %v448_v10  ;;  %v485_v20 = vadd.f32 %v475_v7, %v449_v11  ;;  %v495_v6 = vld [vmem:[#allocation2 + $0x28] sm:$0x3] }
  0x4a   : > { %v539_v21 = vrot.slane %v531_v56, 1  ;;  %v602_v22 = vunpack.c.l.bf16 %v594_v9  ;;  %v567_v35 = vmul.f32 %v1383_v34, %v559_v15  ;;  %v613_v36 = vmul.f32 %v1394_v47, %v601_v18 }
  0x4b   : > { %v647_v28 = vadd.f32 %v639_v43, %v619_v13  ;;  %v648_v31 = vadd.f32 %v639_v43, %v620_v14  ;;  %v520_v24 = vadd.f32 %v512_v55, %v484_v19  ;;  %v521_v29 = vadd.f32 %v513_v12, %v485_v20  ;;  %v556_v20 = vld [vmem:[#allocation2 + $0x28] sm:$0x7] }
  0x4c   : > { %v614_v8 = vmul.f32 %v1394_v47, %v602_v22  ;;  %v632_v38 = vmul.f32 %v1424_v30, %v602_v22  ;;  %vm807_vm0 = vsmask.f32 256  ;;  %vm808_vm1 = vsmask.f32 2312 }
  0x4d   : > { %v683_v41 = vadd.f32 %v675_v1, %v647_v28  ;;  %v684_v46 = vadd.f32 %v675_v1, %v648_v31  ;;  %v575_v48 = vrot.slane %v567_v35, 2  ;;  %v660_v49 = vunpack.c.l.bf16 %v656_v23  ;;  %vm1478_vm4 = vmor %vm807_vm0, %vm808_vm1 }
  0x4e   : > { %v548_v17 = vadd.f32 %v539_v21, %v520_v24  ;;  %v549_v52 = vadd.f32 %v539_v21, %v521_v29  ;;  %v640_v53 = vrot.slane %v632_v38, 1  ;;  %v414_v54 = vmul.f32 %v1367_v25, %v402_v44  ;;  %v595_v29 = vld [vmem:[#allocation2 + $0x30] sm:$0x8] }
  0x4f   : > { %v697_v43 = vmul.f32 %v1450_v37, %v683_v41  ;;  %v698_v2 = vmul.f32 %v1450_v37, %v684_v46  ;;  %v668_v1 = vmul.f32 %v1389_v42, %v660_v49  ;;  %v415_v3 = vmul.f32 %v1367_v25, %v403_v62 }
  0x50   : > { %vm810_vm2 = vsmask.f32 4368  ;;  %v584_v4 = vadd.f32 %v575_v48, %v548_v17  ;;  %v585_v5 = vadd.f32 %v575_v48, %v549_v52  ;;  %v432_v39 = vmul.f32 %v1370_v26, %v403_v62 }
  0x51   : > { %v468_v44 = vmul.f32 %v1373_v27, %v460_v63  ;;  %v711_v7 = vadd.f32 %v1454_v51, %v697_v43  ;;  %v712_v55 = vadd.f32 %v1454_v51, %v698_v2  ;;  %v676_v9 = vrot.slane %v668_v1, 2  ;;  %v596_v2 = vld [vmem:[#allocation2 + $0x34] sm:$0x3]  ;;  %vm811_vm5 = vmor %vm1478_vm4, %vm810_vm2 }
  0x52   : > { %v502_v10 = vunpack.c.l.bf16 %v494_v60  ;;  %v621_v11 = vadd.f32 %v613_v36, %v584_v4  ;;  %v622_v12 = vadd.f32 %v614_v8, %v585_v5  ;;  %v440_v56 = vrot.slane %v432_v39, 1 }
  0x53   : > { %v476_v13 = vrot.slane %v468_v44, 2  ;;  %v719_v14 = vmax.f32 %v711_v7, 0.0  ;;  %v720_v15 = vmax.f32 %v712_v55, 0.0  ;;  %vm812_vm3 = vsmask.f32 6424 }
  0x54   : > { %v503_v50 = vunpack.c.l.bf16 %v495_v6  ;;  %v514_v62 = vmul.f32 %v1377_v32, %v502_v10  ;;  %v649_v57 = vadd.f32 %v640_v53, %v621_v11  ;;  %v650_v18 = vadd.f32 %v640_v53, %v622_v12  ;;  %vm1494_vm6 = vmor %vm811_vm5, %vm812_vm3 }
  0x55   : > { %v450_v63 = vadd.f32 %v440_v56, %v414_v54  ;;  %v451_v19 = vadd.f32 %v440_v56, %v415_v3  ;;  %v727_v21 = vmin.f32 %v719_v14, 6.0  ;;  %v728_v22 = vmin.f32 %v720_v15, 6.0  ;;  %v657_v56 = vld [vmem:[#allocation2 + $0x34] sm:$0x7] }
  0x56   : > { %v515_v23 = vmul.f32 %v1377_v32, %v503_v50  ;;  %v532_v28 = vmul.f32 %v1380_v33, %v503_v50  ;;  %v685_v31 = vadd.f32 %v676_v9, %v649_v57  ;;  %v686_v35 = vadd.f32 %v676_v9, %v650_v18 }
  0x57   : > { %v486_v36 = vadd.f32 %v476_v13, %v450_v63  ;;  %v487_v24 = vadd.f32 %v476_v13, %v451_v19  ;;  %v735_v8 = vpack.c.bf16 %v728_v22, %v727_v21  ;;  %v1059_v38 = vpack.c.bf16 %v728_v22, %v728_v22 }
  0x58   : > { %v540_v41 = vrot.slane %v532_v28, 1  ;;  %v560_v46 = vunpack.c.l.bf16 %v556_v20  ;;  %v699_v49 = vmul.f32 %v1450_v37, %v685_v31  ;;  %v700_v17 = vmul.f32 %v1450_v37, %v686_v35 }
  0x59   : > { %v522_v52 = vadd.f32 %v514_v62, %v486_v36  ;;  %v523_v53 = vadd.f32 %v515_v23, %v487_v24  ;;  %v750_v54 = vrot.slane %v735_v8, %v1409_v61  ;;  %v757_v60 = vrot.slane %v1059_v38, %v1409_v61  ;;  %v496_v24 = vld [vmem:[#allocation2 + $0x30] sm:$0x8] }
  0x5a   : > { %v568_v43 = vmul.f32 %v1383_v34, %v560_v46  ;;  %v603_v1 = vunpack.c.l.bf16 %v595_v29  ;;  %v713_v3 = vadd.f32 %v1454_v51, %v699_v49  ;;  %v714_v4 = vadd.f32 %v1454_v51, %v700_v17  ;;  %v497_v46 = vld [vmem:[#allocation2 + $0x34] sm:$0x3] }
  0x5b   : > { %v550_v5 = vadd.f32 %v540_v41, %v522_v52  ;;  %v551_v39 = vadd.f32 %v540_v41, %v523_v53  ;;  %v758_v44 = vcombine.high %v750_v54, %v750_v54  ;;  %v820_v6 = vshrl.u32 %v757_v60, 16 }
  0x5c   : > { %v823_v7 = vshll.u32 %v757_v60, 16  ;;  %v576_v55 = vrot.slane %v568_v43, 2  ;;  %v721_v9 = vmax.f32 %v713_v3, 0.0  ;;  %v722_v10 = vmax.f32 %v714_v4, 0.0 }
  0x5d   : > { %v604_v11 = vunpack.c.l.bf16 %v596_v2  ;;  %v615_v12 = vmul.f32 %v1394_v47, %v603_v1  ;;  %v815_v13 = vshrl.u32 %v758_v44, 16  ;;  %v822_v14 = vrot.slane %v820_v6, 7 }
  0x5e   : > { %v586_v15 = vadd.f32 %v576_v55, %v550_v5  ;;  %v587_v50 = vadd.f32 %v576_v55, %v551_v39  ;;  %v729_v57 = vmin.f32 %v721_v9, 6.0  ;;  %v730_v18 = vmin.f32 %v722_v10, 6.0  ;;  %v557_v39 = vld [vmem:[#allocation2 + $0x34] sm:$0x7] }
  0x5f   : > { %v616_v63 = vmul.f32 %v1394_v47, %v604_v11  ;;  %v633_v19 = vmul.f32 %v1424_v30, %v604_v11  ;;  %v1063_v20 = vrot.slane %v815_v13, 9  ;;  %v825_v21 = vor.u32 %v823_v7, %v822_v14  ;;  %v597_v7 = vld [vmem:[#allocation2 + $0x3c] sm:$0x8] }
  0x60   : > { %v623_v22 = vadd.f32 %v615_v12, %v586_v15  ;;  %v661_v23 = vunpack.c.l.bf16 %v657_v56  ;;  %v736_v28 = vpack.c.bf16 %v730_v18, %v729_v57  ;;  %v1060_v31 = vpack.c.bf16 %v730_v18, %v730_v18  ;;  %v658_v15 = vld [vmem:[#allocation2 + $0x40] sm:$0x7] }
  0x61   : > { %v624_v35 = vadd.f32 %v616_v63, %v587_v50  ;;  %v641_v36 = vrot.slane %v633_v19, 1  ;;  %v826_v29 = vsel %vm1494_vm6, %v1063_v20, %v825_v21  ;;  %v416_v38 = vmul.f32 %v1367_v25, %v404_v45 }
  0x62   : > { %v669_v8 = vmul.f32 %v1389_v42, %v661_v23  ;;  %v417_v41 = vmul.f32 %v1367_v25, %v405_v0  ;;  %870 = vst [vmem:[%s1510_s13] sm:$0x3] %v826_v29  ;;  %v766_v48 = vrot.slane %v736_v28, %v1409_v61  ;;  %v773_v49 = vrot.slane %v1060_v31, %v1409_v61 }
  0x63   : > { %v651_v17 = vadd.f32 %v641_v36, %v623_v22  ;;  %v652_v52 = vadd.f32 %v641_v36, %v624_v35  ;;  %v433_v40 = vmul.f32 %v1370_v26, %v405_v0  ;;  %v469_v25 = vmul.f32 %v1373_v27, %v461_v16 }
  0x64   : > { %v677_v53 = vrot.slane %v669_v8, 2  ;;  %v504_v45 = vunpack.c.l.bf16 %v496_v24  ;;  %v774_v54 = vcombine.high %v766_v48, %v766_v48  ;;  %v833_v60 = vshrl.u32 %v773_v49, 16 }
  0x65   : > { %v836_v43 = vshll.u32 %v773_v49, 16  ;;  %v505_v2 = vunpack.c.l.bf16 %v497_v46  ;;  %v441_v4 = vrot.slane %v433_v40, 1  ;;  %v477_v5 = vrot.slane %v469_v25, 2 }
  0x66   : > { %v687_v1 = vadd.f32 %v677_v53, %v651_v17  ;;  %v688_v3 = vadd.f32 %v677_v53, %v652_v52  ;;  %v828_v44 = vshrl.u32 %v774_v54, 16  ;;  %v835_v6 = vrot.slane %v833_v60, 7 }
  0x67   : > { %v516_v58 = vmul.f32 %v1377_v32, %v504_v45  ;;  %v517_v26 = vmul.f32 %v1377_v32, %v505_v2  ;;  %v452_v0 = vadd.f32 %v441_v4, %v416_v38  ;;  %v453_v16 = vadd.f32 %v441_v4, %v417_v41  ;;  %v598_v32 = vld [vmem:[#allocation2 + $0x40] sm:$0x3] }
  0x68   : > { %v701_v59 = vmul.f32 %v1450_v37, %v687_v1  ;;  %v702_v27 = vmul.f32 %v1450_v37, %v688_v3  ;;  %v1064_v55 = vrot.slane %v828_v44, 9  ;;  %v838_v9 = vor.u32 %v836_v43, %v835_v6 }
  0x69   : > { %v533_v10 = vmul.f32 %v1380_v33, %v505_v2  ;;  %v561_v11 = vunpack.c.l.bf16 %v557_v39  ;;  %v488_v13 = vadd.f32 %v477_v5, %v452_v0  ;;  %v489_v14 = vadd.f32 %v477_v5, %v453_v16 }
  0x6a   : > { %v715_v12 = vadd.f32 %v1454_v51, %v701_v59  ;;  %v716_v56 = vadd.f32 %v1454_v51, %v702_v27  ;;  %v839_v50 = vsel %vm1494_vm6, %v1064_v55, %v838_v9  ;;  %v605_v63 = vunpack.c.l.bf16 %v597_v7 }
  0x6b   : > { %v541_v57 = vrot.slane %v533_v10, 1  ;;  %v569_v18 = vmul.f32 %v1383_v34, %v561_v11  ;;  %871 = vst [vmem:[%s1510_s13 + $0x2] sm:$0x3] %v839_v50  ;;  %v524_v33 = vadd.f32 %v516_v58, %v488_v13  ;;  %v525_v21 = vadd.f32 %v517_v26, %v489_v14 }
  0x6c   : > { %v723_v19 = vmax.f32 %v715_v12, 0.0  ;;  %v724_v20 = vmax.f32 %v716_v56, 0.0  ;;  %v606_v23 = vunpack.c.l.bf16 %v598_v32  ;;  %v617_v28 = vmul.f32 %v1394_v47, %v605_v63 }
  0x6d   : > { %v577_v22 = vrot.slane %v569_v18, 2  ;;  %v662_v31 = vunpack.c.l.bf16 %v658_v15  ;;  %v552_v24 = vadd.f32 %v541_v57, %v524_v33  ;;  %v553_v29 = vadd.f32 %v541_v57, %v525_v21 }
  0x6e   : > { %v731_v35 = vmin.f32 %v723_v19, 6.0  ;;  %v732_v36 = vmin.f32 %v724_v20, 6.0  ;;  %v618_v8 = vmul.f32 %v1394_v47, %v606_v23  ;;  %v634_v38 = vmul.f32 %v1424_v30, %v606_v23 }
  0x6f   : > { %v670_v34 = vmul.f32 %v1389_v42, %v662_v31  ;;  %v588_v48 = vadd.f32 %v577_v22, %v552_v24  ;;  %v589_v49 = vadd.f32 %v577_v22, %v553_v29 }
  0x70   : > { %v737_v41 = vpack.c.bf16 %v732_v36, %v731_v35  ;;  %v1061_v46 = vpack.c.bf16 %v732_v36, %v732_v36  ;;  %v642_v17 = vrot.slane %v634_v38, 1 }
  0x71   : > { %v625_v40 = vadd.f32 %v617_v28, %v588_v48  ;;  %v626_v25 = vadd.f32 %v618_v8, %v589_v49  ;;  %v678_v47 = vrot.slane %v670_v34, 2 }
  0x72   : > { %v782_v52 = vrot.slane %v737_v41, %v1409_v61  ;;  %v789_v53 = vrot.slane %v1061_v46, %v1409_v61  ;;  %v902_v15 = vld [vmem:[%s1510_s13 + $0x2] sm:$0x3] (%p1326_p10) }
  0x73   : > { %v653_v60 = vadd.f32 %v642_v17, %v625_v40  ;;  %v654_v43 = vadd.f32 %v642_v17, %v626_v25  ;;  %903 = vst [vmem:[%s884_s17 + $0x4] sm:$0x3] (%p1326_p10), %v902_v15 }
  0x74   : > { %v790_v45 = vcombine.high %v782_v52, %v782_v52  ;;  %v846_v54 = vshrl.u32 %v789_v53, 16  ;;  %v849_v42 = vshll.u32 %v789_v53, 16 }
  0x75   : > { %v689_v1 = vadd.f32 %v678_v47, %v653_v60  ;;  %v690_v3 = vadd.f32 %v678_v47, %v654_v43 }
  0x76   : > { %v841_v30 = vshrl.u32 %v790_v45, 16  ;;  %v848_v2 = vrot.slane %v846_v54, 7 }
  0x77   : > { %v703_v39 = vmul.f32 %v1450_v37, %v689_v1  ;;  %v704_v44 = vmul.f32 %v1450_v37, %v690_v3 }
  0x78   : > { %v1065_v4 = vrot.slane %v841_v30, 9  ;;  %v851_v5 = vor.u32 %v849_v42, %v848_v2 }
  0x79   : > { %v717_v58 = vadd.f32 %v1454_v51, %v703_v39  ;;  %v718_v26 = vadd.f32 %v1454_v51, %v704_v44 }
  0x7a   : > { %v852_v6 = vsel %vm1494_vm6, %v1065_v4, %v851_v5 }
  0x7b   : > { %872 = vst [vmem:[%s1510_s13 + $0x4] sm:$0x3] %v852_v6  ;;  %v725_v59 = vmax.f32 %v717_v58, 0.0  ;;  %v726_v27 = vmax.f32 %v718_v26, 0.0 }
  0x7d   : > { %v733_v0 = vmin.f32 %v725_v59, 6.0  ;;  %v734_v16 = vmin.f32 %v726_v27, 6.0 }
  0x7f   : > { %v738_v7 = vpack.c.bf16 %v734_v16, %v733_v0  ;;  %v1062_v55 = vpack.c.bf16 %v734_v16, %v734_v16 }
  0x81   : > { %v798_v9 = vrot.slane %v738_v7, %v1409_v61  ;;  %v805_v10 = vrot.slane %v1062_v55, %v1409_v61  ;;  %v900_v61 = vld [vmem:[%s1510_s13] sm:$0x3] (%p1326_p10) }
  0x82   : > { %v904_v50 = vld [vmem:[%s1510_s13 + $0x4] sm:$0x3] (%p1326_p10)  ;;  %901 = vst [vmem:[%s884_s17] sm:$0x3] (%p1326_p10), %v900_v61 }
  0x83   : > { %v806_v37 = vcombine.high %v798_v9, %v798_v9  ;;  %v859_v11 = vshrl.u32 %v805_v10, 16  ;;  %v862_v13 = vshll.u32 %v805_v10, 16  ;;  %905 = vst [vmem:[%s884_s17 + $0x8] sm:$0x3] (%p1326_p10), %v904_v50 }
  0x84   : > { %880 = sbr.rel (!%p1326_p10) target bundleno = 147 (0x93), region = 122 }
  0x85   : > { %v854_v12 = vshrl.u32 %v806_v37, 16  ;;  %v861_v56 = vrot.slane %v859_v11, 7 }
  0x87   : > { %v1066_v14 = vrot.slane %v854_v12, 9  ;;  %v864_v32 = vor.u32 %v862_v13, %v861_v56 }
  0x89   : > { %v865_v51 = vsel %vm1494_vm6, %v1066_v14, %v864_v32 }
  0x8a   : > { %873 = vst [vmem:[%s1510_s13 + $0x6] sm:$0x3] %v865_v51 }
  0x91   : > { %v906_v57 = vld [vmem:[%s1510_s13 + $0x6] sm:$0x3] }
  0x92   : > { %907 = vst [vmem:[%s884_s17 + $0xc] sm:$0x3] %v906_v57 }
  0x93 PF: > { %s14_s23 = sadd.s32 1, %s1216_s23   ;;  %s1600_s15 = smov %s1188_s16 }
  0x94   : > { %p11_p2 = scmp.ge.s32.totalorder %s14_s23, 6   ;;  %s1601_s16 = smov %s1313_s5 }
  0x95   : > { %s1602_s17 = smov %s1196_s18  ;;  %s1603_s18 = smov %s1331_s10 }
  0x96   : > { %s1604_s19 = smov %s1208_s21  ;;  %s1605_s20 = smov %s1212_s22 }
  0x97   : > { %s1606_s21 = smov %s1609_s25  ;;  %s1607_s22 = smov %s1613_s26 }
  0x98   :  { %13 = sbr.rel (!%p11_p2) target bundleno = 5 (0x5), region = 210 }

// kernel: a_call__.35
= control target key start
LH: loop header
LB: loop body
LE: loop exit
PB: predicated region body
PF: predicated region fallthrough
CT: control target
= control target key end

     0   :  { %s835_s18 = smov 0   ;;  %s837_s19 = smov 0   ;;  %s933_s0 = inlined_call_operand.vmem [shape: bf16[2,4,256], index: 0, kind: input, shape index: {}]   ;;  %s934_s1 = inlined_call_operand.vmem [shape: bf16[256,128], index: 1, kind: input, shape index: {}]   ;;  %s935_s2 = inlined_call_operand.vmem [shape: f32[1,128], index: 2, kind: input, shape index: {}]   ;;  %s936_s3 = inlined_call_operand.vmem [shape: f32[1,128], index: 3, kind: input, shape index: {}]   ;;  %s937_s4 = inlined_call_operand.vmem [shape: f32[2,1,256], index: 4, kind: input, shape index: {}]   ;;  %s938_s5 = inlined_call_operand.vmem [shape: bf16[2,4,128], index: 5, kind: output, shape index: {}]  }
   0x1   :  { %s839_s20 = smov 0  }
   0x2 LB: > { %s34_s21 = sadd.s32 1, %s799_s19  ;;  %p693_p0 = scmp.ge.s32.totalorder %s803_s20, 1  ;;  %s803_s20 = sphi %s839_s20, %s15_s20   ;;  %s799_s19 = sphi %s837_s19, %s940_s19   ;;  %s795_s18 = sphi %s835_s18, %s939_s18  }
   0x3   : > { %p36_p1 = scmp.ge.s32.totalorder %s34_s21, 2  ;;  %p250_p2 = scmp.lt.s32.totalorder %s803_s20, 3 }
   0x5   : > { %s942_s21 = smov (%p36_p1, %s34_s21), 0  ;;  %p251_p3 = pnand %p693_p0, %p250_p2 }
   0x6   : > { %v765_v0 = vld [vmem:[%s934_s1 + $0x40] sm:$0xff] (!%p251_p3)   ;;  %v767_v2 = vld [vmem:[%s934_s1 + $0x48] sm:$0xff] (!%p251_p3)   ;;  %p301_p4 = scmp.lt.s32.totalorder (!%p251_p3), %s795_s18, 1  ;;  %v769_v4 = vld [vmem:[%s934_s1 + $0x50] sm:$0xff] (!%p251_p3)   ;;  %v339_v5 = vlaneseq (!%p251_p3) }
   0x7   : > { %254 = sbr.rel (%p251_p3) target bundleno = 261 (0x105), region = 40  ;;  %v766_v1 = vld [vmem:[%s934_s1] sm:$0xff] (!%p251_p3)   ;;  %719 = vmatprep.subr.bf16.mxu0 (!%p251_p3), %v765_v0  ;;  %v768_v3 = vld [vmem:[%s934_s1 + $0x8] sm:$0xff] (!%p251_p3)   ;;  %v770_v6 = vld [vmem:[%s934_s1 + $0x10] sm:$0xff] (!%p251_p3)  }
   0x8   : > { %720 = vmatpush3.bf16.msra.mxu0 (!%p251_p3), %v766_v1  ;;  %v771_v7 = vld [vmem:[%s934_s1 + $0x58] sm:$0xff] (!%p251_p3)   ;;  %v340_v8 = vshrl.u32 (!%p251_p3), %v339_v5, 7  ;;  %v773_v10 = vld [vmem:[%s934_s1 + $0x60] sm:$0xff] (!%p251_p3)   ;;  %v775_v14 = vld [vmem:[%s934_s1 + $0x68] sm:$0xff] (!%p251_p3)  }
   0x9   : > { %721 = vmatprep.subr.bf16.mxu0 (!%p251_p3), %v767_v2  ;;  %v772_v9 = vld [vmem:[%s934_s1 + $0x18] sm:$0xff] (!%p251_p3)   ;;  %v774_v13 = vld [vmem:[%s934_s1 + $0x20] sm:$0xff] (!%p251_p3)   ;;  %v776_v20 = vld [vmem:[%s934_s1 + $0x28] sm:$0xff] (!%p251_p3)  }
   0xa   : > { %v341_v11 = vsub.s32 (!%p251_p3), 0, %v340_v8  ;;  %v345_v12 = vsub.s32 (!%p251_p3), 1, %v340_v8  ;;  %v777_v22 = vld [vmem:[%s934_s1 + $0x70] sm:$0xff] (!%p251_p3)   ;;  %v779_v26 = vld [vmem:[%s934_s1 + $0x78] sm:$0xff] (!%p251_p3)   ;;  %v714_v32 = vld [vmem:[%s935_s2] ss:$0 sm:$0xff] (!%p251_p3) }
   0xb   : > { %v778_v24 = vld [vmem:[%s934_s1 + $0x30] sm:$0xff] (!%p251_p3)   ;;  %v780_v28 = vld [vmem:[%s934_s1 + $0x38] sm:$0xff] (!%p251_p3)   ;;  %v715_v35 = vld [vmem:[%s936_s3] ss:$0 sm:$0xff] (!%p251_p3) }
   0xc   : > { %722 = vmatpush3.bf16.msra.mxu0 (!%p251_p3), %v768_v3 }
   0xd   : > { %723 = vmatprep.subr.bf16.mxu0 (!%p251_p3), %v769_v4 }
   0xe   : > { %s944_s18 = smov (!%p301_p4, %s795_s18), 1 }
   0xf   : > { %s718_s11 = sshll.u32 %s944_s18, 2  ;;  %s696_s12 = sshll.u32 %s944_s18, 1 }
  0x10   : > { %724 = vmatpush3.bf16.msra.mxu0 %v770_v6  ;;  %s309_s23 = scalar_lea.vmem %s933_s0, %s718_s11  ;;  %s323_s26 = scalar_lea.vmem %s937_s4, %s696_s12 }
  0x11   : > { %725 = vmatprep.subr.bf16.mxu0 %v771_v7  ;;  %v335_v15 = vld [vmem:[%s309_s23] sm:$0xf]  ;;  %s333_s27 = scalar_lea.vmem %s938_s5, %s696_s12 }
  0x12   : > { %v337_v16 = vld [vmem:[%s323_s26] sm:$0x3]  ;;  %v336_v17 = vunpack.c.l.bf16 %v335_v15 }
  0x13   : > { %v342_v18 = vrot.slane %v337_v16, %v341_v11  ;;  %v346_v19 = vrot.slane %v337_v16, %v345_v12 }
  0x14   : > { %726 = vmatpush3.bf16.msra.mxu0 %v772_v9 }
  0x15   : > { %727 = vmatprep.subr.bf16.mxu0 %v773_v10  ;;  %v347_v21 = vcombine.low %v342_v18, %v346_v19 }
  0x17   : > { %v349_v23 = vmul.f32 %v347_v21, %v336_v17 }
  0x18   : > { %728 = vmatpush3.bf16.msra.mxu0 %v774_v13 }
  0x19   : > { %729 = vmatprep.subr.bf16.mxu0 %v775_v14  ;;  %v351_v25 = vcombine.high %v349_v23, %v349_v23  ;;  %v353_v29 = vpack.c.bf16 %v349_v23, %v349_v23 }
  0x1b   : > { %v354_v27 = vpack.c.bf16 %v351_v25, %v351_v25 }
  0x1c   : > { %730 = vmatpush3.bf16.msra.mxu0 %v776_v20 }
  0x1d   : > { %731 = vmatprep.subr.bf16.mxu0 %v777_v22  ;;  %515 = vmatprep.mubr.bf16.mxu0 %v354_v27 }
  0x20   : > { %732 = vmatpush3.bf16.msra.mxu0 %v778_v24 }
  0x21   : > { %733 = vmatprep.subr.bf16.mxu0 %v779_v26 }
  0x24   : > { %734 = vmatpush3.bf16.msra.mxu0 %v780_v28 }
  0x27   : > { %516 = vmatmul.mubr.bf16.vlgmr.msra.gmra.mrb[0].mxu0 %v353_v29 }
  0xfa   : > { %v735_v30 = vpop.f32.mrb[0].mxu0 }
  0xfb   : > { %v736_v31 = vpop.f32.mrb[1].mxu0 }
  0xfc   : > { %v737_v33 = vadd.f32 %v736_v31, %v735_v30  ;;  %v738_v34 = vpop.f32.mrb[2].mxu0 }
  0xfd   : > { %v739_v36 = vpop.f32.mrb[3].mxu0 }
  0xfe   : > { %v530_v37 = vmul.f32 %v737_v33, %v714_v32 }
 0x100   : > { %v538_v38 = vadd.f32 %v715_v35, %v530_v37 }
 0x102   : > { %v539_v39 = vpack.c.bf16 %v538_v38, %v538_v38 }
 0x104   : > { %540 = vst [vmem:[%s333_s27] sm:$0x3] %v539_v39 }
 0x105 PF: > { %s15_s20 = sadd.s32 1, %s803_s20   ;;  %s939_s18 = smov %s799_s19 }
 0x106   : > { %p12_p5 = scmp.ge.s32.totalorder %s15_s20, 4   ;;  %s940_s19 = smov %s942_s21 }
 0x108   :  { %14 = sbr.rel (!%p12_p5) target bundleno = 2 (0x2), region = 82 }

// kernel: a_call__.36
= control target key start
LH: loop header
LB: loop body
LE: loop exit
PB: predicated region body
PF: predicated region fallthrough
CT: control target
= control target key end

     0   :  { %s764_s15 = smov 0   ;;  %s766_s16 = smov 0   ;;  %s859_s0 = inlined_call_operand.vmem [shape: bf16[2,4,128], index: 0, kind: input, shape index: {}]   ;;  %s860_s1 = inlined_call_operand.vmem [shape: bf16[128,256], index: 1, kind: input, shape index: {}]   ;;  %s861_s2 = inlined_call_operand.vmem [shape: f32[1,256], index: 2, kind: input, shape index: {}]   ;;  %s862_s3 = inlined_call_operand.vmem [shape: f32[1,256], index: 3, kind: input, shape index: {}]   ;;  %s863_s4 = inlined_call_operand.vmem [shape: bf16[2,4,256], index: 4, kind: output, shape index: {}]  }
   0x1   :  { %s768_s17 = smov 0  }
   0x2 LB: > { %s33_s18 = sadd.s32 1, %s732_s16  ;;  %p640_p0 = scmp.ge.s32.totalorder %s736_s17, 1  ;;  %s736_s17 = sphi %s768_s17, %s14_s17   ;;  %s732_s16 = sphi %s766_s16, %s865_s16   ;;  %s728_s15 = sphi %s764_s15, %s864_s15  }
   0x3   : > { %p35_p1 = scmp.ge.s32.totalorder %s33_s18, 2  ;;  %p220_p2 = scmp.lt.s32.totalorder %s736_s17, 3 }
   0x5   : > { %s867_s18 = smov (%p35_p1, %s33_s18), 0  ;;  %p221_p3 = pnand %p640_p0, %p220_p2 }
   0x6   : > { %v690_v0 = vld [vmem:[%s860_s1 + $0x4] ss:$8 sps:$4 sm:$0xff] (!%p221_p3)   ;;  %v692_v1 = vld [vmem:[%s860_s1] ss:$8 sps:$4 sm:$0xff] (!%p221_p3)   ;;  %v738_v2 = vmov (!%p221_p3), 0   ;;  %p269_p4 = scmp.lt.s32.totalorder (!%p221_p3), %s728_s15, 1  ;;  %v447_v18 = vlaneseq (!%p221_p3) }
   0x7   : > { %224 = sbr.rel (%p221_p3) target bundleno = 263 (0x107), region = 36  ;;  %436 = vmatprep.mubr.bf16.mxu0 (!%p221_p3), %v738_v2  ;;  %404 = vmatprep.subr.bf16.mxu0 (!%p221_p3), %v690_v0  ;;  %v693_v3 = vld [vmem:[%s860_s1 + $0x14] ss:$8 sps:$4 sm:$0xff] (!%p221_p3)   ;;  %v695_v4 = vld [vmem:[%s860_s1 + $0x10] ss:$8 sps:$4 sm:$0xff] (!%p221_p3)  }
   0x8   : > { %405 = vmatpush1.bf16.msra.mxu0 (!%p221_p3), %v692_v1  ;;  %v696_v5 = vld [vmem:[%s860_s1 + $0x24] ss:$8 sps:$4 sm:$0xff] (!%p221_p3)   ;;  %v698_v6 = vld [vmem:[%s860_s1 + $0x20] ss:$8 sps:$4 sm:$0xff] (!%p221_p3)   ;;  %v699_v7 = vld [vmem:[%s860_s1 + $0x34] ss:$8 sps:$4 sm:$0xff] (!%p221_p3)  }
   0x9   : > { %406 = vmatprep.subr.bf16.mxu0 (!%p221_p3), %v693_v3  ;;  %v701_v8 = vld [vmem:[%s860_s1 + $0x30] ss:$8 sps:$4 sm:$0xff] (!%p221_p3)   ;;  %v702_v9 = vld [vmem:[%s860_s1 + $0x44] ss:$8 sps:$4 sm:$0xff] (!%p221_p3)   ;;  %v704_v10 = vld [vmem:[%s860_s1 + $0x40] ss:$8 sps:$4 sm:$0xff] (!%p221_p3)  }
   0xa   : > { %v705_v11 = vld [vmem:[%s860_s1 + $0x54] ss:$8 sps:$4 sm:$0xff] (!%p221_p3)   ;;  %v707_v12 = vld [vmem:[%s860_s1 + $0x50] ss:$8 sps:$4 sm:$0xff] (!%p221_p3)   ;;  %v708_v13 = vld [vmem:[%s860_s1 + $0x64] ss:$8 sps:$4 sm:$0xff] (!%p221_p3)  }
   0xb   : > { %v710_v14 = vld [vmem:[%s860_s1 + $0x60] ss:$8 sps:$4 sm:$0xff] (!%p221_p3)   ;;  %v711_v15 = vld [vmem:[%s860_s1 + $0x74] ss:$8 sps:$4 sm:$0xff] (!%p221_p3)   ;;  %v713_v16 = vld [vmem:[%s860_s1 + $0x70] ss:$8 sps:$4 sm:$0xff] (!%p221_p3)  }
   0xc   : > { %407 = vmatpush1.bf16.msra.mxu0 (!%p221_p3), %v695_v4  ;;  %v448_v19 = vshrl.u32 (!%p221_p3), %v447_v18, 7  ;;  %v445_v21 = vld [vmem:[%s861_s2] sm:$0x3] (!%p221_p3) }
   0xd   : > { %408 = vmatprep.subr.bf16.mxu0 (!%p221_p3), %v696_v5  ;;  %v459_v23 = vld [vmem:[%s862_s3] sm:$0x3] (!%p221_p3) }
   0xe   : > { %s869_s15 = smov (!%p269_p4, %s728_s15), 1  ;;  %v449_v20 = vsub.s32 0, %v448_v19  ;;  %v453_v22 = vsub.s32 1, %v448_v19 }
   0xf   : > { %s641_s27 = sshll.u32 %s869_s15, 1  ;;  %s664_s11 = sshll.u32 %s869_s15, 2 }
  0x10   : > { %409 = vmatpush1.bf16.msra.mxu0 %v698_v6  ;;  %s275_s6 = scalar_lea.vmem %s859_s0, %s641_s27  ;;  %v450_v24 = vrot.slane %v445_v21, %v449_v20  ;;  %v454_v25 = vrot.slane %v445_v21, %v453_v22  ;;  %v464_v26 = vrot.slane %v459_v23, %v449_v20  ;;  %v468_v28 = vrot.slane %v459_v23, %v453_v22  ;;  %s304_s14 = scalar_lea.vmem %s863_s4, %s664_s11 }
  0x11   : > { %410 = vmatprep.subr.bf16.mxu0 %v699_v7  ;;  %v307_v17 = vld [vmem:[%s275_s6] sm:$0x3] }
  0x14   : > { %411 = vmatpush1.bf16.msra.mxu0 %v701_v8 }
  0x15   : > { %412 = vmatprep.subr.bf16.mxu0 %v702_v9 }
  0x18   : > { %413 = vmatpush1.bf16.msra.mxu0 %v704_v10 }
  0x19   : > { %414 = vmatprep.subr.bf16.mxu0 %v705_v11 }
  0x1c   : > { %415 = vmatpush1.bf16.msra.mxu0 %v707_v12 }
  0x1d   : > { %416 = vmatprep.subr.bf16.mxu0 %v708_v13 }
  0x20   : > { %417 = vmatpush1.bf16.msra.mxu0 %v710_v14 }
  0x21   : > { %418 = vmatprep.subr.bf16.mxu0 %v711_v15 }
  0x24   : > { %419 = vmatpush1.bf16.msra.mxu0 %v713_v16 }
  0x27   : > { %437 = vmatmul.mubr.bf16.vlgmr.msra.gmra.mrb[0].mxu0 %v307_v17 }
  0xfa   : > { %v438_v27 = vpop.f32.mrb[0].mxu0 }
  0xfb   : > { %v457_v29 = vmul.f32 %v450_v24, %v438_v27  ;;  %v440_v30 = vpop.f32.mrb[1].mxu0 }
  0xfc   : > { %v458_v31 = vmul.f32 %v454_v25, %v440_v30  ;;  %v442_v32 = vpop.f32.mrb[2].mxu0 }
  0xfd   : > { %v471_v33 = vadd.f32 %v464_v26, %v457_v29  ;;  %v443_v34 = vpop.f32.mrb[3].mxu0 }
  0xfe   : > { %v472_v35 = vadd.f32 %v468_v28, %v458_v31 }
  0xff   : > { %v473_v36 = vmax.f32 %v471_v33, 0.0 }
 0x100   : > { %v474_v37 = vmax.f32 %v472_v35, 0.0 }
 0x101   : > { %v475_v38 = vmin.f32 %v473_v36, 6.0 }
 0x102   : > { %v476_v39 = vmin.f32 %v474_v37, 6.0 }
 0x104   : > { %v660_v40 = vpack.c.bf16 %v476_v39, %v475_v38 }
 0x106   : > { %661 = vst.sshfl [vmem:[%s304_s14] sm:$0x33 pattern:$0x76325410] %v660_v40 }
 0x107 PF: > { %s14_s17 = sadd.s32 1, %s736_s17   ;;  %s864_s15 = smov %s732_s16 }
 0x108   : > { %p11_p5 = scmp.ge.s32.totalorder %s14_s17, 4   ;;  %s865_s16 = smov %s867_s18 }
 0x10a   :  { %13 = sbr.rel (!%p11_p5) target bundleno = 2 (0x2), region = 75 }

// kernel: a_call__.37
= control target key start
LH: loop header
LB: loop body
LE: loop exit
PB: predicated region body
PF: predicated region fallthrough
CT: control target
= control target key end

     0   :  { %s1009_s15 = smov 0   ;;  %s1011_s16 = smov 0   ;;  %s1235_s0 = inlined_call_operand.vmem [shape: bf16[2,2,2,256], index: 0, kind: input, shape index: {}]   ;;  %s1236_s1 = inlined_call_operand.vmem [shape: bf16[9,256], index: 1, kind: input, shape index: {}]   ;;  %s1237_s2 = inlined_call_operand.vmem [shape: f32[1,256], index: 2, kind: input, shape index: {}]   ;;  %s1238_s3 = inlined_call_operand.vmem [shape: f32[1,256], index: 3, kind: input, shape index: {}]   ;;  %s1239_s4 = inlined_call_operand.vmem [shape: bf16[2,2,2,256], index: 4, kind: output, shape index: {}]  }
   0x1   :  { %s1013_s17 = smov 0   ;;  %s1015_s18 = smov 0  }
   0x2   :  { %s1017_s19 = smov 0   ;;  %s1019_s20 = smov 0  }
   0x3   :  { %s1021_s21 = smov 0   ;;  %s1023_s22 = smov 0  }
   0x4   :  { %s1025_s23 = smov 0  }
   0x5 LB: > { %s814_s24 = sadd.s32 4294967295, %s980_s23   ;;  %s23_s25 = sadd.s32 1, %s972_s21  ;;  %s980_s23 = sphi %s1025_s23, %s14_s23   ;;  %s976_s22 = sphi %s1023_s22, %s1255_s22   ;;  %s972_s21 = sphi %s1021_s21, %s1254_s21   ;;  %s968_s20 = sphi %s1019_s20, %s1253_s20   ;;  %s964_s19 = sphi %s1017_s19, %s1252_s19   ;;  %s960_s18 = sphi %s1015_s18, %s1251_s18   ;;  %s956_s17 = sphi %s1013_s17, %s1250_s17   ;;  %s952_s16 = sphi %s1011_s16, %s1249_s16   ;;  %s948_s15 = sphi %s1009_s15, %s1248_s15  }
   0x6   : > { %p24_p0 = scmp.ge.s32.totalorder %s23_s25, 2  ;;  %s26_s26 = sadd.s32 1, %s976_s22 }
   0x7   : > { %s35_s27 = sadd.s32 1, %s960_s18  ;;  %p42_p1 = scmp.ne.s32.totalorder %s960_s18, %s956_s17 }
   0x8   : > { %s1257_s25 = smov (%p24_p0, %s23_s25), 0  ;;  %s1259_s26 = smov (!%p24_p0, %s26_s26), %s976_s22 }
   0x9   : > { %s31_s28 = ssub.s32 %s972_s21, %s1257_s25  ;;  %p43_p2 = scmp.eq.s32.totalorder %s980_s23, 0 }
   0xa   : > { %p28_p3 = scmp.ge.s32.totalorder %s1259_s26, 2  ;;  %p59_p4 = scmp.eq.s32.totalorder %s31_s28, 0 }
   0xb   : > { %p1069_p5 = por %p43_p2, %p42_p1  ;;  %s61_s30 = sadd.s32 1, %s952_s16 }
   0xc   : > { %s1261_s26 = smov (%p28_p3, %s1259_s26), 0  ;;  %p68_p6 = scmp.ne.s32.totalorder %s952_s16, %s948_s15 }
   0xd   : > { %1242 = sst [smem:[#allocation6_spill]] %s1261_s26  ;;  %s30_s6 = ssub.s32 %s976_s22, %s1261_s26 }
   0xe   : > { %s1077_s5 = scalar_select %p59_p4, %s952_s16, %s61_s30  }
   0xf   : > { %s32_s7 = sor.u32 %s31_s28, %s30_s6  ;;  %p152_p7 = scmp.eq.s32.totalorder %s814_s24, 3 }
  0x10   : > { %p33_p8 = scmp.eq.s32.totalorder %s32_s7, 0  ;;  %p1083_p9 = por %p68_p6, %p43_p2 }
  0x11   : > { %p1090_p10 = por %p152_p7, %p42_p1  ;;  %p817_p11 = scmp.ge.s32.totalorder %s980_s23, 4 }
  0x12   : > { %s1095_s10 = scalar_select %p33_p8, %s960_s18, %s35_s27  }
  0x13   : > { %174 = sbr.rel (%p817_p11) target bundleno = 40 (0x28), region = 16 }
  0x1a   : > { %177 = sbr.rel (!%p1069_p5) target bundleno = 33 (0x21), region = 20  ;;  %s179_s11 = sand.u32 (%p1069_p5), 1, %s960_s18  }
  0x1b   : > { %s819_s12 = sshll.u32 (%p1069_p5), %s976_s22, 2  ;;  %s818_s13 = sshll.u32 (%p1069_p5), %s179_s11, 1 }
  0x1c   : > { %s183_s14 = sadd.s32 (%p1069_p5), %s972_s21, %s819_s12  ;;  %s181_s27 = scalar_lea.vmem (%p1069_p5), [#allocation3], %s818_s13 }
  0x1d   : > { %s184_s30 = scalar_lea.vmem (%p1069_p5), %s1235_s0, %s183_s14 }
  0x1e   : > { %v200_v0 = vld [vmem:[%s184_s30] sm:$0x1] (%p1069_p5)  ;;  %v202_v1 = vld [vmem:[%s184_s30 + $0x2] sm:$0x1] (%p1069_p5) }
  0x1f   : > { %201 = vst [vmem:[%s181_s27] sm:$0x1] (%p1069_p5), %v200_v0  ;;  %203 = vst [vmem:[%s181_s27 + $0x1] sm:$0x1] (%p1069_p5), %v202_v1 }
  0x21 PF: > { %222 = sbr.rel (!%p1083_p9) target bundleno = 40 (0x28), region = 54  ;;  %s224_s29 = sand.u32 (%p1083_p9), 1, %s952_s16  }
  0x22   : > { %s821_s6 = sshll.u32 (%p1083_p9), %s972_s21, 2  ;;  %s820_s7 = sshll.u32 (%p1083_p9), %s224_s29, 3 }
  0x23   : > { %s228_s26 = scalar_lea.vmem (%p1083_p9), %s1236_s1, %s821_s6  ;;  %s226_s14 = scalar_lea.vmem (%p1083_p9), [#allocation4], %s820_s7 }
  0x24   : > { %v244_v2 = vld [vmem:[%s228_s26] sm:$0xf] (%p1083_p9)  ;;  %v246_v3 = vld [vmem:[%s228_s26 + $0x8] sm:$0xf] (%p1083_p9) }
  0x25   : > { %245 = vst [vmem:[%s226_s14] sm:$0xf] (%p1083_p9), %v244_v2  ;;  %247 = vst [vmem:[%s226_s14 + $0x4] sm:$0xf] (%p1083_p9), %v246_v3 }
  0x28 PF: > { %p822_p12 = scmp.ge.s32.totalorder %s980_s23, 1  ;;  %p285_p13 = scmp.lt.s32.totalorder %s980_s23, 5 }
  0x2a   : > { %p286_p0 = pnand %p822_p12, %p285_p13 }
  0x2b   : > { %s292_s8 = sand.u32 (!%p286_p0), 1, %s956_s17   ;;  %s299_s13 = sand.u32 (!%p286_p0), 1, %s948_s15   ;;  %v371_v4 = vlaneseq (!%p286_p0)  ;;  %v982_v5 = vmov (!%p286_p0), 0   ;;  %vm626_vm0 = vsmask.f32 (!%p286_p0), 256 }
  0x2c   : > { %289 = sbr.rel (%p286_p0) target bundleno = 113 (0x71), region = 103  ;;  %347 = vst [vmem:[#allocation2 + $0x4] sm:$0xf] (!%p286_p0), %v982_v5  ;;  %346 = vst [vmem:[#allocation2] sm:$0xf] (!%p286_p0), %v982_v5  ;;  %s1117_s26 = sshll.u32 (!%p286_p0), %s292_s8, 1 }
  0x2d   : > { %349 = vst [vmem:[#allocation2 + $0xc] sm:$0xf] (!%p286_p0), %v982_v5  ;;  %350 = vst [vmem:[#allocation2 + $0x10] sm:$0xf] (!%p286_p0), %v982_v5  ;;  %s824_s24 = sshll.u32 (!%p286_p0), %s299_s13, 3  ;;  %v1119_v6 = vshrl.u32 (!%p286_p0), %v371_v4, 7 }
  0x2e   : > { %352 = vst [vmem:[#allocation2 + $0x18] sm:$0xf] (!%p286_p0), %v982_v5  ;;  %353 = vst [vmem:[#allocation2 + $0x1c] sm:$0xf] (!%p286_p0), %v982_v5  ;;  %s294_s28 = scalar_lea.vmem (!%p286_p0), [#allocation3], %s1117_s26  ;;  %s301_s15 = scalar_lea.vmem (!%p286_p0), [#allocation4], %s824_s24 }
  0x2f   : > { %355 = vst [vmem:[#allocation2 + $0x24] sm:$0xf] (!%p286_p0), %v982_v5  ;;  %356 = vst [vmem:[#allocation2 + $0x28] sm:$0xf] (!%p286_p0), %v982_v5  ;;  %v358_v7 = vld [vmem:[%s294_s28] sm:$0x1] (!%p286_p0) }
  0x30   : > { %v359_v8 = vld [vmem:[%s294_s28 + $0x1] sm:$0x1] (!%p286_p0)  ;;  %361 = vst [vmem:[#allocation2 + $0x10] sm:$0x1] (!%p286_p0), %v358_v7  ;;  %v340_v9 = vld [vmem:[%s301_s15] sm:$0xf] (!%p286_p0) }
  0x31   : > { %362 = vst [vmem:[#allocation2 + $0x1c] sm:$0x1] (!%p286_p0), %v359_v8  ;;  %v373_v10 = vsub.s32 (!%p286_p0), 0, %v1119_v6  ;;  %v385_v11 = vsub.s32 (!%p286_p0), 1, %v1119_v6  ;;  %v342_v12 = vunpack.c.l.bf16 (!%p286_p0), %v340_v9  ;;  %v405_v13 = vsub.s32 (!%p286_p0), 2, %v1119_v6  ;;  %p333_p1 = scmp.lt.s32.totalorder (!%p286_p0), %s964_s19, 1 }
  0x32   : > { %v429_v14 = vsub.s32 (!%p286_p0), 3, %v1119_v6  ;;  %v441_v15 = vsub.s32 (!%p286_p0), 4, %v1119_v6  ;;  %v461_v19 = vsub.s32 (!%p286_p0), 5, %v1119_v6  ;;  %v341_v27 = vld [vmem:[%s301_s15 + $0x4] sm:$0x1] (!%p286_p0)  ;;  %v486_v28 = vsub.s32 (!%p286_p0), 6, %v1119_v6 }
  0x33   : > { %v1127_v16 = vrot.slane %v342_v12, %v373_v10  ;;  %v1129_v17 = vrot.slane %v342_v12, %v385_v11  ;;  %v1131_v18 = vrot.slane %v342_v12, %v405_v13  ;;  %v364_v20 = vld [vmem:[#allocation2 + $0x4] sm:$0x1]  ;;  %v363_v22 = vld [vmem:[#allocation2] sm:$0x8]  ;;  %v498_v31 = vsub.s32 7, %v1119_v6  ;;  %s1168_s17 = scalar_select %p333_p1, %s964_s19, 1 }
  0x34   : > { %v399_v21 = vld [vmem:[#allocation2 + $0x4] sm:$0x3]  ;;  %v368_v23 = vunpack.c.l.bf16 %v364_v20  ;;  %v367_v25 = vunpack.c.l.bf16 %v363_v22  ;;  %v419_v26 = vld [vmem:[#allocation2 + $0xc] sm:$0x8]  ;;  %v1135_v30 = vrot.slane %v342_v12, %v441_v15  ;;  %v343_v38 = vunpack.c.l.bf16 %v341_v27  ;;  %s332_s12 = scalar_lea.vmem [#allocation5], %s1117_s26  ;;  %s833_s14 = sshll.u32 (%p1090_p10), %s968_s20, 2 }
  0x35   : > { %v401_v24 = vunpack.c.l.bf16 %v399_v21  ;;  %v423_v29 = vunpack.c.l.bf16 %v419_v26  ;;  %v365_v32 = vld [vmem:[#allocation2 + $0xc] sm:$0x8]  ;;  %v1142_v40 = vrot.slane %v342_v12, %v429_v14  ;;  %v1144_v42 = vrot.slane %v342_v12, %v461_v19  ;;  %v476_v43 = vld [vmem:[#allocation2 + $0x18] sm:$0x8]  ;;  %s335_s29 = scalar_lea.vmem %s1237_s2, %s1168_s17  ;;  %s338_s11 = scalar_lea.vmem %s1238_s3, %s1168_s17 }
  0x36   : > { %v375_v33 = vmul.f32 %v1127_v16, %v367_v25  ;;  %v376_v34 = vmul.f32 %v1127_v16, %v368_v23  ;;  %v387_v35 = vmul.f32 %v1129_v17, %v368_v23  ;;  %v1146_v50 = vrot.slane %v342_v12, %v486_v28  ;;  %v421_v56 = vld [vmem:[#allocation2 + $0x18] sm:$0x8]  ;;  %v479_v28 = vld [vmem:[#allocation2 + $0x28] sm:$0x1]  ;;  %s671_s8 = sadd.s32 (%p1090_p10), %s964_s19, %s833_s14 }
  0x37   : > { %v407_v36 = vmul.f32 %v1131_v18, %v401_v24  ;;  %v420_v37 = vld [vmem:[#allocation2 + $0x10] sm:$0x1]  ;;  %v369_v51 = vunpack.c.l.bf16 %v365_v32  ;;  %v431_v52 = vmul.f32 %v1142_v40, %v423_v29  ;;  %v1150_v54 = vrot.slane %v342_v12, %v498_v31  ;;  %s672_s24 = scalar_lea.vmem (%p1090_p10), %s1239_s4, %s671_s8 }
  0x38   : > { %v424_v39 = vunpack.c.l.bf16 %v420_v37  ;;  %v455_v41 = vld [vmem:[#allocation2 + $0x10] sm:$0x3]  ;;  %v477_v44 = vld [vmem:[#allocation2 + $0x1c] sm:$0x1]  ;;  %v391_v47 = vrot.slane %v387_v35, 1  ;;  %v480_v59 = vunpack.c.l.bf16 %v476_v43  ;;  %v1153_v0 = vrot.slane %v343_v38, %v373_v10 }
  0x39   : > { %v366_v45 = vld [vmem:[#allocation2 + $0x10] sm:$0x1]  ;;  %v411_v48 = vrot.slane %v407_v36, 2  ;;  %v457_v49 = vunpack.c.l.bf16 %v455_v41  ;;  %v512_v55 = vld [vmem:[#allocation2 + $0x1c] sm:$0x3]  ;;  %v481_v60 = vunpack.c.l.bf16 %v477_v44  ;;  %v377_v5 = vmul.f32 %v1127_v16, %v369_v51 }
  0x3a   : > { %v400_v46 = vld [vmem:[#allocation2 + $0x10] sm:$0x3]  ;;  %v443_v53 = vmul.f32 %v1135_v30, %v424_v39  ;;  %v395_v57 = vadd.f32 %v391_v47, %v375_v33  ;;  %v396_v58 = vadd.f32 %v391_v47, %v376_v34  ;;  %v370_v61 = vunpack.c.l.bf16 %v366_v45  ;;  %v422_v11 = vld [vmem:[#allocation2 + $0x1c] sm:$0x1]  ;;  %v478_v34 = vld [vmem:[#allocation2 + $0x24] sm:$0x8] }
  0x3b   : > { %v402_v62 = vunpack.c.l.bf16 %v400_v46  ;;  %v463_v63 = vmul.f32 %v1144_v42, %v457_v49  ;;  %v432_v3 = vmul.f32 %v1142_v40, %v424_v39  ;;  %v514_v4 = vunpack.c.l.bf16 %v512_v55  ;;  %v456_v19 = vld [vmem:[#allocation2 + $0x1c] sm:$0x3]  ;;  %v513_v46 = vld [vmem:[#allocation2 + $0x28] sm:$0x3] }
  0x3c   : > { %v415_v1 = vadd.f32 %v411_v48, %v395_v57  ;;  %v416_v2 = vadd.f32 %v411_v48, %v396_v58  ;;  %v447_v7 = vrot.slane %v443_v53, 1  ;;  %v983_v8 = vmov 1966171168   ;;  %v826_v53 = vld [vmem:[%s335_s29] ss:$0 sm:$0xff] }
  0x3d   : > { %v1158_v9 = vunpack.c.l.s4 %v983_v8  ;;  %v425_v12 = vunpack.c.l.bf16 %v421_v56  ;;  %v488_v10 = vmul.f32 %v1146_v50, %v480_v59  ;;  %v489_v15 = vmul.f32 %v1146_v50, %v481_v60 }
  0x3e   : > { %v435_v13 = vadd.f32 %v431_v52, %v415_v1  ;;  %v436_v14 = vadd.f32 %v432_v3, %v416_v2  ;;  %v467_v20 = vrot.slane %v463_v63, 2  ;;  %v500_v21 = vmul.f32 %v1150_v54, %v481_v60 }
  0x3f   : > { %v388_v22 = vmul.f32 %v1129_v17, %v370_v61  ;;  %v408_v23 = vmul.f32 %v1131_v18, %v402_v62  ;;  %v520_v26 = vmul.f32 %v1153_v0, %v514_v4  ;;  %v426_v27 = vunpack.c.l.bf16 %v422_v11 }
  0x40   : > { %v451_v24 = vadd.f32 %v447_v7, %v435_v13  ;;  %v452_v25 = vadd.f32 %v447_v7, %v436_v14  ;;  %v378_v29 = vmul.f32 %v1127_v16, %v370_v61  ;;  %v433_v32 = vmul.f32 %v1142_v40, %v425_v12 }
  0x41   : > { %v392_v31 = vrot.slane %v388_v22, 1  ;;  %v458_v33 = vunpack.c.l.bf16 %v456_v19  ;;  %v412_v18 = vrot.slane %v408_v23, 2  ;;  %v444_v36 = vmul.f32 %v1135_v30, %v426_v27 }
  0x42   : > { %v471_v17 = vadd.f32 %v467_v20, %v451_v24  ;;  %v472_v35 = vadd.f32 %v467_v20, %v452_v25  ;;  %v434_v39 = vmul.f32 %v1142_v40, %v426_v27  ;;  %v483_v41 = vunpack.c.l.bf16 %v479_v28 }
  0x43   : > { %v397_v37 = vadd.f32 %v392_v31, %v377_v5  ;;  %v398_v38 = vadd.f32 %v392_v31, %v378_v29  ;;  %v504_v44 = vrot.slane %v500_v21, 1  ;;  %v482_v45 = vunpack.c.l.bf16 %v478_v34 }
  0x44   : > { %v492_v16 = vadd.f32 %v488_v10, %v471_v17  ;;  %v493_v43 = vadd.f32 %v489_v15, %v472_v35  ;;  %v448_v49 = vrot.slane %v444_v36, 1  ;;  %v464_v51 = vmul.f32 %v1144_v42, %v458_v33  ;;  %v827_v42 = vld [vmem:[%s338_s11] ss:$0 sm:$0xff] }
  0x45   : > { %v417_v47 = vadd.f32 %v412_v18, %v397_v37  ;;  %v418_v48 = vadd.f32 %v412_v18, %v398_v38  ;;  %v524_v52 = vrot.slane %v520_v26, 2  ;;  %vm627_vm1 = vsmask.f32 1284 }
  0x46   : > { %v508_v30 = vadd.f32 %v504_v44, %v492_v16  ;;  %v509_v40 = vadd.f32 %v504_v44, %v493_v43  ;;  %v501_v57 = vmul.f32 %v1150_v54, %v483_v41  ;;  %v515_v58 = vunpack.c.l.bf16 %v513_v46  ;;  %vm628_vm3 = vmor %vm626_vm0, %vm627_vm1 }
  0x47   : > { %v437_v55 = vadd.f32 %v433_v32, %v417_v47  ;;  %v438_v56 = vadd.f32 %v434_v39, %v418_v48  ;;  %vm629_vm2 = vsmask.f32 2312  ;;  %v490_v61 = vmul.f32 %v1146_v50, %v482_v45 }
  0x48   : > { %v528_v59 = vadd.f32 %v524_v52, %v508_v30  ;;  %v529_v60 = vadd.f32 %v524_v52, %v509_v40  ;;  %v468_v1 = vrot.slane %v464_v51, 2  ;;  %v491_v2 = vmul.f32 %v1146_v50, %v483_v41  ;;  %vm630_vm4 = vmor %vm628_vm3, %vm629_vm2 }
  0x49   : > { %v453_v62 = vadd.f32 %v448_v49, %v437_v55  ;;  %v454_v63 = vadd.f32 %v448_v49, %v438_v56  ;;  %v505_v8 = vrot.slane %v501_v57, 1  ;;  %v521_v54 = vmul.f32 %v1153_v0, %v515_v58 }
  0x4a   : > { %v538_v3 = vmul.f32 %v826_v53, %v528_v59  ;;  %v539_v4 = vmul.f32 %v826_v53, %v529_v60  ;;  %v567_v13 = vunpack.c.0.s8 %v1158_v9  ;;  %vm631_vm5 = vsmask.f32 3340 }
  0x4b   : > { %v473_v5 = vadd.f32 %v468_v1, %v453_v62  ;;  %v474_v7 = vadd.f32 %v468_v1, %v454_v63  ;;  %vm632_vm6 = vmor %vm630_vm4, %vm631_vm5  ;;  %vm633_vm7 = vsmask.f32 4368  ;;  %v525_v21 = vrot.slane %v521_v54, 2 }
  0x4c   : > { %v548_v11 = vadd.f32 %v827_v42, %v538_v3  ;;  %v549_v12 = vadd.f32 %v827_v42, %v539_v4  ;;  %v570_v0 = vsub.s32 %v567_v13, %v1119_v6  ;;  %vm634_vm8 = vmor %vm632_vm6, %vm633_vm7  ;;  %vm635_vm9 = vsmask.f32 5396 }
  0x4d   : > { %v494_v14 = vadd.f32 %v490_v61, %v473_v5  ;;  %v495_v10 = vadd.f32 %v491_v2, %v474_v7  ;;  %vm636_vm10 = vmor %vm634_vm8, %vm635_vm9  ;;  %vm637_vm11 = vsmask.f32 6424  ;;  %vm639_vm13 = vsmask.f32 7452 }
  0x4e   : > { %v552_v15 = vmax.f32 %v548_v11, 0.0  ;;  %v553_v19 = vmax.f32 %v549_v12, 0.0  ;;  %vm638_vm12 = vmor %vm636_vm10, %vm637_vm11 }
  0x4f   : > { %v510_v50 = vadd.f32 %v505_v8, %v494_v14  ;;  %v511_v20 = vadd.f32 %v505_v8, %v495_v10  ;;  %vm1192_vm14 = vmor %vm638_vm12, %vm639_vm13 }
  0x50   : > { %v556_v22 = vmin.f32 %v552_v15, 6.0  ;;  %v557_v23 = vmin.f32 %v553_v19, 6.0 }
  0x51   : > { %v530_v24 = vadd.f32 %v525_v21, %v510_v50  ;;  %v531_v25 = vadd.f32 %v525_v21, %v511_v20 }
  0x52   : > { %v560_v26 = vpack.c.bf16 %v557_v23, %v556_v22  ;;  %v828_v9 = vpack.c.bf16 %v557_v23, %v557_v23 }
  0x53   : > { %v540_v27 = vmul.f32 %v826_v53, %v530_v24  ;;  %v541_v28 = vmul.f32 %v826_v53, %v531_v25 }
  0x54   : > { %v571_v29 = vrot.slane %v560_v26, %v570_v0  ;;  %v578_v31 = vrot.slane %v828_v9, %v570_v0 }
  0x55   : > { %v550_v32 = vadd.f32 %v827_v42, %v540_v27  ;;  %v551_v33 = vadd.f32 %v827_v42, %v541_v28 }
  0x56   : > { %v579_v34 = vcombine.high %v571_v29, %v571_v29  ;;  %v586_v18 = vrot.slane %v578_v31, %v570_v0 }
  0x57   : > { %v554_v17 = vmax.f32 %v550_v32, 0.0  ;;  %v555_v35 = vmax.f32 %v551_v33, 0.0 }
  0x58   : > { %v593_v6 = vrot.slane %v579_v34, %v570_v0  ;;  %v647_v44 = vshll.u32 %v586_v18, 16 }
  0x59   : > { %v558_v36 = vmin.f32 %v554_v17, 6.0  ;;  %v559_v37 = vmin.f32 %v555_v35, 6.0 }
  0x5a   : > { %v594_v38 = vcombine.high %v593_v6, %v593_v6 }
  0x5b   : > { %v561_v41 = vpack.c.bf16 %v559_v37, %v558_v36  ;;  %v829_v16 = vpack.c.bf16 %v559_v37, %v559_v37 }
  0x5c   : > { %v642_v43 = vshrl.u32 %v594_v38, 16 }
  0x5d   : > { %v602_v45 = vrot.slane %v561_v41, %v570_v0  ;;  %v609_v46 = vrot.slane %v829_v16, %v570_v0 }
  0x5e   : > { %v649_v47 = vsel %vm1192_vm14, %v642_v43, %v647_v44 }
  0x5f   : > { %661 = vst [vmem:[%s332_s12] sm:$0x1] %v649_v47  ;;  %v610_v48 = vcombine.high %v602_v45, %v602_v45  ;;  %v617_v49 = vrot.slane %v609_v46, %v570_v0 }
  0x61   : > { %v624_v51 = vrot.slane %v610_v48, %v570_v0  ;;  %v656_v52 = vshll.u32 %v617_v49, 16 }
  0x62   : > { %669 = sbr.rel (!%p1090_p10) target bundleno = 113 (0x71), region = 115 }
  0x63   : > { %v625_v30 = vcombine.high %v624_v51, %v624_v51 }
  0x65   : > { %v651_v40 = vshrl.u32 %v625_v30, 16 }
  0x66   : > { %v688_v55 = vld [vmem:[%s332_s12] sm:$0x1] (%p1090_p10) }
  0x67   : > { %v658_v53 = vsel %vm1192_vm14, %v651_v40, %v656_v52  ;;  %689 = vst [vmem:[%s672_s24] sm:$0x1] (%p1090_p10), %v688_v55 }
  0x68   : > { %662 = vst [vmem:[%s332_s12 + $0x1] sm:$0x1] %v658_v53 }
  0x6f   : > { %v690_v56 = vld [vmem:[%s332_s12 + $0x1] sm:$0x1] }
  0x70   : > { %691 = vst [vmem:[%s672_s24 + $0x2] sm:$0x1] %v690_v56 }
  0x71 PF: > { %s14_s23 = sadd.s32 1, %s980_s23   ;;  %s1247_s9 = sld [smem:[#allocation6_spill]] }
  0x72   : > { %p11_p2 = scmp.ge.s32.totalorder %s14_s23, 6   ;;  %s1248_s15 = smov %s952_s16 }
  0x73   : > { %s1249_s16 = smov %s1077_s5  ;;  %s1250_s17 = smov %s960_s18 }
  0x74   : > { %s1251_s18 = smov %s1095_s10  ;;  %s1252_s19 = smov %s972_s21 }
  0x75   : > { %s1253_s20 = smov %s976_s22  ;;  %s1254_s21 = smov %s1257_s25 }
  0x76   :  { %13 = sbr.rel (!%p11_p2) target bundleno = 5 (0x5), region = 196 }
  0x77   : > { %s1255_s22 = smov %s1247_s9 }

// kernel: a_call__.34
= control target key start
LH: loop header
LB: loop body
LE: loop exit
PB: predicated region body
PF: predicated region fallthrough
CT: control target
= control target key end

     0   :  { %s2061_s18 = smov 0   ;;  %s2063_s19 = smov 0   ;;  %s2514_s0 = inlined_call_operand.vmem [shape: bf16[2,4,1024], index: 0, kind: input, shape index: {}]   ;;  %s2515_s1 = inlined_call_operand.vmem [shape: bf16[1024,256], index: 1, kind: input, shape index: {}]   ;;  %s2516_s2 = inlined_call_operand.vmem [shape: f32[1,256], index: 2, kind: input, shape index: {}]   ;;  %s2517_s3 = inlined_call_operand.vmem [shape: f32[1,256], index: 3, kind: input, shape index: {}]   ;;  %s2518_s4 = inlined_call_operand.vmem [shape: bf16[2,4,256], index: 4, kind: output, shape index: {0}]   ;;  %s2519_s5 = inlined_call_operand.vmem [shape: f32[2,1,8,256], index: 5, kind: output, shape index: {1}]  }
   0x1   :  { %s2065_s20 = smov 0  }
   0x2 LB: > { %s35_s21 = sadd.s32 1, %s2024_s19  ;;  %p1635_p0 = scmp.ge.s32.totalorder %s2028_s20, 1  ;;  %s2028_s20 = sphi %s2065_s20, %s16_s20   ;;  %s2024_s19 = sphi %s2063_s19, %s2521_s19   ;;  %s2020_s18 = sphi %s2061_s18, %s2520_s18  }
   0x3   : > { %p37_p1 = scmp.ge.s32.totalorder %s35_s21, 2  ;;  %p254_p2 = scmp.lt.s32.totalorder %s2028_s20, 3 }
   0x5   : > { %s2523_s21 = smov (%p37_p1, %s35_s21), 0  ;;  %p255_p3 = pnand %p1635_p0, %p254_p2 }
   0x6   : > { %v1812_v0 = vld [vmem:[%s2515_s1 + $0x4] ss:$8 sps:$4 sm:$0xff] (!%p255_p3)   ;;  %v1816_v2 = vld [vmem:[%s2515_s1] ss:$8 sps:$4 sm:$0xff] (!%p255_p3)   ;;  %v1818_v4 = vld [vmem:[%s2515_s1 + $0x14] ss:$8 sps:$4 sm:$0xff] (!%p255_p3)   ;;  %v509_v38 = vlaneseq (!%p255_p3) }
   0x7   : > { %258 = sbr.rel (%p255_p3) target bundleno = 373 (0x175), region = 36  ;;  %v1814_v1 = vld [vmem:[%s2515_s1 + $0x204] ss:$8 sps:$4 sm:$0xff] (!%p255_p3)   ;;  %1187 = vmatprep.subr.bf16.mxu1 (!%p255_p3), %v1812_v0  ;;  %v1817_v3 = vld [vmem:[%s2515_s1 + $0x200] ss:$8 sps:$4 sm:$0xff] (!%p255_p3)   ;;  %p320_p4 = scmp.lt.s32.totalorder (!%p255_p3), %s2020_s18, 1 }
   0x8   : > { %1269 = vmatprep.subr.bf16.mxu0 (!%p255_p3), %v1814_v1  ;;  %1188 = vmatpush1.bf16.msra.mxu1 (!%p255_p3), %v1816_v2  ;;  %v1820_v5 = vld [vmem:[%s2515_s1 + $0x214] ss:$8 sps:$4 sm:$0xff] (!%p255_p3)   ;;  %v1822_v6 = vld [vmem:[%s2515_s1 + $0x10] ss:$8 sps:$4 sm:$0xff] (!%p255_p3)   ;;  %v1824_v8 = vld [vmem:[%s2515_s1 + $0x24] ss:$8 sps:$4 sm:$0xff] (!%p255_p3)  }
   0x9   : > { %1270 = vmatpush1.bf16.msra.mxu0 (!%p255_p3), %v1817_v3  ;;  %1189 = vmatprep.subr.bf16.mxu1 (!%p255_p3), %v1818_v4  ;;  %v1823_v7 = vld [vmem:[%s2515_s1 + $0x210] ss:$8 sps:$4 sm:$0xff] (!%p255_p3)   ;;  %v1826_v9 = vld [vmem:[%s2515_s1 + $0x224] ss:$8 sps:$4 sm:$0xff] (!%p255_p3)   ;;  %v1828_v10 = vld [vmem:[%s2515_s1 + $0x20] ss:$8 sps:$4 sm:$0xff] (!%p255_p3)  }
   0xa   : > { %1271 = vmatprep.subr.bf16.mxu0 (!%p255_p3), %v1820_v5  ;;  %v1829_v11 = vld [vmem:[%s2515_s1 + $0x220] ss:$8 sps:$4 sm:$0xff] (!%p255_p3)   ;;  %v1830_v12 = vld [vmem:[%s2515_s1 + $0x34] ss:$8 sps:$4 sm:$0xff] (!%p255_p3)   ;;  %v1834_v14 = vld [vmem:[%s2515_s1 + $0x30] ss:$8 sps:$4 sm:$0xff] (!%p255_p3)  }
   0xb   : > { %v1832_v13 = vld [vmem:[%s2515_s1 + $0x234] ss:$8 sps:$4 sm:$0xff] (!%p255_p3)   ;;  %v1835_v15 = vld [vmem:[%s2515_s1 + $0x230] ss:$8 sps:$4 sm:$0xff] (!%p255_p3)   ;;  %v1836_v16 = vld [vmem:[%s2515_s1 + $0x44] ss:$8 sps:$4 sm:$0xff] (!%p255_p3)  }
   0xc   : > { %1190 = vmatpush1.bf16.msra.mxu1 (!%p255_p3), %v1822_v6  ;;  %v1838_v17 = vld [vmem:[%s2515_s1 + $0x244] ss:$8 sps:$4 sm:$0xff] (!%p255_p3)   ;;  %v1840_v18 = vld [vmem:[%s2515_s1 + $0x40] ss:$8 sps:$4 sm:$0xff] (!%p255_p3)   ;;  %v1842_v20 = vld [vmem:[%s2515_s1 + $0x54] ss:$8 sps:$4 sm:$0xff] (!%p255_p3)  }
   0xd   : > { %1272 = vmatpush1.bf16.msra.mxu0 (!%p255_p3), %v1823_v7  ;;  %1191 = vmatprep.subr.bf16.mxu1 (!%p255_p3), %v1824_v8  ;;  %v1841_v19 = vld [vmem:[%s2515_s1 + $0x240] ss:$8 sps:$4 sm:$0xff] (!%p255_p3)   ;;  %v1844_v21 = vld [vmem:[%s2515_s1 + $0x254] ss:$8 sps:$4 sm:$0xff] (!%p255_p3)   ;;  %v1846_v22 = vld [vmem:[%s2515_s1 + $0x50] ss:$8 sps:$4 sm:$0xff] (!%p255_p3)  }
   0xe   : > { %1273 = vmatprep.subr.bf16.mxu0 %v1826_v9  ;;  %v1847_v23 = vld [vmem:[%s2515_s1 + $0x250] ss:$8 sps:$4 sm:$0xff]   ;;  %v1848_v24 = vld [vmem:[%s2515_s1 + $0x64] ss:$8 sps:$4 sm:$0xff]   ;;  %v1852_v26 = vld [vmem:[%s2515_s1 + $0x60] ss:$8 sps:$4 sm:$0xff]  }
   0xf   : > { %v1850_v25 = vld [vmem:[%s2515_s1 + $0x264] ss:$8 sps:$4 sm:$0xff]   ;;  %v1853_v27 = vld [vmem:[%s2515_s1 + $0x260] ss:$8 sps:$4 sm:$0xff]   ;;  %v1854_v28 = vld [vmem:[%s2515_s1 + $0x74] ss:$8 sps:$4 sm:$0xff]  }
  0x10   : > { %1192 = vmatpush1.bf16.msra.mxu1 %v1828_v10  ;;  %v1856_v29 = vld [vmem:[%s2515_s1 + $0x274] ss:$8 sps:$4 sm:$0xff]   ;;  %v1858_v30 = vld [vmem:[%s2515_s1 + $0x70] ss:$8 sps:$4 sm:$0xff]   ;;  %v1860_v32 = vld [vmem:[%s2515_s1 + $0x84] ss:$8 sps:$4 sm:$0xff]  }
  0x11   : > { %1274 = vmatpush1.bf16.msra.mxu0 %v1829_v11  ;;  %1193 = vmatprep.subr.bf16.mxu1 %v1830_v12  ;;  %v1859_v31 = vld [vmem:[%s2515_s1 + $0x270] ss:$8 sps:$4 sm:$0xff]   ;;  %v1862_v33 = vld [vmem:[%s2515_s1 + $0x284] ss:$8 sps:$4 sm:$0xff]   ;;  %v1864_v34 = vld [vmem:[%s2515_s1 + $0x80] ss:$8 sps:$4 sm:$0xff]  }
  0x12   : > { %1275 = vmatprep.subr.bf16.mxu0 %v1832_v13  ;;  %v1865_v35 = vld [vmem:[%s2515_s1 + $0x280] ss:$8 sps:$4 sm:$0xff]   ;;  %v2030_v36 = vmov 1983009808   ;;  %v1866_v39 = vld [vmem:[%s2515_s1 + $0x94] ss:$8 sps:$4 sm:$0xff]  }
  0x13   : > { %v507_v37 = vunpack.c.l.s4 %v2030_v36  ;;  %s2525_s18 = smov (!%p320_p4, %s2020_s18), 1  ;;  %v1868_v40 = vld [vmem:[%s2515_s1 + $0x294] ss:$8 sps:$4 sm:$0xff]   ;;  %v1870_v41 = vld [vmem:[%s2515_s1 + $0x90] ss:$8 sps:$4 sm:$0xff]   ;;  %v2202_v43 = vshrl.u32 %v509_v38, 7 }
  0x14   : > { %1194 = vmatpush1.bf16.msra.mxu1 %v1834_v14  ;;  %v1871_v44 = vld [vmem:[%s2515_s1 + $0x290] ss:$8 sps:$4 sm:$0xff]   ;;  %v1872_v45 = vld [vmem:[%s2515_s1 + $0xa4] ss:$8 sps:$4 sm:$0xff]   ;;  %s1774_s16 = sshll.u32 %s2525_s18, 4  ;;  %s1775_s22 = sshll.u32 %s2525_s18, 2 }
  0x15   : > { %1276 = vmatpush1.bf16.msra.mxu0 %v1835_v15  ;;  %1195 = vmatprep.subr.bf16.mxu1 %v1836_v16  ;;  %v508_v42 = vunpack.c.0.s8 %v507_v37  ;;  %v1874_v46 = vld [vmem:[%s2515_s1 + $0x2a4] ss:$8 sps:$4 sm:$0xff]   ;;  %v1876_v47 = vld [vmem:[%s2515_s1 + $0xa0] ss:$8 sps:$4 sm:$0xff]   ;;  %s328_s29 = scalar_lea.vmem %s2514_s0, %s1774_s16  ;;  %v1878_v50 = vld [vmem:[%s2515_s1 + $0xb4] ss:$8 sps:$4 sm:$0xff]   ;;  %s357_s25 = scalar_lea.vmem %s2518_s4, %s1775_s22 }
  0x16   : > { %1277 = vmatprep.subr.bf16.mxu0 %v1838_v17  ;;  %v1877_v48 = vld [vmem:[%s2515_s1 + $0x2a0] ss:$8 sps:$4 sm:$0xff]   ;;  %v1880_v51 = vld [vmem:[%s2515_s1 + $0x2b4] ss:$8 sps:$4 sm:$0xff]   ;;  %v1882_v53 = vld [vmem:[%s2515_s1 + $0xb0] ss:$8 sps:$4 sm:$0xff]   ;;  %s371_s28 = scalar_lea.vmem %s2519_s5, %s1774_s16 }
  0x17   : > { %v511_v49 = vsub.s32 %v508_v42, %v2202_v43  ;;  %v373_v52 = vld [vmem:[%s328_s29] sm:$0xff]  ;;  %v1883_v55 = vld [vmem:[%s2515_s1 + $0x2b0] ss:$8 sps:$4 sm:$0xff]   ;;  %v374_v56 = vld [vmem:[%s328_s29 + $0x8] sm:$0xff]  ;;  %vm1395_vm0 = vcmask 1043456  }
  0x18   : > { %1196 = vmatpush1.bf16.msra.mxu1 %v1840_v18  ;;  %v1884_v57 = vld [vmem:[%s2515_s1 + $0xc4] ss:$8 sps:$4 sm:$0xff]   ;;  %v1888_v62 = vld [vmem:[%s2515_s1 + $0xc0] ss:$8 sps:$4 sm:$0xff]   ;;  %v1890_v0 = vld [vmem:[%s2515_s1 + $0xd4] ss:$8 sps:$4 sm:$0xff]   ;;  %v505_v10 = vcombine.high %v373_v52, %v373_v52  ;;  %v522_v11 = vcombine.high %v374_v56, %v374_v56 }
  0x19   : > { %1278 = vmatpush1.bf16.msra.mxu0 %v1841_v19  ;;  %1197 = vmatprep.subr.bf16.mxu1 %v1842_v20  ;;  %v512_v54 = vrot.slane %v373_v52, %v511_v49  ;;  %v1886_v58 = vld [vmem:[%s2515_s1 + $0x2c4] ss:$8 sps:$4 sm:$0xff]   ;;  %v529_v60 = vrot.slane %v374_v56, %v511_v49  ;;  %v1889_v63 = vld [vmem:[%s2515_s1 + $0x2c0] ss:$8 sps:$4 sm:$0xff]   ;;  %v1892_v1 = vld [vmem:[%s2515_s1 + $0x2d4] ss:$8 sps:$4 sm:$0xff]  }
  0x1a   : > { %1279 = vmatprep.subr.bf16.mxu0 %v1844_v21  ;;  %v1894_v2 = vld [vmem:[%s2515_s1 + $0xd0] ss:$8 sps:$4 sm:$0xff]   ;;  %v1896_v4 = vld [vmem:[%s2515_s1 + $0xe4] ss:$8 sps:$4 sm:$0xff]   ;;  %v1900_v6 = vld [vmem:[%s2515_s1 + $0xe0] ss:$8 sps:$4 sm:$0xff]   ;;  %v2292_v16 = vrot.slane %v505_v10, %v511_v49  ;;  %v2294_v17 = vrot.slane %v522_v11, %v511_v49 }
  0x1b   : > { %v520_v59 = vcombine.high %v512_v54, %v512_v54  ;;  %v537_v61 = vcombine.high %v529_v60, %v529_v60  ;;  %v1895_v3 = vld [vmem:[%s2515_s1 + $0x2d0] ss:$8 sps:$4 sm:$0xff]   ;;  %v1898_v5 = vld [vmem:[%s2515_s1 + $0x2e4] ss:$8 sps:$4 sm:$0xff]   ;;  %v1901_v7 = vld [vmem:[%s2515_s1 + $0x2e0] ss:$8 sps:$4 sm:$0xff]  }
  0x1c   : > { %1198 = vmatpush1.bf16.msra.mxu1 %v1846_v22  ;;  %v1902_v8 = vld [vmem:[%s2515_s1 + $0xf4] ss:$8 sps:$4 sm:$0xff]   ;;  %v1906_v12 = vld [vmem:[%s2515_s1 + $0xf0] ss:$8 sps:$4 sm:$0xff]   ;;  %v1911_v14 = vld [vmem:[%s2515_s1 + $0x104] ss:$8 sps:$4 sm:$0xff]   ;;  %v521_v22 = vcombine.high %v2292_v16, %v2292_v16 }
  0x1d   : > { %1280 = vmatpush1.bf16.msra.mxu0 %v1847_v23  ;;  %1199 = vmatprep.subr.bf16.mxu1 %v1848_v24  ;;  %v1904_v9 = vld [vmem:[%s2515_s1 + $0x2f4] ss:$8 sps:$4 sm:$0xff]   ;;  %v1907_v13 = vld [vmem:[%s2515_s1 + $0x2f0] ss:$8 sps:$4 sm:$0xff]   ;;  %v1915_v15 = vld [vmem:[%s2515_s1 + $0x304] ss:$8 sps:$4 sm:$0xff]   ;;  %v538_v23 = vcombine.high %v2294_v17, %v2294_v17 }
  0x1e   : > { %1281 = vmatprep.subr.bf16.mxu0 %v1850_v25  ;;  %1219 = vmatprep.mubr.bf16.mxu1 %v520_v59  ;;  %v1909_v18 = vld [vmem:[%s2515_s1 + $0x100] ss:$8 sps:$4 sm:$0xff]   ;;  %v1918_v20 = vld [vmem:[%s2515_s1 + $0x114] ss:$8 sps:$4 sm:$0xff]   ;;  %v1916_v24 = vld [vmem:[%s2515_s1 + $0x110] ss:$8 sps:$4 sm:$0xff]  }
  0x1f   : > { %1301 = vmatprep.mubr.bf16.mxu0 %v537_v61  ;;  %v1913_v19 = vld [vmem:[%s2515_s1 + $0x300] ss:$8 sps:$4 sm:$0xff]   ;;  %v1921_v21 = vld [vmem:[%s2515_s1 + $0x314] ss:$8 sps:$4 sm:$0xff]   ;;  %v1919_v25 = vld [vmem:[%s2515_s1 + $0x310] ss:$8 sps:$4 sm:$0xff]  }
  0x20   : > { %1200 = vmatpush1.bf16.msra.mxu1 %v1852_v26  ;;  %v1924_v26 = vld [vmem:[%s2515_s1 + $0x124] ss:$8 sps:$4 sm:$0xff]   ;;  %v1934_v36 = vld [vmem:[%s2515_s1 + $0x140] ss:$8 sps:$4 sm:$0xff]   ;;  %v1942_v38 = vld [vmem:[%s2515_s1 + $0x154] ss:$8 sps:$4 sm:$0xff]  }
  0x21   : > { %1282 = vmatpush1.bf16.msra.mxu0 %v1853_v27  ;;  %1201 = vmatprep.subr.bf16.mxu1 %v1854_v28  ;;  %v1927_v27 = vld [vmem:[%s2515_s1 + $0x324] ss:$8 sps:$4 sm:$0xff]   ;;  %v1922_v28 = vld [vmem:[%s2515_s1 + $0x120] ss:$8 sps:$4 sm:$0xff]   ;;  %v1952_v49 = vld [vmem:[%s2515_s1 + $0x170] ss:$8 sps:$4 sm:$0xff]  }
  0x22   : > { %1283 = vmatprep.subr.bf16.mxu0 %v1856_v29  ;;  %v1925_v29 = vld [vmem:[%s2515_s1 + $0x320] ss:$8 sps:$4 sm:$0xff]   ;;  %v1948_v42 = vld [vmem:[%s2515_s1 + $0x164] ss:$8 sps:$4 sm:$0xff]   ;;  %v1969_v56 = vld [vmem:[%s2515_s1 + $0x394] ss:$8 sps:$4 sm:$0xff]  }
  0x23   : > { %v1937_v37 = vld [vmem:[%s2515_s1 + $0x340] ss:$8 sps:$4 sm:$0xff]   ;;  %v1963_v52 = vld [vmem:[%s2515_s1 + $0x384] ss:$8 sps:$4 sm:$0xff]   ;;  %v1991_v10 = vld [vmem:[%s2515_s1 + $0x3d0] ss:$8 sps:$4 sm:$0xff]  }
  0x24   : > { %1202 = vmatpush1.bf16.msra.mxu1 %v1858_v30  ;;  %v1930_v30 = vld [vmem:[%s2515_s1 + $0x134] ss:$8 sps:$4 sm:$0xff]   ;;  %v1972_v59 = vld [vmem:[%s2515_s1 + $0x1a4] ss:$8 sps:$4 sm:$0xff]   ;;  %v1970_v61 = vld [vmem:[%s2515_s1 + $0x1a0] ss:$8 sps:$4 sm:$0xff]  }
  0x25   : > { %1284 = vmatpush1.bf16.msra.mxu0 %v1859_v31  ;;  %1203 = vmatprep.subr.bf16.mxu1 %v1860_v32  ;;  %v1933_v31 = vld [vmem:[%s2515_s1 + $0x334] ss:$8 sps:$4 sm:$0xff]   ;;  %v1928_v32 = vld [vmem:[%s2515_s1 + $0x130] ss:$8 sps:$4 sm:$0xff]   ;;  %v1996_v11 = vld [vmem:[%s2515_s1 + $0x1e4] ss:$8 sps:$4 sm:$0xff]  }
  0x26   : > { %1285 = vmatprep.subr.bf16.mxu0 %v1862_v33  ;;  %v1931_v33 = vld [vmem:[%s2515_s1 + $0x330] ss:$8 sps:$4 sm:$0xff]  }
  0x28   : > { %1204 = vmatpush1.bf16.msra.mxu1 %v1864_v34  ;;  %v1936_v34 = vld [vmem:[%s2515_s1 + $0x144] ss:$8 sps:$4 sm:$0xff]  }
  0x29   : > { %1286 = vmatpush1.bf16.msra.mxu0 %v1865_v35  ;;  %1205 = vmatprep.subr.bf16.mxu1 %v1866_v39  ;;  %v1939_v35 = vld [vmem:[%s2515_s1 + $0x344] ss:$8 sps:$4 sm:$0xff]   ;;  %v1945_v39 = vld [vmem:[%s2515_s1 + $0x354] ss:$8 sps:$4 sm:$0xff]  }
  0x2a   : > { %1287 = vmatprep.subr.bf16.mxu0 %v1868_v40  ;;  %v1940_v40 = vld [vmem:[%s2515_s1 + $0x150] ss:$8 sps:$4 sm:$0xff]  }
  0x2c   : > { %1206 = vmatpush1.bf16.msra.mxu1 %v1870_v41  ;;  %v1943_v41 = vld [vmem:[%s2515_s1 + $0x350] ss:$8 sps:$4 sm:$0xff]  }
  0x2d   : > { %1288 = vmatpush1.bf16.msra.mxu0 %v1871_v44  ;;  %1207 = vmatprep.subr.bf16.mxu1 %v1872_v45  ;;  %v1951_v44 = vld [vmem:[%s2515_s1 + $0x364] ss:$8 sps:$4 sm:$0xff]   ;;  %v1946_v45 = vld [vmem:[%s2515_s1 + $0x160] ss:$8 sps:$4 sm:$0xff]  }
  0x2e   : > { %1289 = vmatprep.subr.bf16.mxu0 %v1874_v46  ;;  %v1949_v46 = vld [vmem:[%s2515_s1 + $0x360] ss:$8 sps:$4 sm:$0xff]  }
  0x30   : > { %1208 = vmatpush1.bf16.msra.mxu1 %v1876_v47  ;;  %v1954_v47 = vld [vmem:[%s2515_s1 + $0x174] ss:$8 sps:$4 sm:$0xff]  }
  0x31   : > { %1290 = vmatpush1.bf16.msra.mxu0 %v1877_v48  ;;  %1209 = vmatprep.subr.bf16.mxu1 %v1878_v50  ;;  %v1957_v48 = vld [vmem:[%s2515_s1 + $0x374] ss:$8 sps:$4 sm:$0xff]   ;;  %v1955_v50 = vld [vmem:[%s2515_s1 + $0x370] ss:$8 sps:$4 sm:$0xff]  }
  0x32   : > { %1291 = vmatprep.subr.bf16.mxu0 %v1880_v51  ;;  %v1960_v51 = vld [vmem:[%s2515_s1 + $0x184] ss:$8 sps:$4 sm:$0xff]  }
  0x34   : > { %1210 = vmatpush1.bf16.msra.mxu1 %v1882_v53  ;;  %v1958_v53 = vld [vmem:[%s2515_s1 + $0x180] ss:$8 sps:$4 sm:$0xff]  }
  0x35   : > { %1292 = vmatpush1.bf16.msra.mxu0 %v1883_v55  ;;  %1211 = vmatprep.subr.bf16.mxu1 %v1884_v57  ;;  %v1966_v55 = vld [vmem:[%s2515_s1 + $0x194] ss:$8 sps:$4 sm:$0xff]   ;;  %v1964_v57 = vld [vmem:[%s2515_s1 + $0x190] ss:$8 sps:$4 sm:$0xff]  }
  0x36   : > { %1293 = vmatprep.subr.bf16.mxu0 %v1886_v58  ;;  %v1967_v58 = vld [vmem:[%s2515_s1 + $0x390] ss:$8 sps:$4 sm:$0xff]  }
  0x38   : > { %1212 = vmatpush1.bf16.msra.mxu1 %v1888_v62  ;;  %v1973_v62 = vld [vmem:[%s2515_s1 + $0x3a0] ss:$8 sps:$4 sm:$0xff]  }
  0x39   : > { %1294 = vmatpush1.bf16.msra.mxu0 %v1889_v63  ;;  %1213 = vmatprep.subr.bf16.mxu1 %v1890_v0  ;;  %v1978_v63 = vld [vmem:[%s2515_s1 + $0x1b4] ss:$8 sps:$4 sm:$0xff]  }
  0x3a   : > { %1295 = vmatprep.subr.bf16.mxu0 %v1892_v1  ;;  %v1981_v0 = vld [vmem:[%s2515_s1 + $0x3b4] ss:$8 sps:$4 sm:$0xff]   ;;  %v1976_v1 = vld [vmem:[%s2515_s1 + $0x1b0] ss:$8 sps:$4 sm:$0xff]  }
  0x3c   : > { %1214 = vmatpush1.bf16.msra.mxu1 %v1894_v2  ;;  %v1979_v2 = vld [vmem:[%s2515_s1 + $0x3b0] ss:$8 sps:$4 sm:$0xff]  }
  0x3d   : > { %1296 = vmatpush1.bf16.msra.mxu0 %v1895_v3  ;;  %1215 = vmatprep.subr.bf16.mxu1 %v1896_v4  ;;  %v1984_v3 = vld [vmem:[%s2515_s1 + $0x1c4] ss:$8 sps:$4 sm:$0xff]  }
  0x3e   : > { %1297 = vmatprep.subr.bf16.mxu0 %v1898_v5  ;;  %v1987_v4 = vld [vmem:[%s2515_s1 + $0x3c4] ss:$8 sps:$4 sm:$0xff]   ;;  %v1982_v5 = vld [vmem:[%s2515_s1 + $0x1c0] ss:$8 sps:$4 sm:$0xff]  }
  0x40   : > { %1216 = vmatpush1.bf16.msra.mxu1 %v1900_v6  ;;  %v1985_v6 = vld [vmem:[%s2515_s1 + $0x3c0] ss:$8 sps:$4 sm:$0xff]  }
  0x41   : > { %1298 = vmatpush1.bf16.msra.mxu0 %v1901_v7  ;;  %1217 = vmatprep.subr.bf16.mxu1 %v1902_v8  ;;  %v1990_v7 = vld [vmem:[%s2515_s1 + $0x1d4] ss:$8 sps:$4 sm:$0xff]  }
  0x42   : > { %1299 = vmatprep.subr.bf16.mxu0 %v1904_v9  ;;  %v1993_v8 = vld [vmem:[%s2515_s1 + $0x3d4] ss:$8 sps:$4 sm:$0xff]   ;;  %v1988_v9 = vld [vmem:[%s2515_s1 + $0x1d0] ss:$8 sps:$4 sm:$0xff]  }
  0x44   : > { %1218 = vmatpush1.bf16.msra.mxu1 %v1906_v12  ;;  %v1999_v12 = vld [vmem:[%s2515_s1 + $0x3e4] ss:$8 sps:$4 sm:$0xff]  }
  0x45   : > { %1300 = vmatpush1.bf16.msra.mxu0 %v1907_v13  ;;  %1228 = vmatprep.subr.bf16.mxu1 %v1911_v14  ;;  %v1994_v13 = vld [vmem:[%s2515_s1 + $0x1e0] ss:$8 sps:$4 sm:$0xff]  }
  0x46   : > { %1310 = vmatprep.subr.bf16.mxu0 %v1915_v15  ;;  %v1997_v14 = vld [vmem:[%s2515_s1 + $0x3e0] ss:$8 sps:$4 sm:$0xff]   ;;  %v2002_v15 = vld [vmem:[%s2515_s1 + $0x1f4] ss:$8 sps:$4 sm:$0xff]  }
  0x47   : > { %1220 = vmatmul.mubr.bf16.vlgmr.msra.gmra.mrb[0].mxu1 %v512_v54  ;;  %v1961_v54 = vld [vmem:[%s2515_s1 + $0x380] ss:$8 sps:$4 sm:$0xff]  }
  0x48   : > { %1302 = vmatmul.mubr.bf16.vlgmr.msra.gmra.mrb[0].mxu0 %v529_v60  ;;  %1229 = vmatpush1.bf16.msra.mxu1 %v1909_v18  ;;  %v1975_v60 = vld [vmem:[%s2515_s1 + $0x3a4] ss:$8 sps:$4 sm:$0xff]   ;;  %v2005_v18 = vld [vmem:[%s2515_s1 + $0x3f4] ss:$8 sps:$4 sm:$0xff]  }
  0x49   : > { %1311 = vmatpush1.bf16.msra.mxu0 %v1913_v19  ;;  %1230 = vmatprep.subr.bf16.mxu1 %v1918_v20  ;;  %v2000_v19 = vld [vmem:[%s2515_s1 + $0x1f0] ss:$8 sps:$4 sm:$0xff]  }
  0x4a   : > { %1312 = vmatprep.subr.bf16.mxu0 %v1921_v21  ;;  %1260 = vmatprep.mubr.bf16.mxu1 %v521_v22  ;;  %v2003_v20 = vld [vmem:[%s2515_s1 + $0x3f0] ss:$8 sps:$4 sm:$0xff]   ;;  %v1355_v21 = vsub.s32 0, %v2202_v43  ;;  %v1351_v22 = vld [vmem:[%s2516_s2] sm:$0x3] }
  0x4b   : > { %1342 = vmatprep.mubr.bf16.mxu0 %v538_v23  ;;  %v1359_v23 = vsub.s32 1, %v2202_v43 }
  0x4c   : > { %1231 = vmatpush1.bf16.msra.mxu1 %v1916_v24  ;;  %v1365_v24 = vld [vmem:[%s2517_s3] sm:$0x3] }
  0x4d   : > { %1313 = vmatpush1.bf16.msra.mxu0 %v1919_v25  ;;  %1232 = vmatprep.subr.bf16.mxu1 %v1924_v26  ;;  %v1356_v25 = vrot.slane %v1351_v22, %v1355_v21 }
  0x4e   : > { %1314 = vmatprep.subr.bf16.mxu0 %v1927_v27 }
  0x50   : > { %1233 = vmatpush1.bf16.msra.mxu1 %v1922_v28  ;;  %v1360_v28 = vrot.slane %v1351_v22, %v1359_v23 }
  0x51   : > { %1315 = vmatpush1.bf16.msra.mxu0 %v1925_v29  ;;  %1234 = vmatprep.subr.bf16.mxu1 %v1930_v30  ;;  %v1370_v29 = vrot.slane %v1365_v24, %v1355_v21 }
  0x52   : > { %1316 = vmatprep.subr.bf16.mxu0 %v1933_v31 }
  0x54   : > { %1235 = vmatpush1.bf16.msra.mxu1 %v1928_v32  ;;  %v1374_v32 = vrot.slane %v1365_v24, %v1359_v23 }
  0x55   : > { %1317 = vmatpush1.bf16.msra.mxu0 %v1931_v33  ;;  %1236 = vmatprep.subr.bf16.mxu1 %v1936_v34 }
  0x56   : > { %1318 = vmatprep.subr.bf16.mxu0 %v1939_v35 }
  0x58   : > { %1237 = vmatpush1.bf16.msra.mxu1 %v1934_v36 }
  0x59   : > { %1319 = vmatpush1.bf16.msra.mxu0 %v1937_v37  ;;  %1238 = vmatprep.subr.bf16.mxu1 %v1942_v38 }
  0x5a   : > { %1320 = vmatprep.subr.bf16.mxu0 %v1945_v39 }
  0x5c   : > { %1239 = vmatpush1.bf16.msra.mxu1 %v1940_v40 }
  0x5d   : > { %1321 = vmatpush1.bf16.msra.mxu0 %v1943_v41  ;;  %1240 = vmatprep.subr.bf16.mxu1 %v1948_v42 }
  0x5e   : > { %1322 = vmatprep.subr.bf16.mxu0 %v1951_v44 }
  0x60   : > { %1241 = vmatpush1.bf16.msra.mxu1 %v1946_v45 }
  0x61   : > { %1323 = vmatpush1.bf16.msra.mxu0 %v1949_v46  ;;  %1242 = vmatprep.subr.bf16.mxu1 %v1954_v47 }
  0x62   : > { %1324 = vmatprep.subr.bf16.mxu0 %v1957_v48 }
  0x64   : > { %1243 = vmatpush1.bf16.msra.mxu1 %v1952_v49 }
  0x65   : > { %1325 = vmatpush1.bf16.msra.mxu0 %v1955_v50  ;;  %1244 = vmatprep.subr.bf16.mxu1 %v1960_v51 }
  0x66   : > { %1326 = vmatprep.subr.bf16.mxu0 %v1963_v52 }
  0x68   : > { %1245 = vmatpush1.bf16.msra.mxu1 %v1958_v53 }
  0x69   : > { %1327 = vmatpush1.bf16.msra.mxu0 %v1961_v54  ;;  %1246 = vmatprep.subr.bf16.mxu1 %v1966_v55 }
  0x6a   : > { %1328 = vmatprep.subr.bf16.mxu0 %v1969_v56 }
  0x6c   : > { %1247 = vmatpush1.bf16.msra.mxu1 %v1964_v57 }
  0x6d   : > { %1329 = vmatpush1.bf16.msra.mxu0 %v1967_v58  ;;  %1248 = vmatprep.subr.bf16.mxu1 %v1972_v59 }
  0x6e   : > { %1330 = vmatprep.subr.bf16.mxu0 %v1975_v60 }
  0x70   : > { %1249 = vmatpush1.bf16.msra.mxu1 %v1970_v61 }
  0x71   : > { %1331 = vmatpush1.bf16.msra.mxu0 %v1973_v62  ;;  %1250 = vmatprep.subr.bf16.mxu1 %v1978_v63 }
  0x72   : > { %1332 = vmatprep.subr.bf16.mxu0 %v1981_v0 }
  0x74   : > { %1251 = vmatpush1.bf16.msra.mxu1 %v1976_v1 }
  0x75   : > { %1333 = vmatpush1.bf16.msra.mxu0 %v1979_v2  ;;  %1252 = vmatprep.subr.bf16.mxu1 %v1984_v3 }
  0x76   : > { %1334 = vmatprep.subr.bf16.mxu0 %v1987_v4 }
  0x78   : > { %1253 = vmatpush1.bf16.msra.mxu1 %v1982_v5 }
  0x79   : > { %1335 = vmatpush1.bf16.msra.mxu0 %v1985_v6  ;;  %1254 = vmatprep.subr.bf16.mxu1 %v1990_v7 }
  0x7a   : > { %1336 = vmatprep.subr.bf16.mxu0 %v1993_v8 }
  0x7c   : > { %1255 = vmatpush1.bf16.msra.mxu1 %v1988_v9 }
  0x7d   : > { %1337 = vmatpush1.bf16.msra.mxu0 %v1991_v10  ;;  %1256 = vmatprep.subr.bf16.mxu1 %v1996_v11 }
  0x7e   : > { %1338 = vmatprep.subr.bf16.mxu0 %v1999_v12 }
  0x80   : > { %1257 = vmatpush1.bf16.msra.mxu1 %v1994_v13 }
  0x81   : > { %1339 = vmatpush1.bf16.msra.mxu0 %v1997_v14  ;;  %1258 = vmatprep.subr.bf16.mxu1 %v2002_v15 }
  0x82   : > { %1340 = vmatprep.subr.bf16.mxu0 %v2005_v18 }
  0x84   : > { %1259 = vmatpush1.bf16.msra.mxu1 %v2000_v19 }
  0x85   : > { %1341 = vmatpush1.bf16.msra.mxu0 %v2003_v20 }
  0x87   : > { %1261 = vmatmul.mubr.bf16.vlgmr.msra.gmra.mrb[0].mxu1 %v2292_v16 }
  0x88   : > { %1343 = vmatmul.mubr.bf16.vlgmr.msra.gmra.mrb[0].mxu0 %v2294_v17 }
 0x15a   : > { %v1262_v26 = vpop.f32.mrb[0].mxu1 }
 0x15b   : > { %v1344_v27 = vpop.f32.mrb[0].mxu0  ;;  %v1264_v17 = vpop.f32.mrb[1].mxu1 }
 0x15c   : > { %v1777_v16 = vadd.f32 %v1344_v27, %v1262_v26  ;;  %v1346_v30 = vpop.f32.mrb[1].mxu0  ;;  %v1266_v33 = vpop.f32.mrb[2].mxu1 }
 0x15d   : > { %v1778_v31 = vadd.f32 %v1346_v30, %v1264_v17  ;;  %v1348_v34 = vpop.f32.mrb[2].mxu0  ;;  %v1267_v36 = vpop.f32.mrb[3].mxu1 }
 0x15e   : > { %v1363_v35 = vmul.f32 %v1777_v16, %v1356_v25  ;;  %v1349_v43 = vpop.f32.mrb[3].mxu0 }
 0x15f   : > { %v1364_v37 = vmul.f32 %v1778_v31, %v1360_v28 }
 0x160   : > { %v1377_v38 = vadd.f32 %v1370_v29, %v1363_v35 }
 0x161   : > { %v1378_v39 = vadd.f32 %v1374_v32, %v1364_v37 }
 0x162   : > { %v1393_v40 = vmul.f32 %v1377_v38, %v1377_v38 }
 0x163   : > { %v1770_v41 = vpack.c.bf16 %v1378_v39, %v1377_v38  ;;  %v1394_v42 = vmul.f32 %v1378_v39, %v1378_v39 }
 0x164   : > { %v1396_v44 = vsel %vm1395_vm0, %v1393_v40, 0.0 }
 0x165   : > { %v1397_v45 = vrot.slane %v1396_v44, 4  ;;  %1771 = vst.sshfl [vmem:[%s357_s25] sm:$0x33 pattern:$0x76325410] %v1770_v41  ;;  %v1403_v46 = vsel %vm1395_vm0, %v1394_v42, 0.0 }
 0x166   : > { %v1404_v47 = vrot.slane %v1403_v46, 4 }
 0x167   : > { %v1398_v48 = vadd.f32 %v1397_v45, %v1396_v44 }
 0x168   : > { %v1405_v49 = vadd.f32 %v1404_v47, %v1403_v46 }
 0x169   : > { %v1399_v50 = vrot.slane %v1398_v48, 2 }
 0x16a   : > { %v1406_v51 = vrot.slane %v1405_v49, 2 }
 0x16b   : > { %v1400_v52 = vadd.f32 %v1399_v50, %v1398_v48 }
 0x16c   : > { %v1407_v53 = vadd.f32 %v1406_v51, %v1405_v49 }
 0x16d   : > { %v1401_v54 = vrot.slane %v1400_v52, 1 }
 0x16e   : > { %v1408_v55 = vrot.slane %v1407_v53, 1 }
 0x16f   : > { %v1402_v56 = vadd.f32 %v1401_v54, %v1400_v52 }
 0x170   : > { %v1409_v57 = vadd.f32 %v1408_v55, %v1407_v53 }
 0x171   : > { %v1410_v58 = vmul.f32 0.25, %v1402_v56 }
 0x172   : > { %v1411_v59 = vmul.f32 0.25, %v1409_v57 }
 0x173   : > { %1412 = vst [vmem:[%s371_s28] sm:$0xff] %v1410_v58 }
 0x174   : > { %1413 = vst [vmem:[%s371_s28 + $0x8] sm:$0xff] %v1411_v59 }
 0x175 PF: > { %s16_s20 = sadd.s32 1, %s2028_s20   ;;  %s2520_s18 = smov %s2024_s19 }
 0x176   : > { %p13_p5 = scmp.ge.s32.totalorder %s16_s20, 4   ;;  %s2521_s19 = smov %s2523_s21 }
 0x178   :  { %15 = sbr.rel (!%p13_p5) target bundleno = 2 (0x2), region = 87 }

// kernel: a_call__.38
= control target key start
LH: loop header
LB: loop body
LE: loop exit
PB: predicated region body
PF: predicated region fallthrough
CT: control target
= control target key end

     0   :  { %s859_s18 = smov 0   ;;  %s861_s19 = smov 0   ;;  %s953_s0 = inlined_call_operand.vmem [shape: bf16[2,4,256], index: 0, kind: input, shape index: {}]   ;;  %s954_s1 = inlined_call_operand.vmem [shape: bf16[256,128], index: 1, kind: input, shape index: {}]   ;;  %s955_s2 = inlined_call_operand.vmem [shape: f32[1,128], index: 2, kind: input, shape index: {}]   ;;  %s956_s3 = inlined_call_operand.vmem [shape: f32[1,128], index: 3, kind: input, shape index: {}]   ;;  %s957_s4 = inlined_call_operand.vmem [shape: bf16[2,4,128], index: 4, kind: input, shape index: {}]   ;;  %s958_s5 = inlined_call_operand.vmem [shape: bf16[2,4,128], index: 5, kind: output, shape index: {}]  }
   0x1   :  { %s863_s20 = smov 0  }
   0x2 LB: > { %s34_s21 = sadd.s32 1, %s823_s19  ;;  %p716_p0 = scmp.ge.s32.totalorder %s827_s20, 1  ;;  %s827_s20 = sphi %s863_s20, %s15_s20   ;;  %s823_s19 = sphi %s861_s19, %s960_s19   ;;  %s819_s18 = sphi %s859_s18, %s959_s18  }
   0x3   : > { %p36_p1 = scmp.ge.s32.totalorder %s34_s21, 2  ;;  %p260_p2 = scmp.lt.s32.totalorder %s827_s20, 3 }
   0x5   : > { %s962_s21 = smov (%p36_p1, %s34_s21), 0  ;;  %p261_p3 = pnand %p716_p0, %p260_p2 }
   0x6   : > { %v789_v0 = vld [vmem:[%s954_s1 + $0x40] sm:$0xff] (!%p261_p3)   ;;  %v791_v2 = vld [vmem:[%s954_s1 + $0x48] sm:$0xff] (!%p261_p3)   ;;  %p317_p4 = scmp.lt.s32.totalorder (!%p261_p3), %s819_s18, 1  ;;  %v793_v4 = vld [vmem:[%s954_s1 + $0x50] sm:$0xff] (!%p261_p3)  }
   0x7   : > { %264 = sbr.rel (%p261_p3) target bundleno = 263 (0x107), region = 40  ;;  %v790_v1 = vld [vmem:[%s954_s1] sm:$0xff] (!%p261_p3)   ;;  %743 = vmatprep.subr.bf16.mxu0 (!%p261_p3), %v789_v0  ;;  %v792_v3 = vld [vmem:[%s954_s1 + $0x8] sm:$0xff] (!%p261_p3)   ;;  %v794_v5 = vld [vmem:[%s954_s1 + $0x10] sm:$0xff] (!%p261_p3)  }
   0x8   : > { %744 = vmatpush3.bf16.msra.mxu0 (!%p261_p3), %v790_v1  ;;  %v795_v6 = vld [vmem:[%s954_s1 + $0x58] sm:$0xff] (!%p261_p3)   ;;  %v797_v8 = vld [vmem:[%s954_s1 + $0x60] sm:$0xff] (!%p261_p3)   ;;  %v799_v10 = vld [vmem:[%s954_s1 + $0x68] sm:$0xff] (!%p261_p3)  }
   0x9   : > { %745 = vmatprep.subr.bf16.mxu0 (!%p261_p3), %v791_v2  ;;  %v796_v7 = vld [vmem:[%s954_s1 + $0x18] sm:$0xff] (!%p261_p3)   ;;  %v798_v9 = vld [vmem:[%s954_s1 + $0x20] sm:$0xff] (!%p261_p3)   ;;  %v800_v13 = vld [vmem:[%s954_s1 + $0x28] sm:$0xff] (!%p261_p3)  }
   0xa   : > { %v801_v14 = vld [vmem:[%s954_s1 + $0x70] sm:$0xff] (!%p261_p3)   ;;  %v803_v16 = vld [vmem:[%s954_s1 + $0x78] sm:$0xff] (!%p261_p3)   ;;  %v738_v21 = vld [vmem:[%s955_s2] ss:$0 sm:$0xff] (!%p261_p3) }
   0xb   : > { %v802_v15 = vld [vmem:[%s954_s1 + $0x30] sm:$0xff] (!%p261_p3)   ;;  %v804_v17 = vld [vmem:[%s954_s1 + $0x38] sm:$0xff] (!%p261_p3)   ;;  %v739_v24 = vld [vmem:[%s956_s3] ss:$0 sm:$0xff] (!%p261_p3) }
   0xc   : > { %746 = vmatpush3.bf16.msra.mxu0 (!%p261_p3), %v792_v3 }
   0xd   : > { %747 = vmatprep.subr.bf16.mxu0 (!%p261_p3), %v793_v4 }
   0xe   : > { %s964_s18 = smov (!%p317_p4, %s819_s18), 1 }
   0xf   : > { %s742_s11 = sshll.u32 %s964_s18, 2  ;;  %s719_s12 = sshll.u32 %s964_s18, 1 }
  0x10   : > { %748 = vmatpush3.bf16.msra.mxu0 %v794_v5  ;;  %s325_s22 = scalar_lea.vmem %s953_s0, %s742_s11  ;;  %s345_s15 = scalar_lea.vmem %s957_s4, %s719_s12 }
  0x11   : > { %749 = vmatprep.subr.bf16.mxu0 %v795_v6  ;;  %v721_v11 = vld.sshfl [vmem:[%s325_s22] sm:$0x33 pattern:$0x76325410]  ;;  %s355_s25 = scalar_lea.vmem %s958_s5, %s719_s12 }
  0x12   : > { %v398_v12 = vcombine.high %v721_v11, %v721_v11  ;;  %v553_v19 = vld [vmem:[%s345_s15] sm:$0x3] }
  0x13   : > { %v554_v26 = vunpack.c.l.bf16 %v553_v19 }
  0x14   : > { %750 = vmatpush3.bf16.msra.mxu0 %v796_v7  ;;  %529 = vmatprep.mubr.bf16.mxu0 %v398_v12 }
  0x15   : > { %751 = vmatprep.subr.bf16.mxu0 %v797_v8 }
  0x18   : > { %752 = vmatpush3.bf16.msra.mxu0 %v798_v9 }
  0x19   : > { %753 = vmatprep.subr.bf16.mxu0 %v799_v10 }
  0x1c   : > { %754 = vmatpush3.bf16.msra.mxu0 %v800_v13 }
  0x1d   : > { %755 = vmatprep.subr.bf16.mxu0 %v801_v14 }
  0x20   : > { %756 = vmatpush3.bf16.msra.mxu0 %v802_v15 }
  0x21   : > { %757 = vmatprep.subr.bf16.mxu0 %v803_v16 }
  0x24   : > { %758 = vmatpush3.bf16.msra.mxu0 %v804_v17 }
  0x27   : > { %530 = vmatmul.mubr.bf16.vlgmr.msra.gmra.mrb[0].mxu0 %v721_v11 }
  0xfa   : > { %v759_v18 = vpop.f32.mrb[0].mxu0 }
  0xfb   : > { %v760_v20 = vpop.f32.mrb[1].mxu0 }
  0xfc   : > { %v761_v22 = vadd.f32 %v760_v20, %v759_v18  ;;  %v762_v23 = vpop.f32.mrb[2].mxu0 }
  0xfd   : > { %v763_v25 = vpop.f32.mrb[3].mxu0 }
  0xfe   : > { %v544_v27 = vmul.f32 %v761_v22, %v738_v21 }
 0x100   : > { %v552_v28 = vadd.f32 %v739_v24, %v544_v27 }
 0x102   : > { %v555_v29 = vadd.f32 %v554_v26, %v552_v28 }
 0x104   : > { %v556_v30 = vpack.c.bf16 %v555_v29, %v555_v29 }
 0x106   : > { %557 = vst [vmem:[%s355_s25] sm:$0x3] %v556_v30 }
 0x107 PF: > { %s15_s20 = sadd.s32 1, %s827_s20   ;;  %s959_s18 = smov %s823_s19 }
 0x108   : > { %p12_p5 = scmp.ge.s32.totalorder %s15_s20, 4   ;;  %s960_s19 = smov %s962_s21 }
 0x10a   :  { %14 = sbr.rel (!%p12_p5) target bundleno = 2 (0x2), region = 82 }

// kernel: a_call__.40
= control target key start
LH: loop header
LB: loop body
LE: loop exit
PB: predicated region body
PF: predicated region fallthrough
CT: control target
= control target key end

     0   :  { %s337_s6 = smov 0   ;;  %s339_s7 = smov 0   ;;  %s385_s0 = inlined_call_operand.vmem [shape: bf16[2,4,1280], index: 0, kind: input, shape index: {}]   ;;  %s386_s1 = inlined_call_operand.vmem [shape: f32[2,1,1280], index: 1, kind: output, shape index: {}]  }
   0x1   :  { %s341_s8 = smov 0   ;;  %s343_s9 = smov 0  }
   0x2   :  { %s345_s10 = smov 0  }
   0x3 LB: > { %s20_s11 = sadd.s32 1, %s317_s8  ;;  %s23_s12 = sadd.s32 1, %s321_s9  ;;  %s325_s10 = sphi %s345_s10, %s11_s10   ;;  %s321_s9 = sphi %s343_s9, %s390_s9   ;;  %s317_s8 = sphi %s341_s8, %s389_s8   ;;  %s313_s7 = sphi %s339_s7, %s388_s7   ;;  %s309_s6 = sphi %s337_s6, %s387_s6  }
   0x4   : > { %p21_p0 = scmp.ge.s32.totalorder %s20_s11, 10  ;;  %p242_p1 = scmp.ge.s32.totalorder %s325_s10, 1 }
   0x5   : > { %p106_p2 = scmp.lt.s32.totalorder %s325_s10, 21 }
   0x6   : > { %s392_s11 = smov (%p21_p0, %s20_s11), 0  ;;  %s394_s12 = smov (!%p21_p0, %s23_s12), %s321_s9 }
   0x7   : > { %p107_p3 = pnand %p242_p1, %p106_p2  ;;  %p25_p4 = scmp.ge.s32.totalorder %s394_s12, 2 }
   0x8   : > { %p131_p5 = scmp.lt.s32.totalorder (!%p107_p3), %s313_s7, 1  ;;  %p133_p6 = scmp.lt.s32.totalorder (!%p107_p3), %s309_s6, 9  ;;  %vm148_vm0 = vcmask (!%p107_p3), 1043456  }
   0x9   : > { %s396_s12 = smov (%p25_p4, %s394_s12), 0  ;;  %110 = sbr.rel (%p107_p3) target bundleno = 41 (0x29), region = 24 }
  0x10   : > { %s398_s7 = smov (!%p131_p5, %s313_s7), 1  ;;  %s400_s6 = smov (!%p133_p6, %s309_s6), 9 }
  0x11   : > { %s246_s13 = smul.u32 10, %s398_s7 }
  0x13   : > { %s136_s14 = sadd.s32 %s246_s13, %s400_s6 }
  0x14   : > { %s243_s15 = sshll.u32 %s136_s14, 1  ;;  %s145_s21 = scalar_lea.vmem %s386_s1, %s136_s14 }
  0x15   : > { %s138_s18 = scalar_lea.vmem %s385_s0, %s243_s15 }
  0x16   : > { %v146_v0 = vld [vmem:[%s138_s18] sm:$0x3] }
  0x17   : > { %v147_v1 = vunpack.c.l.bf16 %v146_v0 }
  0x19   : > { %v149_v2 = vsel %vm148_vm0, %v147_v1, 0.0 }
  0x1a   : > { %v150_v3 = vrot.slane %v149_v2, 4 }
  0x1c   : > { %v151_v4 = vadd.f32 %v150_v3, %v149_v2 }
  0x1e   : > { %v152_v5 = vrot.slane %v151_v4, 2 }
  0x20   : > { %v153_v6 = vadd.f32 %v152_v5, %v151_v4 }
  0x22   : > { %v154_v7 = vrot.slane %v153_v6, 1 }
  0x24   : > { %v155_v8 = vadd.f32 %v154_v7, %v153_v6 }
  0x26   : > { %v156_v9 = vmul.f32 0.25, %v155_v8 }
  0x28   : > { %157 = vst [vmem:[%s145_s21] sm:$0x1] %v156_v9 }
  0x29 PF: > { %s11_s10 = sadd.s32 1, %s325_s10   ;;  %s387_s6 = smov %s317_s8 }
  0x2a   : > { %p8_p7 = scmp.ge.s32.totalorder %s11_s10, 22   ;;  %s388_s7 = smov %s321_s9 }
  0x2b   : > { %s389_s8 = smov %s392_s11  ;;  %s390_s9 = smov %s396_s12 }
  0x2c   :  { %10 = sbr.rel (!%p8_p7) target bundleno = 3 (0x3), region = 54 }

// kernel: a_call__.39
= control target key start
LH: loop header
LB: loop body
LE: loop exit
PB: predicated region body
PF: predicated region fallthrough
CT: control target
= control target key end

     0   :  { %s1647_s15 = smov 0   ;;  %s1649_s16 = smov 0   ;;  %s1980_s0 = inlined_call_operand.vmem [shape: bf16[2,4,128], index: 0, kind: input, shape index: {}]   ;;  %s1981_s1 = inlined_call_operand.vmem [shape: bf16[128,1280], index: 1, kind: input, shape index: {}]   ;;  %s1982_s2 = inlined_call_operand.vmem [shape: f32[1,1280], index: 2, kind: input, shape index: {}]   ;;  %s1983_s3 = inlined_call_operand.vmem [shape: f32[1,1280], index: 3, kind: input, shape index: {}]   ;;  %s1984_s4 = inlined_call_operand.vmem [shape: bf16[2,4,1280], index: 4, kind: output, shape index: {}]  }
   0x1   :  { %s1651_s17 = smov 0  }
   0x2 LB: > { %s33_s18 = sadd.s32 1, %s1614_s16  ;;  %p1358_p0 = scmp.ge.s32.totalorder %s1618_s17, 1  ;;  %s1618_s17 = sphi %s1651_s17, %s14_s17   ;;  %s1614_s16 = sphi %s1649_s16, %s1986_s16   ;;  %s1610_s15 = sphi %s1647_s15, %s1985_s15  }
   0x3   : > { %p35_p1 = scmp.ge.s32.totalorder %s33_s18, 2  ;;  %p220_p2 = scmp.lt.s32.totalorder %s1618_s17, 3 }
   0x5   : > { %s1988_s18 = smov (%p35_p1, %s33_s18), 0  ;;  %p221_p3 = pnand %p1358_p0, %p220_p2 }
   0x6   : > { %v1476_v0 = vld [vmem:[%s1981_s1 + $0x4] ss:$40 sps:$4 sm:$0xff] (!%p221_p3)   ;;  %v1620_v2 = vmov (!%p221_p3), 0   ;;  %v1480_v3 = vld [vmem:[%s1981_s1] ss:$40 sps:$4 sm:$0xff] (!%p221_p3)   ;;  %p269_p4 = scmp.lt.s32.totalorder (!%p221_p3), %s1610_s15, 1 }
   0x7   : > { %224 = sbr.rel (%p221_p3) target bundleno = 328 (0x148), region = 36  ;;  %v1478_v1 = vld [vmem:[%s1981_s1 + $0xc] ss:$40 sps:$4 sm:$0xff] (!%p221_p3)   ;;  %820 = vmatprep.mubr.bf16.mxu0 (!%p221_p3), %v1620_v2  ;;  %861 = vmatprep.mubr.bf16.mxu1 (!%p221_p3), %v1620_v2  ;;  %v1481_v4 = vld [vmem:[%s1981_s1 + $0x8] ss:$40 sps:$4 sm:$0xff] (!%p221_p3)  }
   0x8   : > { %788 = vmatprep.subr.bf16.mxu0 (!%p221_p3), %v1476_v0  ;;  %829 = vmatprep.subr.bf16.mxu1 (!%p221_p3), %v1478_v1  ;;  %v1482_v5 = vld [vmem:[%s1981_s1 + $0x54] ss:$40 sps:$4 sm:$0xff] (!%p221_p3)   ;;  %v1486_v7 = vld [vmem:[%s1981_s1 + $0x50] ss:$40 sps:$4 sm:$0xff] (!%p221_p3)   ;;  %v1488_v9 = vld [vmem:[%s1981_s1 + $0xa4] ss:$40 sps:$4 sm:$0xff] (!%p221_p3)  }
   0x9   : > { %789 = vmatpush1.bf16.msra.mxu0 (!%p221_p3), %v1480_v3  ;;  %830 = vmatpush1.bf16.msra.mxu1 (!%p221_p3), %v1481_v4  ;;  %v1484_v6 = vld [vmem:[%s1981_s1 + $0x5c] ss:$40 sps:$4 sm:$0xff] (!%p221_p3)   ;;  %v1487_v8 = vld [vmem:[%s1981_s1 + $0x58] ss:$40 sps:$4 sm:$0xff] (!%p221_p3)   ;;  %v1490_v10 = vld [vmem:[%s1981_s1 + $0xac] ss:$40 sps:$4 sm:$0xff] (!%p221_p3)  }
   0xa   : > { %790 = vmatprep.subr.bf16.mxu0 (!%p221_p3), %v1482_v5  ;;  %831 = vmatprep.subr.bf16.mxu1 (!%p221_p3), %v1484_v6  ;;  %v1492_v11 = vld [vmem:[%s1981_s1 + $0xa0] ss:$40 sps:$4 sm:$0xff] (!%p221_p3)   ;;  %v1494_v13 = vld [vmem:[%s1981_s1 + $0xf4] ss:$40 sps:$4 sm:$0xff] (!%p221_p3)   ;;  %v1498_v15 = vld [vmem:[%s1981_s1 + $0xf0] ss:$40 sps:$4 sm:$0xff] (!%p221_p3)  }
   0xb   : > { %v1493_v12 = vld [vmem:[%s1981_s1 + $0xa8] ss:$40 sps:$4 sm:$0xff] (!%p221_p3)   ;;  %v1496_v14 = vld [vmem:[%s1981_s1 + $0xfc] ss:$40 sps:$4 sm:$0xff] (!%p221_p3)   ;;  %v1499_v16 = vld [vmem:[%s1981_s1 + $0xf8] ss:$40 sps:$4 sm:$0xff] (!%p221_p3)  }
   0xc   : > { %v1500_v17 = vld [vmem:[%s1981_s1 + $0x144] ss:$40 sps:$4 sm:$0xff] (!%p221_p3)   ;;  %v1504_v19 = vld [vmem:[%s1981_s1 + $0x140] ss:$40 sps:$4 sm:$0xff] (!%p221_p3)   ;;  %v1506_v21 = vld [vmem:[%s1981_s1 + $0x194] ss:$40 sps:$4 sm:$0xff] (!%p221_p3)  }
   0xd   : > { %791 = vmatpush1.bf16.msra.mxu0 (!%p221_p3), %v1486_v7  ;;  %832 = vmatpush1.bf16.msra.mxu1 (!%p221_p3), %v1487_v8  ;;  %v1502_v18 = vld [vmem:[%s1981_s1 + $0x14c] ss:$40 sps:$4 sm:$0xff] (!%p221_p3)   ;;  %v1505_v20 = vld [vmem:[%s1981_s1 + $0x148] ss:$40 sps:$4 sm:$0xff] (!%p221_p3)   ;;  %v1508_v22 = vld [vmem:[%s1981_s1 + $0x19c] ss:$40 sps:$4 sm:$0xff] (!%p221_p3)  }
   0xe   : > { %792 = vmatprep.subr.bf16.mxu0 %v1488_v9  ;;  %833 = vmatprep.subr.bf16.mxu1 %v1490_v10  ;;  %v1510_v23 = vld [vmem:[%s1981_s1 + $0x190] ss:$40 sps:$4 sm:$0xff]   ;;  %s1990_s15 = smov (!%p269_p4, %s1610_s15), 1  ;;  %v1512_v25 = vld [vmem:[%s1981_s1 + $0x1e4] ss:$40 sps:$4 sm:$0xff]  }
   0xf   : > { %v1511_v24 = vld [vmem:[%s1981_s1 + $0x198] ss:$40 sps:$4 sm:$0xff]   ;;  %v1514_v26 = vld [vmem:[%s1981_s1 + $0x1ec] ss:$40 sps:$4 sm:$0xff]   ;;  %v1517_v28 = vld [vmem:[%s1981_s1 + $0x1e8] ss:$40 sps:$4 sm:$0xff]  }
  0x10   : > { %v1516_v27 = vld [vmem:[%s1981_s1 + $0x1e0] ss:$40 sps:$4 sm:$0xff]   ;;  %s1359_s5 = sshll.u32 %s1990_s15, 1  ;;  %v1518_v29 = vld [vmem:[%s1981_s1 + $0x234] ss:$40 sps:$4 sm:$0xff]   ;;  %s1449_s7 = smul.u32 20, %s1990_s15 }
  0x11   : > { %793 = vmatpush1.bf16.msra.mxu0 %v1492_v11  ;;  %834 = vmatpush1.bf16.msra.mxu1 %v1493_v12  ;;  %v1520_v30 = vld [vmem:[%s1981_s1 + $0x23c] ss:$40 sps:$4 sm:$0xff]   ;;  %v1522_v31 = vld [vmem:[%s1981_s1 + $0x230] ss:$40 sps:$4 sm:$0xff]   ;;  %s275_s14 = scalar_lea.vmem %s1980_s0, %s1359_s5  ;;  %v1535_v39 = vld [vmem:[%s1981_s1 + $0x6c] ss:$40 sps:$4 sm:$0xff]  }
  0x12   : > { %794 = vmatprep.subr.bf16.mxu0 %v1494_v13  ;;  %835 = vmatprep.subr.bf16.mxu1 %v1496_v14  ;;  %v1523_v32 = vld [vmem:[%s1981_s1 + $0x238] ss:$40 sps:$4 sm:$0xff]   ;;  %v1526_v33 = vld [vmem:[%s1981_s1 + $0x14] ss:$40 sps:$4 sm:$0xff]   ;;  %v1532_v38 = vld [vmem:[%s1981_s1 + $0x64] ss:$40 sps:$4 sm:$0xff]   ;;  %s1952_s10 = scalar_lea.vmem %s1984_s4, %s1449_s7 }
  0x13   : > { %v1529_v34 = vld [vmem:[%s1981_s1 + $0x1c] ss:$40 sps:$4 sm:$0xff]   ;;  %v1779_v35 = vld [vmem:[%s275_s14] sm:$0x3]  ;;  %v1524_v36 = vld [vmem:[%s1981_s1 + $0x10] ss:$40 sps:$4 sm:$0xff]  }
  0x14   : > { %v1527_v37 = vld [vmem:[%s1981_s1 + $0x18] ss:$40 sps:$4 sm:$0xff]   ;;  %v1533_v41 = vld [vmem:[%s1981_s1 + $0x68] ss:$40 sps:$4 sm:$0xff]   ;;  %v1538_v42 = vld [vmem:[%s1981_s1 + $0xb4] ss:$40 sps:$4 sm:$0xff]  }
  0x15   : > { %795 = vmatpush1.bf16.msra.mxu0 %v1498_v15  ;;  %836 = vmatpush1.bf16.msra.mxu1 %v1499_v16  ;;  %v1530_v40 = vld [vmem:[%s1981_s1 + $0x60] ss:$40 sps:$4 sm:$0xff]   ;;  %v1541_v43 = vld [vmem:[%s1981_s1 + $0xbc] ss:$40 sps:$4 sm:$0xff]   ;;  %v1536_v44 = vld [vmem:[%s1981_s1 + $0xb0] ss:$40 sps:$4 sm:$0xff]  }
  0x16   : > { %796 = vmatprep.subr.bf16.mxu0 %v1500_v17  ;;  %837 = vmatprep.subr.bf16.mxu1 %v1502_v18  ;;  %v1539_v45 = vld [vmem:[%s1981_s1 + $0xb8] ss:$40 sps:$4 sm:$0xff]   ;;  %v1544_v46 = vld [vmem:[%s1981_s1 + $0x104] ss:$40 sps:$4 sm:$0xff]   ;;  %v1545_v49 = vld [vmem:[%s1981_s1 + $0x108] ss:$40 sps:$4 sm:$0xff]   ;;  %v997_v18 = vlaneseq }
  0x17   : > { %v1547_v47 = vld [vmem:[%s1981_s1 + $0x10c] ss:$40 sps:$4 sm:$0xff]   ;;  %v1542_v48 = vld [vmem:[%s1981_s1 + $0x100] ss:$40 sps:$4 sm:$0xff]   ;;  %v1553_v51 = vld [vmem:[%s1981_s1 + $0x15c] ss:$40 sps:$4 sm:$0xff]  }
  0x18   : > { %v1550_v50 = vld [vmem:[%s1981_s1 + $0x154] ss:$40 sps:$4 sm:$0xff]   ;;  %v1548_v52 = vld [vmem:[%s1981_s1 + $0x150] ss:$40 sps:$4 sm:$0xff]   ;;  %v1556_v54 = vld [vmem:[%s1981_s1 + $0x1a4] ss:$40 sps:$4 sm:$0xff]  }
  0x19   : > { %797 = vmatpush1.bf16.msra.mxu0 %v1504_v19  ;;  %838 = vmatpush1.bf16.msra.mxu1 %v1505_v20  ;;  %v1551_v53 = vld [vmem:[%s1981_s1 + $0x158] ss:$40 sps:$4 sm:$0xff]   ;;  %v1559_v55 = vld [vmem:[%s1981_s1 + $0x1ac] ss:$40 sps:$4 sm:$0xff]   ;;  %v1557_v57 = vld [vmem:[%s1981_s1 + $0x1a8] ss:$40 sps:$4 sm:$0xff]  }
  0x1a   : > { %798 = vmatprep.subr.bf16.mxu0 %v1506_v21  ;;  %839 = vmatprep.subr.bf16.mxu1 %v1508_v22  ;;  %v1554_v56 = vld [vmem:[%s1981_s1 + $0x1a0] ss:$40 sps:$4 sm:$0xff]   ;;  %v1562_v58 = vld [vmem:[%s1981_s1 + $0x1f4] ss:$40 sps:$4 sm:$0xff]   ;;  %v1560_v60 = vld [vmem:[%s1981_s1 + $0x1f0] ss:$40 sps:$4 sm:$0xff]  }
  0x1b   : > { %v1565_v59 = vld [vmem:[%s1981_s1 + $0x1fc] ss:$40 sps:$4 sm:$0xff]   ;;  %v1563_v61 = vld [vmem:[%s1981_s1 + $0x1f8] ss:$40 sps:$4 sm:$0xff]   ;;  %v1571_v63 = vld [vmem:[%s1981_s1 + $0x24c] ss:$40 sps:$4 sm:$0xff]  }
  0x1c   : > { %v1568_v62 = vld [vmem:[%s1981_s1 + $0x244] ss:$40 sps:$4 sm:$0xff]   ;;  %v1566_v0 = vld [vmem:[%s1981_s1 + $0x240] ss:$40 sps:$4 sm:$0xff]   ;;  %v1577_v5 = vld [vmem:[%s1981_s1 + $0x74] ss:$40 sps:$4 sm:$0xff]  }
  0x1d   : > { %799 = vmatpush1.bf16.msra.mxu0 %v1510_v23  ;;  %840 = vmatpush1.bf16.msra.mxu1 %v1511_v24  ;;  %v1569_v1 = vld [vmem:[%s1981_s1 + $0x248] ss:$40 sps:$4 sm:$0xff]   ;;  %v1574_v3 = vld [vmem:[%s1981_s1 + $0x24] ss:$40 sps:$4 sm:$0xff]   ;;  %v1583_v9 = vld [vmem:[%s1981_s1 + $0x114] ss:$40 sps:$4 sm:$0xff]  }
  0x1e   : > { %800 = vmatprep.subr.bf16.mxu0 %v1512_v25  ;;  %841 = vmatprep.subr.bf16.mxu1 %v1514_v26  ;;  %v1572_v4 = vld [vmem:[%s1981_s1 + $0x20] ss:$40 sps:$4 sm:$0xff]   ;;  %v1575_v6 = vld [vmem:[%s1981_s1 + $0x70] ss:$40 sps:$4 sm:$0xff]   ;;  %v1580_v7 = vld [vmem:[%s1981_s1 + $0xc4] ss:$40 sps:$4 sm:$0xff]  }
  0x1f   : > { %v1578_v8 = vld [vmem:[%s1981_s1 + $0xc0] ss:$40 sps:$4 sm:$0xff]   ;;  %v1586_v10 = vld [vmem:[%s1981_s1 + $0x164] ss:$40 sps:$4 sm:$0xff]   ;;  %v1589_v12 = vld [vmem:[%s1981_s1 + $0x1b4] ss:$40 sps:$4 sm:$0xff]  }
  0x20   : > { %v1584_v11 = vld [vmem:[%s1981_s1 + $0x160] ss:$40 sps:$4 sm:$0xff]   ;;  %v1587_v13 = vld [vmem:[%s1981_s1 + $0x1b0] ss:$40 sps:$4 sm:$0xff]   ;;  %v1592_v14 = vld [vmem:[%s1981_s1 + $0x204] ss:$40 sps:$4 sm:$0xff]  }
  0x21   : > { %801 = vmatpush1.bf16.msra.mxu0 %v1516_v27  ;;  %842 = vmatpush1.bf16.msra.mxu1 %v1517_v28  ;;  %v1590_v15 = vld [vmem:[%s1981_s1 + $0x200] ss:$40 sps:$4 sm:$0xff]   ;;  %v1595_v16 = vld [vmem:[%s1981_s1 + $0x254] ss:$40 sps:$4 sm:$0xff]   ;;  %v1593_v17 = vld [vmem:[%s1981_s1 + $0x250] ss:$40 sps:$4 sm:$0xff]  }
  0x22   : > { %802 = vmatprep.subr.bf16.mxu0 %v1518_v29  ;;  %843 = vmatprep.subr.bf16.mxu1 %v1520_v30  ;;  %v1927_v19 = vshrl.u32 %v997_v18, 7  ;;  %v993_v22 = vld [vmem:[%s1982_s2] sm:$0xff] }
  0x23   : > { %v1057_v25 = vld [vmem:[%s1983_s3] sm:$0xff] }
  0x24   : > { %v1930_v20 = vsub.s32 0, %v1927_v19  ;;  %v1007_v21 = vsub.s32 2, %v1927_v19  ;;  %v1937_v23 = vsub.s32 1, %v1927_v19  ;;  %v1011_v24 = vsub.s32 3, %v1927_v19 }
  0x25   : > { %803 = vmatpush1.bf16.msra.mxu0 %v1522_v31  ;;  %844 = vmatpush1.bf16.msra.mxu1 %v1523_v32 }
  0x26   : > { %870 = vmatprep.subr.bf16.mxu0 %v1526_v33  ;;  %911 = vmatprep.subr.bf16.mxu1 %v1529_v34  ;;  %v1000_v26 = vrot.slane %v993_v22, %v1930_v20  ;;  %v1008_v27 = vrot.slane %v993_v22, %v1007_v21  ;;  %v1004_v28 = vrot.slane %v993_v22, %v1937_v23 }
  0x27   : > { %v1012_v29 = vrot.slane %v993_v22, %v1011_v24  ;;  %v1064_v30 = vrot.slane %v1057_v25, %v1930_v20  ;;  %v1072_v31 = vrot.slane %v1057_v25, %v1007_v21  ;;  %v1068_v34 = vrot.slane %v1057_v25, %v1937_v23 }
  0x28   : > { %821 = vmatmul.mubr.bf16.vlgmr.msra.gmra.mrb[0].mxu0 %v1779_v35  ;;  %862 = vmatmul.mubr.bf16.vlgmr.msra.gmra.mrb[0].mxu1 %v1779_v35 }
  0x29   : > { %871 = vmatpush1.bf16.msra.mxu0 %v1524_v36  ;;  %912 = vmatpush1.bf16.msra.mxu1 %v1527_v37  ;;  %v1076_v37 = vrot.slane %v1057_v25, %v1011_v24 }
  0x2a   : > { %872 = vmatprep.subr.bf16.mxu0 %v1532_v38  ;;  %913 = vmatprep.subr.bf16.mxu1 %v1535_v39 }
  0x2b   : > { %902 = vmatprep.mubr.bf16.mxu0 %v1620_v2  ;;  %943 = vmatprep.mubr.bf16.mxu1 %v1620_v2 }
  0x2d   : > { %873 = vmatpush1.bf16.msra.mxu0 %v1530_v40  ;;  %914 = vmatpush1.bf16.msra.mxu1 %v1533_v41 }
  0x2e   : > { %874 = vmatprep.subr.bf16.mxu0 %v1538_v42  ;;  %915 = vmatprep.subr.bf16.mxu1 %v1541_v43 }
  0x31   : > { %875 = vmatpush1.bf16.msra.mxu0 %v1536_v44  ;;  %916 = vmatpush1.bf16.msra.mxu1 %v1539_v45 }
  0x32   : > { %876 = vmatprep.subr.bf16.mxu0 %v1544_v46  ;;  %917 = vmatprep.subr.bf16.mxu1 %v1547_v47 }
  0x35   : > { %877 = vmatpush1.bf16.msra.mxu0 %v1542_v48  ;;  %918 = vmatpush1.bf16.msra.mxu1 %v1545_v49 }
  0x36   : > { %878 = vmatprep.subr.bf16.mxu0 %v1550_v50  ;;  %919 = vmatprep.subr.bf16.mxu1 %v1553_v51 }
  0x39   : > { %879 = vmatpush1.bf16.msra.mxu0 %v1548_v52  ;;  %920 = vmatpush1.bf16.msra.mxu1 %v1551_v53 }
  0x3a   : > { %880 = vmatprep.subr.bf16.mxu0 %v1556_v54  ;;  %921 = vmatprep.subr.bf16.mxu1 %v1559_v55 }
  0x3d   : > { %881 = vmatpush1.bf16.msra.mxu0 %v1554_v56  ;;  %922 = vmatpush1.bf16.msra.mxu1 %v1557_v57 }
  0x3e   : > { %882 = vmatprep.subr.bf16.mxu0 %v1562_v58  ;;  %923 = vmatprep.subr.bf16.mxu1 %v1565_v59 }
  0x41   : > { %883 = vmatpush1.bf16.msra.mxu0 %v1560_v60  ;;  %924 = vmatpush1.bf16.msra.mxu1 %v1563_v61 }
  0x42   : > { %884 = vmatprep.subr.bf16.mxu0 %v1568_v62  ;;  %925 = vmatprep.subr.bf16.mxu1 %v1571_v63 }
  0x45   : > { %885 = vmatpush1.bf16.msra.mxu0 %v1566_v0  ;;  %926 = vmatpush1.bf16.msra.mxu1 %v1569_v1 }
  0x46   : > { %952 = vmatprep.subr.bf16.mxu0 %v1574_v3 }
  0x48   : > { %903 = vmatmul.mubr.bf16.vlgmr.msra.gmra.mrb[4].mxu0 %v1779_v35  ;;  %944 = vmatmul.mubr.bf16.vlgmr.msra.gmra.mrb[4].mxu1 %v1779_v35 }
  0x49   : > { %953 = vmatpush1.bf16.msra.mxu0 %v1572_v4  ;;  %984 = vmatprep.mubr.bf16.mxu0 %v1620_v2  ;;  %v1581_v2 = vld [vmem:[%s1981_s1 + $0x110] ss:$40 sps:$4 sm:$0xff]   ;;  %v1015_v4 = vsub.s32 4, %v1927_v19 }
  0x4a   : > { %954 = vmatprep.subr.bf16.mxu0 %v1577_v5  ;;  %v1023_v5 = vsub.s32 6, %v1927_v19 }
  0x4d   : > { %955 = vmatpush1.bf16.msra.mxu0 %v1575_v6  ;;  %v1019_v6 = vsub.s32 5, %v1927_v19 }
  0x4e   : > { %956 = vmatprep.subr.bf16.mxu0 %v1580_v7  ;;  %v1027_v7 = vsub.s32 7, %v1927_v19 }
  0x51   : > { %957 = vmatpush1.bf16.msra.mxu0 %v1578_v8  ;;  %v1016_v8 = vrot.slane %v993_v22, %v1015_v4 }
  0x52   : > { %958 = vmatprep.subr.bf16.mxu0 %v1583_v9  ;;  %v1024_v9 = vrot.slane %v993_v22, %v1023_v5 }
  0x55   : > { %959 = vmatpush1.bf16.msra.mxu0 %v1581_v2  ;;  %v1020_v2 = vrot.slane %v993_v22, %v1019_v6 }
  0x56   : > { %960 = vmatprep.subr.bf16.mxu0 %v1586_v10  ;;  %v1028_v10 = vrot.slane %v993_v22, %v1027_v7 }
  0x59   : > { %961 = vmatpush1.bf16.msra.mxu0 %v1584_v11  ;;  %v1080_v11 = vrot.slane %v1057_v25, %v1015_v4 }
  0x5a   : > { %962 = vmatprep.subr.bf16.mxu0 %v1589_v12  ;;  %v1088_v12 = vrot.slane %v1057_v25, %v1023_v5 }
  0x5d   : > { %963 = vmatpush1.bf16.msra.mxu0 %v1587_v13 }
  0x5e   : > { %964 = vmatprep.subr.bf16.mxu0 %v1592_v14 }
  0x61   : > { %965 = vmatpush1.bf16.msra.mxu0 %v1590_v15  ;;  %v1084_v15 = vrot.slane %v1057_v25, %v1019_v6 }
  0x62   : > { %966 = vmatprep.subr.bf16.mxu0 %v1595_v16  ;;  %v1092_v16 = vrot.slane %v1057_v25, %v1027_v7 }
  0x65   : > { %967 = vmatpush1.bf16.msra.mxu0 %v1593_v17 }
  0x68   : > { %985 = vmatmul.mubr.bf16.vlgmr.msra.gmra.mrb[8].mxu0 %v1779_v35  ;;  %v1621_v35 = vmov 1983009808  }
  0x69   : > { %v1164_v36 = vunpack.c.l.s4 %v1621_v35 }
  0x6b   : > { %v1165_v51 = vunpack.c.0.s8 %v1164_v36 }
  0x6d   : > { %v1168_v60 = vsub.s32 %v1165_v51, %v1927_v19 }
  0xfb   : > { %v822_v32 = vpop.f32.mrb[0].mxu0  ;;  %v863_v33 = vpop.f32.mrb[0].mxu1 }
  0xfc   : > { %v1047_v38 = vmul.f32 %v1000_v26, %v822_v32  ;;  %v1049_v39 = vmul.f32 %v1008_v27, %v863_v33  ;;  %v824_v40 = vpop.f32.mrb[1].mxu0  ;;  %v865_v41 = vpop.f32.mrb[1].mxu1 }
  0xfd   : > { %v1048_v42 = vmul.f32 %v1004_v28, %v824_v40  ;;  %v1050_v43 = vmul.f32 %v1012_v29, %v865_v41  ;;  %v826_v44 = vpop.f32.mrb[2].mxu0  ;;  %v867_v45 = vpop.f32.mrb[2].mxu1 }
  0xfe   : > { %v1111_v46 = vadd.f32 %v1064_v30, %v1047_v38  ;;  %v1113_v47 = vadd.f32 %v1072_v31, %v1049_v39  ;;  %v827_v48 = vpop.f32.mrb[3].mxu0  ;;  %v868_v49 = vpop.f32.mrb[3].mxu1 }
  0xff   : > { %v1112_v50 = vadd.f32 %v1068_v34, %v1048_v42  ;;  %v1114_v52 = vadd.f32 %v1076_v37, %v1050_v43 }
 0x100   : > { %v1121_v53 = vmax.f32 %v1111_v46, 0.0  ;;  %v1123_v54 = vmax.f32 %v1113_v47, 0.0  ;;  %v994_v46 = vld [vmem:[%s1982_s2 + $0x8] sm:$0x3] }
 0x101   : > { %v1122_v55 = vmax.f32 %v1112_v50, 0.0  ;;  %v1124_v56 = vmax.f32 %v1114_v52, 0.0  ;;  %v1058_v47 = vld [vmem:[%s1983_s3 + $0x8] sm:$0x3]  ;;  %v1032_v48 = vrot.slane %v994_v46, %v1930_v20  ;;  %v1036_v49 = vrot.slane %v994_v46, %v1937_v23 }
 0x102   : > { %v1131_v57 = vmin.f32 %v1121_v53, 6.0  ;;  %v1133_v58 = vmin.f32 %v1123_v54, 6.0  ;;  %v1096_v50 = vrot.slane %v1058_v47, %v1930_v20  ;;  %v1100_v52 = vrot.slane %v1058_v47, %v1937_v23 }
 0x103   : > { %v1132_v59 = vmin.f32 %v1122_v55, 6.0  ;;  %v1134_v61 = vmin.f32 %v1124_v56, 6.0 }
 0x105   : > { %v1441_v62 = vpack.c.bf16 %v1132_v59, %v1131_v57  ;;  %v1442_v63 = vpack.c.bf16 %v1134_v61, %v1133_v58 }
 0x107   : > { %v1169_v0 = vrot.slane %v1441_v62, %v1168_v60  ;;  %v1176_v1 = vrot.slane %v1442_v63, %v1168_v60 }
 0x109   : > { %v1177_v3 = vcombine.low %v1169_v0, %v1176_v1 }
 0x10b   : > { %1206 = vst [vmem:[%s1952_s10] sm:$0xff] %v1177_v3 }
 0x11b   : > { %v904_v13 = vpop.f32.mrb[4].mxu0  ;;  %v945_v14 = vpop.f32.mrb[4].mxu1 }
 0x11c   : > { %v1051_v17 = vmul.f32 %v1016_v8, %v904_v13  ;;  %v1053_v18 = vmul.f32 %v1024_v9, %v945_v14  ;;  %v906_v21 = vpop.f32.mrb[5].mxu0  ;;  %v947_v24 = vpop.f32.mrb[5].mxu1 }
 0x11d   : > { %v1052_v26 = vmul.f32 %v1020_v2, %v906_v21  ;;  %v1054_v27 = vmul.f32 %v1028_v10, %v947_v24  ;;  %v908_v28 = vpop.f32.mrb[6].mxu0  ;;  %v949_v29 = vpop.f32.mrb[6].mxu1 }
 0x11e   : > { %v1115_v30 = vadd.f32 %v1080_v11, %v1051_v17  ;;  %v1117_v19 = vadd.f32 %v1088_v12, %v1053_v18  ;;  %v909_v31 = vpop.f32.mrb[7].mxu0  ;;  %v950_v32 = vpop.f32.mrb[7].mxu1 }
 0x11f   : > { %v1116_v22 = vadd.f32 %v1084_v15, %v1052_v26  ;;  %v1118_v33 = vadd.f32 %v1092_v16, %v1054_v27 }
 0x120   : > { %v1125_v34 = vmax.f32 %v1115_v30, 0.0  ;;  %v1127_v35 = vmax.f32 %v1117_v19, 0.0 }
 0x121   : > { %v1126_v36 = vmax.f32 %v1116_v22, 0.0  ;;  %v1128_v37 = vmax.f32 %v1118_v33, 0.0 }
 0x122   : > { %v1135_v25 = vmin.f32 %v1125_v34, 6.0  ;;  %v1137_v38 = vmin.f32 %v1127_v35, 6.0 }
 0x123   : > { %v1136_v39 = vmin.f32 %v1126_v36, 6.0  ;;  %v1138_v40 = vmin.f32 %v1128_v37, 6.0 }
 0x125   : > { %v1443_v41 = vpack.c.bf16 %v1136_v39, %v1135_v25  ;;  %v1444_v42 = vpack.c.bf16 %v1138_v40, %v1137_v38 }
 0x127   : > { %v1186_v43 = vrot.slane %v1443_v41, %v1168_v60  ;;  %v1193_v44 = vrot.slane %v1444_v42, %v1168_v60 }
 0x129   : > { %v1194_v45 = vcombine.low %v1186_v43, %v1193_v44 }
 0x12b   : > { %1207 = vst [vmem:[%s1952_s10 + $0x8] sm:$0xff] %v1194_v45 }
 0x13b   : > { %v986_v51 = vpop.f32.mrb[8].mxu0 }
 0x13c   : > { %v1055_v53 = vmul.f32 %v1032_v48, %v986_v51  ;;  %v988_v54 = vpop.f32.mrb[9].mxu0 }
 0x13d   : > { %v1056_v55 = vmul.f32 %v1036_v49, %v988_v54  ;;  %v990_v56 = vpop.f32.mrb[10].mxu0 }
 0x13e   : > { %v1119_v57 = vadd.f32 %v1096_v50, %v1055_v53  ;;  %v991_v58 = vpop.f32.mrb[11].mxu0 }
 0x13f   : > { %v1120_v59 = vadd.f32 %v1100_v52, %v1056_v55 }
 0x140   : > { %v1129_v60 = vmax.f32 %v1119_v57, 0.0 }
 0x141   : > { %v1130_v61 = vmax.f32 %v1120_v59, 0.0 }
 0x142   : > { %v1139_v62 = vmin.f32 %v1129_v60, 6.0 }
 0x143   : > { %v1140_v63 = vmin.f32 %v1130_v61, 6.0 }
 0x145   : > { %v1445_v0 = vpack.c.bf16 %v1140_v63, %v1139_v62 }
 0x147   : > { %1446 = vst.sshfl [vmem:[%s1952_s10 + $0x10] sm:$0x33 pattern:$0x76325410] %v1445_v0 }
 0x148 PF: > { %s14_s17 = sadd.s32 1, %s1618_s17   ;;  %s1985_s15 = smov %s1614_s16 }
 0x149   : > { %p11_p5 = scmp.ge.s32.totalorder %s14_s17, 4   ;;  %s1986_s16 = smov %s1988_s18 }
 0x14b   :  { %13 = sbr.rel (!%p11_p5) target bundleno = 2 (0x2), region = 75 }

// kernel: a_call__.41
= control target key start
LH: loop header
LB: loop body
LE: loop exit
PB: predicated region body
PF: predicated region fallthrough
CT: control target
= control target key end

     0   :  { %v187_v29 = vlaneseq  ;;  %v1275_v35 = vmov 1966171168   ;;  %s1581_s0 = inlined_call_operand.vmem [shape: bf16[1,2,1280], index: 0, kind: input, shape index: {}]   ;;  %s1582_s1 = inlined_call_operand.vmem [shape: bf16[1280,128], index: 1, kind: input, shape index: {}]   ;;  %s1583_s2 = inlined_call_operand.vmem [shape: f32[1,128], index: 2, kind: input, shape index: {}]   ;;  %s1584_s3 = inlined_call_operand.vmem [shape: f32[1,128], index: 3, kind: input, shape index: {}]   ;;  %s1585_s4 = inlined_call_operand.hbm [shape: f32[1,2,128], index: 4, kind: output, shape index: {}]  }
   0x1   :  { %v1170_v0 = vld [vmem:[%s1582_s1 + $0x40] sm:$0xff]   ;;  %v1174_v4 = vld [vmem:[%s1582_s1 + $0x48] sm:$0xff]   ;;  %v1178_v8 = vld [vmem:[%s1582_s1 + $0x50] sm:$0xff]   ;;  %v185_v36 = vunpack.c.l.s4 %v1275_v35 }
   0x2   :  { %v1171_v1 = vld [vmem:[%s1582_s1 + $0xc0] sm:$0xff]   ;;  %1058 = vmatprep.subr.bf16.mxu0 %v1170_v0  ;;  %v1175_v5 = vld [vmem:[%s1582_s1 + $0xc8] sm:$0xff]   ;;  %v1179_v9 = vld [vmem:[%s1582_s1 + $0xd0] sm:$0xff]   ;;  %v188_v33 = vshrl.u32 %v187_v29, 7 }
   0x3   :  { %v1172_v2 = vld [vmem:[%s1582_s1] sm:$0xff]   ;;  %1080 = vmatprep.subr.bf16.mxu1 %v1171_v1  ;;  %v1176_v6 = vld [vmem:[%s1582_s1 + $0x8] sm:$0xff]   ;;  %v1180_v10 = vld [vmem:[%s1582_s1 + $0x10] sm:$0xff]   ;;  %v186_v39 = vunpack.c.0.s8 %v185_v36 }
   0x4   :  { %v1173_v3 = vld [vmem:[%s1582_s1 + $0x80] sm:$0xff]   ;;  %1059 = vmatpush3.bf16.msra.mxu0 %v1172_v2  ;;  %v1177_v7 = vld [vmem:[%s1582_s1 + $0x88] sm:$0xff]   ;;  %v1181_v11 = vld [vmem:[%s1582_s1 + $0x90] sm:$0xff]  }
   0x5   :  { %1081 = vmatpush3.bf16.msra.mxu1 %v1173_v3  ;;  %1060 = vmatprep.subr.bf16.mxu0 %v1174_v4  ;;  %v1182_v12 = vld [vmem:[%s1582_s1 + $0x58] sm:$0xff]   ;;  %v1186_v16 = vld [vmem:[%s1582_s1 + $0x60] sm:$0xff]   ;;  %v1190_v20 = vld [vmem:[%s1582_s1 + $0x68] sm:$0xff]   ;;  %v1407_v41 = vsub.s32 %v186_v39, %v188_v33 }
   0x6   :  { %1082 = vmatprep.subr.bf16.mxu1 %v1175_v5  ;;  %v1183_v13 = vld [vmem:[%s1582_s1 + $0xd8] sm:$0xff]   ;;  %v1187_v17 = vld [vmem:[%s1582_s1 + $0xe0] sm:$0xff]   ;;  %v1191_v21 = vld [vmem:[%s1582_s1 + $0xe8] sm:$0xff]  }
   0x7   :  { %v1184_v14 = vld [vmem:[%s1582_s1 + $0x18] sm:$0xff]   ;;  %v1188_v18 = vld [vmem:[%s1582_s1 + $0x20] sm:$0xff]   ;;  %v1192_v22 = vld [vmem:[%s1582_s1 + $0x28] sm:$0xff]  }
   0x8   :  { %1061 = vmatpush3.bf16.msra.mxu0 %v1176_v6  ;;  %v1185_v15 = vld [vmem:[%s1582_s1 + $0x98] sm:$0xff]   ;;  %v1189_v19 = vld [vmem:[%s1582_s1 + $0xa0] sm:$0xff]   ;;  %v1193_v23 = vld [vmem:[%s1582_s1 + $0xa8] sm:$0xff]  }
   0x9   :  { %1083 = vmatpush3.bf16.msra.mxu1 %v1177_v7  ;;  %1062 = vmatprep.subr.bf16.mxu0 %v1178_v8  ;;  %v1194_v24 = vld [vmem:[%s1582_s1 + $0x70] sm:$0xff]   ;;  %v1198_v28 = vld [vmem:[%s1582_s1 + $0x78] sm:$0xff]   ;;  %v1203_v34 = vld [vmem:[%s1582_s1 + $0x140] sm:$0xff]  }
   0xa   :  { %1084 = vmatprep.subr.bf16.mxu1 %v1179_v9  ;;  %v1195_v25 = vld [vmem:[%s1582_s1 + $0xf0] sm:$0xff]   ;;  %v1199_v30 = vld [vmem:[%s1582_s1 + $0xf8] sm:$0xff]   ;;  %v19_v37 = vld [vmem:[%s1581_s0] sm:$0xff] }
   0xb   :  { %v1196_v26 = vld [vmem:[%s1582_s1 + $0x30] sm:$0xff]   ;;  %v1200_v31 = vld [vmem:[%s1582_s1 + $0x38] sm:$0xff]   ;;  %v183_v38 = vcombine.high %v19_v37, %v19_v37  ;;  %v1205_v40 = vld [vmem:[%s1582_s1 + $0x1c0] sm:$0xff]   ;;  %v190_v42 = vrot.slane %v19_v37, %v1407_v41 }
   0xc   :  { %1063 = vmatpush3.bf16.msra.mxu0 %v1180_v10  ;;  %v1197_v27 = vld [vmem:[%s1582_s1 + $0xb0] sm:$0xff]   ;;  %v1201_v32 = vld [vmem:[%s1582_s1 + $0xb8] sm:$0xff]   ;;  %v1204_v48 = vld [vmem:[%s1582_s1 + $0x100] sm:$0xff]  }
   0xd   :  { %1085 = vmatpush3.bf16.msra.mxu1 %v1181_v11  ;;  %1064 = vmatprep.subr.bf16.mxu0 %v1182_v12  ;;  %v1411_v43 = vrot.slane %v183_v38, %v1407_v41  ;;  %v198_v44 = vcombine.high %v190_v42, %v190_v42  ;;  %v206_v45 = vrot.slane %v190_v42, %v1407_v41  ;;  %v1207_v51 = vld [vmem:[%s1582_s1 + $0x148] sm:$0xff]   ;;  %v1206_v53 = vld [vmem:[%s1582_s1 + $0x180] sm:$0xff]   ;;  %v1211_v57 = vld [vmem:[%s1582_s1 + $0x150] sm:$0xff]  }
   0xe   :  { %1086 = vmatprep.subr.bf16.mxu1 %v1183_v13  ;;  %v1209_v54 = vld [vmem:[%s1582_s1 + $0x1c8] sm:$0xff]   ;;  %v1213_v59 = vld [vmem:[%s1582_s1 + $0x1d0] sm:$0xff]   ;;  %v1215_v61 = vld [vmem:[%s1582_s1 + $0x158] sm:$0xff]  }
   0xf   :  { %v199_v46 = vcombine.high %v1411_v43, %v1411_v43  ;;  %v220_v47 = vrot.slane %v198_v44, %v1407_v41  ;;  %v228_v50 = vcombine.high %v206_v45, %v206_v45  ;;  %v1208_v56 = vld [vmem:[%s1582_s1 + $0x108] sm:$0xff]   ;;  %v1212_v60 = vld [vmem:[%s1582_s1 + $0x110] sm:$0xff]   ;;  %v1217_v63 = vld [vmem:[%s1582_s1 + $0x1d8] sm:$0xff]  }
  0x10   :  { %1065 = vmatpush3.bf16.msra.mxu0 %v1184_v14  ;;  %v1210_v58 = vld [vmem:[%s1582_s1 + $0x188] sm:$0xff]   ;;  %v1214_v62 = vld [vmem:[%s1582_s1 + $0x190] sm:$0xff]   ;;  %v1216_v0 = vld [vmem:[%s1582_s1 + $0x118] sm:$0xff]  }
  0x11   :  { %1087 = vmatpush3.bf16.msra.mxu1 %v1185_v15  ;;  %1066 = vmatprep.subr.bf16.mxu0 %v1186_v16  ;;  %v227_v49 = vrot.slane %v199_v46, %v1407_v41  ;;  %v230_v52 = vcombine.high %v220_v47, %v220_v47  ;;  %v1219_v1 = vld [vmem:[%s1582_s1 + $0x160] sm:$0xff]   ;;  %v1218_v2 = vld [vmem:[%s1582_s1 + $0x198] sm:$0xff]   ;;  %v1223_v5 = vld [vmem:[%s1582_s1 + $0x168] sm:$0xff]  }
  0x12   :  { %1088 = vmatprep.subr.bf16.mxu1 %v1187_v17  ;;  %776 = vmatprep.mubr.bf16.mxu0 %v220_v47  ;;  %v1221_v3 = vld [vmem:[%s1582_s1 + $0x1e0] sm:$0xff]   ;;  %v1225_v7 = vld [vmem:[%s1582_s1 + $0x1e8] sm:$0xff]   ;;  %v1227_v9 = vld [vmem:[%s1582_s1 + $0x170] sm:$0xff]   ;;  %v213_v17 = vrot.slane %v1411_v43, %v1407_v41 }
  0x13   :  { %v231_v55 = vcombine.high %v227_v49, %v227_v49  ;;  %816 = vmatprep.mubr.bf16.mxu1 %v230_v52  ;;  %v1220_v4 = vld [vmem:[%s1582_s1 + $0x120] sm:$0xff]   ;;  %v1224_v8 = vld [vmem:[%s1582_s1 + $0x128] sm:$0xff]   ;;  %v1229_v11 = vld [vmem:[%s1582_s1 + $0x1f0] sm:$0xff]  }
  0x14   :  { %1067 = vmatpush3.bf16.msra.mxu0 %v1188_v18  ;;  %v1222_v6 = vld [vmem:[%s1582_s1 + $0x1a0] sm:$0xff]   ;;  %v1226_v10 = vld [vmem:[%s1582_s1 + $0x1a8] sm:$0xff]   ;;  %v1228_v12 = vld [vmem:[%s1582_s1 + $0x130] sm:$0xff]  }
  0x15   :  { %1089 = vmatpush3.bf16.msra.mxu1 %v1189_v19  ;;  %1068 = vmatprep.subr.bf16.mxu0 %v1190_v20  ;;  %v1231_v13 = vld [vmem:[%s1582_s1 + $0x178] sm:$0xff]   ;;  %v1230_v14 = vld [vmem:[%s1582_s1 + $0x1b0] sm:$0xff]   ;;  %v1235_v18 = vld [vmem:[%s1582_s1 + $0x240] sm:$0xff]  }
  0x16   :  { %1090 = vmatprep.subr.bf16.mxu1 %v1191_v21  ;;  %v1233_v15 = vld [vmem:[%s1582_s1 + $0x1f8] sm:$0xff]   ;;  %v1236_v20 = vld [vmem:[%s1582_s1 + $0x200] sm:$0xff]   ;;  %v229_v21 = vcombine.high %v213_v17, %v213_v17 }
  0x17   :  { %v1232_v16 = vld [vmem:[%s1582_s1 + $0x138] sm:$0xff]  }
  0x18   :  { %1069 = vmatpush3.bf16.msra.mxu0 %v1192_v22  ;;  %v1234_v19 = vld [vmem:[%s1582_s1 + $0x1b8] sm:$0xff]   ;;  %v1237_v22 = vld [vmem:[%s1582_s1 + $0x248] sm:$0xff]  }
  0x19   :  { %1091 = vmatpush3.bf16.msra.mxu1 %v1193_v23  ;;  %1070 = vmatprep.subr.bf16.mxu0 %v1194_v24  ;;  %v1238_v23 = vld [vmem:[%s1582_s1 + $0x208] sm:$0xff]   ;;  %v1239_v24 = vld [vmem:[%s1582_s1 + $0x250] sm:$0xff]  }
  0x1a   :  { %1092 = vmatprep.subr.bf16.mxu1 %v1195_v25  ;;  %v975_v25 = vld.sshfl [vmem:[%s1581_s0 + $0x8] sm:$0x11 pattern:$0x75316420] }
  0x1c   :  { %1071 = vmatpush3.bf16.msra.mxu0 %v1196_v26  ;;  %v239_v26 = vcombine.high %v975_v25, %v975_v25 }
  0x1d   :  { %1093 = vmatpush3.bf16.msra.mxu1 %v1197_v27  ;;  %1072 = vmatprep.subr.bf16.mxu0 %v1198_v28 }
  0x1e   :  { %1094 = vmatprep.subr.bf16.mxu1 %v1199_v30 }
  0x20   :  { %1073 = vmatpush3.bf16.msra.mxu0 %v1200_v31 }
  0x21   :  { %1095 = vmatpush3.bf16.msra.mxu1 %v1201_v32  ;;  %1102 = vmatprep.subr.bf16.mxu0 %v1203_v34 }
  0x22   :  { %1124 = vmatprep.subr.bf16.mxu1 %v1205_v40 }
  0x23   :  { %777 = vmatmul.mubr.bf16.vlgmr.msra.gmra.mrb[0].mxu0 %v206_v45 }
  0x24   :  { %1103 = vmatpush3.bf16.msra.mxu0 %v1204_v48  ;;  %817 = vmatmul.mubr.bf16.vlgmr.msra.gmra.mrb[0].mxu1 %v228_v50 }
  0x25   :  { %1104 = vmatprep.subr.bf16.mxu0 %v1207_v51  ;;  %1125 = vmatpush3.bf16.msra.mxu1 %v1206_v53 }
  0x26   :  { %856 = vmatprep.mubr.bf16.mxu0 %v227_v49  ;;  %1126 = vmatprep.subr.bf16.mxu1 %v1209_v54 }
  0x27   :  { %896 = vmatprep.mubr.bf16.mxu1 %v231_v55 }
  0x28   :  { %1105 = vmatpush3.bf16.msra.mxu0 %v1208_v56 }
  0x29   :  { %1106 = vmatprep.subr.bf16.mxu0 %v1211_v57  ;;  %1127 = vmatpush3.bf16.msra.mxu1 %v1210_v58 }
  0x2a   :  { %1128 = vmatprep.subr.bf16.mxu1 %v1213_v59 }
  0x2c   :  { %1107 = vmatpush3.bf16.msra.mxu0 %v1212_v60 }
  0x2d   :  { %1108 = vmatprep.subr.bf16.mxu0 %v1215_v61  ;;  %1129 = vmatpush3.bf16.msra.mxu1 %v1214_v62 }
  0x2e   :  { %1130 = vmatprep.subr.bf16.mxu1 %v1217_v63 }
  0x30   :  { %1109 = vmatpush3.bf16.msra.mxu0 %v1216_v0 }
  0x31   :  { %1110 = vmatprep.subr.bf16.mxu0 %v1219_v1  ;;  %1131 = vmatpush3.bf16.msra.mxu1 %v1218_v2 }
  0x32   :  { %1132 = vmatprep.subr.bf16.mxu1 %v1221_v3 }
  0x34   :  { %1111 = vmatpush3.bf16.msra.mxu0 %v1220_v4 }
  0x35   :  { %1112 = vmatprep.subr.bf16.mxu0 %v1223_v5  ;;  %1133 = vmatpush3.bf16.msra.mxu1 %v1222_v6 }
  0x36   :  { %1134 = vmatprep.subr.bf16.mxu1 %v1225_v7 }
  0x38   :  { %1113 = vmatpush3.bf16.msra.mxu0 %v1224_v8 }
  0x39   :  { %1114 = vmatprep.subr.bf16.mxu0 %v1227_v9  ;;  %1135 = vmatpush3.bf16.msra.mxu1 %v1226_v10 }
  0x3a   :  { %1136 = vmatprep.subr.bf16.mxu1 %v1229_v11 }
  0x3c   :  { %1115 = vmatpush3.bf16.msra.mxu0 %v1228_v12 }
  0x3d   :  { %1116 = vmatprep.subr.bf16.mxu0 %v1231_v13  ;;  %1137 = vmatpush3.bf16.msra.mxu1 %v1230_v14 }
  0x3e   :  { %1138 = vmatprep.subr.bf16.mxu1 %v1233_v15 }
  0x40   :  { %1117 = vmatpush3.bf16.msra.mxu0 %v1232_v16 }
  0x41   :  { %1146 = vmatprep.subr.bf16.mxu0 %v1235_v18  ;;  %1139 = vmatpush3.bf16.msra.mxu1 %v1234_v19 }
  0x43   :  { %857 = vmatmul.mubr.bf16.vlgmr.msra.gmra.mrb[4].mxu0 %v213_v17 }
  0x44   :  { %1147 = vmatpush3.bf16.msra.mxu0 %v1236_v20  ;;  %897 = vmatmul.mubr.bf16.vlgmr.msra.gmra.mrb[4].mxu1 %v229_v21 }
  0x45   :  { %1148 = vmatprep.subr.bf16.mxu0 %v1237_v22 }
  0x46   :  { %9 = vsyncpa [#allocation3], 0  ;;  %v1240_v27 = vld [vmem:[%s1582_s1 + $0x210] sm:$0xff]   ;;  %v253_v28 = vrot.slane %v239_v26, %v1407_v41  ;;  %v1241_v29 = vld [vmem:[%s1582_s1 + $0x258] sm:$0xff]   ;;  %v246_v39 = vrot.slane %v975_v25, %v1407_v41  ;;  %s1276_s25 = smov [#allocation2]  }
  0x47   :  { %v1242_v30 = vld [vmem:[%s1582_s1 + $0x218] sm:$0xff]   ;;  %v1243_v31 = vld [vmem:[%s1582_s1 + $0x260] sm:$0xff]   ;;  %v1245_v33 = vld [vmem:[%s1582_s1 + $0x268] sm:$0xff]   ;;  %s967_s26 = sshll.u32 %s1276_s25, 4  ;;  %s968_s26 = int_to_ptr.vmem [resolvable:$true] %s967_s26 }
  0x48   :  { %1149 = vmatpush3.bf16.msra.mxu0 %v1238_v23  ;;  %936 = vmatprep.mubr.bf16.mxu0 %v253_v28  ;;  %v1244_v32 = vld [vmem:[%s1582_s1 + $0x220] sm:$0xff]   ;;  %v1246_v34 = vld [vmem:[%s1582_s1 + $0x228] sm:$0xff]   ;;  %v1247_v35 = vld [vmem:[%s1582_s1 + $0x270] sm:$0xff]   ;;  %s1251_s27 = scalar_lea.vmem %s968_s26, 32  ;;  %p1256_p1 = scmp.lt.s32.totalorder %s968_s26, %s968_s26 }
  0x49   :  { %1150 = vmatprep.subr.bf16.mxu0 %v1239_v24  ;;  %v1248_v36 = vld [vmem:[%s1582_s1 + $0x230] sm:$0xff]   ;;  %v1249_v37 = vld [vmem:[%s1582_s1 + $0x278] sm:$0xff]   ;;  %v1056_v4 = vld [vmem:[%s1583_s2] ss:$0 sm:$0xff]  ;;  %p1252_p0 = scmp.ne.s32.totalorder %s968_s26, %s1251_s27  ;;  %p1257_p2 = scmp.lt.s32.totalorder %s1251_s27, %s1251_s27 }
  0x4a   :  { %v1250_v38 = vld [vmem:[%s1582_s1 + $0x238] sm:$0xff]   ;;  %v1057_v6 = vld [vmem:[%s1584_s3] ss:$0 sm:$0xff] }
  0x4b   :  { %p1258_p3 = por %p1257_p2, %p1256_p1 }
  0x4c   :  { %1151 = vmatpush3.bf16.msra.mxu0 %v1240_v27 }
  0x4d   :  { %1152 = vmatprep.subr.bf16.mxu0 %v1241_v29  ;;  %p1259_p4 = pnand %p1258_p3, %p1252_p0 }
  0x50   :  { %1153 = vmatpush3.bf16.msra.mxu0 %v1242_v30 }
  0x51   :  { %1154 = vmatprep.subr.bf16.mxu0 %v1243_v31 }
  0x54   :  { %1155 = vmatpush3.bf16.msra.mxu0 %v1244_v32 }
  0x55   :  { %1156 = vmatprep.subr.bf16.mxu0 %v1245_v33 }
  0x58   :  { %1157 = vmatpush3.bf16.msra.mxu0 %v1246_v34 }
  0x59   :  { %1158 = vmatprep.subr.bf16.mxu0 %v1247_v35 }
  0x5c   :  { %1159 = vmatpush3.bf16.msra.mxu0 %v1248_v36 }
  0x5d   :  { %1160 = vmatprep.subr.bf16.mxu0 %v1249_v37 }
  0x60   :  { %1161 = vmatpush3.bf16.msra.mxu0 %v1250_v38 }
  0x63   :  { %937 = vmatmul.mubr.bf16.vlgmr.msra.gmra.mrb[8].mxu0 %v246_v39 }
  0xf6   :  { %v1074_v40 = vpop.f32.mrb[0].mxu0 }
  0xf7   :  { %v1075_v42 = vpop.f32.mrb[1].mxu0  ;;  %v1096_v43 = vpop.f32.mrb[0].mxu1 }
  0xf8   :  { %v1076_v44 = vadd.f32 %v1075_v42, %v1074_v40  ;;  %v1077_v45 = vpop.f32.mrb[2].mxu0  ;;  %v1097_v46 = vpop.f32.mrb[1].mxu1 }
  0xf9   :  { %v1078_v47 = vpop.f32.mrb[3].mxu0  ;;  %v1098_v48 = vadd.f32 %v1097_v46, %v1096_v43  ;;  %v1099_v49 = vpop.f32.mrb[2].mxu1 }
  0xfa   :  { %v1100_v50 = vpop.f32.mrb[3].mxu1 }
  0xfb   :  { %v819_v51 = vadd.f32 %v1098_v48, %v1076_v44 }
 0x116   :  { %v1118_v52 = vpop.f32.mrb[4].mxu0 }
 0x117   :  { %v1119_v53 = vpop.f32.mrb[5].mxu0  ;;  %v1140_v56 = vpop.f32.mrb[4].mxu1 }
 0x118   :  { %v1120_v54 = vadd.f32 %v1119_v53, %v1118_v52  ;;  %v1121_v55 = vpop.f32.mrb[6].mxu0  ;;  %v1141_v41 = vpop.f32.mrb[5].mxu1 }
 0x119   :  { %v1122_v57 = vpop.f32.mrb[7].mxu0  ;;  %v1142_v59 = vadd.f32 %v1141_v41, %v1140_v56  ;;  %v1143_v60 = vpop.f32.mrb[6].mxu1 }
 0x11a   :  { %v859_v58 = vadd.f32 %v1120_v54, %v819_v51  ;;  %v1144_v61 = vpop.f32.mrb[7].mxu1 }
 0x11c   :  { %v899_v62 = vadd.f32 %v1142_v59, %v859_v58 }
 0x136   :  { %v1162_v63 = vpop.f32.mrb[8].mxu0 }
 0x137   :  { %v1163_v0 = vpop.f32.mrb[9].mxu0 }
 0x138   :  { %v1164_v1 = vadd.f32 %v1163_v0, %v1162_v63  ;;  %v1165_v2 = vpop.f32.mrb[10].mxu0 }
 0x139   :  { %v1166_v3 = vpop.f32.mrb[11].mxu0 }
 0x13a   :  { %v939_v5 = vadd.f32 %v1164_v1, %v899_v62 }
 0x13c   :  { %v951_v7 = vmul.f32 %v1056_v4, %v939_v5 }
 0x13e   :  { %v959_v8 = vadd.f32 %v1057_v6, %v951_v7 }
 0x140   :  { %960 = vst [vmem:[#allocation2] sm:$0x3] %v959_v8 }
 0x141   :  { %1262 = shalt.err (!%p1259_p4)
}
 0x142   :  { %s1263_s29 = scalar_lea.hbm %s1585_s4, 32 }
 0x143   :  { %p1264_p5 = scmp.ne.s32.totalorder %s1585_s4, %s1263_s29  ;;  %p1267_p6 = scmp.lt.u32.totalorder %s1263_s29, %s1585_s4 }
 0x145   :  { %p1269_p7 = pnand %p1267_p6, %p1264_p5 }
 0x147   :  { %1272 = shalt.err (!%p1269_p7)
}
 0x148   :  { %970 = dma.vmem_to_hbm [thread:$0]  %s968_s26, 32, %s1585_s4, [#allocation3]  }
 0x149   :  { %1273 = dma.done.wait [#allocation3], 32  }
 0x14a   :  { %1274 = vsyncadd [#allocation3], 4294967264 }
 0x14b   :  { %974 = vsyncpa [#allocation3], 1 }

</bundles_post_ra>
